<compile_context>
chip_gen: v6e
topology: v6e:2x2x1
jax: 0.10.0
libtpu: 0.0.40
codegen_flags: <defaults>
</compile_context>

<pallas_src>
import jax
import jax.numpy as jnp
from jax.experimental import pallas as pl
from jax.experimental.pallas import tpu as pltpu


def _round_up(n, m):
    return ((n + m - 1) // m) * m


# ---------------------------------------------------------------------------
# Fused kernel: conv1..conv4 + linear1 + linear2 for TB batch samples
# ---------------------------------------------------------------------------
def _deep_cnn_kernel(xc_ref, w1, b1, w2, b2, w3, b3, w4, b4,
                     fw1, fb1, fw2, fb2, o_ref):
    f32, bf16 = jnp.float32, jnp.bfloat16
    TB = o_ref.shape[0]
    L1 = xc_ref.shape[0] // TB          # 31 conv1 output positions (even block, then odd block)
    n_even = (L1 + 1) // 2              # 16 even positions

    # ---- conv1: wrapper already did the stride-3 im2col -> ONE matmul, M = TB*31
    x = xc_ref[...].astype(bf16)                                          # (TB*31, K1*C_in)
    h1 = jnp.dot(x, w1[...], preferred_element_type=f32) + b1[...]
    h1 = jnp.maximum(h1, 0.0)                                             # (TB*31, 64) f32

    # ---- conv2: K=7, stride 2.  conv1 positions were emitted even-first, so every
    #      stride-2 tap is a CONTIGUOUS per-sample slice (no strided reads, no sel matmuls).
    K2, C1, C2 = w2.shape
    L2 = (L1 - K2) // 2 + 1                                               # 13
    h1_3d = h1.astype(bf16).reshape(TB, L1, C1)
    acc2 = jnp.zeros((TB * L2, C2), f32)
    for k in range(K2):                                                   # static unroll
        off = (k // 2) + n_even * (k % 2)   # even taps -> rows [0,16), odd taps -> rows [16,31)
        tap = h1_3d[:, off:off + L2, :].reshape(TB * L2, C1)
        acc2 = acc2 + jnp.dot(tap, w2[k], preferred_element_type=f32)
    h2 = jnp.maximum(acc2 + b2[...], 0.0)                                 # (TB*13, 128)

    # ---- conv3 / conv4: stride 1 -> taps are plain contiguous slices, M = TB*L_out
    def stride1_conv(h_in, L_in, w_ref, b_ref):
        K, Cin, Cout = w_ref.shape
        L_out = L_in - K + 1
        h_3d = h_in.astype(bf16).reshape(TB, L_in, Cin)
        acc = jnp.zeros((TB * L_out, Cout), f32)
        for k in range(K):                                                # static unroll
            tap = h_3d[:, k:k + L_out, :].reshape(TB * L_out, Cin)
            acc = acc + jnp.dot(tap, w_ref[k], preferred_element_type=f32)
        return jnp.maximum(acc + b_ref[...], 0.0), L_out

    h3, L3 = stride1_conv(h2, L2, w3, b3)                                 # (TB*9, 256)
    h4, L4 = stride1_conv(h3, L3, w4, b4)                                 # (TB*7, 256)

    # ---- linear1: one matmul over the per-sample flatten (contraction 1792).
    #      torch's channel-major .view(-1, 256*7) is folded into fw1's row order.
    C4 = w4.shape[-1]
    hf = h4.reshape(TB, L4 * C4).astype(bf16)                             # (TB, 1792), j = l*256 + c
    h5 = jnp.dot(hf, fw1[...], preferred_element_type=f32) + fb1[...]
    h5 = jnp.maximum(h5, 0.0)                                             # (TB, 128)

    # ---- linear2 (no activation)
    logits = jnp.dot(h5.astype(bf16), fw2[...], preferred_element_type=f32) + fb2[...]
    o_ref[...] = logits.astype(o_ref.dtype)                               # (TB, out_dim)


# ---------------------------------------------------------------------------
# Host wrapper
# ---------------------------------------------------------------------------
def deep_cnn_forward(kp, x, *, tb=16):
    """x: (B, C_in, L) float32 in PyTorch NCL layout.  L must be 100."""
    B, C_in, L = x.shape
    K1, S1 = 10, 3
    L1 = (L - K1) // S1 + 1
    assert L1 == 31 and kp["fw1"].shape[0] == 7 * kp["w4"].shape[-1], \
        "DeepCNN requires input length 100 so linear1 sees 256*7 features"
    out_dim = kp["fw2"].shape[-1]

    # Batch tiling: TB samples per grid step (multiple of 8 for sublane alignment).
    # v5e: TB~16 already fills the 128-row MXU for conv3/4; v6e/v7x: TB up to 32 is
    # fine (VMEM is not the constraint); on v7x keep grid length >= 2 for both TCs.
    TB = max(8, _round_up(min(tb, _round_up(B, 8)), 8))
    Bp = _round_up(B, TB)
    if Bp != B:
        x = jnp.pad(x, ((0, Bp - B), (0, 0), (0, 0)))

    # conv1 im2col in the wrapper (tiny: Bp x 31 x 40).  Output positions are emitted
    # even-first / odd-second so conv2's stride-2 taps become contiguous slices in-kernel.
    pos = jnp.concatenate([jnp.arange(0, L1, 2), jnp.arange(1, L1, 2)])   # (31,)
    gather_idx = pos[:, None] * S1 + jnp.arange(K1)[None, :]              # (31, 10)
    x_nlc = jnp.transpose(x, (0, 2, 1))                                   # (Bp, L, C_in)
    x_cols = x_nlc[:, gather_idx, :].reshape(Bp * L1, K1 * C_in)          # (Bp*31, 40)

    order = ("w1", "b1", "w2", "b2", "w3", "b3", "w4", "b4", "fw1", "fb1", "fw2", "fb2")
    weights = [kp[n] for n in order]

    macs_per_sample = (31 * 40 * 64 + 13 * 7 * 64 * 128 + 9 * 5 * 128 * 256
                       + 7 * 3 * 256 * 256 + 1792 * 128 + 128 * out_dim)
    bytes_accessed = (x_cols.size * 4
                      + sum(int(w.size) * w.dtype.itemsize for w in weights)
                      + Bp * out_dim * 4)

    def resident(a):
        nd = a.ndim
        def imap(b):
            return (0,) * nd          # constant block index: weight stays VMEM resident
        return pl.BlockSpec(a.shape, imap)

    out = pl.pallas_call(
        _deep_cnn_kernel,
        out_shape=jax.ShapeDtypeStruct((Bp, out_dim), jnp.float32),
        grid=(Bp // TB,),
        in_specs=[pl.BlockSpec((TB * L1, K1 * C_in), lambda b: (b, 0))]
                 + [resident(w) for w in weights],
        out_specs=pl.BlockSpec((TB, out_dim), lambda b: (b, 0)),
        compiler_params=pltpu.CompilerParams(
            dimension_semantics=("parallel",),            # v7x: both TCs split the batch
            vmem_limit_bytes=32 * 1024 * 1024),
        cost_estimate=pl.CostEstimate(flops=2 * Bp * macs_per_sample,
                                      transcendentals=0,
                                      bytes_accessed=int(bytes_accessed)),
    )(x_cols, *weights)
    return out[:B]


# ---------------------------------------------------------------------------
# Parameter init (PyTorch layout) and one-time kernel-layout preparation
# ---------------------------------------------------------------------------
def init_params(key, input_dim, output_dim):
    keys = jax.random.split(key, 12)

    def u(k, shape, fan_in):
        bound = 1.0 / jnp.sqrt(float(fan_in))
        return jax.random.uniform(k, shape, jnp.float32, -bound, bound)

    return {
        "w1": u(keys[0], (64, input_dim, 10), input_dim * 10), "b1": u(keys[1], (64,), input_dim * 10),
        "w2": u(keys[2], (128, 64, 7), 64 * 7),                "b2": u(keys[3], (128,), 64 * 7),
        "w3": u(keys[4], (256, 128, 5), 128 * 5),              "b3": u(keys[5], (256,), 128 * 5),
        "w4": u(keys[6], (256, 256, 3), 256 * 3),              "b4": u(keys[7], (256,), 256 * 3),
        "lw1": u(keys[8], (128, 256 * 7), 256 * 7),            "lb1": u(keys[9], (128,), 256 * 7),
        "lw2": u(keys[10], (output_dim, 128), 128),            "lb2": u(keys[11], (output_dim,), 128),
    }


def prepare_params(p):
    """One-time re-layout to kernel form (all bf16 except biases):
       conv1 -> im2col weight (K*C_in, 64);
       conv2/3/4 -> per-tap (K, C_in, C_out);
       linear1 -> (7*256, 128) with torch's channel-major flatten folded into row order;
       linear2 -> (128, out).  Biases stay f32 as (1, C)."""
    def conv_taps(w):                  # (C_out, C_in, K) -> (K, C_in, C_out)
        return jnp.transpose(w, (2, 1, 0)).astype(jnp.bfloat16)

    co1, ci1, k1 = p["w1"].shape
    w1_cols = jnp.transpose(p["w1"], (2, 1, 0)).reshape(k1 * ci1, co1).astype(jnp.bfloat16)

    c_hid, feat = p["lw1"].shape
    c4 = p["w4"].shape[0]
    l4 = feat // c4
    # kernel flatten index is l*256 + c, torch's is c*7 + l -> permute rows accordingly
    fw1 = (jnp.transpose(p["lw1"].reshape(c_hid, c4, l4), (2, 1, 0))   # (l, c, o)
             .reshape(l4 * c4, c_hid).astype(jnp.bfloat16))
    fw2 = p["lw2"].T.astype(jnp.bfloat16)

    return {
        "w1": w1_cols,            "b1": p["b1"].reshape(1, -1),
        "w2": conv_taps(p["w2"]), "b2": p["b2"].reshape(1, -1),
        "w3": conv_taps(p["w3"]), "b3": p["b3"].reshape(1, -1),
        "w4": conv_taps(p["w4"]), "b4": p["b4"].reshape(1, -1),
        "fw1": fw1,               "fb1": p["lb1"].reshape(1, -1),
        "fw2": fw2,               "fb2": p["lb2"].reshape(1, -1),
    }


# ---------------------------------------------------------------------------
# Pure-JAX reference (PyTorch semantics).  mimic_bf16=True applies the same
# rounding points as the kernel (weights + every layer input -> bf16, f32 accum),
# isolating wiring/layout correctness from bf16 quantization noise.
# ---------------------------------------------------------------------------
def reference_forward(p, x, *, mimic_bf16=False):
    cast = ((lambda a: a.astype(jnp.bfloat16).astype(jnp.float32))
            if mimic_bf16 else (lambda a: a))

    def conv_relu(h, w, b, stride):
        y = jax.lax.conv_general_dilated(
            cast(h), cast(w), window_strides=(stride,), padding="VALID",
            dimension_numbers=("NCH", "OIH", "NCH"),
            precision=jax.lax.Precision.HIGHEST)
        return jnp.maximum(y + b[None, :, None], 0.0)

    h = conv_relu(x, p["w1"], p["b1"], 3)
    h = conv_relu(h, p["w2"], p["b2"], 2)
    h = conv_relu(h, p["w3"], p["b3"], 1)
    h = conv_relu(h, p["w4"], p["b4"], 1)
    h = h.reshape(h.shape[0], -1)                 # channel-major flatten, like torch .view
    h = jnp.maximum(cast(h) @ cast(p["lw1"]).T + p["lb1"], 0.0)
    return cast(h) @ cast(p["lw2"]).T + p["lb2"]


if __name__ == "__main__":
    key = jax.random.PRNGKey(0)
    k_param, k_x = jax.random.split(key)
    input_dim, output_dim = 4, 8
    B, L = 2, 100   # L=100 -> conv lengths 31 -> 13 -> 9 -> 7 (matches the 256*7 flatten)

    params = init_params(k_param, input_dim, output_dim)
    kparams = prepare_params(params)
    x = jax.random.normal(k_x, (B, input_dim, L), jnp.float32)

    fwd = jax.jit(deep_cnn_forward)
    out = jax.block_until_ready(fwd(kparams, x))
    assert out.shape == (B, output_dim)

    # Compare against the bf16-mimicking reference (same rounding points as the kernel);
    # remaining difference is only f32 summation-order noise, so the tolerance is tight.
    ref = reference_forward(params, x, mimic_bf16=True)
    max_err = float(jnp.max(jnp.abs(out - ref)))
    assert max_err < 2e-3, f"kernel mismatch vs bf16-mimic reference: max abs err {max_err}"

    print("KERNEL_OK")
</pallas_src>

<mosaic_0001>
module attributes {stable_mosaic.version = 11 : i64} {
  func.func @_deep_cnn_kernel(%arg0: i32, %arg1: memref<248x40xf32, #tpu.memory_space<vmem>>, %arg2: memref<40x64xbf16, #tpu.memory_space<vmem>>, %arg3: memref<1x64xf32, #tpu.memory_space<vmem>>, %arg4: memref<7x64x128xbf16, #tpu.memory_space<vmem>>, %arg5: memref<1x128xf32, #tpu.memory_space<vmem>>, %arg6: memref<5x128x256xbf16, #tpu.memory_space<vmem>>, %arg7: memref<1x256xf32, #tpu.memory_space<vmem>>, %arg8: memref<3x256x256xbf16, #tpu.memory_space<vmem>>, %arg9: memref<1x256xf32, #tpu.memory_space<vmem>>, %arg10: memref<1792x128xbf16, #tpu.memory_space<vmem>>, %arg11: memref<1x128xf32, #tpu.memory_space<vmem>>, %arg12: memref<128x8xbf16, #tpu.memory_space<vmem>>, %arg13: memref<1x8xf32, #tpu.memory_space<vmem>>, %arg14: memref<8x8xf32, #tpu.memory_space<vmem>>) attributes {dimension_semantics = [#tpu.dimension_semantics<parallel>], iteration_bounds = array<i64: 1>, scalar_prefetch = 0 : i64, scratch_operands = 0 : i64, tpu.core_type = #tpu.core_type<tc>, window_params = [{transform_indices = @transform_0, window_bounds = array<i64: 248, 40>}, {pipeline_mode = #tpu.pipeline_mode<synchronous>, transform_indices = @transform_1, window_bounds = array<i64: 40, 64>}, {pipeline_mode = #tpu.pipeline_mode<synchronous>, transform_indices = @transform_2, window_bounds = array<i64: 1, 64>}, {pipeline_mode = #tpu.pipeline_mode<synchronous>, transform_indices = @transform_3, window_bounds = array<i64: 7, 64, 128>}, {pipeline_mode = #tpu.pipeline_mode<synchronous>, transform_indices = @transform_4, window_bounds = array<i64: 1, 128>}, {pipeline_mode = #tpu.pipeline_mode<synchronous>, transform_indices = @transform_5, window_bounds = array<i64: 5, 128, 256>}, {pipeline_mode = #tpu.pipeline_mode<synchronous>, transform_indices = @transform_6, window_bounds = array<i64: 1, 256>}, {pipeline_mode = #tpu.pipeline_mode<synchronous>, transform_indices = @transform_7, window_bounds = array<i64: 3, 256, 256>}, {pipeline_mode = #tpu.pipeline_mode<synchronous>, transform_indices = @transform_8, window_bounds = array<i64: 1, 256>}, {pipeline_mode = #tpu.pipeline_mode<synchronous>, transform_indices = @transform_9, window_bounds = array<i64: 1792, 128>}, {pipeline_mode = #tpu.pipeline_mode<synchronous>, transform_indices = @transform_10, window_bounds = array<i64: 1, 128>}, {pipeline_mode = #tpu.pipeline_mode<synchronous>, transform_indices = @transform_11, window_bounds = array<i64: 128, 8>}, {pipeline_mode = #tpu.pipeline_mode<synchronous>, transform_indices = @transform_12, window_bounds = array<i64: 1, 8>}, {transform_indices = @transform_13, window_bounds = array<i64: 8, 8>}]} {
    %c0 = arith.constant 0 : index
    %c0_0 = arith.constant 0 : index
    %0 = vector.load %arg1[%c0, %c0_0] : memref<248x40xf32, #tpu.memory_space<vmem>>, vector<248x40xf32>
    %1 = arith.truncf %0 : vector<248x40xf32> to vector<248x40xbf16>
    %c0_1 = arith.constant 0 : index
    %c0_2 = arith.constant 0 : index
    %2 = vector.load %arg2[%c0_1, %c0_2] : memref<40x64xbf16, #tpu.memory_space<vmem>>, vector<40x64xbf16>
    %cst = arith.constant dense<0.000000e+00> : vector<248x64xf32>
    %3 = tpu.matmul %1, %2, %cst {dimension_numbers = #tpu.dot_dimension_numbers<[1], [0], [0], [1], [0, 0, 1, 1], [], []>} : vector<248x40xbf16>, vector<40x64xbf16>, vector<248x64xf32> -> vector<248x64xf32>
    %c0_3 = arith.constant 0 : index
    %c0_4 = arith.constant 0 : index
    %4 = vector.load %arg3[%c0_3, %c0_4] : memref<1x64xf32, #tpu.memory_space<vmem>>, vector<1x64xf32>
    %5 = vector.broadcast %4 : vector<1x64xf32> to vector<248x64xf32>
    %6 = arith.addf %3, %5 : vector<248x64xf32>
    %cst_5 = arith.constant 0.000000e+00 : f32
    %7 = vector.broadcast %cst_5 : f32 to vector<248x64xf32>
    %8 = arith.maximumf %6, %7 : vector<248x64xf32>
    %9 = arith.truncf %8 : vector<248x64xf32> to vector<248x64xbf16>
    %10 = vector.shape_cast %9 : vector<248x64xbf16> to vector<8x31x64xbf16>
    %cst_6 = arith.constant 0.000000e+00 : f32
    %11 = vector.broadcast %cst_6 : f32 to vector<104x128xf32>
    %12 = vector.extract_strided_slice %10 {offsets = [0, 0, 0], sizes = [8, 13, 64], strides = [1, 1, 1]} : vector<8x31x64xbf16> to vector<8x13x64xbf16>
    %13 = vector.shape_cast %12 : vector<8x13x64xbf16> to vector<104x64xbf16>
    %c0_7 = arith.constant 0 : index
    %c0_8 = arith.constant 0 : index
    %c0_9 = arith.constant 0 : index
    %14 = vector.load %arg4[%c0_7, %c0_8, %c0_9] : memref<7x64x128xbf16, #tpu.memory_space<vmem>>, vector<1x64x128xbf16>
    %15 = vector.shape_cast %14 : vector<1x64x128xbf16> to vector<64x128xbf16>
    %cst_10 = arith.constant dense<0.000000e+00> : vector<104x128xf32>
    %16 = tpu.matmul %13, %15, %cst_10 {dimension_numbers = #tpu.dot_dimension_numbers<[1], [0], [0], [1], [0, 0, 1, 1], [], []>} : vector<104x64xbf16>, vector<64x128xbf16>, vector<104x128xf32> -> vector<104x128xf32>
    %17 = arith.addf %11, %16 : vector<104x128xf32>
    %18 = vector.extract_strided_slice %10 {offsets = [0, 16, 0], sizes = [8, 13, 64], strides = [1, 1, 1]} : vector<8x31x64xbf16> to vector<8x13x64xbf16>
    %19 = vector.shape_cast %18 : vector<8x13x64xbf16> to vector<104x64xbf16>
    %c1 = arith.constant 1 : index
    %c0_11 = arith.constant 0 : index
    %c0_12 = arith.constant 0 : index
    %20 = vector.load %arg4[%c1, %c0_11, %c0_12] : memref<7x64x128xbf16, #tpu.memory_space<vmem>>, vector<1x64x128xbf16>
    %21 = vector.shape_cast %20 : vector<1x64x128xbf16> to vector<64x128xbf16>
    %cst_13 = arith.constant dense<0.000000e+00> : vector<104x128xf32>
    %22 = tpu.matmul %19, %21, %cst_13 {dimension_numbers = #tpu.dot_dimension_numbers<[1], [0], [0], [1], [0, 0, 1, 1], [], []>} : vector<104x64xbf16>, vector<64x128xbf16>, vector<104x128xf32> -> vector<104x128xf32>
    %23 = arith.addf %17, %22 : vector<104x128xf32>
    %24 = vector.extract_strided_slice %10 {offsets = [0, 1, 0], sizes = [8, 13, 64], strides = [1, 1, 1]} : vector<8x31x64xbf16> to vector<8x13x64xbf16>
    %25 = vector.shape_cast %24 : vector<8x13x64xbf16> to vector<104x64xbf16>
    %c2 = arith.constant 2 : index
    %c0_14 = arith.constant 0 : index
    %c0_15 = arith.constant 0 : index
    %26 = vector.load %arg4[%c2, %c0_14, %c0_15] : memref<7x64x128xbf16, #tpu.memory_space<vmem>>, vector<1x64x128xbf16>
    %27 = vector.shape_cast %26 : vector<1x64x128xbf16> to vector<64x128xbf16>
    %cst_16 = arith.constant dense<0.000000e+00> : vector<104x128xf32>
    %28 = tpu.matmul %25, %27, %cst_16 {dimension_numbers = #tpu.dot_dimension_numbers<[1], [0], [0], [1], [0, 0, 1, 1], [], []>} : vector<104x64xbf16>, vector<64x128xbf16>, vector<104x128xf32> -> vector<104x128xf32>
    %29 = arith.addf %23, %28 : vector<104x128xf32>
    %30 = vector.extract_strided_slice %10 {offsets = [0, 17, 0], sizes = [8, 13, 64], strides = [1, 1, 1]} : vector<8x31x64xbf16> to vector<8x13x64xbf16>
    %31 = vector.shape_cast %30 : vector<8x13x64xbf16> to vector<104x64xbf16>
    %c3 = arith.constant 3 : index
    %c0_17 = arith.constant 0 : index
    %c0_18 = arith.constant 0 : index
    %32 = vector.load %arg4[%c3, %c0_17, %c0_18] : memref<7x64x128xbf16, #tpu.memory_space<vmem>>, vector<1x64x128xbf16>
    %33 = vector.shape_cast %32 : vector<1x64x128xbf16> to vector<64x128xbf16>
    %cst_19 = arith.constant dense<0.000000e+00> : vector<104x128xf32>
    %34 = tpu.matmul %31, %33, %cst_19 {dimension_numbers = #tpu.dot_dimension_numbers<[1], [0], [0], [1], [0, 0, 1, 1], [], []>} : vector<104x64xbf16>, vector<64x128xbf16>, vector<104x128xf32> -> vector<104x128xf32>
    %35 = arith.addf %29, %34 : vector<104x128xf32>
    %36 = vector.extract_strided_slice %10 {offsets = [0, 2, 0], sizes = [8, 13, 64], strides = [1, 1, 1]} : vector<8x31x64xbf16> to vector<8x13x64xbf16>
    %37 = vector.shape_cast %36 : vector<8x13x64xbf16> to vector<104x64xbf16>
    %c4 = arith.constant 4 : index
    %c0_20 = arith.constant 0 : index
    %c0_21 = arith.constant 0 : index
    %38 = vector.load %arg4[%c4, %c0_20, %c0_21] : memref<7x64x128xbf16, #tpu.memory_space<vmem>>, vector<1x64x128xbf16>
    %39 = vector.shape_cast %38 : vector<1x64x128xbf16> to vector<64x128xbf16>
    %cst_22 = arith.constant dense<0.000000e+00> : vector<104x128xf32>
    %40 = tpu.matmul %37, %39, %cst_22 {dimension_numbers = #tpu.dot_dimension_numbers<[1], [0], [0], [1], [0, 0, 1, 1], [], []>} : vector<104x64xbf16>, vector<64x128xbf16>, vector<104x128xf32> -> vector<104x128xf32>
    %41 = arith.addf %35, %40 : vector<104x128xf32>
    %42 = vector.extract_strided_slice %10 {offsets = [0, 18, 0], sizes = [8, 13, 64], strides = [1, 1, 1]} : vector<8x31x64xbf16> to vector<8x13x64xbf16>
    %43 = vector.shape_cast %42 : vector<8x13x64xbf16> to vector<104x64xbf16>
    %c5 = arith.constant 5 : index
    %c0_23 = arith.constant 0 : index
    %c0_24 = arith.constant 0 : index
    %44 = vector.load %arg4[%c5, %c0_23, %c0_24] : memref<7x64x128xbf16, #tpu.memory_space<vmem>>, vector<1x64x128xbf16>
    %45 = vector.shape_cast %44 : vector<1x64x128xbf16> to vector<64x128xbf16>
    %cst_25 = arith.constant dense<0.000000e+00> : vector<104x128xf32>
    %46 = tpu.matmul %43, %45, %cst_25 {dimension_numbers = #tpu.dot_dimension_numbers<[1], [0], [0], [1], [0, 0, 1, 1], [], []>} : vector<104x64xbf16>, vector<64x128xbf16>, vector<104x128xf32> -> vector<104x128xf32>
    %47 = arith.addf %41, %46 : vector<104x128xf32>
    %48 = vector.extract_strided_slice %10 {offsets = [0, 3, 0], sizes = [8, 13, 64], strides = [1, 1, 1]} : vector<8x31x64xbf16> to vector<8x13x64xbf16>
    %49 = vector.shape_cast %48 : vector<8x13x64xbf16> to vector<104x64xbf16>
    %c6 = arith.constant 6 : index
    %c0_26 = arith.constant 0 : index
    %c0_27 = arith.constant 0 : index
    %50 = vector.load %arg4[%c6, %c0_26, %c0_27] : memref<7x64x128xbf16, #tpu.memory_space<vmem>>, vector<1x64x128xbf16>
    %51 = vector.shape_cast %50 : vector<1x64x128xbf16> to vector<64x128xbf16>
    %cst_28 = arith.constant dense<0.000000e+00> : vector<104x128xf32>
    %52 = tpu.matmul %49, %51, %cst_28 {dimension_numbers = #tpu.dot_dimension_numbers<[1], [0], [0], [1], [0, 0, 1, 1], [], []>} : vector<104x64xbf16>, vector<64x128xbf16>, vector<104x128xf32> -> vector<104x128xf32>
    %53 = arith.addf %47, %52 : vector<104x128xf32>
    %c0_29 = arith.constant 0 : index
    %c0_30 = arith.constant 0 : index
    %54 = vector.load %arg5[%c0_29, %c0_30] : memref<1x128xf32, #tpu.memory_space<vmem>>, vector<1x128xf32>
    %55 = vector.broadcast %54 : vector<1x128xf32> to vector<104x128xf32>
    %56 = arith.addf %53, %55 : vector<104x128xf32>
    %cst_31 = arith.constant 0.000000e+00 : f32
    %57 = vector.broadcast %cst_31 : f32 to vector<104x128xf32>
    %58 = arith.maximumf %56, %57 : vector<104x128xf32>
    %59 = arith.truncf %58 : vector<104x128xf32> to vector<104x128xbf16>
    %60 = vector.shape_cast %59 : vector<104x128xbf16> to vector<8x13x128xbf16>
    %cst_32 = arith.constant 0.000000e+00 : f32
    %61 = vector.broadcast %cst_32 : f32 to vector<72x256xf32>
    %62 = vector.extract_strided_slice %60 {offsets = [0, 0, 0], sizes = [8, 9, 128], strides = [1, 1, 1]} : vector<8x13x128xbf16> to vector<8x9x128xbf16>
    %63 = vector.shape_cast %62 : vector<8x9x128xbf16> to vector<72x128xbf16>
    %c0_33 = arith.constant 0 : index
    %c0_34 = arith.constant 0 : index
    %c0_35 = arith.constant 0 : index
    %64 = vector.load %arg6[%c0_33, %c0_34, %c0_35] : memref<5x128x256xbf16, #tpu.memory_space<vmem>>, vector<1x128x256xbf16>
    %65 = vector.shape_cast %64 : vector<1x128x256xbf16> to vector<128x256xbf16>
    %cst_36 = arith.constant dense<0.000000e+00> : vector<72x256xf32>
    %66 = tpu.matmul %63, %65, %cst_36 {dimension_numbers = #tpu.dot_dimension_numbers<[1], [0], [0], [1], [0, 0, 1, 1], [], []>} : vector<72x128xbf16>, vector<128x256xbf16>, vector<72x256xf32> -> vector<72x256xf32>
    %67 = arith.addf %61, %66 : vector<72x256xf32>
    %68 = vector.extract_strided_slice %60 {offsets = [0, 1, 0], sizes = [8, 9, 128], strides = [1, 1, 1]} : vector<8x13x128xbf16> to vector<8x9x128xbf16>
    %69 = vector.shape_cast %68 : vector<8x9x128xbf16> to vector<72x128xbf16>
    %c1_37 = arith.constant 1 : index
    %c0_38 = arith.constant 0 : index
    %c0_39 = arith.constant 0 : index
    %70 = vector.load %arg6[%c1_37, %c0_38, %c0_39] : memref<5x128x256xbf16, #tpu.memory_space<vmem>>, vector<1x128x256xbf16>
    %71 = vector.shape_cast %70 : vector<1x128x256xbf16> to vector<128x256xbf16>
    %cst_40 = arith.constant dense<0.000000e+00> : vector<72x256xf32>
    %72 = tpu.matmul %69, %71, %cst_40 {dimension_numbers = #tpu.dot_dimension_numbers<[1], [0], [0], [1], [0, 0, 1, 1], [], []>} : vector<72x128xbf16>, vector<128x256xbf16>, vector<72x256xf32> -> vector<72x256xf32>
    %73 = arith.addf %67, %72 : vector<72x256xf32>
    %74 = vector.extract_strided_slice %60 {offsets = [0, 2, 0], sizes = [8, 9, 128], strides = [1, 1, 1]} : vector<8x13x128xbf16> to vector<8x9x128xbf16>
    %75 = vector.shape_cast %74 : vector<8x9x128xbf16> to vector<72x128xbf16>
    %c2_41 = arith.constant 2 : index
    %c0_42 = arith.constant 0 : index
    %c0_43 = arith.constant 0 : index
    %76 = vector.load %arg6[%c2_41, %c0_42, %c0_43] : memref<5x128x256xbf16, #tpu.memory_space<vmem>>, vector<1x128x256xbf16>
    %77 = vector.shape_cast %76 : vector<1x128x256xbf16> to vector<128x256xbf16>
    %cst_44 = arith.constant dense<0.000000e+00> : vector<72x256xf32>
    %78 = tpu.matmul %75, %77, %cst_44 {dimension_numbers = #tpu.dot_dimension_numbers<[1], [0], [0], [1], [0, 0, 1, 1], [], []>} : vector<72x128xbf16>, vector<128x256xbf16>, vector<72x256xf32> -> vector<72x256xf32>
    %79 = arith.addf %73, %78 : vector<72x256xf32>
    %80 = vector.extract_strided_slice %60 {offsets = [0, 3, 0], sizes = [8, 9, 128], strides = [1, 1, 1]} : vector<8x13x128xbf16> to vector<8x9x128xbf16>
    %81 = vector.shape_cast %80 : vector<8x9x128xbf16> to vector<72x128xbf16>
    %c3_45 = arith.constant 3 : index
    %c0_46 = arith.constant 0 : index
    %c0_47 = arith.constant 0 : index
    %82 = vector.load %arg6[%c3_45, %c0_46, %c0_47] : memref<5x128x256xbf16, #tpu.memory_space<vmem>>, vector<1x128x256xbf16>
    %83 = vector.shape_cast %82 : vector<1x128x256xbf16> to vector<128x256xbf16>
    %cst_48 = arith.constant dense<0.000000e+00> : vector<72x256xf32>
    %84 = tpu.matmul %81, %83, %cst_48 {dimension_numbers = #tpu.dot_dimension_numbers<[1], [0], [0], [1], [0, 0, 1, 1], [], []>} : vector<72x128xbf16>, vector<128x256xbf16>, vector<72x256xf32> -> vector<72x256xf32>
    %85 = arith.addf %79, %84 : vector<72x256xf32>
    %86 = vector.extract_strided_slice %60 {offsets = [0, 4, 0], sizes = [8, 9, 128], strides = [1, 1, 1]} : vector<8x13x128xbf16> to vector<8x9x128xbf16>
    %87 = vector.shape_cast %86 : vector<8x9x128xbf16> to vector<72x128xbf16>
    %c4_49 = arith.constant 4 : index
    %c0_50 = arith.constant 0 : index
    %c0_51 = arith.constant 0 : index
    %88 = vector.load %arg6[%c4_49, %c0_50, %c0_51] : memref<5x128x256xbf16, #tpu.memory_space<vmem>>, vector<1x128x256xbf16>
    %89 = vector.shape_cast %88 : vector<1x128x256xbf16> to vector<128x256xbf16>
    %cst_52 = arith.constant dense<0.000000e+00> : vector<72x256xf32>
    %90 = tpu.matmul %87, %89, %cst_52 {dimension_numbers = #tpu.dot_dimension_numbers<[1], [0], [0], [1], [0, 0, 1, 1], [], []>} : vector<72x128xbf16>, vector<128x256xbf16>, vector<72x256xf32> -> vector<72x256xf32>
    %91 = arith.addf %85, %90 : vector<72x256xf32>
    %c0_53 = arith.constant 0 : index
    %c0_54 = arith.constant 0 : index
    %92 = vector.load %arg7[%c0_53, %c0_54] : memref<1x256xf32, #tpu.memory_space<vmem>>, vector<1x256xf32>
    %93 = vector.broadcast %92 : vector<1x256xf32> to vector<72x256xf32>
    %94 = arith.addf %91, %93 : vector<72x256xf32>
    %cst_55 = arith.constant 0.000000e+00 : f32
    %95 = vector.broadcast %cst_55 : f32 to vector<72x256xf32>
    %96 = arith.maximumf %94, %95 : vector<72x256xf32>
    %97 = arith.truncf %96 : vector<72x256xf32> to vector<72x256xbf16>
    %98 = vector.shape_cast %97 : vector<72x256xbf16> to vector<8x9x256xbf16>
    %cst_56 = arith.constant 0.000000e+00 : f32
    %99 = vector.broadcast %cst_56 : f32 to vector<56x256xf32>
    %100 = vector.extract_strided_slice %98 {offsets = [0, 0, 0], sizes = [8, 7, 256], strides = [1, 1, 1]} : vector<8x9x256xbf16> to vector<8x7x256xbf16>
    %101 = vector.shape_cast %100 : vector<8x7x256xbf16> to vector<56x256xbf16>
    %c0_57 = arith.constant 0 : index
    %c0_58 = arith.constant 0 : index
    %c0_59 = arith.constant 0 : index
    %102 = vector.load %arg8[%c0_57, %c0_58, %c0_59] : memref<3x256x256xbf16, #tpu.memory_space<vmem>>, vector<1x256x256xbf16>
    %103 = vector.shape_cast %102 : vector<1x256x256xbf16> to vector<256x256xbf16>
    %cst_60 = arith.constant dense<0.000000e+00> : vector<56x256xf32>
    %104 = tpu.matmul %101, %103, %cst_60 {dimension_numbers = #tpu.dot_dimension_numbers<[1], [0], [0], [1], [0, 0, 1, 1], [], []>} : vector<56x256xbf16>, vector<256x256xbf16>, vector<56x256xf32> -> vector<56x256xf32>
    %105 = arith.addf %99, %104 : vector<56x256xf32>
    %106 = vector.extract_strided_slice %98 {offsets = [0, 1, 0], sizes = [8, 7, 256], strides = [1, 1, 1]} : vector<8x9x256xbf16> to vector<8x7x256xbf16>
    %107 = vector.shape_cast %106 : vector<8x7x256xbf16> to vector<56x256xbf16>
    %c1_61 = arith.constant 1 : index
    %c0_62 = arith.constant 0 : index
    %c0_63 = arith.constant 0 : index
    %108 = vector.load %arg8[%c1_61, %c0_62, %c0_63] : memref<3x256x256xbf16, #tpu.memory_space<vmem>>, vector<1x256x256xbf16>
    %109 = vector.shape_cast %108 : vector<1x256x256xbf16> to vector<256x256xbf16>
    %cst_64 = arith.constant dense<0.000000e+00> : vector<56x256xf32>
    %110 = tpu.matmul %107, %109, %cst_64 {dimension_numbers = #tpu.dot_dimension_numbers<[1], [0], [0], [1], [0, 0, 1, 1], [], []>} : vector<56x256xbf16>, vector<256x256xbf16>, vector<56x256xf32> -> vector<56x256xf32>
    %111 = arith.addf %105, %110 : vector<56x256xf32>
    %112 = vector.extract_strided_slice %98 {offsets = [0, 2, 0], sizes = [8, 7, 256], strides = [1, 1, 1]} : vector<8x9x256xbf16> to vector<8x7x256xbf16>
    %113 = vector.shape_cast %112 : vector<8x7x256xbf16> to vector<56x256xbf16>
    %c2_65 = arith.constant 2 : index
    %c0_66 = arith.constant 0 : index
    %c0_67 = arith.constant 0 : index
    %114 = vector.load %arg8[%c2_65, %c0_66, %c0_67] : memref<3x256x256xbf16, #tpu.memory_space<vmem>>, vector<1x256x256xbf16>
    %115 = vector.shape_cast %114 : vector<1x256x256xbf16> to vector<256x256xbf16>
    %cst_68 = arith.constant dense<0.000000e+00> : vector<56x256xf32>
    %116 = tpu.matmul %113, %115, %cst_68 {dimension_numbers = #tpu.dot_dimension_numbers<[1], [0], [0], [1], [0, 0, 1, 1], [], []>} : vector<56x256xbf16>, vector<256x256xbf16>, vector<56x256xf32> -> vector<56x256xf32>
    %117 = arith.addf %111, %116 : vector<56x256xf32>
    %c0_69 = arith.constant 0 : index
    %c0_70 = arith.constant 0 : index
    %118 = vector.load %arg9[%c0_69, %c0_70] : memref<1x256xf32, #tpu.memory_space<vmem>>, vector<1x256xf32>
    %119 = vector.broadcast %118 : vector<1x256xf32> to vector<56x256xf32>
    %120 = arith.addf %117, %119 : vector<56x256xf32>
    %cst_71 = arith.constant 0.000000e+00 : f32
    %121 = vector.broadcast %cst_71 : f32 to vector<56x256xf32>
    %122 = arith.maximumf %120, %121 : vector<56x256xf32>
    %123 = vector.shape_cast %122 : vector<56x256xf32> to vector<8x1792xf32>
    %124 = arith.truncf %123 : vector<8x1792xf32> to vector<8x1792xbf16>
    %c0_72 = arith.constant 0 : index
    %c0_73 = arith.constant 0 : index
    %125 = vector.load %arg10[%c0_72, %c0_73] : memref<1792x128xbf16, #tpu.memory_space<vmem>>, vector<1792x128xbf16>
    %cst_74 = arith.constant dense<0.000000e+00> : vector<8x128xf32>
    %126 = tpu.matmul %124, %125, %cst_74 {dimension_numbers = #tpu.dot_dimension_numbers<[1], [0], [0], [1], [0, 0, 1, 1], [], []>} : vector<8x1792xbf16>, vector<1792x128xbf16>, vector<8x128xf32> -> vector<8x128xf32>
    %c0_75 = arith.constant 0 : index
    %c0_76 = arith.constant 0 : index
    %127 = vector.load %arg11[%c0_75, %c0_76] : memref<1x128xf32, #tpu.memory_space<vmem>>, vector<1x128xf32>
    %128 = vector.broadcast %127 : vector<1x128xf32> to vector<8x128xf32>
    %129 = arith.addf %126, %128 : vector<8x128xf32>
    %cst_77 = arith.constant 0.000000e+00 : f32
    %130 = vector.broadcast %cst_77 : f32 to vector<8x128xf32>
    %131 = arith.maximumf %129, %130 : vector<8x128xf32>
    %132 = arith.truncf %131 : vector<8x128xf32> to vector<8x128xbf16>
    %c0_78 = arith.constant 0 : index
    %c0_79 = arith.constant 0 : index
    %133 = vector.load %arg12[%c0_78, %c0_79] : memref<128x8xbf16, #tpu.memory_space<vmem>>, vector<128x8xbf16>
    %cst_80 = arith.constant dense<0.000000e+00> : vector<8x8xf32>
    %134 = tpu.matmul %132, %133, %cst_80 {dimension_numbers = #tpu.dot_dimension_numbers<[1], [0], [0], [1], [0, 0, 1, 1], [], []>} : vector<8x128xbf16>, vector<128x8xbf16>, vector<8x8xf32> -> vector<8x8xf32>
    %c0_81 = arith.constant 0 : index
    %c0_82 = arith.constant 0 : index
    %135 = vector.load %arg13[%c0_81, %c0_82] : memref<1x8xf32, #tpu.memory_space<vmem>>, vector<1x8xf32>
    %136 = vector.broadcast %135 : vector<1x8xf32> to vector<8x8xf32>
    %137 = arith.addf %134, %136 : vector<8x8xf32>
    %c0_83 = arith.constant 0 : index
    %c0_84 = arith.constant 0 : index
    %138 = vector.load %arg14[%c0_83, %c0_84] : memref<8x8xf32, #tpu.memory_space<vmem>>, vector<8x8xf32>
    tpu.vector_store %arg14[%c0_83, %c0_84], %137 {strides = array<i32>} : memref<8x8xf32, #tpu.memory_space<vmem>>, vector<8x8xf32>,
    return
  }
  func.func @transform_0(%arg0: i32) -> (i32, i32) {
    %c0_i32 = arith.constant 0 : i32
    %c0_i32_0 = arith.constant 0 : i32
    return %arg0, %c0_i32 : i32, i32
  }
  func.func @transform_1(%arg0: i32) -> (i32, i32) {
    %c0_i32 = arith.constant 0 : i32
    %c0_i32_0 = arith.constant 0 : i32
    %c0_i32_1 = arith.constant 0 : i32
    return %c0_i32, %c0_i32_0 : i32, i32
  }
  func.func @transform_2(%arg0: i32) -> (i32, i32) {
    %c0_i32 = arith.constant 0 : i32
    %c0_i32_0 = arith.constant 0 : i32
    %c0_i32_1 = arith.constant 0 : i32
    return %c0_i32, %c0_i32_0 : i32, i32
  }
  func.func @transform_3(%arg0: i32) -> (i32, i32, i32) {
    %c0_i32 = arith.constant 0 : i32
    %c0_i32_0 = arith.constant 0 : i32
    %c0_i32_1 = arith.constant 0 : i32
    %c0_i32_2 = arith.constant 0 : i32
    return %c0_i32, %c0_i32_0, %c0_i32_1 : i32, i32, i32
  }
  func.func @transform_4(%arg0: i32) -> (i32, i32) {
    %c0_i32 = arith.constant 0 : i32
    %c0_i32_0 = arith.constant 0 : i32
    %c0_i32_1 = arith.constant 0 : i32
    return %c0_i32, %c0_i32_0 : i32, i32
  }
  func.func @transform_5(%arg0: i32) -> (i32, i32, i32) {
    %c0_i32 = arith.constant 0 : i32
    %c0_i32_0 = arith.constant 0 : i32
    %c0_i32_1 = arith.constant 0 : i32
    %c0_i32_2 = arith.constant 0 : i32
    return %c0_i32, %c0_i32_0, %c0_i32_1 : i32, i32, i32
  }
  func.func @transform_6(%arg0: i32) -> (i32, i32) {
    %c0_i32 = arith.constant 0 : i32
    %c0_i32_0 = arith.constant 0 : i32
    %c0_i32_1 = arith.constant 0 : i32
    return %c0_i32, %c0_i32_0 : i32, i32
  }
  func.func @transform_7(%arg0: i32) -> (i32, i32, i32) {
    %c0_i32 = arith.constant 0 : i32
    %c0_i32_0 = arith.constant 0 : i32
    %c0_i32_1 = arith.constant 0 : i32
    %c0_i32_2 = arith.constant 0 : i32
    return %c0_i32, %c0_i32_0, %c0_i32_1 : i32, i32, i32
  }
  func.func @transform_8(%arg0: i32) -> (i32, i32) {
    %c0_i32 = arith.constant 0 : i32
    %c0_i32_0 = arith.constant 0 : i32
    %c0_i32_1 = arith.constant 0 : i32
    return %c0_i32, %c0_i32_0 : i32, i32
  }
  func.func @transform_9(%arg0: i32) -> (i32, i32) {
    %c0_i32 = arith.constant 0 : i32
    %c0_i32_0 = arith.constant 0 : i32
    %c0_i32_1 = arith.constant 0 : i32
    return %c0_i32, %c0_i32_0 : i32, i32
  }
  func.func @transform_10(%arg0: i32) -> (i32, i32) {
    %c0_i32 = arith.constant 0 : i32
    %c0_i32_0 = arith.constant 0 : i32
    %c0_i32_1 = arith.constant 0 : i32
    return %c0_i32, %c0_i32_0 : i32, i32
  }
  func.func @transform_11(%arg0: i32) -> (i32, i32) {
    %c0_i32 = arith.constant 0 : i32
    %c0_i32_0 = arith.constant 0 : i32
    %c0_i32_1 = arith.constant 0 : i32
    return %c0_i32, %c0_i32_0 : i32, i32
  }
  func.func @transform_12(%arg0: i32) -> (i32, i32) {
    %c0_i32 = arith.constant 0 : i32
    %c0_i32_0 = arith.constant 0 : i32
    %c0_i32_1 = arith.constant 0 : i32
    return %c0_i32, %c0_i32_0 : i32, i32
  }
  func.func @transform_13(%arg0: i32) -> (i32, i32) {
    %c0_i32 = arith.constant 0 : i32
    %c0_i32_0 = arith.constant 0 : i32
    return %arg0, %c0_i32 : i32, i32
  }
}

</mosaic_0001>

<bundles_post_ra>
// kernel: deep_cnn_forward.1
= control target key start
LH: loop header
LB: loop body
LE: loop exit
PB: predicated region body
PF: predicated region fallthrough
CT: control target
= control target key end

     0   :  { %vm168_vm0 = vcmask 1043456   ;;  %vm119_vm1 = vcmask 326656   ;;  %v17798_v51 = vmov 0.0   ;;  %vm12918_vm2 = vmmov 0   ;;  %s17784_s1 = inlined_call_operand.vmem [shape: bf16[40,64], index: 1, kind: input, shape index: {}]   ;;  %s17785_s0 = inlined_call_operand.vmem [shape: f32[248,40], index: 0, kind: input, shape index: {}]   ;;  %s17786_s3 = inlined_call_operand.vmem [shape: bf16[7,64,128], index: 3, kind: input, shape index: {}]   ;;  %s17787_s2 = inlined_call_operand.vmem [shape: f32[1,64], index: 2, kind: input, shape index: {}]   ;;  %s17788_s5 = inlined_call_operand.vmem [shape: bf16[5,128,256], index: 5, kind: input, shape index: {}]   ;;  %s17789_s4 = inlined_call_operand.vmem [shape: f32[1,128], index: 4, kind: input, shape index: {}]   ;;  %s17790_s7 = inlined_call_operand.vmem [shape: bf16[3,256,256], index: 7, kind: input, shape index: {}]   ;;  %s17791_s6 = inlined_call_operand.vmem [shape: f32[1,256], index: 6, kind: input, shape index: {}]   ;;  %s17792_s9 = inlined_call_operand.vmem [shape: bf16[1792,128], index: 9, kind: input, shape index: {}]   ;;  %s17793_s8 = inlined_call_operand.vmem [shape: f32[1,256], index: 8, kind: input, shape index: {}]   ;;  %s17794_s11 = inlined_call_operand.vmem [shape: bf16[128,8], index: 11, kind: input, shape index: {}]   ;;  %s17795_s10 = inlined_call_operand.vmem [shape: f32[1,128], index: 10, kind: input, shape index: {}]   ;;  %s17796_s12 = inlined_call_operand.vmem [shape: f32[1,8], index: 12, kind: input, shape index: {}]   ;;  %s17797_s13 = inlined_call_operand.vmem [shape: f32[8,8], index: 13, kind: output, shape index: {}]  }
   0x1   :  { %v12502_v0 = vld [vmem:[%s17784_s1 + $0x10] ss:$0 sps:$4 sm:$0xff]   ;;  %v12503_v1 = vld [vmem:[%s17784_s1 + $0x8] sm:$0xff]   ;;  %v45_v3 = vld [vmem:[%s17785_s0] sm:$0xff]  ;;  %v12919_v60 = vmov 1966171168   ;;  %v399_v62 = vlaneseq }
   0x2   :  { %12496 = vmatprep.subr.msk.bf16.mxu0 %vm168_vm0, %v12502_v0  ;;  %v170_v2 = vsel %vm168_vm0, %v12502_v0, 0  ;;  %12497 = vmatprep.subr.msk.bf16.mxu1 %vm168_vm0, %v12502_v0  ;;  %v46_v4 = vld [vmem:[%s17785_s0 + $0x8] sm:$0xff]  ;;  %v12504_v5 = vld [vmem:[%s17784_s1] sm:$0xff]   ;;  %v47_v7 = vld [vmem:[%s17785_s0 + $0x10] sm:$0xff]  ;;  %v397_v61 = vunpack.c.l.s4 %v12919_v60  ;;  %vm1813_vm3 = vcmask 523264   ;;  %vm9536_vm4 = vcmask 1040384  }
   0x3   :  { %12181 = vmatpush3.bf16.msra.mxu0 %v170_v2  ;;  %12493 = vmatpush3.bf16.msra.mxu1 %v170_v2  ;;  %v76_v6 = vpack.c.bf16 %v46_v4, %v45_v3  ;;  %v48_v8 = vld [vmem:[%s17785_s0 + $0x18] sm:$0xff]  ;;  %v69_v9 = vld [vmem:[%s17785_s0 + $0xc0] sm:$0xff]  ;;  %v70_v10 = vld [vmem:[%s17785_s0 + $0xc8] sm:$0xff]  ;;  %v13152_v4 = vshrl.u32 %v399_v62, 7  ;;  %vm9539_vm5 = vcmask 1041409   ;;  %vm9542_vm6 = vcmask 1042434  }
   0x4   :  { %12182 = vmatprep.subr.bf16.mxu0 %v12503_v1  ;;  %12491 = vmatprep.subr.bf16.mxu1 %v12503_v1  ;;  %v49_v11 = vld [vmem:[%s17785_s0 + $0x20] sm:$0xff]  ;;  %v50_v12 = vld [vmem:[%s17785_s0 + $0x28] sm:$0xff]  ;;  %v88_v13 = vpack.c.bf16 %v70_v10, %v69_v9  ;;  %v71_v14 = vld [vmem:[%s17785_s0 + $0xd0] sm:$0xff]  ;;  %v77_v16 = vpack.c.bf16 %v48_v8, %v47_v7  ;;  %v398_v3 = vunpack.c.0.s8 %v397_v61  ;;  %vm9545_vm7 = vcmask 1043459  }
   0x5   :  { %12186 = vmatprep.mubr.msk.bf16.mxu0 %vm119_vm1, %v76_v6  ;;  %v72_v15 = vld [vmem:[%s17785_s0 + $0xd8] sm:$0xff]  ;;  %v73_v18 = vld [vmem:[%s17785_s0 + $0xe0] sm:$0xff]  ;;  %v74_v19 = vld [vmem:[%s17785_s0 + $0xe8] sm:$0xff]  ;;  %v78_v20 = vpack.c.bf16 %v50_v12, %v49_v11  ;;  %18029 = vst [vmem:[#allocation2_spill] sm:$0xff] %v13152_v4  ;;  %vm9547_vm8 = vcmask 1044484   ;;  %vm9550_vm9 = vcmask 1045509  }
   0x6   :  { %12210 = vmatprep.mubr.msk.bf16.mxu1 %vm119_vm1, %v88_v13  ;;  %v89_v17 = vpack.c.bf16 %v72_v15, %v71_v14  ;;  %v90_v21 = vpack.c.bf16 %v74_v19, %v73_v18  ;;  %v51_v22 = vld [vmem:[%s17785_s0 + $0x30] sm:$0xff]  ;;  %v52_v23 = vld [vmem:[%s17785_s0 + $0x38] sm:$0xff]  ;;  %v53_v25 = vld [vmem:[%s17785_s0 + $0x40] sm:$0xff]  ;;  %v13160_v13 = vsub.s32 %v398_v3, %v13152_v4  ;;  %vm9553_vm10 = vcmask 1046534  }
   0x7   :  { %12183 = vmatpush3.bf16.msra.mxu0 %v12503_v1  ;;  %12494 = vmatpush3.bf16.msra.mxu1 %v12503_v1  ;;  %v75_v24 = vld [vmem:[%s17785_s0 + $0xf0] sm:$0xff]  ;;  %v54_v26 = vld [vmem:[%s17785_s0 + $0x48] sm:$0xff]  ;;  %v79_v27 = vpack.c.bf16 %v52_v23, %v51_v22  ;;  %v56_v31 = vld [vmem:[%s17785_s0 + $0x58] sm:$0xff]  ;;  %vm9556_vm11 = vcmask 1047559   ;;  %vm11050_vm12 = vcmask 64512  }
   0x8   :  { %12184 = vmatprep.subr.bf16.mxu0 %v12504_v5  ;;  %12492 = vmatprep.subr.bf16.mxu1 %v12504_v5  ;;  %v91_v28 = vpack.c.bf16 %v75_v24, %v75_v24  ;;  %v80_v29 = vpack.c.bf16 %v54_v26, %v53_v25  ;;  %v55_v30 = vld [vmem:[%s17785_s0 + $0x50] sm:$0xff]  ;;  %v57_v32 = vld [vmem:[%s17785_s0 + $0x60] sm:$0xff]  ;;  %v58_v33 = vld [vmem:[%s17785_s0 + $0x68] sm:$0xff] }
   0x9   :  { %v81_v34 = vpack.c.bf16 %v56_v31, %v55_v30  ;;  %v82_v35 = vpack.c.bf16 %v58_v33, %v57_v32  ;;  %v59_v36 = vld [vmem:[%s17785_s0 + $0x70] sm:$0xff]  ;;  %v60_v37 = vld [vmem:[%s17785_s0 + $0x78] sm:$0xff]  ;;  %v61_v38 = vld [vmem:[%s17785_s0 + $0x80] sm:$0xff] }
   0xa   :  { %v62_v39 = vld [vmem:[%s17785_s0 + $0x88] sm:$0xff]  ;;  %v83_v40 = vpack.c.bf16 %v60_v37, %v59_v36  ;;  %v63_v42 = vld [vmem:[%s17785_s0 + $0x90] sm:$0xff]  ;;  %v64_v43 = vld [vmem:[%s17785_s0 + $0x98] sm:$0xff] }
   0xb   :  { %12185 = vmatpush3.bf16.msra.mxu0 %v12504_v5  ;;  %12495 = vmatpush3.bf16.msra.mxu1 %v12504_v5  ;;  %v84_v41 = vpack.c.bf16 %v62_v39, %v61_v38  ;;  %v65_v44 = vld [vmem:[%s17785_s0 + $0xa0] sm:$0xff]  ;;  %v66_v45 = vld [vmem:[%s17785_s0 + $0xa8] sm:$0xff]  ;;  %v85_v46 = vpack.c.bf16 %v64_v43, %v63_v42  ;;  %v67_v48 = vld [vmem:[%s17785_s0 + $0xb0] sm:$0xff] }
   0xc   :  { %v86_v47 = vpack.c.bf16 %v66_v45, %v65_v44  ;;  %v68_v49 = vld [vmem:[%s17785_s0 + $0xb8] sm:$0xff]  ;;  %12290 = vmatprep.subr.bf16.mxu0 %v17798_v51  ;;  %12218 = vmatprep.subr.bf16.mxu1 %v17798_v51  ;;  %v12507_v54 = vld [vmem:[%s17786_s3 + $0x50] sm:$0xff]   ;;  %v12509_v56 = vld [vmem:[%s17786_s3 + $0x48] sm:$0xff]  }
   0xd   :  { %v87_v50 = vpack.c.bf16 %v68_v49, %v67_v48  ;;  %v12505_v52 = vld [vmem:[%s17786_s3 + $0x58] sm:$0xff]   ;;  %v12508_v55 = vld [vmem:[%s17786_s3 + $0x30] sm:$0xff]   ;;  %v12510_v57 = vld [vmem:[%s17786_s3 + $0x28] sm:$0xff]  }
   0xe   :  { %12187 = vmatmul.mubr.msk.bf16.vlgmr.msra.gmra.mxu0 %vm119_vm1, %v77_v16  ;;  %12211 = vmatmul.mubr.msk.bf16.vlgmr.msra.gmra.mxu1 %vm119_vm1, %v89_v17  ;;  %v12506_v53 = vld [vmem:[%s17786_s3 + $0x38] sm:$0xff]   ;;  %v12511_v58 = vld [vmem:[%s17786_s3 + $0x40] sm:$0xff]  }
   0xf   :  { %12190 = vmatprep.mubr.msk.bf16.mxu0 %vm119_vm1, %v78_v20  ;;  %12214 = vmatprep.mubr.msk.bf16.mxu1 %vm119_vm1, %v90_v21  ;;  %v12512_v59 = vld [vmem:[%s17786_s3 + $0x20] sm:$0xff]  }
  0x10   :  { %12291 = vmatpush3.bf16.msra.mxu0 %v12505_v52  ;;  %12219 = vmatpush3.bf16.msra.mxu1 %v12506_v53  ;;  %v13150_v0 = vld [vmem:[%s17787_s2] ss:$0 sm:$0xff] }
  0x11   :  { %12292 = vmatprep.subr.bf16.mxu0 %v17798_v51  ;;  %12220 = vmatprep.subr.bf16.mxu1 %v17798_v51 }
  0x14   :  { %12293 = vmatpush3.bf16.msra.mxu0 %v12507_v54  ;;  %12221 = vmatpush3.bf16.msra.mxu1 %v12508_v55 }
  0x15   :  { %12294 = vmatprep.subr.bf16.mxu0 %v17798_v51  ;;  %12222 = vmatprep.subr.bf16.mxu1 %v17798_v51 }
  0x16   :  { %12191 = vmatmul.mubr.msk.bf16.gmra.mxu0 %vm119_vm1, %v79_v27  ;;  %12215 = vmatmul.mubr.msk.bf16.gmra.mxu1 %vm119_vm1, %v91_v28 }
  0x17   :  { %12194 = vmatprep.mubr.msk.bf16.mxu0 %vm119_vm1, %v80_v29  ;;  %12226 = vmatprep.mubr.msk.bf16.mxu1 %vm12918_vm2, %v17798_v51 }
  0x18   :  { %12295 = vmatpush3.bf16.msra.mxu0 %v12509_v56  ;;  %12223 = vmatpush3.bf16.msra.mxu1 %v12510_v57 }
  0x19   :  { %12296 = vmatprep.subr.bf16.mxu0 %v17798_v51  ;;  %12224 = vmatprep.subr.bf16.mxu1 %v17798_v51 }
  0x1c   :  { %12297 = vmatpush3.bf16.msra.mxu0 %v12511_v58  ;;  %12225 = vmatpush3.bf16.msra.mxu1 %v12512_v59 }
  0x1d   :  { %12362 = vmatprep.subr.bf16.mxu0 %v17798_v51  ;;  %12254 = vmatprep.subr.bf16.mxu1 %v17798_v51 }
  0x1e   :  { %12195 = vmatmul.mubr.msk.bf16.gmra.mxu0 %vm119_vm1, %v81_v34 }
  0x1f   :  { %12198 = vmatprep.mubr.msk.bf16.mxu0 %vm119_vm1, %v82_v35 }
  0x26   :  { %12199 = vmatmul.mubr.msk.bf16.gmra.mxu0 %vm119_vm1, %v83_v40 }
  0x27   :  { %12202 = vmatprep.mubr.msk.bf16.mxu0 %vm119_vm1, %v84_v41 }
  0x2e   :  { %12203 = vmatmul.mubr.msk.bf16.gmra.mxu0 %vm119_vm1, %v85_v46 }
  0x2f   :  { %12206 = vmatprep.mubr.msk.bf16.mxu0 %vm119_vm1, %v86_v47 }
  0x36   :  { %12207 = vmatmul.mubr.msk.bf16.gmra.mxu0 %vm119_vm1, %v87_v50 }
  0x37   :  { %12298 = vmatprep.mubr.msk.bf16.mxu0 %vm12918_vm2, %v17798_v51 }
  0xce   :  { %v12188_v63 = vpop.f32.mrf.mxu0  ;;  %v12212_v1 = vpop.f32.mrf.mxu1 }
  0xcf   :  { %v311_v5 = vadd.f32 %v12212_v1, %v13150_v0  ;;  %v215_v7 = vadd.f32 %v12188_v63, %v13150_v0 }
  0xd0   :  { %v206_v2 = vpop.f32.mrf.mxu0  ;;  %v302_v6 = vpop.f32.mrf.mxu1 }
  0xd1   :  { %v207_v12 = vadd.f32 %v13150_v0, %v206_v2  ;;  %v358_v15 = vmax.f32 %v311_v5, 0.0  ;;  %v334_v17 = vmax.f32 %v215_v7, 0.0  ;;  %v13166_v27 = vadd.f32 %v13150_v0, %v302_v6 }
  0xd2   :  { %v12189_v8 = vpop.f32.mrf.mxu0  ;;  %v12213_v9 = vpop.f32.mrf.mxu1 }
  0xd3   :  { %v218_v10 = vadd.f32 %v12189_v8, %v13150_v0  ;;  %v314_v11 = vadd.f32 %v12213_v9, %v13150_v0  ;;  %v332_v26 = vmax.f32 %v207_v12, 0.0 }
  0xd4   :  { %v209_v14 = vpop.f32.mrf.mxu0  ;;  %v305_v16 = vpop.f32.mrf.mxu1 }
  0xd5   :  { %v335_v18 = vmax.f32 %v218_v10, 0.0  ;;  %v210_v19 = vadd.f32 %v13150_v0, %v209_v14  ;;  %v13163_v20 = vmax.f32 %v314_v11, 0.0  ;;  %v306_v33 = vadd.f32 %v13150_v0, %v305_v16 }
  0xd6   :  { %v12192_v21 = vpop.f32.mrf.mxu0  ;;  %v12216_v22 = vpop.f32.mrf.mxu1 }
  0xd7   :  { %v364_v23 = vpack.c.bf16 %v335_v18, %v334_v17  ;;  %v11077_v24 = vpack.c.bf16 %v335_v18, %v335_v18  ;;  %v333_v25 = vmax.f32 %v210_v19, 0.0  ;;  %v376_v28 = vpack.c.bf16 %v13163_v20, %v358_v15 }
  0xd8   :  { %v13169_v29 = vpop.f32.mrf.mxu1  ;;  %v222_v32 = vpop.f32.mrf.mxu0  ;;  %v13179_v41 = vadd.f32 %v12192_v21, %v13150_v0  ;;  %v11089_v43 = vpack.c.bf16 %v13163_v20, %v13163_v20  ;;  %v13192_v48 = vmax.f32 %v306_v33, 0.0  ;;  %v13197_v53 = vadd.f32 %v12216_v22, %v13150_v0 }
  0xd9   :  { %v451_v30 = vrot.slane %v364_v23, %v13160_v13  ;;  %v458_v31 = vrot.slane %v11077_v24, %v13160_v13  ;;  %v363_v34 = vpack.c.bf16 %v333_v25, %v332_v26  ;;  %v11076_v35 = vpack.c.bf16 %v333_v25, %v333_v25 }
  0xda   :  { %v12217_v36 = vpop.f32.mrf.mxu1  ;;  %v12193_v47 = vpop.f32.mrf.mxu0  ;;  %v338_v60 = vmax.f32 %v13179_v41, 0.0  ;;  %v13213_v61 = vadd.f32 %v13150_v0, %v222_v32  ;;  %v13221_v3 = vrot.slane %v376_v28, %v13160_v13  ;;  %v13252_v22 = vrot.slane %v11089_v43, %v13160_v13 }
  0xdb   :  { %v459_v37 = vcombine.high %v451_v30, %v451_v30  ;;  %v460_v38 = vcombine.high %v458_v31, %v458_v31  ;;  %v467_v39 = vrot.slane %v451_v30, %v13160_v13  ;;  %v13176_v40 = vrot.slane %v458_v31, %v13160_v13 }
  0xdc   :  { %v402_v50 = vrot.slane %v363_v34, %v13160_v13  ;;  %v409_v52 = vrot.slane %v11076_v35, %v13160_v13  ;;  %v13218_v2 = vpop.f32.mrf.mxu0  ;;  %v336_v26 = vmax.f32 %v13213_v61, 0.0  ;;  %v234_v32 = vadd.f32 %v12193_v47, %v13150_v0 }
  0xdd   :  { %v13185_v44 = vrot.slane %v459_v37, %v13160_v13  ;;  %v13188_v45 = vrot.slane %v460_v38, %v13160_v13  ;;  %v13190_v46 = vcombine.high %v467_v39, %v467_v39  ;;  %v1171_v49 = vunpack.i.h.s16 %v467_v39 }
  0xde   :  { %v1179_v57 = vunpack.i.h.s16 %v13176_v40  ;;  %v13208_v58 = vcombine.high %v13176_v40, %v13176_v40  ;;  %v410_v7 = vcombine.high %v402_v50, %v402_v50  ;;  %v411_v8 = vcombine.high %v409_v52, %v409_v52  ;;  %v12196_v21 = vpop.f32.mrf.mxu0 }
  0xdf   :  { %18030 = vst [vmem:[#allocation3_spill] sm:$0xff] %v13185_v44  ;;  %18031 = vst [vmem:[#allocation4_spill] sm:$0xff] %v13188_v45  ;;  %v13201_v54 = vcombine.high %v13185_v44, %v13185_v44  ;;  %v1173_v55 = vunpack.i.h.s16 %v13185_v44  ;;  %v1175_v56 = vunpack.i.h.s16 %v13190_v46  ;;  %v1181_v59 = vunpack.i.h.s16 %v13188_v45 }
  0xe0   :  { %18032 = vst [vmem:[#allocation5_spill] sm:$0xff] %v13190_v46  ;;  %18033 = vst [vmem:[#allocation6_spill] sm:$0xff] %v13208_v58  ;;  %v11218_v63 = vpack.i.b16 %v13185_v44, %v1171_v49  ;;  %v13225_v5 = vcombine.high %v13188_v45, %v13188_v45  ;;  %v13234_v10 = vpack.i.b16 %v13188_v45, %v1179_v57  ;;  %v238_v43 = vpop.f32.mrf.mxu0 }
  0xe1   :  { %v1177_v62 = vunpack.i.h.s16 %v13201_v54  ;;  %v11219_v1 = vpack.i.b16 %v13190_v46, %v1173_v55  ;;  %v13228_v6 = vpack.i.b16 %v13201_v54, %v1175_v56  ;;  %v13237_v11 = vpack.i.b16 %v13208_v58, %v1181_v59 }
  0xe2   :  { %18036 = vst [vmem:[#allocation9_spill] sm:$0xff] %v13234_v10  ;;  %v1471_v14 = vcombine.low %v467_v39, %v13185_v44  ;;  %v3983_v16 = vcombine.low %v13201_v54, %v13176_v40  ;;  %v418_v20 = vrot.slane %v402_v50, %v13160_v13  ;;  %v11103_v23 = vcombine.high %v467_v39, %v13185_v44 }
  0xe3   :  { %18034 = vst [vmem:[#allocation7_spill] sm:$0xff] %v13228_v6  ;;  %v13231_v9 = vpack.i.b16 %v13176_v40, %v1177_v62  ;;  %18037 = vst [vmem:[#allocation10_spill] sm:$0xff] %v13237_v11  ;;  %v3012_v12 = vcombine.low %v11218_v63, %v11219_v1  ;;  %v13256_v24 = vrot.slane %v409_v52, %v13160_v13  ;;  %v1185_v33 = vunpack.i.h.s16 %v13225_v5 }
  0xe4   :  { %v13259_v25 = vrot.slane %v410_v7, %v13160_v13  ;;  %v1473_v28 = vcombine.low %v13176_v40, %v13188_v45  ;;  %v13265_v30 = vrot.slane %v411_v8, %v13160_v13  ;;  %v13267_v31 = vcombine.high %v418_v20, %v418_v20 }
  0xe5   :  { %18035 = vst [vmem:[#allocation8_spill] sm:$0xff] %v13231_v9  ;;  %v13272_v34 = vrot.slane %v1471_v14, %v13160_v13  ;;  %v13281_v37 = vcombine.high %v13256_v24, %v13256_v24  ;;  %v1163_v39 = vunpack.i.h.s16 %v13256_v24  ;;  %v13287_v47 = vrot.slane %v11103_v23, %v13160_v13 }
  0xe6   :  { %18038 = vst [vmem:[#allocation11_spill] sm:$0xff] %v13265_v30  ;;  %v13276_v35 = vcombine.high %v13259_v25, %v13259_v25  ;;  %v1157_v36 = vunpack.i.h.s16 %v13259_v25  ;;  %v1159_v38 = vunpack.i.h.s16 %v13267_v31  ;;  %v1975_v40 = vcombine.low %v418_v20, %v13259_v25 }
  0xe7   :  { %18039 = vst [vmem:[#allocation12_spill] sm:$0xff] %v13281_v37  ;;  %v11123_v50 = vcombine.high %v418_v20, %v13259_v25  ;;  %v1977_v52 = vcombine.low %v13256_v24, %v13265_v30  ;;  %v1155_v54 = vunpack.i.h.s16 %v418_v20  ;;  %v1165_v59 = vunpack.i.h.s16 %v13265_v30  ;;  %v12197_v20 = vpop.f32.mrf.mxu0 }
  0xe8   :  { %v1161_v49 = vunpack.i.h.s16 %v13276_v35  ;;  %v13294_v55 = vrot.slane %v1975_v40, %v13160_v13  ;;  %v13297_v56 = vpack.i.b16 %v13267_v31, %v1157_v36  ;;  %v13300_v57 = vpack.i.b16 %v13276_v35, %v1159_v38 }
  0xe9   :  { %v13304_v61 = vrot.slane %v11123_v50, %v13160_v13  ;;  %v339_v63 = vmax.f32 %v234_v32, 0.0  ;;  %v13310_v1 = vpack.i.b16 %v13265_v30, %v1163_v39  ;;  %v3497_v7 = vcombine.low %v13259_v25, %v13267_v31 }
  0xea   :  { %18040 = vst [vmem:[#allocation13_spill] sm:$0xff] %v13294_v55  ;;  %18041 = vst [vmem:[#allocation14_spill] sm:$0xff] %v13297_v56  ;;  %v13307_v62 = vpack.i.b16 %v13256_v24, %v1161_v49  ;;  %v3498_v8 = vcombine.low %v13276_v35, %v13256_v24  ;;  %v13319_v23 = vrot.slane %v1473_v28, %v13160_v13  ;;  %v17800_v17 = vunpack.i.h.s16 %v13281_v37 }
  0xeb   :  { %18042 = vst [vmem:[#allocation15_spill] sm:$0xff] %v13300_v57  ;;  %18043 = vst [vmem:[#allocation16_spill] sm:$0xff] %v13304_v61  ;;  %v13328_v31 = vrot.slane %v3012_v12, %v13160_v13  ;;  %v13332_v24 = vcombine.high %v13265_v30, %v13265_v30  ;;  %v11147_v35 = vpack.i.b16 %v13259_v25, %v1155_v54  ;;  %v241_v54 = vpop.f32.mrf.mxu0  ;;  %v18066_v44 = vunpack.i.h.s16 %v13281_v37 }
  0xec   :  { %18044 = vst [vmem:[#allocation17_spill] sm:$0xff] %v13307_v62  ;;  %18045 = vst [vmem:[#allocation18_spill] sm:$0xff] %v13310_v1  ;;  %v13338_v39 = vpack.i.b16 %v13281_v37, %v1165_v59  ;;  %v366_v40 = vpack.c.bf16 %v339_v63, %v338_v60  ;;  %v11079_v49 = vpack.c.bf16 %v339_v63, %v339_v63 }
  0xed   :  { %18046 = vst [vmem:[#allocation19_spill] sm:$0xff] %v13328_v31  ;;  %v226_v12 = vadd.f32 %v13150_v0, %v13218_v2  ;;  %v2487_v50 = vcombine.low %v11147_v35, %v13297_v56  ;;  %v13347_v15 = vpack.i.b16 %v1185_v33, %v13281_v37  ;;  %v247_v25 = vadd.f32 %v12196_v21, %v13150_v0  ;;  %v12200_v19 = vpop.f32.mrf.mxu0 }
  0xee   :  { %18047 = vst [vmem:[#allocation20_spill] sm:$0xff] %v13338_v39  ;;  %v549_v59 = vrot.slane %v366_v40, %v13160_v13  ;;  %v556_v28 = vrot.slane %v11079_v49, %v13160_v13  ;;  %v250_v60 = vadd.f32 %v12197_v20, %v13150_v0  ;;  %v13354_v63 = vrot.slane %v3983_v16, %v13160_v13 }
  0xef   :  { %v337_v41 = vmax.f32 %v226_v12, 0.0  ;;  %v13357_v2 = vrot.slane %v1977_v52, %v13160_v13  ;;  %v13364_v21 = vpack.i.b16 %v13332_v24, %v17800_v17  ;;  %v242_v16 = vadd.f32 %v13150_v0, %v241_v54  ;;  %v254_v42 = vpop.f32.mrf.mxu0 }
  0xf0   :  { %18048 = vst [vmem:[#allocation21_spill] sm:$0xff] %v13354_v63  ;;  %v557_v40 = vcombine.high %v549_v59, %v549_v59  ;;  %v13369_v20 = vrot.slane %v549_v59, %v13160_v13  ;;  %v342_v12 = vmax.f32 %v247_v25, 0.0  ;;  %v343_v38 = vmax.f32 %v250_v60, 0.0 }
  0xf1   :  { %18049 = vst [vmem:[#allocation22_spill] sm:$0xff] %v13357_v2  ;;  %18050 = vst [vmem:[#allocation23_spill] sm:$0xff] %v13364_v21  ;;  %v365_v49 = vpack.c.bf16 %v337_v41, %v336_v26  ;;  %v11078_v52 = vpack.c.bf16 %v337_v41, %v337_v41  ;;  %v13373_v18 = vrot.slane %v2487_v50, %v13160_v13  ;;  %v341_v60 = vmax.f32 %v242_v16, 0.0  ;;  %v12201_v4 = vpop.f32.mrf.mxu0 }
  0xf2   :  { %18051 = vst [vmem:[#allocation24_spill] sm:$0xff] %v13369_v20  ;;  %v558_v14 = vcombine.high %v556_v28, %v556_v28  ;;  %v13376_v32 = vrot.slane %v557_v40, %v13160_v13  ;;  %v239_v51 = vadd.f32 %v13150_v0, %v238_v43  ;;  %v1203_v36 = vunpack.i.h.s16 %v13369_v20 }
  0xf3   :  { %v500_v59 = vrot.slane %v365_v49, %v13160_v13  ;;  %v507_v54 = vrot.slane %v11078_v52, %v13160_v13  ;;  %v368_v26 = vpack.c.bf16 %v343_v38, %v342_v12  ;;  %v13383_v25 = vrot.slane %v3497_v7, %v13160_v13  ;;  %v257_v31 = vpop.f32.mrf.mxu0 }
  0xf4   :  { %v13386_v41 = vrot.slane %v3498_v8, %v13160_v13  ;;  %v11081_v50 = vpack.c.bf16 %v343_v38, %v343_v38  ;;  %v1183_v40 = vunpack.i.h.s16 %v13208_v58  ;;  %v13393_v49 = vrot.slane %v556_v28, %v13160_v13 }
  0xf5   :  { %18052 = vst [vmem:[#allocation25_spill] sm:$0xff] %v13383_v25  ;;  %v508_v35 = vcombine.high %v500_v59, %v500_v59  ;;  %v509_v33 = vcombine.high %v507_v54, %v507_v54  ;;  %v13390_v43 = vrot.slane %v500_v59, %v13160_v13  ;;  %v340_v52 = vmax.f32 %v239_v51, 0.0  ;;  %v12204_v9 = vpop.f32.mrf.mxu0 }
  0xf6   :  { %18053 = vst [vmem:[#allocation26_spill] sm:$0xff] %v13386_v41  ;;  %18055 = vst [vmem:[#allocation28_spill] sm:$0xff] %v13393_v49  ;;  %v647_v7 = vrot.slane %v368_v26, %v13160_v13  ;;  %v654_v12 = vrot.slane %v11081_v50, %v13160_v13  ;;  %v13398_v8 = vrot.slane %v558_v14, %v13160_v13 }
  0xf7   :  { %18054 = vst [vmem:[#allocation27_spill] sm:$0xff] %v13390_v43  ;;  %v13401_v38 = vpack.i.b16 %v13376_v32, %v1203_v36  ;;  %v13404_v16 = vrot.slane %v508_v35, %v13160_v13  ;;  %v13407_v59 = vrot.slane %v509_v33, %v13160_v13  ;;  %v13411_v28 = vcombine.high %v13369_v20, %v13369_v20 }
  0xf8   :  { %18056 = vst [vmem:[#allocation29_spill] sm:$0xff] %v13398_v8  ;;  %v13414_v51 = vrot.slane %v507_v54, %v13160_v13  ;;  %v1187_v26 = vunpack.i.h.s16 %v13390_v43  ;;  %v367_v14 = vpack.c.bf16 %v341_v60, %v340_v52  ;;  %v13418_v50 = vpack.i.b16 %v13369_v20, %v1183_v40 }
  0xf9   :  { %18057 = vst [vmem:[#allocation30_spill] sm:$0xff] %v13401_v38  ;;  %v13421_v17 = vpack.i.b16 %v1203_v36, %v13225_v5  ;;  %v13425_v33 = vcombine.high %v13407_v59, %v13407_v59  ;;  %v656_v35 = vcombine.high %v654_v12, %v654_v12  ;;  %v1978_v63 = vcombine.low %v13347_v15, %v13390_v43 }
  0xfa   :  { %18058 = vst [vmem:[#allocation31_spill] sm:$0xff] %v13414_v51  ;;  %18059 = vst [vmem:[#allocation32_spill] sm:$0xff] %v13418_v50  ;;  %v13430_v54 = vpack.i.b16 %v1187_v26, %v13332_v24  ;;  %v655_v45 = vcombine.high %v647_v7, %v647_v7  ;;  %v13433_v52 = vrot.slane %v654_v12, %v13160_v13 }
  0xfb   :  { %18060 = vst [vmem:[#allocation33_spill] sm:$0xff] %v13421_v17  ;;  %18061 = vst [vmem:[#allocation34_spill] sm:$0xff] %v13425_v33  ;;  %v13439_v36 = vcombine.high %v13390_v43, %v13390_v43  ;;  %v13442_v40 = vpack.i.b16 %v13404_v16, %v1187_v26  ;;  %v11080_v46 = vpack.c.bf16 %v341_v60, %v341_v60  ;;  %v1201_v56 = vunpack.i.h.s16 %v13425_v33 }
  0xfc   :  { %18062 = vst [vmem:[#allocation35_spill] sm:$0xff] %v13430_v54  ;;  %18063 = vst [vmem:[#allocation36_spill] sm:$0xff] %v13433_v52  ;;  %v13446_v15 = vcombine.high %v13414_v51, %v13414_v51  ;;  %v13451_v12 = vpack.i.b16 %v13390_v43, %v18066_v44  ;;  %v598_v17 = vrot.slane %v367_v14, %v13160_v13 }
  0xfd   :  { %18064 = vst [vmem:[#allocation37_spill] sm:$0xff] %v13439_v36  ;;  %v263_v5 = vadd.f32 %v12200_v19, %v13150_v0  ;;  %v13457_v21 = vrot.slane %v647_v7, %v13160_v13  ;;  %v13460_v60 = vrot.slane %v656_v35, %v13160_v13  ;;  %v605_v26 = vrot.slane %v11080_v46, %v13160_v13 }
  0xfe   :  { %18065 = vst [vmem:[#allocation38_spill] sm:$0xff] %v13446_v15  ;;  %v13464_v38 = vrot.slane %v1978_v63, %v13160_v13  ;;  %v13467_v44 = vrot.slane %v655_v45, %v13160_v13  ;;  %v13471_v19 = vcombine.high %v13433_v52, %v13433_v52  ;;  %v266_v14 = vadd.f32 %v12201_v4, %v13150_v0 }
  0xff   :  { %18067 = vst [vmem:[#allocation39_spill] sm:$0xff] %v13457_v21  ;;  %18068 = vst [vmem:[#allocation40_spill] sm:$0xff] %v13460_v60  ;;  %v606_v35 = vcombine.high %v598_v17, %v598_v17  ;;  %v607_v33 = vcombine.high %v605_v26, %v605_v26  ;;  %v255_v46 = vadd.f32 %v13150_v0, %v254_v42  ;;  %v346_v45 = vmax.f32 %v263_v5, 0.0 }
 0x100   :  { %18069 = vst [vmem:[#allocation41_spill] sm:$0xff] %v13464_v38  ;;  %18070 = vst [vmem:[#allocation42_spill] sm:$0xff] %v13467_v44  ;;  %v13480_v50 = vrot.slane %v605_v26, %v13160_v13  ;;  %v347_v11 = vmax.f32 %v266_v14, 0.0  ;;  %v13483_v10 = vpack.i.b16 %v1201_v56, %v13208_v58  ;;  %v13487_v4 = vcombine.high %v13460_v60, %v13460_v60 }
 0x101   :  { %18071 = vst [vmem:[#allocation43_spill] sm:$0xff] %v13471_v19  ;;  %v13490_v7 = vrot.slane %v598_v17, %v13160_v13  ;;  %v1047_v42 = vcombine.high %v13221_v3, %v13221_v3  ;;  %v1048_v5 = vcombine.high %v13252_v22, %v13252_v22  ;;  %v13498_v56 = vrot.slane %v13221_v3, %v13160_v13 }
 0x102   :  { %v370_v63 = vpack.c.bf16 %v347_v11, %v346_v45  ;;  %v11083_v6 = vpack.c.bf16 %v347_v11, %v347_v11  ;;  %v13501_v26 = vrot.slane %v606_v35, %v13160_v13  ;;  %v13504_v14 = vrot.slane %v607_v33, %v13160_v13 }
 0x103   :  { %18072 = vst [vmem:[#allocation44_spill] sm:$0xff] %v13498_v56  ;;  %v344_v17 = vmax.f32 %v255_v46, 0.0  ;;  %v258_v58 = vadd.f32 %v13150_v0, %v257_v31  ;;  %v13509_v45 = vcombine.high %v13480_v50, %v13480_v50  ;;  %v13515_v3 = vrot.slane %v13252_v22, %v13160_v13 }
 0x104   :  { %v745_v11 = vrot.slane %v370_v63, %v13160_v13  ;;  %v752_v43 = vrot.slane %v11083_v6, %v13160_v13  ;;  %v13518_v35 = vrot.slane %v1047_v42, %v13160_v13  ;;  %v18076_v46 = vmax.f32 %v13166_v27, 0.0 }
 0x105   :  { %18073 = vst [vmem:[#allocation45_spill] sm:$0xff] %v13509_v45  ;;  %18074 = vst [vmem:[#allocation46_spill] sm:$0xff] %v13515_v3  ;;  %v345_v33 = vmax.f32 %v258_v58, 0.0  ;;  %v11088_v19 = vpack.c.bf16 %v13192_v48, %v13192_v48  ;;  %v270_v45 = vpop.f32.mrf.mxu0  ;;  %v13529_v6 = vrot.slane %v1048_v5, %v13160_v13  ;;  %v13533_v22 = vcombine.high %v13498_v56, %v13498_v56 }
 0x106   :  { %18075 = vst [vmem:[#allocation47_spill] sm:$0xff] %v13518_v35  ;;  %v375_v31 = vpack.c.bf16 %v13192_v48, %v18076_v46  ;;  %v754_v25 = vcombine.high %v752_v43, %v752_v43  ;;  %v13526_v63 = vrot.slane %v752_v43, %v13160_v13  ;;  %v753_v41 = vcombine.high %v745_v11, %v745_v11 }
 0x107   :  { %18077 = vst [vmem:[#allocation48_spill] sm:$0xff] %v13529_v6  ;;  %18078 = vst [vmem:[#allocation49_spill] sm:$0xff] %v13533_v22  ;;  %v369_v58 = vpack.c.bf16 %v345_v33, %v344_v17  ;;  %v11082_v42 = vpack.c.bf16 %v345_v33, %v345_v33  ;;  %v997_v46 = vrot.slane %v11088_v19, %v13160_v13 }
 0x108   :  { %v990_v27 = vrot.slane %v375_v31, %v13160_v13  ;;  %v13538_v48 = vrot.slane %v754_v25, %v13160_v13  ;;  %v13542_v43 = vcombine.high %v13515_v3, %v13515_v3  ;;  %v279_v5 = vadd.f32 %v12204_v9, %v13150_v0  ;;  %v12205_v31 = vpop.f32.mrf.mxu0 }
 0x109   :  { %v1275_v54 = vunpack.i.h.s16 %v13526_v63  ;;  %v13548_v17 = vcombine.high %v13518_v35, %v13518_v35  ;;  %v696_v33 = vrot.slane %v369_v58, %v13160_v13  ;;  %v703_v19 = vrot.slane %v11082_v42, %v13160_v13 }
 0x10a   :  { %18079 = vst [vmem:[#allocation50_spill] sm:$0xff] %v13538_v48  ;;  %18080 = vst [vmem:[#allocation51_spill] sm:$0xff] %v13542_v43  ;;  %v13554_v25 = vcombine.high %v13529_v6, %v13529_v6  ;;  %v998_v30 = vcombine.high %v990_v27, %v990_v27  ;;  %v13560_v61 = vrot.slane %v745_v11, %v13160_v13  ;;  %v350_v37 = vmax.f32 %v279_v5, 0.0  ;;  %v273_v43 = vpop.f32.mrf.mxu0 }
 0x10b   :  { %18081 = vst [vmem:[#allocation52_spill] sm:$0xff] %v13548_v17  ;;  %v704_v55 = vcombine.high %v696_v33, %v696_v33  ;;  %v999_v2 = vcombine.high %v997_v46, %v997_v46  ;;  %v13563_v58 = vrot.slane %v990_v27, %v13160_v13  ;;  %v13566_v42 = vrot.slane %v753_v41, %v13160_v13  ;;  %v321_v41 = vpop.f32.mrf.mxu1 }
 0x10c   :  { %18082 = vst [vmem:[#allocation53_spill] sm:$0xff] %v13554_v25  ;;  %18083 = vst [vmem:[#allocation54_spill] sm:$0xff] %v13560_v61  ;;  %v13570_v38 = vcombine.high %v13538_v48, %v13538_v48  ;;  %v362_v25 = vmax.f32 %v13197_v53, 0.0  ;;  %v13574_v9 = vpack.i.b16 %v13538_v48, %v1275_v54  ;;  %v705_v11 = vcombine.high %v703_v19, %v703_v19 }
 0x10d   :  { %18084 = vst [vmem:[#allocation55_spill] sm:$0xff] %v13563_v58  ;;  %18085 = vst [vmem:[#allocation56_spill] sm:$0xff] %v13566_v42  ;;  %v13577_v3 = vrot.slane %v696_v33, %v13160_v13  ;;  %v13580_v27 = vrot.slane %v997_v46, %v13160_v13  ;;  %v13583_v6 = vrot.slane %v703_v19, %v13160_v13 }
 0x10e   :  { %18086 = vst [vmem:[#allocation57_spill] sm:$0xff] %v13570_v38  ;;  %18087 = vst [vmem:[#allocation58_spill] sm:$0xff] %v13574_v9  ;;  %v13586_v22 = vrot.slane %v998_v30, %v13160_v13  ;;  %v378_v5 = vpack.c.bf16 %v362_v25, %v362_v25  ;;  %v271_v53 = vadd.f32 %v13150_v0, %v270_v45 }
 0x10f   :  { %18088 = vst [vmem:[#allocation59_spill] sm:$0xff] %v13580_v27  ;;  %v13590_v54 = vrot.slane %v704_v55, %v13160_v13  ;;  %v13593_v33 = vrot.slane %v999_v2, %v13160_v13  ;;  %v13597_v46 = vcombine.high %v13563_v58, %v13563_v58  ;;  %v319_v19 = vadd.f32 %v13150_v0, %v13169_v29  ;;  %v12208_v58 = vpop.f32.mrf.mxu0 }
 0x110   :  { %18089 = vst [vmem:[#allocation60_spill] sm:$0xff] %v13586_v22  ;;  %v1136_v9 = vrot.slane %v378_v5, %v13160_v13  ;;  %v282_v30 = vadd.f32 %v12205_v31, %v13150_v0  ;;  %v274_v25 = vadd.f32 %v13150_v0, %v273_v43  ;;  %v322_v45 = vadd.f32 %v13150_v0, %v321_v41 }
 0x111   :  { %18090 = vst [vmem:[#allocation61_spill] sm:$0xff] %v13597_v46  ;;  %v13606_v55 = vrot.slane %v705_v11, %v13160_v13  ;;  %v360_v2 = vmax.f32 %v319_v19, 0.0  ;;  %v18091_v48 = vcombine.low %v13300_v57, %v13307_v62  ;;  %v18092_v29 = vcombine.low %v13451_v12, %v13442_v40  ;;  %v286_v38 = vpop.f32.mrf.mxu0 }
 0x112   :  { %v13618_v43 = vcombine.high %v13583_v6, %v13583_v6  ;;  %v348_v31 = vmax.f32 %v271_v53, 0.0  ;;  %v351_v41 = vmax.f32 %v282_v30, 0.0  ;;  %v349_v11 = vmax.f32 %v274_v25, 0.0 }
 0x113   :  { %v2504_v46 = vrot.slane %v18091_v48, %v13160_v13  ;;  %v2518_v5 = vrot.slane %v18092_v29, %v13160_v13  ;;  %v13622_v19 = vcombine.high %v13586_v22, %v13586_v22  ;;  %v1137_v56 = vcombine.high %v1136_v9, %v1136_v9 }
 0x114   :  { %18093 = vst [vmem:[#allocation62_spill] sm:$0xff] %v13618_v43  ;;  %v361_v62 = vmax.f32 %v322_v45, 0.0  ;;  %v18095_v48 = vcombine.low %v13310_v1, %v13338_v39  ;;  %v372_v12 = vpack.c.bf16 %v351_v41, %v350_v37  ;;  %v11085_v29 = vpack.c.bf16 %v351_v41, %v351_v41 }
 0x115   :  { %18094 = vst [vmem:[#allocation63_spill] sm:$0xff] %v13622_v19  ;;  %v371_v57 = vpack.c.bf16 %v349_v11, %v348_v31  ;;  %v2519_v35 = vcombine.low %v13373_v18, %v2504_v46  ;;  %v11084_v53 = vpack.c.bf16 %v349_v11, %v349_v11  ;;  %v295_v1 = vadd.f32 %v12208_v58, %v13150_v0 }
 0x116   :  { %v2511_v40 = vrot.slane %v18095_v48, %v13160_v13  ;;  %v377_v30 = vpack.c.bf16 %v361_v62, %v360_v2  ;;  %v11090_v25 = vpack.c.bf16 %v361_v62, %v361_v62  ;;  %v843_v19 = vrot.slane %v372_v12, %v13160_v13 }
 0x117   :  { %v850_v45 = vrot.slane %v11085_v29, %v13160_v13  ;;  %v794_v22 = vrot.slane %v371_v57, %v13160_v13  ;;  %v13635_v37 = vcombine.high %v13606_v55, %v13606_v55  ;;  %v13639_v18 = vcombine.high %v13593_v33, %v13593_v33 }
 0x118   :  { %v2520_v17 = vcombine.low %v2511_v40, %v2518_v5  ;;  %v801_v62 = vrot.slane %v11084_v53, %v13160_v13  ;;  %v1095_v46 = vrot.slane %v11090_v25, %v13160_v13  ;;  %v13644_v2 = vrot.slane %v1136_v9, %v13160_v13  ;;  %v12209_v40 = vpop.f32.mrf.mxu0 }
 0x119   :  { %18096 = vst [vmem:[#allocation64_spill] sm:$0xff] %v13635_v37  ;;  %18097 = vst [vmem:[#allocation65_spill] sm:$0xff] %v13639_v18  ;;  %v851_v5 = vcombine.high %v843_v19, %v843_v19  ;;  %v852_v31 = vcombine.high %v850_v45, %v850_v45  ;;  %v13647_v57 = vrot.slane %v850_v45, %v13160_v13  ;;  %v354_v53 = vmax.f32 %v295_v1, 0.0 }
 0x11a   :  { %18098 = vst [vmem:[#allocation66_spill] sm:$0xff] %v13644_v2  ;;  %v13650_v58 = vrot.slane %v1137_v56, %v13160_v13  ;;  %v802_v41 = vcombine.high %v794_v22, %v794_v22  ;;  %v1088_v11 = vrot.slane %v377_v30, %v13160_v13  ;;  %v2534_v48 = vrot.slane %v2520_v17, %v13160_v13 }
 0x11b   :  { %18099 = vst [vmem:[#allocation67_spill] sm:$0xff] %v13647_v57  ;;  %v13655_v12 = vrot.slane %v852_v31, %v13160_v13  ;;  %v803_v29 = vcombine.high %v801_v62, %v801_v62  ;;  %v2527_v9 = vrot.slane %v2519_v35, %v13160_v13  ;;  %v13659_v25 = vrot.slane %v843_v19, %v13160_v13  ;;  %v12516_v35 = vld [vmem:[%s17786_s3 + $0x98] sm:$0xff]  }
 0x11c   :  { %18100 = vst [vmem:[#allocation68_spill] sm:$0xff] %v13650_v58  ;;  %v13662_v45 = vrot.slane %v794_v22, %v13160_v13  ;;  %v1096_v56 = vcombine.high %v1088_v11, %v1088_v11  ;;  %v1097_v18 = vcombine.high %v1095_v46, %v1095_v46  ;;  %v13665_v30 = vrot.slane %v851_v5, %v13160_v13  ;;  %v289_v58 = vpop.f32.mrf.mxu0 }
 0x11d   :  { %18101 = vst [vmem:[#allocation69_spill] sm:$0xff] %v13655_v12  ;;  %18102 = vst [vmem:[#allocation70_spill] sm:$0xff] %v13659_v25  ;;  %v13669_v17 = vcombine.high %v13647_v57, %v13647_v57  ;;  %v13672_v31 = vrot.slane %v801_v62, %v13160_v13  ;;  %v13675_v1 = vrot.slane %v1095_v46, %v13160_v13 }
 0x11e   :  { %18103 = vst [vmem:[#allocation71_spill] sm:$0xff] %v13665_v30  ;;  %v13681_v22 = vrot.slane %v802_v41, %v13160_v13  ;;  %v2535_v19 = vcombine.low %v2527_v9, %v2534_v48  ;;  %v287_v5 = vadd.f32 %v13150_v0, %v286_v38  ;;  %v1474_v39 = vcombine.low %v13483_v10, %v13369_v20 }
 0x11f   :  { %18104 = vst [vmem:[#allocation72_spill] sm:$0xff] %v13669_v17  ;;  %18105 = vst [vmem:[#allocation73_spill] sm:$0xff] %v13675_v1  ;;  %v13688_v62 = vcombine.high %v13655_v12, %v13655_v12  ;;  %v13691_v46 = vrot.slane %v803_v29, %v13160_v13  ;;  %v13694_v2 = vrot.slane %v1088_v11, %v13160_v13 }
 0x120   :  { %v298_v41 = vadd.f32 %v12209_v40, %v13150_v0  ;;  %v13698_v48 = vrot.slane %v1096_v56, %v13160_v13  ;;  %v13701_v38 = vrot.slane %v1097_v18, %v13160_v13  ;;  %v13705_v10 = vcombine.high %v13675_v1, %v13675_v1  ;;  %12299 = vmatmul.mubr.msk.bf16.vlgmr.msra.gmra.mxu0 %vm1813_vm3, %v2535_v19  ;;  %v12518_v19 = vld [vmem:[%s17786_s3 + $0x90] sm:$0xff]  }
 0x121   :  { %18106 = vst [vmem:[#allocation74_spill] sm:$0xff] %v13688_v62  ;;  %18107 = vst [vmem:[#allocation75_spill] sm:$0xff] %v13694_v2  ;;  %v1502_v29 = vrot.slane %v1474_v39, %v13160_v13  ;;  %v18111_v11 = vcombine.low %v13272_v34, %v13287_v47  ;;  %v290_v20 = vadd.f32 %v13150_v0, %v289_v58  ;;  %v18112_v18 = vmov 0.0   ;;  %12363 = vmatpush3.bf16.msra.mxu0 %v12516_v35 }
 0x122   :  { %18108 = vst [vmem:[#allocation76_spill] sm:$0xff] %v13698_v48  ;;  %18109 = vst [vmem:[#allocation77_spill] sm:$0xff] %v13701_v38  ;;  %v355_v56 = vmax.f32 %v298_v41, 0.0  ;;  %12302 = vmatprep.mubr.msk.bf16.mxu0 %vm12918_vm2, %v18112_v18  ;;  %v352_v12 = vmax.f32 %v287_v5, 0.0  ;;  %v13723_v9 = vcombine.high %v13580_v27, %v13580_v27  ;;  %v13727_v34 = vcombine.high %v13404_v16, %v13404_v16 }
 0x123   :  { %18110 = vst [vmem:[#allocation78_spill] sm:$0xff] %v13705_v10  ;;  %v1511_v40 = vrot.slane %v18111_v11, %v13160_v13  ;;  %v1504_v39 = vcombine.low %v13319_v23, %v1502_v29  ;;  %12364 = vmatprep.subr.bf16.mxu0 %v18112_v18  ;;  %v353_v58 = vmax.f32 %v290_v20, 0.0  ;;  %v13732_v35 = vcombine.high %v13398_v8, %v13398_v8 }
 0x124   :  { %18113 = vst [vmem:[#allocation79_spill] sm:$0xff] %v13723_v9  ;;  %18114 = vst [vmem:[#allocation80_spill] sm:$0xff] %v13727_v34  ;;  %v374_v0 = vpack.c.bf16 %v355_v56, %v354_v53  ;;  %v11087_v47 = vpack.c.bf16 %v355_v56, %v355_v56  ;;  %v13737_v23 = vcombine.high %v13490_v7, %v13490_v7  ;;  %v1189_v29 = vunpack.i.h.s16 %v13404_v16  ;;  %v12513_v53 = vld [vmem:[%s17786_s3 + $0x18] sm:$0xff]  }
 0x125   :  { %18115 = vst [vmem:[#allocation81_spill] sm:$0xff] %v13732_v35  ;;  %v1518_v5 = vrot.slane %v1504_v39, %v13160_v13  ;;  %v373_v56 = vpack.c.bf16 %v353_v58, %v352_v12  ;;  %v11086_v9 = vpack.c.bf16 %v353_v58, %v353_v58  ;;  %12365 = vmatpush3.bf16.msra.mxu0 %v12518_v19  ;;  %v1191_v48 = vunpack.i.h.s16 %v13439_v36  ;;  %v12519_v12 = vld [vmem:[%s17786_s3 + $0x88] sm:$0xff]  }
 0x126   :  { %v941_v20 = vrot.slane %v374_v0, %v13160_v13  ;;  %v948_v11 = vrot.slane %v11087_v47, %v13160_v13  ;;  %v1193_v2 = vunpack.i.h.s16 %v13727_v34  ;;  %v1195_v41 = vunpack.i.h.s16 %v13414_v51  ;;  %12366 = vmatprep.subr.bf16.mxu0 %v18112_v18 }
 0x127   :  { %v1519_v39 = vcombine.low %v1511_v40, %v1518_v5  ;;  %v1197_v0 = vunpack.i.h.s16 %v13407_v59  ;;  %v892_v40 = vrot.slane %v373_v56, %v13160_v13  ;;  %v899_v19 = vrot.slane %v11086_v9, %v13160_v13  ;;  %v12514_v9 = vld [vmem:[%s17786_s3 + $0x10] sm:$0xff]  }
 0x128   :  { %v949_v38 = vcombine.high %v941_v20, %v941_v20  ;;  %v950_v10 = vcombine.high %v948_v11, %v948_v11  ;;  %v13751_v27 = vrot.slane %v948_v11, %v13160_v13  ;;  %v1217_v47 = vunpack.i.h.s16 %v13732_v35 }
 0x129   :  { %12227 = vmatmul.mubr.msk.bf16.vlgmr.msra.gmra.mxu1 %vm1813_vm3, %v1519_v39  ;;  %v1219_v58 = vunpack.i.h.s16 %v13490_v7  ;;  %v13763_v5 = vrot.slane %v941_v20, %v13160_v13  ;;  %v13772_v39 = vpack.i.b16 %v13439_v36, %v1189_v29  ;;  %v900_v56 = vcombine.high %v892_v40, %v892_v40  ;;  %12367 = vmatpush3.bf16.msra.mxu0 %v12519_v12 }
 0x12a   :  { %18116 = vst [vmem:[#allocation82_spill] sm:$0xff] %v13751_v27  ;;  %12255 = vmatpush3.bf16.msra.mxu1 %v12513_v53  ;;  %v13766_v11 = vrot.slane %v949_v38, %v13160_v13  ;;  %v13769_v1 = vrot.slane %v950_v10, %v13160_v13  ;;  %v901_v35 = vcombine.high %v899_v19, %v899_v19 }
 0x12b   :  { %18117 = vst [vmem:[#allocation83_spill] sm:$0xff] %v13763_v5  ;;  %v13778_v53 = vrot.slane %v899_v19, %v13160_v13  ;;  %v13781_v20 = vpack.i.b16 %v13727_v34, %v1191_v48  ;;  %12230 = vmatprep.mubr.msk.bf16.mxu1 %vm12918_vm2, %v18112_v18  ;;  %v13787_v38 = vcombine.high %v13751_v27, %v13751_v27  ;;  %v1221_v19 = vunpack.i.h.s16 %v13501_v26  ;;  %v12520_v48 = vld [vmem:[%s17786_s3 + $0x80] sm:$0xff]  }
 0x12c   :  { %18118 = vst [vmem:[#allocation84_spill] sm:$0xff] %v13766_v11  ;;  %18119 = vst [vmem:[#allocation85_spill] sm:$0xff] %v13769_v1  ;;  %v13791_v10 = vcombine.high %v13766_v11, %v13766_v11  ;;  %v13794_v29 = vrot.slane %v892_v40, %v13160_v13  ;;  %12256 = vmatprep.subr.bf16.mxu1 %v18112_v18  ;;  %v13803_v34 = vcombine.high %v13769_v1, %v13769_v1 }
 0x12d   :  { %18120 = vst [vmem:[#allocation86_spill] sm:$0xff] %v13778_v53  ;;  %18121 = vst [vmem:[#allocation87_spill] sm:$0xff] %v13781_v20  ;;  %v13810_v40 = vrot.slane %v901_v35, %v13160_v13  ;;  %12368 = vmatprep.subr.bf16.mxu0 %v18112_v18  ;;  %v13818_v17 = vcombine.high %v13778_v53, %v13778_v53  ;;  %v12515_v35 = vld [vmem:[%s17786_s3 + $0x8] sm:$0xff]   ;;  %v13832_v62 = vpack.i.b16 %v13407_v59, %v1195_v41 }
 0x12e   :  { %18122 = vst [vmem:[#allocation88_spill] sm:$0xff] %v13787_v38  ;;  %18123 = vst [vmem:[#allocation89_spill] sm:$0xff] %v13791_v10  ;;  %v13807_v38 = vrot.slane %v900_v56, %v13160_v13  ;;  %v1337_v12 = vunpack.i.h.s16 %v13791_v10  ;;  %12257 = vmatpush3.bf16.msra.mxu1 %v12514_v9  ;;  %v13835_v1 = vpack.i.b16 %v13446_v15, %v1197_v0  ;;  %12369 = vmatpush3.bf16.msra.mxu0 %v12520_v48 }
 0x12f   :  { %18124 = vst [vmem:[#allocation90_spill] sm:$0xff] %v13803_v34  ;;  %18126 = vst [vmem:[#allocation92_spill] sm:$0xff] %v13810_v40  ;;  %v13821_v34 = vpack.i.b16 %v13414_v51, %v1193_v2  ;;  %v1325_v36 = vunpack.i.h.s16 %v13810_v40  ;;  %12258 = vmatprep.subr.bf16.mxu1 %v18112_v18  ;;  %v13840_v2 = vcombine.high %v13810_v40, %v13810_v40  ;;  %12434 = vmatprep.subr.bf16.mxu0 %v18112_v18 }
 0x130   :  { %18125 = vst [vmem:[#allocation91_spill] sm:$0xff] %v13807_v38  ;;  %18127 = vst [vmem:[#allocation93_spill] sm:$0xff] %v13818_v17  ;;  %v13828_v56 = vcombine.high %v13807_v38, %v13807_v38  ;;  %v11160_v9 = vpack.i.b16 %v13490_v7, %v1217_v47  ;;  %v13844_v51 = vpack.i.b16 %v13501_v26, %v1219_v58 }
 0x131   :  { %18128 = vst [vmem:[#allocation94_spill] sm:$0xff] %v13821_v34  ;;  %18129 = vst [vmem:[#allocation95_spill] sm:$0xff] %v13832_v62  ;;  %v13847_v38 = vpack.i.b16 %v13737_v23, %v1221_v19  ;;  %v13850_v41 = vpack.i.b16 %v13751_v27, %v1337_v12  ;;  %v2536_v15 = vcombine.low %v13772_v39, %v13781_v20  ;;  %v18135_v19 = vunpack.i.h.s16 %v13332_v24 }
 0x132   :  { %18130 = vst [vmem:[#allocation96_spill] sm:$0xff] %v13835_v1  ;;  %18131 = vst [vmem:[#allocation97_spill] sm:$0xff] %v13840_v2  ;;  %v1321_v0 = vunpack.i.h.s16 %v13828_v56  ;;  %v2537_v40 = vcombine.low %v13821_v34, %v13832_v62  ;;  %v2538_v47 = vcombine.low %v13835_v1, %v11160_v9  ;;  %v13868_v12 = vcombine.high %v13376_v32, %v13376_v32 }
 0x133   :  { %18132 = vst [vmem:[#allocation98_spill] sm:$0xff] %v13844_v51  ;;  %18133 = vst [vmem:[#allocation99_spill] sm:$0xff] %v13847_v38  ;;  %v2539_v58 = vcombine.low %v13844_v51, %v13847_v38  ;;  %v13864_v48 = vpack.i.b16 %v13404_v16, %v18135_v19  ;;  %12259 = vmatpush3.bf16.msra.mxu1 %v12515_v35  ;;  %v13874_v62 = vpack.i.b16 %v1325_v36, %v13647_v57 }
 0x134   :  { %18134 = vst [vmem:[#allocation100_spill] sm:$0xff] %v13850_v41  ;;  %18136 = vst [vmem:[#allocation101_spill] sm:$0xff] %v13868_v12  ;;  %v12517_v41 = vld [vmem:[%s17786_s3] sm:$0xff]   ;;  %v2546_v9 = vrot.slane %v2536_v15, %v13160_v13  ;;  %v2553_v51 = vrot.slane %v2537_v40, %v13160_v13  ;;  %v13880_v24 = vcombine.high %v13504_v14, %v13504_v14  ;;  %12260 = vmatprep.subr.bf16.mxu1 %v18112_v18 }
 0x135   :  { %v2560_v19 = vrot.slane %v2538_v47, %v13160_v13  ;;  %v2567_v35 = vrot.slane %v2539_v58, %v13160_v13  ;;  %v1520_v36 = vcombine.low %v13376_v32, %v13411_v28  ;;  %v1521_v15 = vcombine.low %v13868_v12, %v13393_v49 }
 0x136   :  { %18137 = vst [vmem:[#allocation102_spill] sm:$0xff] %v13880_v24  ;;  %v2568_v57 = vcombine.low %v2546_v9, %v2553_v51  ;;  %v1522_v40 = vcombine.low %v13398_v8, %v13880_v24  ;;  %v1523_v1 = vcombine.low %v13457_v21, %v13467_v44  ;;  %v13896_v47 = vpack.i.b16 %v13778_v53, %v1321_v0 }
 0x137   :  { %v2569_v58 = vcombine.low %v2560_v19, %v2567_v35  ;;  %v1530_v20 = vrot.slane %v1520_v36, %v13160_v13  ;;  %v13901_v38 = vcombine.high %v13501_v26, %v13501_v26  ;;  %12261 = vmatpush3.bf16.msra.mxu1 %v12517_v41  ;;  %v1537_v9 = vrot.slane %v1521_v15, %v13160_v13 }
 0x138   :  { %18138 = vst [vmem:[#allocation103_spill] sm:$0xff] %v13896_v47  ;;  %v2576_v51 = vrot.slane %v2568_v57, %v13160_v13  ;;  %v1544_v34 = vrot.slane %v1522_v40, %v13160_v13  ;;  %v1551_v24 = vrot.slane %v1523_v1, %v13160_v13  ;;  %12326 = vmatprep.subr.bf16.mxu1 %v18112_v18  ;;  %v1223_v57 = vunpack.i.h.s16 %v13737_v23 }
 0x139   :  { %v2583_v0 = vrot.slane %v2569_v58, %v13160_v13  ;;  %v13911_v19 = vcombine.high %v13577_v3, %v13577_v3  ;;  %v13915_v35 = vcombine.high %v13590_v54, %v13590_v54  ;;  %v1552_v41 = vcombine.low %v1530_v20, %v1537_v9 }
 0x13a   :  { %v1553_v36 = vcombine.low %v1544_v34, %v1551_v24  ;;  %v1225_v15 = vunpack.i.h.s16 %v13901_v38  ;;  %v1227_v1 = vunpack.i.h.s16 %v13480_v50  ;;  %v17899_v8 = vunpack.i.h.s16 %v13504_v14 }
 0x13b   :  { %v2584_v40 = vcombine.low %v2576_v51, %v2583_v0  ;;  %v17900_v58 = vunpack.i.h.s16 %v13487_v4  ;;  %v1251_v49 = vunpack.i.h.s16 %v13577_v3  ;;  %v1560_v27 = vrot.slane %v1552_v41, %v13160_v13 }
 0x13c   :  { %v1567_v53 = vrot.slane %v1553_v36, %v13160_v13  ;;  %v1253_v12 = vunpack.i.h.s16 %v13590_v54  ;;  %v1255_v20 = vunpack.i.h.s16 %v13911_v19  ;;  %v13929_v34 = vpack.i.b16 %v13901_v38, %v1223_v57 }
 0x13d   :  { %12303 = vmatmul.mubr.msk.bf16.gmra.mxu0 %vm1813_vm3, %v2584_v40  ;;  %v13932_v24 = vpack.i.b16 %v13480_v50, %v1225_v15  ;;  %v13935_v51 = vpack.i.b16 %v13504_v14, %v1227_v1  ;;  %v11166_v9 = vpack.i.b16 %v13487_v4, %v17899_v8  ;;  %v11167_v41 = vpack.i.b16 %v13577_v3, %v17900_v58 }
 0x13e   :  { %18139 = vst [vmem:[#allocation104_spill] sm:$0xff] %v13929_v34  ;;  %v1568_v0 = vcombine.low %v1560_v27, %v1567_v53  ;;  %12306 = vmatprep.mubr.msk.bf16.mxu0 %vm12918_vm2, %v18112_v18  ;;  %v13946_v57 = vpack.i.b16 %v13590_v54, %v1251_v49  ;;  %v13949_v36 = vpack.i.b16 %v13911_v19, %v1253_v12  ;;  %v1263_v40 = vunpack.i.h.s16 %v13618_v43 }
 0x13f   :  { %18140 = vst [vmem:[#allocation105_spill] sm:$0xff] %v13932_v24  ;;  %18141 = vst [vmem:[#allocation106_spill] sm:$0xff] %v13935_v51  ;;  %v13952_v15 = vpack.i.b16 %v13915_v35, %v1255_v20  ;;  %v2585_v1 = vcombine.low %v13929_v34, %v13932_v24  ;;  %v2586_v27 = vcombine.low %v13935_v51, %v11166_v9 }
 0x140   :  { %18142 = vst [vmem:[#allocation107_spill] sm:$0xff] %v13946_v57  ;;  %18143 = vst [vmem:[#allocation108_spill] sm:$0xff] %v13949_v36  ;;  %v13959_v53 = vcombine.high %v13560_v61, %v13560_v61  ;;  %12231 = vmatmul.mubr.msk.bf16.gmra.mxu1 %vm1813_vm3, %v1568_v0  ;;  %v2587_v49 = vcombine.low %v11167_v41, %v13946_v57  ;;  %v11104_v12 = vcombine.high %v13457_v21, %v13467_v44 }
 0x141   :  { %18144 = vst [vmem:[#allocation109_spill] sm:$0xff] %v13952_v15  ;;  %v1571_v20 = vcombine.low %v13635_v37, %v13560_v61  ;;  %v2588_v8 = vcombine.low %v13949_v36, %v13952_v15  ;;  %v2595_v9 = vrot.slane %v2585_v1, %v13160_v13  ;;  %v2602_v58 = vrot.slane %v2586_v27, %v13160_v13 }
 0x142   :  { %18145 = vst [vmem:[#allocation110_spill] sm:$0xff] %v13959_v53  ;;  %12234 = vmatprep.mubr.msk.bf16.mxu1 %vm12918_vm2, %v18112_v18  ;;  %v1572_v0 = vcombine.low %v13566_v42, %v13959_v53  ;;  %v2609_v41 = vrot.slane %v2587_v49, %v13160_v13  ;;  %v11100_v43 = vpack.i.b16 %v1263_v40, %v13460_v60  ;;  %v18167_v60 = vld [vmem:[#allocation73_spill] sm:$0xff] }
 0x143   :  { %v1579_v57 = vrot.slane %v11104_v12, %v13160_v13  ;;  %v1593_v24 = vrot.slane %v1571_v20, %v13160_v13  ;;  %v2616_v36 = vrot.slane %v2588_v8, %v13160_v13  ;;  %v2617_v15 = vcombine.low %v2595_v9, %v2602_v58 }
 0x144   :  { %v1600_v1 = vrot.slane %v1572_v0, %v13160_v13  ;;  %v13984_v27 = vcombine.high %v13566_v42, %v13566_v42  ;;  %v1570_v51 = vcombine.low %v13433_v52, %v11100_v43  ;;  %v11105_v49 = vcombine.high %v13672_v31, %v13691_v46 }
 0x145   :  { %v1620_v40 = vcombine.low %v13659_v25, %v13665_v30  ;;  %v11106_v12 = vcombine.high %v13659_v25, %v13665_v30  ;;  %v2618_v20 = vcombine.low %v2609_v41, %v2616_v36  ;;  %v2625_v8 = vrot.slane %v2617_v15, %v13160_v13 }
 0x146   :  { %18146 = vst [vmem:[#allocation111_spill] sm:$0xff] %v13984_v27  ;;  %v1602_v58 = vcombine.low %v1593_v24, %v1600_v1  ;;  %v1618_v9 = vcombine.low %v13984_v27, %v13526_v63  ;;  %v1586_v0 = vrot.slane %v1570_v51, %v13160_v13  ;;  %v1635_v43 = vrot.slane %v11105_v49, %v13160_v13 }
 0x147   :  { %v1642_v53 = vrot.slane %v1620_v40, %v13160_v13  ;;  %v1649_v42 = vrot.slane %v11106_v12, %v13160_v13  ;;  %v2632_v61 = vrot.slane %v2618_v20, %v13160_v13  ;;  %v784_v24 = vcombine.high %v13526_v63, %v13526_v63 }
 0x148   :  { %v1616_v37 = vrot.slane %v1602_v58, %v13160_v13  ;;  %v1628_v36 = vrot.slane %v1618_v9, %v13160_v13  ;;  %v1601_v15 = vcombine.low %v1579_v57, %v1586_v0  ;;  %v14007_v51 = vcombine.high %v13662_v45, %v13662_v45 }
 0x149   :  { %v1651_v41 = vcombine.low %v1642_v53, %v1649_v42  ;;  %v14011_v1 = vcombine.high %v13681_v22, %v13681_v22  ;;  %v2633_v49 = vcombine.low %v2625_v8, %v2632_v61  ;;  %v1257_v12 = vunpack.i.h.s16 %v13915_v35  ;;  %v18147_v42 = vld [vmem:[#allocation57_spill] sm:$0xff] }
 0x14a   :  { %v1650_v40 = vcombine.low %v1628_v36, %v1635_v43  ;;  %v1259_v20 = vunpack.i.h.s16 %v13583_v6  ;;  %v1609_v58 = vrot.slane %v1601_v15, %v13160_v13  ;;  %v1279_v57 = vunpack.i.h.s16 %v784_v24 }
 0x14b   :  { %v1665_v9 = vrot.slane %v1651_v41, %v13160_v13  ;;  %v1281_v53 = vunpack.i.h.s16 %v18147_v42  ;;  %12307 = vmatmul.mubr.msk.bf16.gmra.mxu0 %vm1813_vm3, %v2633_v49  ;;  %v1283_v30 = vunpack.i.h.s16 %v13662_v45  ;;  %v1285_v61 = vunpack.i.h.s16 %v13681_v22 }
 0x14c   :  { %v1658_v0 = vrot.slane %v1650_v40, %v13160_v13  ;;  %v1287_v8 = vunpack.i.h.s16 %v14007_v51  ;;  %v1617_v43 = vcombine.low %v1609_v58, %v1616_v37  ;;  %12310 = vmatprep.mubr.msk.bf16.mxu0 %vm12918_vm2, %v18112_v18  ;;  %v1289_v36 = vunpack.i.h.s16 %v14011_v1 }
 0x14d   :  { %v14027_v24 = vpack.i.b16 %v13583_v6, %v1257_v12  ;;  %v14030_v15 = vpack.i.b16 %v13606_v55, %v1259_v20  ;;  %v11173_v49 = vpack.i.b16 %v18147_v42, %v1279_v57  ;;  %v14034_v40 = vpack.i.b16 %v13662_v45, %v1281_v53 }
 0x14e   :  { %v1666_v41 = vcombine.low %v1658_v0, %v1665_v9  ;;  %v14037_v25 = vpack.i.b16 %v13681_v22, %v1283_v30  ;;  %12235 = vmatmul.mubr.msk.bf16.gmra.mxu1 %vm1813_vm3, %v1617_v43  ;;  %v14041_v37 = vpack.i.b16 %v14007_v51, %v1285_v61  ;;  %v14044_v12 = vpack.i.b16 %v14011_v1, %v1287_v8 }
 0x14f   :  { %18148 = vst [vmem:[#allocation57_spill] sm:$0xff] %v14027_v24  ;;  %18149 = vst [vmem:[#allocation112_spill] sm:$0xff] %v14030_v15  ;;  %v14047_v20 = vpack.i.b16 %v13672_v31, %v1289_v36  ;;  %v2634_v58 = vcombine.low %v14027_v24, %v14030_v15  ;;  %12238 = vmatprep.mubr.msk.bf16.mxu1 %vm12918_vm2, %v18112_v18  ;;  %v2635_v30 = vcombine.low %v11173_v49, %v14034_v40 }
 0x150   :  { %18150 = vst [vmem:[#allocation113_spill] sm:$0xff] %v14034_v40  ;;  %18151 = vst [vmem:[#allocation114_spill] sm:$0xff] %v14037_v25  ;;  %v14056_v9 = vcombine.high %v13763_v5, %v13763_v5  ;;  %v1667_v57 = vcombine.low %v13874_v62, %v13818_v17  ;;  %v1668_v53 = vcombine.low %v13840_v2, %v13763_v5 }
 0x151   :  { %18152 = vst [vmem:[#allocation115_spill] sm:$0xff] %v14041_v37  ;;  %18153 = vst [vmem:[#allocation116_spill] sm:$0xff] %v14044_v12  ;;  %v2636_v0 = vcombine.low %v14037_v25, %v14041_v37  ;;  %v2637_v61 = vcombine.low %v14044_v12, %v14047_v20  ;;  %v2644_v8 = vrot.slane %v2634_v58, %v13160_v13  ;;  %v18158_v25 = vld [vmem:[#allocation91_spill] sm:$0xff] }
 0x152   :  { %18154 = vst [vmem:[#allocation117_spill] sm:$0xff] %v14047_v20  ;;  %18155 = vst [vmem:[#allocation118_spill] sm:$0xff] %v14056_v9  ;;  %v1670_v43 = vcombine.low %v13791_v10, %v13593_v33  ;;  %v2651_v36 = vrot.slane %v2635_v30, %v13160_v13  ;;  %v1669_v49 = vcombine.low %v13766_v11, %v14056_v9  ;;  %v17937_v9 = vunpack.i.h.s16 %v13672_v31 }
 0x153   :  { %v1677_v62 = vrot.slane %v1667_v57, %v13160_v13  ;;  %v1684_v5 = vrot.slane %v1668_v53, %v13160_v13  ;;  %v2658_v2 = vrot.slane %v2636_v0, %v13160_v13  ;;  %v2665_v17 = vrot.slane %v2637_v61, %v13160_v13  ;;  %v18156_v57 = vld [vmem:[#allocation72_spill] sm:$0xff]  ;;  %v18157_v53 = vld [vmem:[#allocation74_spill] sm:$0xff] }
 0x154   :  { %v1698_v20 = vrot.slane %v1670_v43, %v13160_v13  ;;  %v14079_v58 = vcombine.high %v13794_v29, %v13794_v29  ;;  %v2666_v10 = vcombine.low %v2644_v8, %v2651_v36  ;;  %v1691_v30 = vrot.slane %v1669_v49, %v13160_v13  ;;  %v18163_v49 = vld [vmem:[#allocation85_spill] sm:$0xff] }
 0x155   :  { %v1699_v15 = vcombine.low %v1677_v62, %v1684_v5  ;;  %v2667_v11 = vcombine.low %v2658_v2, %v2665_v17  ;;  %v17938_v37 = vunpack.i.h.s16 %v18156_v57  ;;  %v1313_v12 = vunpack.i.h.s16 %v18157_v53 }
 0x156   :  { %v1315_v0 = vunpack.i.h.s16 %v13794_v29  ;;  %v2674_v61 = vrot.slane %v2666_v10, %v13160_v13  ;;  %v1700_v43 = vcombine.low %v1691_v30, %v1698_v20  ;;  %v1317_v24 = vunpack.i.h.s16 %v18158_v25  ;;  %12239 = vmatmul.mubr.msk.bf16.gmra.mxu1 %vm1813_vm3, %v1666_v41  ;;  %v18165_v30 = vld [vmem:[#allocation88_spill] sm:$0xff] }
 0x157   :  { %v1707_v40 = vrot.slane %v1699_v15, %v13160_v13  ;;  %v2681_v5 = vrot.slane %v2667_v11, %v13160_v13  ;;  %v1319_v8 = vunpack.i.h.s16 %v14079_v58  ;;  %v11179_v17 = vpack.i.b16 %v18156_v57, %v17937_v9  ;;  %12242 = vmatprep.mubr.msk.bf16.mxu1 %vm12918_vm2, %v18112_v18 }
 0x158   :  { %v11180_v2 = vpack.i.b16 %v18157_v53, %v17938_v37  ;;  %v1714_v10 = vrot.slane %v1700_v43, %v13160_v13  ;;  %v14102_v15 = vpack.i.b16 %v13794_v29, %v1313_v12  ;;  %v14105_v11 = vpack.i.b16 %v18158_v25, %v1315_v0  ;;  %v18166_v43 = vld [vmem:[#allocation52_spill] sm:$0xff] }
 0x159   :  { %v14108_v41 = vpack.i.b16 %v14079_v58, %v1317_v24  ;;  %v2682_v20 = vcombine.low %v2674_v61, %v2681_v5  ;;  %v14111_v36 = vpack.i.b16 %v13828_v56, %v1319_v8  ;;  %v18164_v62 = vunpack.i.h.s16 %v18163_v49  ;;  %v18169_v24 = vld [vmem:[#allocation59_spill] sm:$0xff] }
 0x15a   :  { %18159 = vst [vmem:[#allocation72_spill] sm:$0xff] %v14102_v15  ;;  %18160 = vst [vmem:[#allocation74_spill] sm:$0xff] %v14105_v11  ;;  %v2683_v37 = vcombine.low %v11179_v17, %v11180_v2  ;;  %v1715_v27 = vcombine.low %v1707_v40, %v1714_v10  ;;  %v2684_v12 = vcombine.low %v14102_v15, %v14105_v11  ;;  %v18168_v0 = vunpack.i.h.s16 %v18167_v60  ;;  %v18170_v40 = vld [vmem:[#allocation47_spill] sm:$0xff]  ;;  %v18171_v17 = vld [vmem:[#allocation44_spill] sm:$0xff] }
 0x15b   :  { %18161 = vst [vmem:[#allocation91_spill] sm:$0xff] %v14108_v41  ;;  %18162 = vst [vmem:[#allocation119_spill] sm:$0xff] %v14111_v36  ;;  %v11186_v9 = vpack.i.b16 %v18165_v30, %v18164_v62  ;;  %v11107_v34 = vcombine.high %v18169_v24, %v13593_v33  ;;  %12311 = vmatmul.mubr.msk.bf16.gmra.mxu0 %vm1813_vm3, %v2682_v20  ;;  %v2685_v61 = vcombine.low %v14108_v41, %v14111_v36  ;;  %v18172_v62 = vld [vmem:[#allocation49_spill] sm:$0xff]  ;;  %v18173_v60 = vld [vmem:[#allocation78_spill] sm:$0xff] }
 0x15c   :  { %v11102_v52 = vpack.i.b16 %v18168_v0, %v18166_v43  ;;  %v2693_v8 = vrot.slane %v2683_v37, %v13160_v13  ;;  %v1717_v2 = vcombine.low %v18171_v17, %v18170_v40  ;;  %12314 = vmatprep.mubr.msk.bf16.mxu0 %vm12918_vm2, %v18112_v18  ;;  %v2700_v10 = vrot.slane %v2684_v12, %v13160_v13  ;;  %v18174_v43 = vld [vmem:[#allocation77_spill] sm:$0xff]  ;;  %v18175_v11 = vld [vmem:[#allocation90_spill] sm:$0xff] }
 0x15d   :  { %v2686_v5 = vcombine.low %v13896_v47, %v11186_v9  ;;  %v1719_v20 = vcombine.low %v18174_v43, %v18173_v60  ;;  %v1726_v15 = vrot.slane %v11107_v34, %v13160_v13  ;;  %v2707_v36 = vrot.slane %v2685_v61, %v13160_v13  ;;  %v18176_v34 = vld [vmem:[#allocation55_spill] sm:$0xff]  ;;  %v18177_v61 = vld [vmem:[#allocation60_spill] sm:$0xff] }
 0x15e   :  { %v1718_v0 = vcombine.low %v18172_v62, %v11102_v52  ;;  %v1733_v37 = vrot.slane %v1717_v2, %v13160_v13  ;;  %v1343_v40 = vunpack.i.h.s16 %v18165_v30  ;;  %v2715_v17 = vcombine.low %v2693_v8, %v2700_v10  ;;  %12243 = vmatmul.mubr.msk.bf16.gmra.mxu1 %vm1813_vm3, %v1715_v27  ;;  %v18178_v2 = vld [vmem:[#allocation61_spill] sm:$0xff] }
 0x15f   :  { %v2714_v9 = vrot.slane %v2686_v5, %v13160_v13  ;;  %v1747_v12 = vrot.slane %v1719_v20, %v13160_v13  ;;  %v1345_v52 = vunpack.i.h.s16 %v18175_v11  ;;  %v1347_v41 = vunpack.i.h.s16 %v18176_v34  ;;  %12246 = vmatprep.mubr.msk.bf16.mxu1 %vm12918_vm2, %v18112_v18 }
 0x160   :  { %v1740_v47 = vrot.slane %v1718_v0, %v13160_v13  ;;  %v1748_v62 = vcombine.low %v1726_v15, %v1733_v37  ;;  %v1349_v44 = vunpack.i.h.s16 %v18177_v61  ;;  %v2723_v5 = vrot.slane %v2715_v17, %v13160_v13  ;;  %v18179_v0 = vld [vmem:[#allocation63_spill] sm:$0xff] }
 0x161   :  { %v2716_v60 = vcombine.low %v2707_v36, %v2714_v9  ;;  %v1351_v10 = vunpack.i.h.s16 %v18178_v2  ;;  %v17958_v20 = vunpack.i.h.s16 %v18179_v0  ;;  %v18180_v36 = vld [vmem:[#allocation48_spill] sm:$0xff]  ;;  %v18181_v9 = vld [vmem:[#allocation51_spill] sm:$0xff]  ;;  %v14158_v17 = vpack.i.b16 %v18175_v11, %v1343_v40  ;;  %v18188_v11 = vld [vmem:[#allocation53_spill] sm:$0xff] }
 0x162   :  { %v1749_v8 = vcombine.low %v1740_v47, %v1747_v12  ;;  %v1756_v27 = vrot.slane %v1748_v62, %v13160_v13  ;;  %v1375_v37 = vunpack.i.h.s16 %v18181_v9  ;;  %v14161_v30 = vpack.i.b16 %v18176_v34, %v1345_v52 }
 0x163   :  { %v2730_v21 = vrot.slane %v2716_v60, %v13160_v13  ;;  %18182 = vst [vmem:[#allocation85_spill] sm:$0xff] %v14158_v17  ;;  %v14164_v47 = vpack.i.b16 %v18177_v61, %v1347_v41  ;;  %v14167_v60 = vpack.i.b16 %v18178_v2, %v1349_v44  ;;  %v14170_v62 = vpack.i.b16 %v18179_v0, %v1351_v10 }
 0x164   :  { %v1763_v24 = vrot.slane %v1749_v8, %v13160_v13  ;;  %18183 = vst [vmem:[#allocation60_spill] sm:$0xff] %v14161_v30  ;;  %v11192_v8 = vpack.i.b16 %v18180_v36, %v17958_v20  ;;  %v18187_v40 = vunpack.i.h.s16 %v18180_v36  ;;  %v14179_v34 = vpack.i.b16 %v18188_v11, %v1375_v37 }
 0x165   :  { %18184 = vst [vmem:[#allocation61_spill] sm:$0xff] %v14164_v47  ;;  %v2731_v12 = vcombine.low %v2723_v5, %v2730_v21  ;;  %18185 = vst [vmem:[#allocation63_spill] sm:$0xff] %v14167_v60  ;;  %v2732_v21 = vcombine.low %v14158_v17, %v14161_v30  ;;  %v2733_v44 = vcombine.low %v14164_v47, %v14167_v60  ;;  %v18191_v5 = vld [vmem:[#allocation66_spill] sm:$0xff]  ;;  %v1377_v47 = vunpack.i.h.s16 %v18188_v11 }
 0x166   :  { %18186 = vst [vmem:[#allocation120_spill] sm:$0xff] %v14170_v62  ;;  %v1764_v15 = vcombine.low %v1756_v27, %v1763_v24  ;;  %v11193_v52 = vpack.i.b16 %v18181_v9, %v18187_v40  ;;  %18189 = vst [vmem:[#allocation121_spill] sm:$0xff] %v14179_v34  ;;  %v2734_v41 = vcombine.low %v14170_v62, %v11192_v8  ;;  %v18195_v8 = vld [vmem:[#allocation76_spill] sm:$0xff] }
 0x167   :  { %12315 = vmatmul.mubr.msk.bf16.gmra.mxu0 %vm1813_vm3, %v2731_v12  ;;  %v14189_v24 = vcombine.high %v18174_v43, %v18174_v43  ;;  %v14193_v10 = vcombine.high %v18191_v5, %v18191_v5  ;;  %v2742_v37 = vrot.slane %v2732_v21, %v13160_v13  ;;  %v18193_v12 = vld [vmem:[#allocation75_spill] sm:$0xff]  ;;  %v14205_v20 = vcombine.high %v18195_v8, %v18195_v8 }
 0x168   :  { %12318 = vmatprep.mubr.msk.bf16.mxu0 %vm12918_vm2, %v18112_v18  ;;  %v2735_v27 = vcombine.low %v11193_v52, %v14179_v34  ;;  %v14201_v40 = vcombine.high %v18193_v12, %v18193_v12  ;;  %12247 = vmatmul.mubr.msk.bf16.gmra.mxu1 %vm1813_vm3, %v1764_v15  ;;  %v2749_v60 = vrot.slane %v2733_v44, %v13160_v13  ;;  %v18197_v52 = vld [vmem:[#allocation68_spill] sm:$0xff]  ;;  %v1379_v43 = vunpack.i.h.s16 %v18193_v12 }
 0x169   :  { %18190 = vst [vmem:[#allocation122_spill] sm:$0xff] %v14189_v24  ;;  %18192 = vst [vmem:[#allocation123_spill] sm:$0xff] %v14193_v10  ;;  %v2756_v62 = vrot.slane %v2734_v41, %v13160_v13  ;;  %v1765_v30 = vcombine.low %v14189_v24, %v18191_v5  ;;  %v1766_v21 = vcombine.low %v18197_v52, %v14193_v10  ;;  %12250 = vmatprep.mubr.msk.bf16.mxu1 %vm12918_vm2, %v18112_v18 }
 0x16a   :  { %18194 = vst [vmem:[#allocation124_spill] sm:$0xff] %v14201_v40  ;;  %18196 = vst [vmem:[#allocation125_spill] sm:$0xff] %v14205_v20  ;;  %v2763_v34 = vrot.slane %v2735_v27, %v13160_v13  ;;  %v1381_v15 = vunpack.i.h.s16 %v18195_v8  ;;  %v2764_v44 = vcombine.low %v2742_v37, %v2749_v60  ;;  %v1383_v5 = vunpack.i.h.s16 %v14201_v40  ;;  %v18203_v37 = vld [vmem:[#allocation22_spill] sm:$0xff] }
 0x16b   :  { %v1773_v41 = vrot.slane %v1765_v30, %v13160_v13  ;;  %v1780_v17 = vrot.slane %v1766_v21, %v13160_v13  ;;  %v14224_v10 = vpack.i.b16 %v18193_v12, %v1377_v47  ;;  %v14227_v27 = vpack.i.b16 %v18195_v8, %v1379_v43  ;;  %v18202_v30 = vld [vmem:[#allocation41_spill] sm:$0xff] }
 0x16c   :  { %v2765_v24 = vcombine.low %v2756_v62, %v2763_v34  ;;  %v14230_v52 = vpack.i.b16 %v14201_v40, %v1381_v15  ;;  %v2772_v11 = vrot.slane %v2764_v44, %v13160_v13  ;;  %v14234_v60 = vpack.i.b16 %v14205_v20, %v1383_v5  ;;  %v18204_v43 = vld [vmem:[#allocation13_spill] sm:$0xff]  ;;  %v18205_v62 = vld [vmem:[#allocation16_spill] sm:$0xff]  ;;  %v18207_v40 = vld [vmem:[#allocation11_spill] sm:$0xff] }
 0x16d   :  { %18198 = vst [vmem:[#allocation126_spill] sm:$0xff] %v14224_v10  ;;  %18199 = vst [vmem:[#allocation127_spill] sm:$0xff] %v14227_v27  ;;  %v1781_v36 = vcombine.low %v1773_v41, %v1780_v17  ;;  %v2008_v21 = vcombine.low %v18203_v37, %v18202_v30  ;;  %v2781_v47 = vcombine.low %v14224_v10, %v14227_v27  ;;  %v18208_v44 = vld [vmem:[#allocation12_spill] sm:$0xff]  ;;  %v18210_v37 = vld [vmem:[#allocation35_spill] sm:$0xff] }
 0x16e   :  { %18200 = vst [vmem:[#allocation128_spill] sm:$0xff] %v14230_v52  ;;  %18201 = vst [vmem:[#allocation129_spill] sm:$0xff] %v14234_v60  ;;  %v2779_v34 = vrot.slane %v2765_v24, %v13160_v13  ;;  %v18206_v8 = vcombine.low %v18204_v43, %v18205_v62  ;;  %v18209_v17 = vcombine.low %v18207_v40, %v18208_v44  ;;  %v18212_v43 = vld [vmem:[#allocation26_spill] sm:$0xff]  ;;  %v18213_v62 = vld [vmem:[#allocation25_spill] sm:$0xff] }
 0x16f   :  { %v1788_v5 = vrot.slane %v1781_v36, %v13160_v13  ;;  %v2782_v30 = vcombine.low %v14230_v52, %v14234_v60  ;;  %v2022_v24 = vrot.slane %v2008_v21, %v13160_v13  ;;  %v18211_v27 = vcombine.low %v18210_v37, %v13404_v16  ;;  %v18214_v40 = vld [vmem:[#allocation37_spill] sm:$0xff]  ;;  %v18215_v60 = vld [vmem:[#allocation31_spill] sm:$0xff]  ;;  %v18216_v52 = vld [vmem:[#allocation80_spill] sm:$0xff] }
 0x170   :  { %v2015_v15 = vrot.slane %v18206_v8, %v13160_v13  ;;  %v3521_v41 = vrot.slane %v18209_v17, %v13160_v13  ;;  %v2780_v10 = vcombine.low %v2772_v11, %v2779_v34  ;;  %v2789_v8 = vrot.slane %v2781_v47, %v13160_v13 }
 0x171   :  { %v3528_v20 = vrot.slane %v18211_v27, %v13160_v13  ;;  %v3529_v12 = vcombine.low %v18213_v62, %v18212_v43  ;;  %v2024_v44 = vcombine.low %v13404_v16, %v18214_v40  ;;  %12251 = vmatmul.mubr.msk.bf16.gmra.mxu1 %vm1813_vm3, %v1788_v5  ;;  %v2796_v36 = vrot.slane %v2782_v30, %v13160_v13  ;;  %v18217_v27 = vld [vmem:[#allocation81_spill] sm:$0xff]  ;;  %v18218_v5 = vld [vmem:[#allocation43_spill] sm:$0xff] }
 0x172   :  { %v2023_v17 = vcombine.low %v2015_v15, %v2022_v24  ;;  %v2025_v9 = vcombine.low %v18216_v52, %v18215_v60  ;;  %12319 = vmatmul.mubr.msk.bf16.gmra.mxu0 %vm1813_vm3, %v2780_v10  ;;  %12262 = vmatprep.mubr.msk.bf16.mxu1 %vm12918_vm2, %v18112_v18  ;;  %v2026_v34 = vcombine.low %v13407_v59, %v18217_v27  ;;  %v1247_v15 = vunpack.i.h.s16 %v18218_v5  ;;  %v18219_v24 = vld [vmem:[#allocation27_spill] sm:$0xff] }
 0x173   :  { %v3530_v21 = vcombine.low %v3521_v41, %v3528_v20  ;;  %v14270_v11 = vrot.slane %v3529_v12, %v13160_v13  ;;  %v2027_v47 = vcombine.low %v13490_v7, %v13501_v26  ;;  %12322 = vmatprep.mubr.msk.bf16.mxu0 %vm12918_vm2, %v18112_v18  ;;  %v2797_v20 = vcombine.low %v2789_v8, %v2796_v36 }
 0x174   :  { %v2034_v52 = vrot.slane %v2024_v44, %v13160_v13  ;;  %v2041_v12 = vrot.slane %v2025_v9, %v13160_v13  ;;  %v2048_v41 = vrot.slane %v2026_v34, %v13160_v13  ;;  %v11293_v37 = vcombine.high %v18219_v24, %v13404_v16  ;;  %v18220_v44 = vld [vmem:[#allocation38_spill] sm:$0xff]  ;;  %v12521_v9 = vld [vmem:[%s17786_s3 + $0x78] sm:$0xff]  }
 0x175   :  { %v14280_v10 = vrot.slane %v3530_v21, %v13160_v13  ;;  %v2055_v30 = vrot.slane %v2027_v47, %v13160_v13  ;;  %v3547_v43 = vcombine.low %v18215_v60, %v13407_v59  ;;  %v2804_v62 = vrot.slane %v2797_v20, %v13160_v13 }
 0x176   :  { %v2056_v40 = vcombine.low %v2034_v52, %v2041_v12  ;;  %v3548_v36 = vcombine.low %v18220_v44, %v13490_v7  ;;  %v3549_v16 = vcombine.low %v13501_v26, %v13737_v23  ;;  %v3556_v27 = vrot.slane %v11293_v37, %v13160_v13 }
 0x177   :  { %v3545_v8 = vcombine.low %v14270_v11, %v14280_v10  ;;  %v2057_v21 = vcombine.low %v2048_v41, %v2055_v30  ;;  %v3563_v59 = vrot.slane %v3547_v43, %v13160_v13  ;;  %v11120_v47 = vpack.i.b16 %v1247_v15, %v13504_v14 }
 0x178   :  { %v2064_v60 = vrot.slane %v2056_v40, %v13160_v13  ;;  %v3570_v34 = vrot.slane %v3548_v36, %v13160_v13  ;;  %v11124_v20 = vcombine.high %v13490_v7, %v13501_v26  ;;  %v3577_v12 = vrot.slane %v3549_v16, %v13160_v13  ;;  %v18222_v26 = vld [vmem:[#allocation45_spill] sm:$0xff] }
 0x179   :  { %v2071_v52 = vrot.slane %v2057_v21, %v13160_v13  ;;  %v3578_v41 = vcombine.low %v3556_v27, %v3563_v59  ;;  %v2075_v23 = vcombine.low %v13487_v4, %v13577_v3  ;;  %v18221_v30 = vcombine.low %v13864_v48, %v13772_v39  ;;  %12263 = vmatmul.mubr.msk.bf16.vlgmr.msra.gmra.mxu1 %vm1813_vm3, %v2023_v17  ;;  %v12522_v48 = vld [vmem:[%s17786_s3 + $0x70] sm:$0xff]   ;;  %v18224_v21 = vld [vmem:[#allocation69_spill] sm:$0xff] }
 0x17a   :  { %v2074_v15 = vcombine.low %v13480_v50, %v11120_v47  ;;  %v2076_v7 = vcombine.low %v13590_v54, %v13911_v19  ;;  %v18223_v37 = vunpack.i.h.s16 %v13487_v4  ;;  %12323 = vmatmul.mubr.msk.bf16.gmra.mxu0 %vm1813_vm3, %v2804_v62  ;;  %12327 = vmatpush3.bf16.msra.mxu1 %v12521_v9  ;;  %v3579_v39 = vcombine.low %v3570_v34, %v3577_v12 }
 0x17b   :  { %v14315_v24 = vrot.slane %v18221_v30, %v13160_v13  ;;  %v2072_v36 = vcombine.low %v2064_v60, %v2071_v52  ;;  %v2083_v17 = vrot.slane %v11124_v20, %v13160_v13  ;;  %v1309_v16 = vunpack.i.h.s16 %v18224_v21  ;;  %12370 = vmatprep.mubr.msk.bf16.mxu0 %vm12918_vm2, %v18112_v18  ;;  %12266 = vmatprep.mubr.msk.bf16.mxu1 %vm12918_vm2, %v18112_v18 }
 0x17c   :  { %v11290_v43 = vpack.i.b16 %v18223_v37, %v18222_v26  ;;  %v2090_v4 = vrot.slane %v2074_v15, %v13160_v13  ;;  %v2097_v19 = vrot.slane %v2075_v23, %v13160_v13  ;;  %v2104_v62 = vrot.slane %v2076_v7, %v13160_v13  ;;  %12328 = vmatprep.subr.bf16.mxu1 %v18112_v18  ;;  %v18225_v15 = vld [vmem:[#allocation50_spill] sm:$0xff] }
 0x17d   :  { %v14339_v9 = vrot.slane %v3578_v41, %v13160_v13  ;;  %v3595_v27 = vcombine.low %v13901_v38, %v13480_v50  ;;  %v3597_v60 = vcombine.low %v13577_v3, %v13590_v54  ;;  %v11294_v20 = vcombine.high %v13577_v3, %v13590_v54 }
 0x17e   :  { %v3596_v59 = vcombine.low %v13504_v14, %v11290_v43  ;;  %v2105_v34 = vcombine.low %v2083_v17, %v2090_v4  ;;  %v2106_v47 = vcombine.low %v2097_v19, %v2104_v62  ;;  %v2122_v52 = vcombine.low %v13915_v35, %v13583_v6  ;;  %12329 = vmatpush3.bf16.msra.mxu1 %v12522_v48  ;;  %v12523_v48 = vld [vmem:[%s17786_s3 + $0x68] sm:$0xff]  }
 0x17f   :  { %v14352_v12 = vrot.slane %v3579_v39, %v13160_v13  ;;  %v3605_v41 = vrot.slane %v3595_v27, %v13160_v13  ;;  %v3619_v38 = vrot.slane %v3597_v60, %v13160_v13  ;;  %v3626_v30 = vrot.slane %v11294_v20, %v13160_v13  ;;  %12330 = vmatprep.subr.bf16.mxu1 %v18112_v18  ;;  %v12524_v60 = vld [vmem:[%s17786_s3 + $0xd8] sm:$0xff]  }
 0x180   :  { %v3612_v50 = vrot.slane %v3596_v59, %v13160_v13  ;;  %v2120_v23 = vrot.slane %v2106_v47, %v13160_v13  ;;  %v11125_v54 = vcombine.high %v13526_v63, %v18225_v15  ;;  %v1205_v35 = vunpack.i.h.s16 %v13376_v32 }
 0x181   :  { %v2124_v37 = vcombine.low %v13662_v45, %v13681_v22  ;;  %v11126_v43 = vcombine.high %v13662_v45, %v13681_v22  ;;  %v2132_v39 = vrot.slane %v2122_v52, %v13160_v13  ;;  %12267 = vmatmul.mubr.msk.bf16.gmra.mxu1 %vm1813_vm3, %v2072_v36  ;;  %v2113_v17 = vrot.slane %v2105_v34, %v13160_v13 }
 0x182   :  { %v3627_v7 = vcombine.low %v3605_v41, %v3612_v50  ;;  %v3628_v4 = vcombine.low %v3619_v38, %v3626_v30  ;;  %v2139_v19 = vrot.slane %v11125_v54, %v13160_v13  ;;  %v3644_v62 = vcombine.low %v13583_v6, %v13606_v55  ;;  %12371 = vmatmul.mubr.msk.bf16.vlgmr.msra.gmra.mxu0 %vm1813_vm3, %v3545_v8 }
 0x183   :  { %v3594_v27 = vcombine.low %v14339_v9, %v14352_v12  ;;  %12270 = vmatprep.mubr.msk.bf16.mxu1 %vm12918_vm2, %v18112_v18  ;;  %v2146_v36 = vrot.slane %v2124_v37, %v13160_v13  ;;  %v2153_v59 = vrot.slane %v11126_v43, %v13160_v13  ;;  %v1207_v6 = vunpack.i.h.s16 %v13411_v28  ;;  %12374 = vmatprep.mubr.msk.bf16.mxu0 %vm12918_vm2, %v18112_v18  ;;  %v12525_v12 = vld [vmem:[%s17786_s3 + $0x60] sm:$0xff]  }
 0x184   :  { %v2121_v11 = vcombine.low %v2113_v17, %v2120_v23  ;;  %v2154_v10 = vcombine.low %v2132_v39, %v2139_v19  ;;  %v3645_v8 = vcombine.low %v18147_v42, %v13662_v45  ;;  %v3646_v9 = vcombine.low %v13681_v22, %v14007_v51  ;;  %12331 = vmatpush3.bf16.msra.mxu1 %v12523_v48 }
 0x185   :  { %v14397_v34 = vrot.slane %v3627_v7, %v13160_v13  ;;  %v2155_v47 = vcombine.low %v2146_v36, %v2153_v59  ;;  %v3647_v20 = vcombine.low %v14011_v1, %v13672_v31  ;;  %v11121_v52 = vpack.i.b16 %v1309_v16, %v13672_v31  ;;  %12332 = vmatprep.subr.bf16.mxu1 %v18112_v18  ;;  %v18227_v59 = vld [vmem:[#allocation101_spill] sm:$0xff] }
 0x186   :  { %v14406_v41 = vrot.slane %v3628_v4, %v13160_v13  ;;  %v2162_v45 = vrot.slane %v2154_v10, %v13160_v13  ;;  %v3654_v22 = vrot.slane %v3644_v62, %v13160_v13  ;;  %v3661_v51 = vrot.slane %v3645_v8, %v13160_v13  ;;  %12435 = vmatpush3.bf16.msra.mxu0 %v12524_v60  ;;  %v18228_v8 = vld [vmem:[#allocation88_spill] sm:$0xff] }
 0x187   :  { %v3668_v1 = vrot.slane %v3646_v9, %v13160_v13  ;;  %v3675_v42 = vrot.slane %v3647_v20, %v13160_v13  ;;  %v2171_v16 = vcombine.low %v11121_v52, %v18156_v57  ;;  %v2172_v50 = vcombine.low %v18157_v53, %v13794_v29  ;;  %12436 = vmatprep.subr.bf16.mxu0 %v18112_v18  ;;  %v18229_v9 = vld [vmem:[#allocation86_spill] sm:$0xff] }
 0x188   :  { %v3676_v38 = vcombine.low %v3654_v22, %v3661_v51  ;;  %v2173_v23 = vcombine.low %v18158_v25, %v14079_v58  ;;  %v2174_v30 = vcombine.low %v13828_v56, %v18163_v49  ;;  %v18226_v54 = vunpack.i.h.s16 %v18156_v57  ;;  %12333 = vmatpush3.bf16.msra.mxu1 %v12525_v12  ;;  %v12526_v58 = vld [vmem:[%s17786_s3 + $0xd0] sm:$0xff]   ;;  %v18230_v22 = vld [vmem:[#allocation46_spill] sm:$0xff] }
 0x189   :  { %v2169_v37 = vrot.slane %v2155_v47, %v13160_v13  ;;  %v3677_v43 = vcombine.low %v3668_v1, %v3675_v42  ;;  %v2181_v39 = vrot.slane %v2171_v16, %v13160_v13  ;;  %v2188_v48 = vrot.slane %v2172_v50, %v13160_v13  ;;  %12271 = vmatmul.mubr.msk.bf16.gmra.mxu1 %vm1813_vm3, %v2121_v11 }
 0x18a   :  { %v11291_v7 = vpack.i.b16 %v18226_v54, %v13691_v46  ;;  %v14433_v56 = vrot.slane %v3676_v38, %v13160_v13  ;;  %v2195_v57 = vrot.slane %v2173_v23, %v13160_v13  ;;  %v2202_v17 = vrot.slane %v2174_v30, %v13160_v13  ;;  %12375 = vmatmul.mubr.msk.bf16.gmra.mxu0 %vm1813_vm3, %v3594_v27  ;;  %v18233_v38 = vld [vmem:[#allocation51_spill] sm:$0xff]  ;;  %v18234_v23 = vld [vmem:[#allocation48_spill] sm:$0xff]  ;;  %v18235_v54 = vld [vmem:[#allocation82_spill] sm:$0xff] }
 0x18b   :  { %12274 = vmatprep.mubr.msk.bf16.mxu1 %vm12918_vm2, %v18112_v18  ;;  %v14442_v19 = vrot.slane %v3677_v43, %v13160_v13  ;;  %v2203_v62 = vcombine.low %v2181_v39, %v2188_v48  ;;  %v3694_v36 = vcombine.low %v13794_v29, %v18158_v25  ;;  %v1209_v60 = vunpack.i.h.s16 %v18227_v59  ;;  %12378 = vmatprep.mubr.msk.bf16.mxu0 %vm12918_vm2, %v18112_v18 }
 0x18c   :  { %v3693_v4 = vcombine.low %v11291_v7, %v18157_v53  ;;  %v3643_v11 = vcombine.low %v14397_v34, %v14406_v41  ;;  %v2204_v10 = vcombine.low %v2195_v57, %v2202_v17  ;;  %v11295_v27 = vcombine.high %v13794_v29, %v18158_v25  ;;  %12437 = vmatpush3.bf16.msra.mxu0 %v12526_v58  ;;  %v12527_v34 = vld [vmem:[%s17786_s3 + $0xc8] sm:$0xff]  }
 0x18d   :  { %v3696_v47 = vcombine.low %v18229_v9, %v18228_v8  ;;  %v2170_v20 = vcombine.low %v2162_v45, %v2169_v37  ;;  %v3692_v52 = vcombine.low %v14433_v56, %v14442_v19  ;;  %v3710_v12 = vrot.slane %v3694_v36, %v13160_v13  ;;  %v18232_v45 = vld [vmem:[#allocation55_spill] sm:$0xff]  ;;  %12438 = vmatprep.subr.bf16.mxu0 %v18112_v18  ;;  %v18265_v19 = vld [vmem:[#allocation102_spill] sm:$0xff] }
 0x18e   :  { %v18231_v51 = vunpack.i.h.s16 %v18230_v22  ;;  %v2218_v25 = vrot.slane %v2204_v10, %v13160_v13  ;;  %v3703_v29 = vrot.slane %v3693_v4, %v13160_v13  ;;  %v3717_v41 = vrot.slane %v11295_v27, %v13160_v13  ;;  %12398 = vmatprep.subr.bf16.mxu1 %v18112_v18  ;;  %v18237_v58 = vld [vmem:[#allocation59_spill] sm:$0xff]  ;;  %v18239_v10 = vld [vmem:[#allocation90_spill] sm:$0xff] }
 0x18f   :  { %v2221_v42 = vcombine.low %v18232_v45, %v18177_v61  ;;  %v2211_v16 = vrot.slane %v2203_v62, %v13160_v13  ;;  %v2223_v30 = vcombine.low %v18234_v23, %v18233_v38  ;;  %v18236_v7 = vcombine.high %v18235_v54, %v18163_v49 }
 0x190   :  { %v11122_v1 = vpack.i.b16 %v18231_v51, %v18179_v0  ;;  %v3724_v43 = vrot.slane %v3696_v47, %v13160_v13  ;;  %v3725_v39 = vcombine.low %v3703_v29, %v3710_v12  ;;  %v18238_v57 = vunpack.i.h.s16 %v18234_v23  ;;  %12439 = vmatpush3.bf16.msra.mxu0 %v12527_v34  ;;  %v12528_v51 = vld [vmem:[%s17786_s3 + $0xc0] sm:$0xff]  }
 0x191   :  { %v2230_v37 = vrot.slane %v18236_v7, %v13160_v13  ;;  %v2237_v48 = vrot.slane %v2221_v42, %v13160_v13  ;;  %v2219_v4 = vcombine.low %v2211_v16, %v2218_v25  ;;  %v2251_v36 = vrot.slane %v2223_v30, %v13160_v13  ;;  %12275 = vmatmul.mubr.msk.bf16.gmra.mxu1 %vm1813_vm3, %v2170_v20  ;;  %v18242_v16 = vld [vmem:[#allocation75_spill] sm:$0xff]  ;;  %v18244_v30 = vld [vmem:[#allocation124_spill] sm:$0xff] }
 0x192   :  { %v2222_v50 = vcombine.low %v18178_v2, %v11122_v1  ;;  %v11292_v17 = vpack.i.b16 %v18238_v57, %v18237_v58  ;;  %v3742_v49 = vcombine.low %v18239_v10, %v18232_v45  ;;  %v3726_v27 = vcombine.low %v3717_v41, %v3724_v43  ;;  %12379 = vmatmul.mubr.msk.bf16.gmra.mxu0 %vm1813_vm3, %v3643_v11  ;;  %v18245_v7 = vld [vmem:[#allocation76_spill] sm:$0xff] }
 0x193   :  { %v2252_v8 = vcombine.low %v2230_v37, %v2237_v48  ;;  %v3743_v47 = vcombine.low %v18177_v61, %v18178_v2  ;;  %12278 = vmatprep.mubr.msk.bf16.mxu1 %vm12918_vm2, %v18112_v18  ;;  %v18240_v20 = vcombine.high %v18230_v22, %v18234_v23  ;;  %v18241_v61 = vld [vmem:[#allocation28_spill] sm:$0xff]  ;;  %12382 = vmatprep.mubr.msk.bf16.mxu0 %vm12918_vm2, %v18112_v18  ;;  %v18298_v22 = vld [vmem:[#allocation58_spill] sm:$0xff] }
 0x194   :  { %v2244_v62 = vrot.slane %v2222_v50, %v13160_v13  ;;  %v3744_v12 = vcombine.low %v18179_v0, %v11292_v17  ;;  %v3752_v34 = vrot.slane %v3742_v49, %v13160_v13  ;;  %v1211_v2 = vunpack.i.h.s16 %v18241_v61  ;;  %v18243_v50 = vld [vmem:[#allocation53_spill] sm:$0xff]  ;;  %12440 = vmatprep.subr.bf16.mxu0 %v18112_v18  ;;  %v18246_v17 = vld [vmem:[#allocation7_spill] sm:$0xff] }
 0x195   :  { %v3773_v25 = vrot.slane %v18240_v20, %v13160_v13  ;;  %v14507_v29 = vrot.slane %v3725_v39, %v13160_v13  ;;  %v2260_v11 = vrot.slane %v2252_v8, %v13160_v13  ;;  %v3759_v41 = vrot.slane %v3743_v47, %v13160_v13  ;;  %12441 = vmatpush3.bf16.msra.mxu0 %v12528_v51  ;;  %v18249_v20 = vld [vmem:[#allocation9_spill] sm:$0xff] }
 0x196   :  { %v2253_v1 = vcombine.low %v2244_v62, %v2251_v36  ;;  %v3766_v45 = vrot.slane %v3744_v12, %v13160_v13  ;;  %v2269_v23 = vcombine.low %v18243_v50, %v18242_v16  ;;  %v2270_v37 = vcombine.low %v18245_v7, %v18244_v30  ;;  %v18247_v62 = vld [vmem:[#allocation8_spill] sm:$0xff]  ;;  %v18255_v30 = vld [vmem:[#allocation19_spill] sm:$0xff] }
 0x197   :  { %v3791_v43 = vcombine.low %v18242_v16, %v18245_v7  ;;  %v3774_v39 = vcombine.low %v3752_v34, %v3759_v41  ;;  %v11297_v57 = vcombine.high %v18242_v16, %v18245_v7  ;;  %v18248_v36 = vcombine.low %v18246_v17, %v18247_v62  ;;  %v18253_v16 = vld [vmem:[#allocation30_spill] sm:$0xff]  ;;  %v18259_v62 = vld [vmem:[#allocation15_spill] sm:$0xff] }
 0x198   :  { %v2267_v42 = vrot.slane %v2253_v1, %v13160_v13  ;;  %v3775_v48 = vcombine.low %v3766_v45, %v3773_v25  ;;  %v2277_v8 = vrot.slane %v2269_v23, %v13160_v13  ;;  %v2284_v47 = vrot.slane %v2270_v37, %v13160_v13  ;;  %v18250_v25 = vld [vmem:[#allocation10_spill] sm:$0xff]  ;;  %v18256_v37 = vld [vmem:[#allocation23_spill] sm:$0xff] }
 0x199   :  { %v3029_v10 = vrot.slane %v18248_v36, %v13160_v13  ;;  %v3799_v12 = vrot.slane %v3791_v43, %v13160_v13  ;;  %v14530_v1 = vrot.slane %v3774_v39, %v13160_v13  ;;  %v3806_v51 = vrot.slane %v11297_v57, %v13160_v13  ;;  %v18257_v43 = vld [vmem:[#allocation20_spill] sm:$0xff]  ;;  %12279 = vmatmul.mubr.msk.bf16.gmra.mxu1 %vm1813_vm3, %v2219_v4  ;;  %v18258_v17 = vld [vmem:[#allocation14_spill] sm:$0xff] }
 0x19a   :  { %v2268_v49 = vcombine.low %v2260_v11, %v2267_v42  ;;  %v14533_v34 = vrot.slane %v3775_v48, %v13160_v13  ;;  %v18251_v41 = vcombine.low %v18249_v20, %v18250_v25  ;;  %v2285_v11 = vcombine.low %v2277_v8, %v2284_v47  ;;  %v18252_v42 = vld [vmem:[#allocation32_spill] sm:$0xff]  ;;  %v18261_v47 = vld [vmem:[#allocation17_spill] sm:$0xff]  ;;  %v18262_v20 = vld [vmem:[#allocation18_spill] sm:$0xff]  ;;  %12383 = vmatmul.mubr.msk.bf16.gmra.mxu0 %vm1813_vm3, %v3692_v52 }
 0x19b   :  { %v18254_v50 = vcombine.low %v18252_v42, %v18253_v16  ;;  %v3044_v7 = vcombine.low %v18255_v30, %v3029_v10  ;;  %v4469_v39 = vcombine.low %v18257_v43, %v18256_v37  ;;  %v3740_v48 = vrot.slane %v3726_v27, %v13160_v13  ;;  %12282 = vmatprep.mubr.msk.bf16.mxu1 %vm12918_vm2, %v18112_v18  ;;  %v18264_v42 = vld [vmem:[#allocation29_spill] sm:$0xff] }
 0x19c   :  { %v3036_v45 = vrot.slane %v18251_v41, %v13160_v13  ;;  %v18260_v36 = vcombine.low %v18258_v17, %v18259_v62  ;;  %v18263_v25 = vcombine.low %v18261_v47, %v18262_v20  ;;  %v3807_v4 = vcombine.low %v3799_v12, %v3806_v51  ;;  %12386 = vmatprep.mubr.msk.bf16.mxu0 %vm12918_vm2, %v18112_v18  ;;  %v18266_v51 = vld [vmem:[#allocation39_spill] sm:$0xff] }
 0x19d   :  { %v3043_v23 = vrot.slane %v18254_v50, %v13160_v13  ;;  %v14566_v41 = vrot.slane %v3044_v7, %v13160_v13  ;;  %v1213_v16 = vunpack.i.h.s16 %v18264_v42  ;;  %v4491_v50 = vrot.slane %v4469_v39, %v13160_v13  ;;  %v18267_v7 = vld [vmem:[#allocation42_spill] sm:$0xff] }
 0x19e   :  { %v4477_v8 = vrot.slane %v18260_v36, %v13160_v13  ;;  %v4484_v10 = vrot.slane %v18263_v25, %v13160_v13  ;;  %v14574_v56 = vcombine.high %v18241_v61, %v18241_v61  ;;  %v1233_v52 = vunpack.i.h.s16 %v18265_v19  ;;  %v18281_v36 = vld [vmem:[#allocation110_spill] sm:$0xff] }
 0x19f   :  { %v3045_v27 = vcombine.low %v3036_v45, %v3043_v23  ;;  %v14582_v45 = vcombine.high %v18266_v51, %v18266_v51  ;;  %v1235_v23 = vunpack.i.h.s16 %v18266_v51  ;;  %v1237_v37 = vunpack.i.h.s16 %v18267_v7 }
 0x1a0   :  { %v4499_v30 = vcombine.low %v4477_v8, %v4484_v10  ;;  %v4500_v43 = vcombine.low %v4491_v50, %v14315_v24  ;;  %v11226_v17 = vpack.i.b16 %v13411_v28, %v1205_v35  ;;  %v11227_v62 = vpack.i.b16 %v18227_v59, %v1207_v6 }
 0x1a1   :  { %v14578_v12 = vrot.slane %v3045_v27, %v13160_v13  ;;  %v11228_v8 = vpack.i.b16 %v18241_v61, %v1209_v60  ;;  %v11229_v24 = vpack.i.b16 %v18264_v42, %v1211_v2  ;;  %v11230_v47 = vpack.i.b16 %v14574_v56, %v1213_v16  ;;  %v18268_v27 = vld [vmem:[#allocation94_spill] sm:$0xff]  ;;  %v18269_v60 = vld [vmem:[#allocation87_spill] sm:$0xff]  ;;  %12283 = vmatmul.mubr.msk.bf16.gmra.mxu1 %vm1813_vm3, %v2268_v49 }
 0x1a2   :  { %v14588_v39 = vrot.slane %v4499_v30, %v13160_v13  ;;  %v14604_v20 = vrot.slane %v4500_v43, %v13160_v13  ;;  %v11231_v35 = vpack.i.b16 %v18266_v51, %v1233_v52  ;;  %v11232_v28 = vpack.i.b16 %v18267_v7, %v1235_v23  ;;  %12286 = vmatprep.mubr.msk.bf16.mxu1 %vm12918_vm2, %v18112_v18  ;;  %v18271_v23 = vld [vmem:[#allocation96_spill] sm:$0xff] }
 0x1a3   :  { %v11233_v6 = vpack.i.b16 %v14582_v45, %v1237_v37  ;;  %v3741_v25 = vcombine.low %v14507_v29, %v3740_v48  ;;  %v3062_v10 = vcombine.low %v11228_v8, %v11229_v24  ;;  %v1199_v59 = vunpack.i.h.s16 %v18220_v44  ;;  %v18270_v29 = vld [vmem:[#allocation34_spill] sm:$0xff]  ;;  %v18272_v37 = vld [vmem:[#allocation95_spill] sm:$0xff]  ;;  %v18273_v8 = vld [vmem:[#allocation104_spill] sm:$0xff] }
 0x1a4   :  { %v4516_v50 = vcombine.low %v18269_v60, %v18268_v27  ;;  %v3061_v16 = vcombine.low %v11226_v17, %v11227_v62  ;;  %v3063_v30 = vcombine.low %v11230_v47, %v11231_v35  ;;  %v2292_v44 = vrot.slane %v2285_v11, %v13160_v13  ;;  %v18274_v24 = vld [vmem:[#allocation99_spill] sm:$0xff]  ;;  %v18275_v35 = vld [vmem:[#allocation98_spill] sm:$0xff]  ;;  %v18276_v27 = vld [vmem:[#allocation36_spill] sm:$0xff] }
 0x1a5   :  { %v3064_v19 = vcombine.low %v11232_v28, %v11233_v6  ;;  %12387 = vmatmul.mubr.msk.bf16.gmra.mxu0 %vm1813_vm3, %v3741_v25  ;;  %v11347_v48 = vpack.i.b16 %v18270_v29, %v1199_v59  ;;  %v4517_v49 = vcombine.low %v18272_v37, %v18271_v23  ;;  %v14627_v43 = vrot.slane %v3807_v4, %v13160_v13  ;;  %v18278_v37 = vld [vmem:[#allocation64_spill] sm:$0xff] }
 0x1a6   :  { %12390 = vmatprep.mubr.msk.bf16.mxu0 %vm12918_vm2, %v18112_v18  ;;  %v3078_v17 = vrot.slane %v3062_v10, %v13160_v13  ;;  %v3085_v62 = vrot.slane %v3063_v30, %v13160_v13  ;;  %v4519_v47 = vcombine.low %v18274_v24, %v18273_v8  ;;  %v4526_v6 = vrot.slane %v4516_v50, %v13160_v13  ;;  %v18277_v50 = vld [vmem:[#allocation40_spill] sm:$0xff]  ;;  %v18279_v24 = vld [vmem:[#allocation54_spill] sm:$0xff] }
 0x1a7   :  { %v3092_v11 = vrot.slane %v3064_v19, %v13160_v13  ;;  %v4518_v28 = vcombine.low %v11347_v48, %v18275_v35  ;;  %v14638_v25 = vcombine.high %v18267_v7, %v18267_v7  ;;  %v3071_v4 = vrot.slane %v3061_v16, %v13160_v13  ;;  %v18280_v16 = vld [vmem:[#allocation56_spill] sm:$0xff] }
 0x1a8   :  { %v4547_v59 = vrot.slane %v4519_v47, %v13160_v13  ;;  %v1239_v10 = vunpack.i.h.s16 %v14582_v45  ;;  %v1243_v60 = vunpack.i.h.s16 %v18276_v27  ;;  %v4533_v29 = vrot.slane %v4517_v49, %v13160_v13 }
 0x1a9   :  { %v3094_v30 = vcombine.low %v3085_v62, %v3092_v11  ;;  %v4540_v19 = vrot.slane %v4518_v28, %v13160_v13  ;;  %v1241_v48 = vunpack.i.h.s16 %v14638_v25  ;;  %v1245_v23 = vunpack.i.h.s16 %v18277_v50  ;;  %12287 = vmatmul.mubr.msk.bf16.gmra.mxu1 %vm1813_vm3, %v2292_v44 }
 0x1aa   :  { %v1267_v35 = vunpack.i.h.s16 %v18279_v24  ;;  %v1269_v40 = vunpack.i.h.s16 %v18280_v16  ;;  %v3093_v47 = vcombine.low %v3071_v4, %v3078_v17  ;;  %v4548_v2 = vcombine.low %v4526_v6, %v4533_v29  ;;  %12334 = vmatprep.mubr.msk.bf16.mxu1 %vm12918_vm2, %v18112_v18 }
 0x1ab   :  { %v4549_v52 = vcombine.low %v4540_v19, %v4547_v59  ;;  %v1271_v57 = vunpack.i.h.s16 %v18281_v36  ;;  %v11234_v49 = vpack.i.b16 %v14638_v25, %v1239_v10  ;;  %v11235_v62 = vpack.i.b16 %v18276_v27, %v1241_v48 }
 0x1ac   :  { %v11236_v11 = vpack.i.b16 %v18277_v50, %v1243_v60  ;;  %v11237_v28 = vpack.i.b16 %v18278_v37, %v1245_v23  ;;  %v18282_v8 = vcombine.low %v14530_v1, %v14533_v34  ;;  %v14664_v17 = vrot.slane %v3094_v30, %v13160_v13  ;;  %v18284_v34 = vld [vmem:[#allocation111_spill] sm:$0xff] }
 0x1ad   :  { %v18283_v44 = vunpack.i.h.s16 %v18278_v37  ;;  %v11239_v4 = vpack.i.b16 %v18280_v16, %v1267_v35  ;;  %v1231_v59 = vunpack.i.h.s16 %v18222_v26  ;;  %v11240_v1 = vpack.i.b16 %v18281_v36, %v1269_v40  ;;  %v12529_v36 = vld [vmem:[%s17786_s3 + $0xb8] sm:$0xff]  }
 0x1ae   :  { %12391 = vmatmul.mubr.msk.bf16.gmra.mxu0 %vm1813_vm3, %v18282_v8  ;;  %v11241_v10 = vpack.i.b16 %v18284_v34, %v1271_v57  ;;  %v3110_v60 = vcombine.low %v11234_v49, %v11235_v62  ;;  %v3111_v29 = vcombine.low %v11236_v11, %v11237_v28  ;;  %v14676_v30 = vrot.slane %v3093_v47, %v13160_v13  ;;  %v18286_v49 = vld [vmem:[#allocation106_spill] sm:$0xff]  ;;  %v18288_v11 = vld [vmem:[#allocation57_spill] sm:$0xff] }
 0x1af   :  { %v11238_v6 = vpack.i.b16 %v18279_v24, %v18283_v44  ;;  %12394 = vmatprep.mubr.msk.bf16.mxu0 %vm12918_vm2, %v18112_v18  ;;  %v18285_v48 = vunpack.i.h.s16 %v13504_v14  ;;  %v11349_v8 = vpack.i.b16 %v13577_v3, %v1231_v59  ;;  %v14683_v35 = vrot.slane %v4549_v52, %v13160_v13  ;;  %v18287_v14 = vld [vmem:[#allocation105_spill] sm:$0xff]  ;;  %v18291_v59 = vld [vmem:[#allocation107_spill] sm:$0xff] }
 0x1b0   :  { %v3113_v44 = vcombine.low %v11240_v1, %v11241_v10  ;;  %v3120_v40 = vrot.slane %v3110_v60, %v13160_v13  ;;  %v3127_v57 = vrot.slane %v3111_v29, %v13160_v13  ;;  %v4565_v62 = vcombine.low %v18287_v14, %v18286_v49  ;;  %v18289_v3 = vld [vmem:[#allocation109_spill] sm:$0xff] }
 0x1b1   :  { %v3112_v19 = vcombine.low %v11238_v6, %v11239_v4  ;;  %v11348_v23 = vpack.i.b16 %v18222_v26, %v18285_v48  ;;  %v4568_v28 = vcombine.low %v18289_v3, %v18288_v11  ;;  %v3109_v52 = vcombine.low %v14676_v30, %v14664_v17  ;;  %v18290_v4 = vld [vmem:[#allocation108_spill] sm:$0xff]  ;;  %v18297_v17 = vld [vmem:[#allocation67_spill] sm:$0xff] }
 0x1b2   :  { %v14698_v6 = vrot.slane %v4548_v2, %v13160_v13  ;;  %v4567_v1 = vcombine.low %v18291_v59, %v18290_v4  ;;  %v833_v10 = vcombine.high %v13672_v31, %v13672_v31  ;;  %v3141_v60 = vrot.slane %v3113_v44, %v13160_v13  ;;  %v18295_v44 = vld [vmem:[#allocation71_spill] sm:$0xff] }
 0x1b3   :  { %v3134_v47 = vrot.slane %v3112_v19, %v13160_v13  ;;  %v4566_v26 = vcombine.low %v11348_v23, %v11349_v8  ;;  %v3142_v29 = vcombine.low %v3120_v40, %v3127_v57  ;;  %v14710_v48 = vcombine.high %v13691_v46, %v13691_v46  ;;  %v18293_v23 = vld [vmem:[#allocation70_spill] sm:$0xff] }
 0x1b4   :  { %v18292_v2 = vcombine.low %v14566_v41, %v14578_v12  ;;  %v4596_v30 = vrot.slane %v4568_v28, %v13160_v13  ;;  %v14721_v8 = vcombine.high %v18293_v23, %v18293_v23  ;;  %v14725_v40 = vcombine.high %v18295_v44, %v18295_v44  ;;  %v12530_v41 = vld [vmem:[%s17786_s3 + $0xb0] sm:$0xff]  }
 0x1b5   :  { %v14706_v19 = vrot.slane %v4566_v26, %v13160_v13  ;;  %v3143_v12 = vcombine.low %v3134_v47, %v3141_v60  ;;  %v14733_v57 = vrot.slane %v4565_v62, %v13160_v13  ;;  %v1273_v49 = vunpack.i.h.s16 %v18284_v34 }
 0x1b6   :  { %12335 = vmatmul.mubr.msk.bf16.vlgmr.msra.gmra.mxu1 %vm1813_vm3, %v18292_v2  ;;  %18294 = vst [vmem:[#allocation41_spill] sm:$0xff] %v14721_v8  ;;  %18296 = vst [vmem:[#allocation22_spill] sm:$0xff] %v14725_v40  ;;  %12395 = vmatmul.mubr.msk.bf16.gmra.mxu0 %vm1813_vm3, %v14627_v43  ;;  %v1295_v14 = vunpack.i.h.s16 %v833_v10  ;;  %v4589_v43 = vrot.slane %v4567_v1, %v13160_v13  ;;  %v1299_v26 = vunpack.i.h.s16 %v18293_v23  ;;  %v1301_v47 = vunpack.i.h.s16 %v18295_v44 }
 0x1b7   :  { %12399 = vmatpush3.bf16.msra.mxu1 %v12529_v36  ;;  %12442 = vmatprep.mubr.msk.bf16.mxu0 %vm12918_vm2, %v18112_v18  ;;  %v1297_v36 = vunpack.i.h.s16 %v14710_v48  ;;  %v14746_v62 = vrot.slane %v3142_v29, %v13160_v13  ;;  %v1303_v11 = vunpack.i.h.s16 %v14721_v8  ;;  %v1305_v3 = vunpack.i.h.s16 %v14725_v40 }
 0x1b8   :  { %12338 = vmatprep.mubr.msk.bf16.mxu1 %vm12918_vm2, %v18112_v18  ;;  %12400 = vmatprep.subr.bf16.mxu1 %v18112_v18  ;;  %v4598_v28 = vcombine.low %v4589_v43, %v4596_v30  ;;  %v11242_v4 = vpack.i.b16 %v13526_v63, %v1273_v49  ;;  %v11244_v59 = vpack.i.b16 %v14710_v48, %v1295_v14  ;;  %v18299_v49 = vunpack.i.h.s16 %v13606_v55  ;;  %v18300_v43 = vld [vmem:[#allocation62_spill] sm:$0xff] }
 0x1b9   :  { %v11245_v1 = vpack.i.b16 %v18293_v23, %v1297_v36  ;;  %v3157_v10 = vrot.slane %v3143_v12, %v13160_v13  ;;  %v11246_v60 = vpack.i.b16 %v18295_v44, %v1299_v26  ;;  %v11247_v29 = vpack.i.b16 %v14721_v8, %v1301_v47  ;;  %v18302_v26 = vld [vmem:[#allocation114_spill] sm:$0xff]  ;;  %v18303_v47 = vld [vmem:[#allocation113_spill] sm:$0xff]  ;;  %v18305_v44 = vld [vmem:[#allocation115_spill] sm:$0xff] }
 0x1ba   :  { %v11248_v2 = vpack.i.b16 %v14725_v40, %v1303_v11  ;;  %v11249_v34 = vpack.i.b16 %v18297_v17, %v1305_v3  ;;  %v3159_v54 = vcombine.low %v11242_v4, %v18298_v22  ;;  %v11350_v14 = vpack.i.b16 %v18300_v43, %v18299_v49  ;;  %v18304_v11 = vld [vmem:[#allocation116_spill] sm:$0xff]  ;;  %v12531_v22 = vld [vmem:[%s17786_s3 + $0xa8] sm:$0xff]   ;;  %v18309_v49 = vld [vmem:[#allocation93_spill] sm:$0xff] }
 0x1bb   :  { %12401 = vmatpush3.bf16.msra.mxu1 %v12530_v41  ;;  %v3160_v30 = vcombine.low %v11244_v59, %v11245_v1  ;;  %v3161_v41 = vcombine.low %v11246_v60, %v11247_v29  ;;  %v18301_v12 = vunpack.i.h.s16 %v13672_v31  ;;  %v4615_v21 = vcombine.low %v18303_v47, %v18302_v26  ;;  %v18306_v31 = vld [vmem:[#allocation112_spill] sm:$0xff]  ;;  %v18310_v43 = vld [vmem:[#allocation97_spill] sm:$0xff] }
 0x1bc   :  { %12402 = vmatprep.subr.bf16.mxu1 %v18112_v18  ;;  %v4616_v3 = vcombine.low %v18305_v44, %v18304_v11  ;;  %v3162_v55 = vcombine.low %v11248_v2, %v11249_v34  ;;  %v3169_v4 = vrot.slane %v3159_v54, %v13160_v13  ;;  %v4614_v1 = vcombine.low %v18306_v31, %v11350_v14  ;;  %v18308_v54 = vld [vmem:[#allocation117_spill] sm:$0xff]  ;;  %v18312_v11 = vld [vmem:[#allocation84_spill] sm:$0xff] }
 0x1bd   :  { %v11351_v36 = vpack.i.b16 %v13691_v46, %v18301_v12  ;;  %v3176_v59 = vrot.slane %v3160_v30, %v13160_v13  ;;  %v1323_v60 = vunpack.i.h.s16 %v18229_v9  ;;  %v18307_v29 = vcombine.low %v14588_v39, %v14604_v20  ;;  %v18314_v8 = vld [vmem:[#allocation89_spill] sm:$0xff]  ;;  %v18317_v40 = vld [vmem:[#allocation92_spill] sm:$0xff] }
 0x1be   :  { %12339 = vmatmul.mubr.msk.bf16.gmra.mxu1 %vm1813_vm3, %v3109_v52  ;;  %v14787_v44 = vrot.slane %v4598_v28, %v13160_v13  ;;  %v3183_v52 = vrot.slane %v3161_v41, %v13160_v13  ;;  %v3190_v9 = vrot.slane %v3162_v55, %v13160_v13  ;;  %v4631_v39 = vrot.slane %v4615_v21, %v13160_v13  ;;  %v18311_v41 = vld [vmem:[#allocation83_spill] sm:$0xff] }
 0x1bf   :  { %12443 = vmatmul.mubr.msk.bf16.vlgmr.msra.gmra.mxu0 %vm1813_vm3, %v18307_v29  ;;  %12342 = vmatprep.mubr.msk.bf16.mxu1 %vm12918_vm2, %v18112_v18  ;;  %v4617_v34 = vcombine.low %v18308_v54, %v11351_v36  ;;  %v3191_v2 = vcombine.low %v3169_v4, %v3176_v59  ;;  %v4638_v20 = vrot.slane %v4616_v3, %v13160_v13  ;;  %v17986_v28 = vunpack.i.h.s16 %v18309_v49  ;;  %v12532_v36 = vld [vmem:[%s17786_s3 + $0xa0] sm:$0xff]  }
 0x1c0   :  { %12446 = vmatprep.mubr.msk.bf16.mxu0 %vm12918_vm2, %v18112_v18  ;;  %12403 = vmatpush3.bf16.msra.mxu1 %v12531_v22  ;;  %v1329_v14 = vunpack.i.h.s16 %v18310_v43  ;;  %v1331_v12 = vunpack.i.h.s16 %v18311_v41  ;;  %v3158_v26 = vcombine.low %v14746_v62, %v3157_v10  ;;  %v4624_v47 = vrot.slane %v4614_v1, %v13160_v13  ;;  %v18313_v4 = vld [vmem:[#allocation118_spill] sm:$0xff] }
 0x1c1   :  { %v4645_v30 = vrot.slane %v4617_v34, %v13160_v13  ;;  %v1307_v21 = vunpack.i.h.s16 %v18297_v17  ;;  %v1333_v3 = vunpack.i.h.s16 %v18312_v11  ;;  %12404 = vmatprep.subr.bf16.mxu1 %v18112_v18  ;;  %v3192_v22 = vcombine.low %v3183_v52, %v3190_v9 }
 0x1c2   :  { %v1335_v59 = vunpack.i.h.s16 %v18313_v4  ;;  %v11251_v31 = vpack.i.b16 %v18310_v43, %v17986_v28  ;;  %v3199_v29 = vrot.slane %v3191_v2, %v13160_v13  ;;  %v11252_v10 = vpack.i.b16 %v18311_v41, %v1329_v14 }
 0x1c3   :  { %v4647_v55 = vcombine.low %v4638_v20, %v4645_v30  ;;  %v11250_v62 = vpack.i.b16 %v18309_v49, %v1307_v21  ;;  %v11253_v1 = vpack.i.b16 %v18312_v11, %v1331_v12  ;;  %v4646_v54 = vcombine.low %v4624_v47, %v4631_v39  ;;  %v18316_v20 = vld [vmem:[#allocation79_spill] sm:$0xff] }
 0x1c4   :  { %v11254_v34 = vpack.i.b16 %v18313_v4, %v1333_v3  ;;  %v11255_v52 = vpack.i.b16 %v18314_v8, %v1335_v59  ;;  %v18315_v9 = vunpack.i.h.s16 %v13593_v33  ;;  %12405 = vmatpush3.bf16.msra.mxu1 %v12532_v36  ;;  %v11353_v28 = vpack.i.b16 %v18317_v40, %v1323_v60  ;;  %v18320_v40 = vld [vmem:[#allocation100_spill] sm:$0xff]  ;;  %v18324_v59 = vld [vmem:[#allocation103_spill] sm:$0xff] }
 0x1c5   :  { %v18318_v2 = vcombine.low %v14733_v57, %v14706_v19  ;;  %v3208_v12 = vcombine.low %v11250_v62, %v11251_v31  ;;  %v3209_v39 = vcombine.low %v11252_v10, %v11253_v1  ;;  %v18319_v47 = vcombine.low %v14698_v6, %v14683_v35  ;;  %v18321_v57 = vld [vmem:[#allocation33_spill] sm:$0xff]  ;;  %v18325_v31 = vld [vmem:[#allocation119_spill] sm:$0xff] }
 0x1c6   :  { %v11257_v30 = vpack.i.b16 %v18316_v20, %v18315_v9  ;;  %12343 = vmatmul.mubr.msk.bf16.gmra.mxu1 %vm1813_vm3, %v3158_v26  ;;  %v3206_v33 = vrot.slane %v3192_v22, %v13160_v13  ;;  %v14835_v8 = vrot.slane %v4647_v55, %v13160_v13  ;;  %v1293_v19 = vunpack.i.h.s16 %v13691_v46  ;;  %v18322_v22 = vld [vmem:[#allocation91_spill] sm:$0xff]  ;;  %v18323_v55 = vld [vmem:[#allocation74_spill] sm:$0xff]  ;;  %v18326_v9 = vld [vmem:[#allocation65_spill] sm:$0xff] }
 0x1c7   :  { %v4605_v14 = vrot.slane %v18318_v2, %v13160_v13  ;;  %12447 = vmatmul.mubr.msk.bf16.gmra.mxu0 %vm1813_vm3, %v18319_v47  ;;  %12346 = vmatprep.mubr.msk.bf16.mxu1 %vm12918_vm2, %v18112_v18  ;;  %v3210_v6 = vcombine.low %v11254_v34, %v11255_v52  ;;  %v3225_v26 = vrot.slane %v3209_v39, %v13160_v13  ;;  %v1359_v1 = vunpack.i.h.s16 %v18316_v20  ;;  %v18327_v52 = vld [vmem:[#allocation85_spill] sm:$0xff]  ;;  %v18329_v47 = vld [vmem:[#allocation47_spill] sm:$0xff] }
 0x1c8   :  { %v3211_v60 = vcombine.low %v18320_v40, %v11257_v30  ;;  %12450 = vmatprep.mubr.msk.bf16.mxu0 %vm12918_vm2, %v18112_v18  ;;  %v3207_v21 = vcombine.low %v3199_v29, %v3206_v33  ;;  %v4654_v3 = vrot.slane %v4646_v54, %v13160_v13  ;;  %v4664_v4 = vcombine.low %v18323_v55, %v18322_v22  ;;  %v18328_v30 = vld [vmem:[#allocation44_spill] sm:$0xff] }
 0x1c9   :  { %v4613_v35 = vcombine.low %v4605_v14, %v14787_v44  ;;  %v4665_v46 = vcombine.low %v18325_v31, %v18324_v59  ;;  %v3218_v62 = vrot.slane %v3208_v12, %v13160_v13  ;;  %v1361_v44 = vunpack.i.h.s16 %v18326_v9  ;;  %v18330_v12 = vld [vmem:[#allocation49_spill] sm:$0xff] }
 0x1ca   :  { %v3239_v10 = vrot.slane %v3211_v60, %v13160_v13  ;;  %v4662_v34 = vcombine.low %v4654_v3, %v14835_v8  ;;  %v11352_v29 = vpack.i.b16 %v18157_v53, %v1293_v19  ;;  %v4666_v54 = vcombine.low %v11353_v28, %v18327_v52  ;;  %v18331_v60 = vld [vmem:[#allocation72_spill] sm:$0xff]  ;;  %v18333_v28 = vld [vmem:[#allocation78_spill] sm:$0xff]  ;;  %v18334_v31 = vld [vmem:[#allocation77_spill] sm:$0xff] }
 0x1cb   :  { %v1363_v2 = vunpack.i.h.s16 %v18328_v30  ;;  %v3232_v14 = vrot.slane %v3210_v6, %v13160_v13  ;;  %v3240_v39 = vcombine.low %v3218_v62, %v3225_v26  ;;  %v1365_v33 = vunpack.i.h.s16 %v18329_v47  ;;  %v18332_v8 = vld [vmem:[#allocation52_spill] sm:$0xff] }
 0x1cc   :  { %v1367_v40 = vunpack.i.h.s16 %v18330_v12  ;;  %v4663_v22 = vcombine.low %v11352_v29, %v18331_v60  ;;  %v4680_v55 = vrot.slane %v4664_v4, %v13160_v13  ;;  %v4687_v59 = vrot.slane %v4665_v46, %v13160_v13 }
 0x1cd   :  { %v1369_v3 = vunpack.i.h.s16 %v18332_v8  ;;  %v3241_v53 = vcombine.low %v3232_v14, %v3239_v10  ;;  %v1391_v19 = vunpack.i.h.s16 %v18333_v28  ;;  %v11258_v6 = vpack.i.b16 %v18326_v9, %v1359_v1 }
 0x1ce   :  { %12347 = vmatmul.mubr.msk.bf16.gmra.mxu1 %vm1813_vm3, %v3207_v21  ;;  %v11259_v26 = vpack.i.b16 %v18328_v30, %v1361_v44  ;;  %v4694_v4 = vrot.slane %v4666_v54, %v13160_v13  ;;  %v17989_v46 = vunpack.i.h.s16 %v18334_v31  ;;  %v11260_v62 = vpack.i.b16 %v18329_v47, %v1363_v2  ;;  %v18335_v54 = vld [vmem:[#allocation122_spill] sm:$0xff] }
 0x1cf   :  { %12451 = vmatmul.mubr.msk.bf16.gmra.mxu0 %vm1813_vm3, %v4613_v35  ;;  %12350 = vmatprep.mubr.msk.bf16.mxu1 %vm12918_vm2, %v18112_v18  ;;  %v1355_v21 = vunpack.i.h.s16 %v18237_v58  ;;  %v3248_v10 = vrot.slane %v3240_v39, %v13160_v13  ;;  %v11261_v1 = vpack.i.b16 %v18330_v12, %v1365_v33  ;;  %v11262_v35 = vpack.i.b16 %v18332_v8, %v1367_v40 }
 0x1d0   :  { %12454 = vmatprep.mubr.msk.bf16.mxu0 %vm12918_vm2, %v18112_v18  ;;  %v11263_v44 = vpack.i.b16 %v18334_v31, %v1369_v3  ;;  %v4696_v29 = vcombine.low %v4687_v59, %v4694_v4  ;;  %v11264_v52 = vpack.i.b16 %v18333_v28, %v17989_v46  ;;  %v11265_v2 = vpack.i.b16 %v18335_v54, %v1391_v19 }
 0x1d1   :  { %v3257_v14 = vcombine.low %v11258_v6, %v11259_v26  ;;  %v3255_v60 = vrot.slane %v3241_v53, %v13160_v13  ;;  %v4673_v36 = vrot.slane %v4663_v22, %v13160_v13  ;;  %v3258_v47 = vcombine.low %v11260_v62, %v11261_v1  ;;  %v18337_v26 = vld [vmem:[#allocation61_spill] sm:$0xff]  ;;  %v18338_v62 = vld [vmem:[#allocation60_spill] sm:$0xff] }
 0x1d2   :  { %v3259_v39 = vcombine.low %v11262_v35, %v11263_v44  ;;  %v3260_v9 = vcombine.low %v11264_v52, %v11265_v2  ;;  %v18336_v40 = vunpack.i.h.s16 %v18179_v0  ;;  %v11355_v3 = vpack.i.b16 %v18233_v38, %v1355_v21  ;;  %v18339_v35 = vld [vmem:[#allocation120_spill] sm:$0xff]  ;;  %v18340_v44 = vld [vmem:[#allocation63_spill] sm:$0xff]  ;;  %v18341_v38 = vld [vmem:[#allocation126_spill] sm:$0xff] }
 0x1d3   :  { %v3267_v33 = vrot.slane %v3257_v14, %v13160_v13  ;;  %v3256_v4 = vcombine.low %v3248_v10, %v3255_v60  ;;  %v4695_v28 = vcombine.low %v4673_v36, %v4680_v55  ;;  %v3274_v19 = vrot.slane %v3258_v47, %v13160_v13  ;;  %v18342_v21 = vld [vmem:[#allocation121_spill] sm:$0xff]  ;;  %v18343_v55 = vld [vmem:[#allocation68_spill] sm:$0xff]  ;;  %v18344_v52 = vld [vmem:[#allocation66_spill] sm:$0xff] }
 0x1d4   :  { %v11354_v59 = vpack.i.b16 %v18237_v58, %v18336_v40  ;;  %v3281_v6 = vrot.slane %v3259_v39, %v13160_v13  ;;  %v4710_v53 = vrot.slane %v4696_v29, %v13160_v13  ;;  %v3288_v22 = vrot.slane %v3260_v9, %v13160_v13 }
 0x1d5   :  { %v4712_v1 = vcombine.low %v18338_v62, %v18337_v26  ;;  %v4713_v0 = vcombine.low %v18340_v44, %v18339_v35  ;;  %v3289_v58 = vcombine.low %v3267_v33, %v3274_v19  ;;  %v4715_v36 = vcombine.low %v18342_v21, %v18341_v38  ;;  %v18345_v33 = vld [vmem:[#allocation123_spill] sm:$0xff]  ;;  %v18349_v35 = vld [vmem:[#allocation125_spill] sm:$0xff] }
 0x1d6   :  { %12351 = vmatmul.mubr.msk.bf16.gmra.mxu1 %vm1813_vm3, %v3256_v4  ;;  %v1153_v47 = vcombine.high %v18343_v55, %v18343_v55  ;;  %v1393_v10 = vunpack.i.h.s16 %v18335_v54  ;;  %v3290_v9 = vcombine.low %v3281_v6, %v3288_v22  ;;  %v4714_v29 = vcombine.low %v11354_v59, %v11355_v3  ;;  %v18346_v19 = vld [vmem:[#allocation3_spill] sm:$0xff]  ;;  %v18347_v6 = vld [vmem:[#allocation5_spill] sm:$0xff] }
 0x1d7   :  { %12455 = vmatmul.mubr.msk.bf16.gmra.mxu0 %vm1813_vm3, %v4662_v34  ;;  %12354 = vmatprep.mubr.msk.bf16.mxu1 %vm12918_vm2, %v18112_v18  ;;  %v1395_v2 = vunpack.i.h.s16 %v18344_v52  ;;  %v1397_v14 = vunpack.i.h.s16 %v18343_v55  ;;  %v4703_v60 = vrot.slane %v4695_v28, %v13160_v13  ;;  %v3297_v39 = vrot.slane %v3289_v58, %v13160_v13 }
 0x1d8   :  { %12458 = vmatprep.mubr.msk.bf16.mxu0 %vm12918_vm2, %v18112_v18  ;;  %v1399_v54 = vunpack.i.h.s16 %v18345_v33  ;;  %v11266_v34 = vpack.i.b16 %v18344_v52, %v1393_v10  ;;  %v3304_v40 = vrot.slane %v3290_v9, %v13160_v13  ;;  %v4722_v4 = vrot.slane %v4712_v1, %v13160_v13 }
 0x1d9   :  { %v11267_v59 = vpack.i.b16 %v18343_v55, %v1395_v2  ;;  %v11268_v3 = vpack.i.b16 %v18345_v33, %v1397_v14  ;;  %v18348_v22 = vcombine.low %v18346_v19, %v18347_v6  ;;  %v4711_v28 = vcombine.low %v4703_v60, %v4710_v53  ;;  %v18350_v2 = vld [vmem:[#allocation4_spill] sm:$0xff]  ;;  %v18351_v14 = vld [vmem:[#allocation6_spill] sm:$0xff]  ;;  %v18355_v19 = vld [vmem:[#allocation21_spill] sm:$0xff] }
 0x1da   :  { %v11269_v62 = vpack.i.b16 %v1153_v47, %v1399_v54  ;;  %v1385_v44 = vunpack.i.h.s16 %v18349_v35  ;;  %v4729_v58 = vrot.slane %v4713_v0, %v13160_v13  ;;  %v4736_v38 = vrot.slane %v4714_v29, %v13160_v13  ;;  %v18354_v54 = vld [vmem:[#allocation73_spill] sm:$0xff]  ;;  %v18356_v6 = vld [vmem:[#allocation128_spill] sm:$0xff] }
 0x1db   :  { %v3992_v26 = vrot.slane %v18348_v22, %v13160_v13  ;;  %v4743_v21 = vrot.slane %v4715_v36, %v13160_v13  ;;  %v3306_v1 = vcombine.low %v11266_v34, %v11267_v59  ;;  %v3305_v10 = vcombine.low %v3297_v39, %v3304_v40  ;;  %v18357_v22 = vld [vmem:[#allocation127_spill] sm:$0xff] }
 0x1dc   :  { %v3307_v9 = vcombine.low %v11268_v3, %v11269_v62  ;;  %v18352_v33 = vcombine.low %v18350_v2, %v18351_v14  ;;  %v18353_v53 = vcombine.low %v18321_v57, %v13376_v32  ;;  %v4744_v60 = vcombine.low %v4722_v4, %v4729_v58 }
 0x1dd   :  { %v3314_v0 = vrot.slane %v3306_v1, %v13160_v13  ;;  %v11356_v29 = vpack.i.b16 %v18354_v54, %v1385_v44  ;;  %v4014_v36 = vcombine.low %v3992_v26, %v18355_v19  ;;  %v4745_v40 = vcombine.low %v4736_v38, %v4743_v21 }
 0x1de   :  { %v4006_v46 = vrot.slane %v18352_v33, %v13160_v13  ;;  %v4013_v47 = vrot.slane %v18353_v53, %v13160_v13  ;;  %12355 = vmatmul.mubr.msk.bf16.gmra.mxu1 %vm1813_vm3, %v3305_v10  ;;  %v3321_v39 = vrot.slane %v3307_v9, %v13160_v13  ;;  %v4752_v3 = vrot.slane %v4744_v60, %v13160_v13  ;;  %v18359_v10 = vld [vmem:[#allocation24_spill] sm:$0xff] }
 0x1df   :  { %12459 = vmatmul.mubr.msk.bf16.gmra.mxu0 %vm1813_vm3, %v4711_v28  ;;  %12358 = vmatprep.mubr.msk.bf16.mxu1 %vm12918_vm2, %v18112_v18  ;;  %v4022_v4 = vrot.slane %v4014_v36, %v13160_v13  ;;  %v4761_v26 = vcombine.low %v18357_v22, %v18356_v6  ;;  %v4759_v35 = vrot.slane %v4745_v40, %v13160_v13 }
 0x1e0   :  { %v4015_v34 = vcombine.low %v4006_v46, %v4013_v47  ;;  %12462 = vmatprep.mubr.msk.bf16.mxu0 %vm12918_vm2, %v18112_v18  ;;  %v3322_v57 = vcombine.low %v3314_v0, %v3321_v39  ;;  %v18358_v46 = vld [vmem:[#allocation129_spill] sm:$0xff]  ;;  %v4034_v58 = vcombine.low %v18267_v7, %v14582_v45  ;;  %v11321_v9 = vcombine.high %v18359_v10, %v13376_v32 }
 0x1e1   :  { %v4762_v62 = vcombine.low %v18358_v46, %v11356_v29  ;;  %v4760_v38 = vcombine.low %v4752_v3, %v4759_v35  ;;  %v4769_v21 = vrot.slane %v4761_v26, %v13160_v13  ;;  %v4032_v2 = vcombine.low %v18241_v61, %v18264_v42  ;;  %v18361_v26 = vld [vmem:[#allocation22_spill] sm:$0xff]  ;;  %v18362_v35 = vld [vmem:[#allocation41_spill] sm:$0xff] }
 0x1e2   :  { %v4029_v59 = vrot.slane %v4015_v34, %v13160_v13  ;;  %v3329_v44 = vrot.slane %v3322_v57, %v13160_v13  ;;  %v4033_v14 = vcombine.low %v14574_v56, %v18266_v51  ;;  %v4062_v45 = vrot.slane %v4034_v58, %v13160_v13  ;;  %v14979_v51 = vpop.f32.mrf.mxu0 }
 0x1e3   :  { %v4776_v1 = vrot.slane %v4762_v62, %v13160_v13  ;;  %v18360_v7 = vunpack.i.h.s16 %v18278_v37  ;;  %v4041_v61 = vrot.slane %v11321_v9, %v13160_v13  ;;  %v4048_v42 = vrot.slane %v4032_v2, %v13160_v13 }
 0x1e4   :  { %v4030_v28 = vcombine.low %v4022_v4, %v4029_v59  ;;  %v4055_v56 = vrot.slane %v4033_v14, %v13160_v13  ;;  %v12300_v60 = vpop.f32.mrf.mxu0  ;;  %v4082_v37 = vcombine.low %v18279_v24, %v18280_v16  ;;  %v11322_v19 = vcombine.high %v18279_v24, %v18280_v16 }
 0x1e5   :  { %v11318_v32 = vpack.i.b16 %v18360_v7, %v18218_v5  ;;  %v4777_v33 = vcombine.low %v4769_v21, %v4776_v1  ;;  %v4063_v29 = vcombine.low %v4041_v61, %v4048_v42  ;;  %v4080_v5 = vcombine.low %v14638_v25, %v18276_v27  ;;  %v18367_v61 = vld [vmem:[#allocation46_spill] sm:$0xff] }
 0x1e6   :  { %12359 = vmatmul.mubr.msk.bf16.gmra.mxu1 %vm1813_vm3, %v3329_v44  ;;  %v4064_v53 = vcombine.low %v4055_v56, %v4062_v45  ;;  %v14990_v36 = vpop.f32.mrf.mxu0  ;;  %v4104_v40 = vrot.slane %v4082_v37, %v13160_v13  ;;  %v4111_v24 = vrot.slane %v11322_v19, %v13160_v13  ;;  %v4130_v59 = vcombine.low %v14710_v48, %v18293_v23  ;;  %v18363_v44 = vld [vmem:[#allocation71_spill] sm:$0xff] }
 0x1e7   :  { %12463 = vmatmul.mubr.msk.bf16.gmra.mxu0 %vm1813_vm3, %v4760_v38  ;;  %12406 = vmatprep.mubr.msk.bf16.mxu1 %vm12918_vm2, %v18112_v18  ;;  %v4081_v47 = vcombine.low %v18277_v50, %v11318_v32  ;;  %v4784_v0 = vrot.slane %v4777_v33, %v13160_v13  ;;  %v4071_v25 = vrot.slane %v4063_v29, %v13160_v13  ;;  %v18364_v38 = vld [vmem:[#allocation69_spill] sm:$0xff]  ;;  %v18365_v21 = vunpack.i.h.s16 %v18309_v49  ;;  %v18366_v32 = vld [vmem:[#allocation82_spill] sm:$0xff]  ;;  %v18370_v19 = vld [vmem:[#allocation47_spill] sm:$0xff] }
 0x1e8   :  { %12466 = vmatprep.mubr.msk.bf16.mxu0 %vm12918_vm2, %v18112_v18  ;;  %v4078_v50 = vrot.slane %v4064_v53, %v13160_v13  ;;  %v12301_v34 = vpop.f32.mrf.mxu0  ;;  %v4090_v27 = vrot.slane %v4080_v5, %v13160_v13  ;;  %v4113_v6 = vcombine.low %v4104_v40, %v4111_v24  ;;  %v4129_v22 = vcombine.low %v13526_v63, %v18225_v15 }
 0x1e9   :  { %v4097_v39 = vrot.slane %v4081_v47, %v13160_v13  ;;  %v15001_v16 = vpop.f32.mrf.mxu1  ;;  %v4132_v46 = vcombine.low %v18361_v26, %v18297_v17  ;;  %v4131_v48 = vcombine.low %v18363_v44, %v18362_v35  ;;  %v4146_v23 = vrot.slane %v4130_v59, %v13160_v13 }
 0x1ea   :  { %v4079_v57 = vcombine.low %v4071_v25, %v4078_v50  ;;  %v11319_v63 = vpack.i.b16 %v18365_v21, %v18364_v38  ;;  %v4127_v15 = vrot.slane %v4113_v6, %v13160_v13  ;;  %v4139_v17 = vrot.slane %v4129_v22, %v13160_v13 }
 0x1eb   :  { %v4112_v4 = vcombine.low %v4090_v27, %v4097_v39  ;;  %v12228_v3 = vpop.f32.mrf.mxu1  ;;  %v4160_v1 = vrot.slane %v4132_v46, %v13160_v13  ;;  %v4153_v9 = vrot.slane %v4131_v48, %v13160_v13  ;;  %v4179_v7 = vcombine.low %v18311_v41, %v18312_v11 }
 0x1ec   :  { %v4161_v2 = vcombine.low %v4139_v17, %v4146_v23  ;;  %v4178_v14 = vcombine.low %v11319_v63, %v18310_v43  ;;  %v11323_v49 = vcombine.high %v18311_v41, %v18312_v11  ;;  %v4181_v33 = vcombine.low %v18366_v32, %v18316_v20 }
 0x1ed   :  { %v15010_v62 = vpop.f32.mrf.mxu1  ;;  %v4162_v45 = vcombine.low %v4153_v9, %v4160_v1  ;;  %v18368_v42 = vunpack.i.h.s16 %v18334_v31  ;;  %v4195_v60 = vrot.slane %v4179_v7, %v13160_v13  ;;  %v11324_v11 = vcombine.high %v18354_v54, %v18334_v31 }
 0x1ee   :  { %12407 = vmatmul.mubr.msk.bf16.vlgmr.msra.gmra.mxu1 %vm1813_vm3, %v4030_v28  ;;  %v4120_v28 = vrot.slane %v4112_v4, %v13160_v13  ;;  %v4169_v43 = vrot.slane %v4161_v2, %v13160_v13  ;;  %v4188_v53 = vrot.slane %v4178_v14, %v13160_v13  ;;  %v4202_v41 = vrot.slane %v11323_v49, %v13160_v13 }
 0x1ef   :  { %12467 = vmatmul.mubr.msk.bf16.gmra.mxu0 %vm1813_vm3, %v4784_v0  ;;  %12410 = vmatprep.mubr.msk.bf16.mxu1 %vm12918_vm2, %v18112_v18  ;;  %v12229_v58 = vpop.f32.mrf.mxu1  ;;  %v11320_v56 = vpack.i.b16 %v18368_v42, %v18367_v61  ;;  %v4176_v47 = vrot.slane %v4162_v45, %v13160_v13  ;;  %v4209_v20 = vrot.slane %v4181_v33, %v13160_v13  ;;  %v18369_v0 = vld [vmem:[#allocation65_spill] sm:$0xff] }
 0x1f0   :  { %v4128_v10 = vcombine.low %v4120_v28, %v4127_v15  ;;  %v4227_v29 = vcombine.low %v18369_v0, %v18328_v30  ;;  %v4210_v37 = vcombine.low %v4188_v53, %v4195_v60  ;;  %v4228_v50 = vcombine.low %v18370_v19, %v18330_v12  ;;  %v12533_v19 = vld [vmem:[%s17788_s5 + $0xf0] ss:$8 sps:$4 sm:$0xff]  }
 0x1f1   :  { %v4177_v5 = vcombine.low %v4169_v43, %v4176_v47  ;;  %v4229_v39 = vcombine.low %v18332_v8, %v11320_v56  ;;  %v4211_v25 = vcombine.low %v4202_v41, %v4209_v20  ;;  %v4258_v8 = vrot.slane %v11324_v11, %v13160_v13 }
 0x1f2   :  { %v4237_v54 = vrot.slane %v4227_v29, %v13160_v13  ;;  %v4218_v30 = vrot.slane %v4210_v37, %v13160_v13  ;;  %v4244_v40 = vrot.slane %v4228_v50, %v13160_v13  ;;  %v4276_v44 = vcombine.low %v18344_v52, %v18343_v55  ;;  %v12535_v50 = vld [vmem:[%s17788_s5 + $0xf4] ss:$8 sps:$4 sm:$0xff]  }
 0x1f3   :  { %v4251_v12 = vrot.slane %v4229_v39, %v13160_v13  ;;  %v11325_v48 = vcombine.high %v18344_v52, %v18343_v55  ;;  %5774 = vmatprep.subr.bf16.mxu1 %v12535_v50  ;;  %v12556_v50 = vld [vmem:[%s17788_s5 + $0x44] ss:$8 sps:$4 sm:$0xff]  }
 0x1f4   :  { %v4259_v22 = vcombine.low %v4237_v54, %v4244_v40  ;;  %v4284_v38 = vrot.slane %v4276_v44, %v13160_v13  ;;  %5775 = vmatpush1.bf16.msra.mxu1 %v12533_v19  ;;  %v12553_v19 = vld [vmem:[%s17788_s5 + $0xc4] ss:$8 sps:$4 sm:$0xff]  }
 0x1f5   :  { %v4260_v26 = vcombine.low %v4251_v12, %v4258_v8  ;;  %v4291_v21 = vrot.slane %v11325_v48, %v13160_v13 }
 0x1f6   :  { %12411 = vmatmul.mubr.msk.bf16.gmra.mxu1 %vm1813_vm3, %v4079_v57  ;;  %v4225_v57 = vrot.slane %v4211_v25, %v13160_v13  ;;  %v4267_v28 = vrot.slane %v4259_v22, %v13160_v13  ;;  %v12536_v25 = vld [vmem:[%s17788_s5 + $0xe0] ss:$8 sps:$4 sm:$0xff]  }
 0x1f7   :  { %12414 = vmatprep.mubr.msk.bf16.mxu1 %vm12918_vm2, %v18112_v18  ;;  %v4274_v35 = vrot.slane %v4260_v26, %v13160_v13 }
 0x1f8   :  { %v4226_v3 = vcombine.low %v4218_v30, %v4225_v57 }
 0x1f9   :  { %v4275_v58 = vcombine.low %v4267_v28, %v4274_v35 }
 0x1fd   :  { %v15051_v34 = vpop.f32.mrf.mxu0 }
 0x1fe   :  { %12415 = vmatmul.mubr.msk.bf16.gmra.mxu1 %vm1813_vm3, %v4128_v10  ;;  %v4292_v10 = vcombine.low %v4284_v38, %v4291_v21  ;;  %v12539_v21 = vld [vmem:[%s17788_s5 + $0x70] ss:$8 sps:$4 sm:$0xff]  }
 0x1ff   :  { %12418 = vmatprep.mubr.msk.bf16.mxu1 %vm12918_vm2, %v18112_v18  ;;  %v12304_v31 = vpop.f32.mrf.mxu0 }
 0x200   :  { %v15057_v27 = vpop.f32.mrf.mxu1  ;;  %v4299_v2 = vrot.slane %v4292_v10, %v13160_v13  ;;  %v12538_v31 = vld [vmem:[%s17788_s5 + $0xe4] ss:$8 sps:$4 sm:$0xff]  }
 0x201   :  { %v15063_v24 = vpop.f32.mrf.mxu0  ;;  %5776 = vmatprep.subr.bf16.mxu1 %v12538_v31  ;;  %v12554_v31 = vld [vmem:[%s17788_s5 + $0x40] ss:$8 sps:$4 sm:$0xff]  }
 0x202   :  { %v12232_v4 = vpop.f32.mrf.mxu1  ;;  %5777 = vmatpush1.bf16.msra.mxu1 %v12536_v25 }
 0x203   :  { %v12305_v59 = vpop.f32.mrf.mxu0 }
 0x204   :  { %v15066_v6 = vpop.f32.mrf.mxu1 }
 0x206   :  { %12419 = vmatmul.mubr.msk.bf16.gmra.mxu1 %vm1813_vm3, %v4177_v5  ;;  %v12233_v46 = vpop.f32.mrf.mxu1 }
 0x207   :  { %12422 = vmatprep.mubr.msk.bf16.mxu1 %vm12918_vm2, %v18112_v18 }
 0x20b   :  { %v15077_v23 = vpop.f32.mrf.mxu0 }
 0x20d   :  { %v12308_v63 = vpop.f32.mrf.mxu0 }
 0x20e   :  { %12423 = vmatmul.mubr.msk.bf16.gmra.mxu1 %vm1813_vm3, %v4226_v3  ;;  %v15081_v15 = vpop.f32.mrf.mxu1  ;;  %v12541_v63 = vld [vmem:[%s17788_s5 + $0x74] ss:$8 sps:$4 sm:$0xff]  }
 0x20f   :  { %12426 = vmatprep.mubr.msk.bf16.mxu1 %vm12918_vm2, %v18112_v18  ;;  %v15084_v17 = vpop.f32.mrf.mxu0  ;;  %6196 = vmatprep.subr.bf16.mxu0 %v12541_v63 }
 0x210   :  { %v12236_v1 = vpop.f32.mrf.mxu1  ;;  %6197 = vmatpush1.bf16.msra.mxu0 %v12539_v21 }
 0x211   :  { %v12309_v55 = vpop.f32.mrf.mxu0  ;;  %v12542_v1 = vld [vmem:[%s17788_s5 + $0xd0] ss:$8 sps:$4 sm:$0xff]  }
 0x212   :  { %v15088_v52 = vpop.f32.mrf.mxu1  ;;  %v12544_v55 = vld [vmem:[%s17788_s5 + $0xd4] ss:$8 sps:$4 sm:$0xff]  }
 0x213   :  { %5778 = vmatprep.subr.bf16.mxu1 %v12544_v55 }
 0x214   :  { %v12237_v9 = vpop.f32.mrf.mxu1  ;;  %5779 = vmatpush1.bf16.msra.mxu1 %v12542_v1 }
 0x215   :  { %v12547_v9 = vld [vmem:[%s17788_s5 + $0x64] ss:$8 sps:$4 sm:$0xff]   ;;  %5780 = vmatprep.subr.bf16.mxu1 %v12553_v19 }
 0x216   :  { %12427 = vmatmul.mubr.msk.bf16.gmra.mxu1 %vm1813_vm3, %v4275_v58  ;;  %v15091_v14 = vpop.f32.mrf.mxu1  ;;  %6198 = vmatprep.subr.bf16.mxu0 %v12547_v9 }
 0x217   :  { %12430 = vmatprep.mubr.msk.bf16.mxu1 %vm12918_vm2, %v18112_v18 }
 0x218   :  { %v12240_v45 = vpop.f32.mrf.mxu1 }
 0x21a   :  { %v15096_v49 = vpop.f32.mrf.mxu1 }
 0x21b   :  { %v15094_v7 = vpop.f32.mrf.mxu0 }
 0x21c   :  { %v12241_v33 = vpop.f32.mrf.mxu1 }
 0x21d   :  { %v12312_v32 = vpop.f32.mrf.mxu0 }
 0x21e   :  { %12431 = vmatmul.mubr.msk.bf16.gmra.mxu1 %vm1813_vm3, %v4299_v2  ;;  %v15100_v42 = vpop.f32.mrf.mxu1 }
 0x21f   :  { %v15098_v61 = vpop.f32.mrf.mxu0 }
 0x220   :  { %v12244_v43 = vpop.f32.mrf.mxu1 }
 0x221   :  { %v12313_v56 = vpop.f32.mrf.mxu0 }
 0x222   :  { %v15102_v53 = vpop.f32.mrf.mxu1 }
 0x224   :  { %v12245_v60 = vpop.f32.mrf.mxu1 }
 0x227   :  { %v15104_v47 = vpop.f32.mrf.mxu0 }
 0x228   :  { %v15106_v11 = vpop.f32.mrf.mxu1 }
 0x229   :  { %v12316_v41 = vpop.f32.mrf.mxu0 }
 0x22a   :  { %v12248_v0 = vpop.f32.mrf.mxu1  ;;  %v12548_v41 = vld [vmem:[%s17788_s5 + $0x50] ss:$8 sps:$4 sm:$0xff]  }
 0x22b   :  { %v15108_v20 = vpop.f32.mrf.mxu0  ;;  %v12550_v0 = vld [vmem:[%s17788_s5 + $0x54] ss:$8 sps:$4 sm:$0xff]  }
 0x22c   :  { %v15110_v5 = vpop.f32.mrf.mxu1 }
 0x22d   :  { %v12317_v29 = vpop.f32.mrf.mxu0 }
 0x22e   :  { %v12249_v37 = vpop.f32.mrf.mxu1  ;;  %v12551_v29 = vld [vmem:[%s17788_s5 + $0xc0] ss:$8 sps:$4 sm:$0xff]  }
 0x22f   :  { %5781 = vmatpush1.bf16.msra.mxu1 %v12551_v29  ;;  %v12572_v29 = vld [vmem:[%s17788_s5 + $0x90] ss:$8 sps:$4 sm:$0xff]  }
 0x231   :  { %v15118_v39 = vpop.f32.mrf.mxu1 }
 0x232   :  { %v15126_v54 = vpop.f32.mrf.mxu0 }
 0x233   :  { %v12252_v30 = vpop.f32.mrf.mxu1 }
 0x234   :  { %v12320_v40 = vpop.f32.mrf.mxu0 }
 0x235   :  { %v1920_v12 = vpop.f32.mrf.mxu1 }
 0x236   :  { %v15128_v8 = vpop.f32.mrf.mxu0 }
 0x237   :  { %v12253_v57 = vpop.f32.mrf.mxu1 }
 0x238   :  { %v12321_v4 = vpop.f32.mrf.mxu0 }
 0x239   :  { %v15130_v59 = vpop.f32.mrf.mxu1 }
 0x23a   :  { %v15132_v3 = vpop.f32.mrf.mxu0 }
 0x23b   :  { %v12264_v22 = vpop.f32.mrf.mxu1 }
 0x23c   :  { %v12324_v26 = vpop.f32.mrf.mxu0  ;;  %v12559_v22 = vld [vmem:[%s17788_s5 + $0x34] ss:$8 sps:$4 sm:$0xff]  }
 0x23d   :  { %v15134_v46 = vpop.f32.mrf.mxu1  ;;  %v12560_v26 = vld [vmem:[%s17788_s5 + $0xb0] ss:$8 sps:$4 sm:$0xff]  }
 0x23e   :  { %v2935_v28 = vpop.f32.mrf.mxu0 }
 0x23f   :  { %v12265_v35 = vpop.f32.mrf.mxu1 }
 0x240   :  { %v12325_v44 = vpop.f32.mrf.mxu0  ;;  %v12562_v35 = vld [vmem:[%s17788_s5 + $0xb4] ss:$8 sps:$4 sm:$0xff]  }
 0x241   :  { %v2380_v48 = vpop.f32.mrf.mxu1  ;;  %5782 = vmatprep.subr.bf16.mxu1 %v12562_v35 }
 0x242   :  { %v15136_v58 = vpop.f32.mrf.mxu0  ;;  %v15139_v38 = vadd.f32 %v2380_v48, %v15057_v27  ;;  %v12545_v27 = vld [vmem:[%s17788_s5 + $0x60] ss:$8 sps:$4 sm:$0xff]   ;;  %5783 = vmatpush1.bf16.msra.mxu1 %v12560_v26 }
 0x243   :  { %v12268_v10 = vpop.f32.mrf.mxu1  ;;  %6199 = vmatpush1.bf16.msra.mxu0 %v12545_v27  ;;  %v12563_v27 = vld [vmem:[%s17788_s5 + $0x20] ss:$8 sps:$4 sm:$0xff]  }
 0x244   :  { %v12372_v2 = vpop.f32.mrf.mxu0  ;;  %6200 = vmatprep.subr.bf16.mxu0 %v12550_v0  ;;  %v12569_v0 = vld [vmem:[%s17788_s5 + $0x10] ss:$8 sps:$4 sm:$0xff]  }
 0x245   :  { %v2383_v45 = vpop.f32.mrf.mxu1  ;;  %v12566_v2 = vld [vmem:[%s17788_s5 + $0xa0] ss:$8 sps:$4 sm:$0xff]  }
 0x246   :  { %v15159_v32 = vpop.f32.mrf.mxu0  ;;  %v15162_v33 = vadd.f32 %v2383_v45, %v15066_v6 }
 0x247   :  { %v12269_v56 = vpop.f32.mrf.mxu1  ;;  %6201 = vmatpush1.bf16.msra.mxu0 %v12548_v41 }
 0x248   :  { %v12373_v43 = vpop.f32.mrf.mxu0  ;;  %6202 = vmatprep.subr.bf16.mxu0 %v12556_v50  ;;  %v12571_v56 = vld [vmem:[%s17788_s5 + $0x14] ss:$8 sps:$4 sm:$0xff]  }
 0x249   :  { %v2388_v60 = vpop.f32.mrf.mxu1  ;;  %v12574_v43 = vld [vmem:[%s17788_s5 + $0x94] ss:$8 sps:$4 sm:$0xff]  }
 0x24a   :  { %v15173_v6 = vpop.f32.mrf.mxu0  ;;  %v2389_v37 = vadd.f32 %v2388_v60, %v15081_v15 }
 0x24b   :  { %v12272_v25 = vpop.f32.mrf.mxu1  ;;  %6203 = vmatpush1.bf16.msra.mxu0 %v12554_v31 }
 0x24c   :  { %v12376_v30 = vpop.f32.mrf.mxu0  ;;  %v15186_v40 = vadd.f32 %v15077_v23, %v2389_v37  ;;  %6204 = vmatprep.subr.bf16.mxu0 %v12559_v22  ;;  %v17992_v22 = vmov 0  }
 0x24d   :  { %v2391_v15 = vpop.f32.mrf.mxu1  ;;  %v12575_v30 = vld [vmem:[%s17788_s5] ss:$8 sps:$4 sm:$0xff]   ;;  %6228 = vmatprep.mubr.bf16.mxu0 %v17992_v22  ;;  %5806 = vmatprep.mubr.bf16.mxu1 %v17992_v22 }
 0x24e   :  { %v15188_v12 = vpop.f32.mrf.mxu0  ;;  %v2392_v57 = vadd.f32 %v2391_v15, %v15088_v52  ;;  %v12557_v52 = vld [vmem:[%s17788_s5 + $0x30] ss:$8 sps:$4 sm:$0xff]  }
 0x24f   :  { %v12273_v4 = vpop.f32.mrf.mxu1  ;;  %6205 = vmatpush1.bf16.msra.mxu0 %v12557_v52 }
 0x250   :  { %v12377_v23 = vpop.f32.mrf.mxu0  ;;  %v15198_v28 = vadd.f32 %v15084_v17, %v2392_v57  ;;  %v12565_v17 = vld [vmem:[%s17788_s5 + $0x24] ss:$8 sps:$4 sm:$0xff]  }
 0x251   :  { %v2396_v44 = vpop.f32.mrf.mxu1  ;;  %6206 = vmatprep.subr.bf16.mxu0 %v12565_v17  ;;  %v12580_v57 = vld [vmem:[%s17788_s5 + $0x84] ss:$8 sps:$4 sm:$0xff]  }
 0x252   :  { %v15206_v48 = vpop.f32.mrf.mxu0  ;;  %v2397_v21 = vadd.f32 %v2396_v44, %v15091_v14 }
 0x253   :  { %v12276_v63 = vpop.f32.mrf.mxu1  ;;  %6207 = vmatpush1.bf16.msra.mxu0 %v12563_v27 }
 0x254   :  { %v12380_v1 = vpop.f32.mrf.mxu0  ;;  %v15213_v10 = vadd.f32 %v15094_v7, %v2397_v21  ;;  %v12568_v7 = vld [vmem:[%s17788_s5 + $0xa4] ss:$8 sps:$4 sm:$0xff]   ;;  %6208 = vmatprep.subr.bf16.mxu0 %v12571_v56 }
 0x255   :  { %v2399_v55 = vpop.f32.mrf.mxu1  ;;  %5784 = vmatprep.subr.bf16.mxu1 %v12568_v7 }
 0x256   :  { %v15218_v9 = vpop.f32.mrf.mxu0  ;;  %v2400_v14 = vadd.f32 %v2399_v55, %v15096_v49  ;;  %5785 = vmatpush1.bf16.msra.mxu1 %v12566_v2 }
 0x257   :  { %v12277_v45 = vpop.f32.mrf.mxu1  ;;  %5786 = vmatprep.subr.bf16.mxu1 %v12574_v43  ;;  %6209 = vmatpush1.bf16.msra.mxu0 %v12569_v0 }
 0x258   :  { %v12381_v60 = vpop.f32.mrf.mxu0  ;;  %v15234_v49 = vadd.f32 %v15098_v61, %v2400_v14  ;;  %v12577_v61 = vld [vmem:[%s17788_s5 + $0x4] ss:$8 sps:$4 sm:$0xff]  }
 0x259   :  { %v2404_v41 = vpop.f32.mrf.mxu1  ;;  %6210 = vmatprep.subr.bf16.mxu0 %v12577_v61 }
 0x25a   :  { %v15242_v37 = vpop.f32.mrf.mxu0  ;;  %v2405_v19 = vadd.f32 %v2404_v41, %v15100_v42  ;;  %5787 = vmatpush1.bf16.msra.mxu1 %v12572_v29  ;;  %v12578_v42 = vld [vmem:[%s17788_s5 + $0x80] ss:$8 sps:$4 sm:$0xff]  }
 0x25b   :  { %v12280_v50 = vpop.f32.mrf.mxu1  ;;  %5788 = vmatprep.subr.bf16.mxu1 %v12580_v57  ;;  %6211 = vmatpush1.bf16.msra.mxu0 %v12575_v30  ;;  %v2940_v57 = vadd.f32 %v15051_v34, %v15139_v38 }
 0x25c   :  { %v12384_v25 = vpop.f32.mrf.mxu0  ;;  %v15249_v31 = vadd.f32 %v15104_v47, %v2405_v19 }
 0x25d   :  { %v2407_v15 = vpop.f32.mrf.mxu1 }
 0x25e   :  { %v15260_v4 = vpop.f32.mrf.mxu0  ;;  %v2408_v47 = vadd.f32 %v2407_v15, %v15102_v53  ;;  %5789 = vmatpush1.bf16.msra.mxu1 %v12578_v42 }
 0x25f   :  { %v12281_v26 = vpop.f32.mrf.mxu1 }
 0x260   :  { %v12385_v23 = vpop.f32.mrf.mxu0  ;;  %v15266_v35 = vadd.f32 %v15108_v20, %v2408_v47 }
 0x261   :  { %v2412_v44 = vpop.f32.mrf.mxu1  ;;  %v12589_v23 = vld [vmem:[%s17788_s5 + $0x1f4] ss:$8 sps:$4 sm:$0xff]  }
 0x262   :  { %v2413_v21 = vadd.f32 %v2412_v44, %v15106_v11  ;;  %7044 = vmatprep.subr.bf16.mxu0 %v12589_v23 }
 0x263   :  { %v12284_v53 = vpop.f32.mrf.mxu1 }
 0x264   :  { %v15272_v63 = vadd.f32 %v15126_v54, %v2413_v21  ;;  %v2373_v54 = vadd.f32 %v15130_v59, %v15001_v16  ;;  %v2941_v53 = vadd.f32 %v15063_v24, %v15162_v33 }
 0x265   :  { %v15268_v52 = vpop.f32.mrf.mxu0  ;;  %v2415_v1 = vpop.f32.mrf.mxu1 }
 0x266   :  { %v2416_v27 = vadd.f32 %v2415_v1, %v15110_v5  ;;  %v2938_v19 = vadd.f32 %v14979_v51, %v2373_v54 }
 0x267   :  { %v12388_v17 = vpop.f32.mrf.mxu0  ;;  %v12285_v14 = vpop.f32.mrf.mxu1 }
 0x268   :  { %v15278_v2 = vadd.f32 %v15128_v8, %v2416_v27  ;;  %v2376_v8 = vadd.f32 %v15134_v46, %v15010_v62 }
 0x269   :  { %v15274_v55 = vpop.f32.mrf.mxu0  ;;  %v2420_v7 = vpop.f32.mrf.mxu1 }
 0x26a   :  { %v2421_v11 = vadd.f32 %v2420_v7, %v15118_v39  ;;  %v12583_v39 = vld [vmem:[%s17788_s5 + $0x174] ss:$8 sps:$4 sm:$0xff]   ;;  %v2939_v25 = vadd.f32 %v14990_v36, %v2376_v8 }
 0x26b   :  { %v12389_v20 = vpop.f32.mrf.mxu0  ;;  %v12288_v56 = vpop.f32.mrf.mxu1  ;;  %6611 = vmatprep.subr.bf16.mxu1 %v12583_v39 }
 0x26c   :  { %v15286_v60 = vadd.f32 %v15132_v3, %v2421_v11 }
 0x26d   :  { %v2423_v41 = vpop.f32.mrf.mxu1 }
 0x26e   :  { %v15280_v45 = vpop.f32.mrf.mxu0 }
 0x26f   :  { %v12289_v0 = vpop.f32.mrf.mxu1 }
 0x270   :  { %v12392_v43 = vpop.f32.mrf.mxu0 }
 0x272   :  { %v15288_v5 = vpop.f32.mrf.mxu0 }
 0x274   :  { %v12393_v29 = vpop.f32.mrf.mxu0 }
 0x276   :  { %v3409_v61 = vpop.f32.mrf.mxu1  ;;  %v15296_v16 = vpop.f32.mrf.mxu0 }
 0x277   :  { %v3463_v59 = vadd.f32 %v3409_v61, %v2938_v19 }
 0x278   :  { %v12336_v3 = vpop.f32.mrf.mxu1  ;;  %v12396_v50 = vpop.f32.mrf.mxu0 }
 0x279   :  { %v15300_v30 = vadd.f32 %v15136_v58, %v3463_v59 }
 0x27a   :  { %v3412_v62 = vpop.f32.mrf.mxu1  ;;  %v3945_v46 = vpop.f32.mrf.mxu0 }
 0x27b   :  { %v3464_v15 = vadd.f32 %v3412_v62, %v2939_v25 }
 0x27c   :  { %v12337_v51 = vpop.f32.mrf.mxu1  ;;  %v12397_v42 = vpop.f32.mrf.mxu0 }
 0x27d   :  { %v15305_v47 = vadd.f32 %v15159_v32, %v3464_v15 }
 0x27e   :  { %v3417_v26 = vpop.f32.mrf.mxu1 }
 0x27f   :  { %v15310_v36 = vpop.f32.mrf.mxu0  ;;  %v3465_v58 = vadd.f32 %v3417_v26, %v2940_v57 }
 0x280   :  { %v12340_v44 = vpop.f32.mrf.mxu1 }
 0x281   :  { %v12444_v21 = vpop.f32.mrf.mxu0  ;;  %v15315_v17 = vadd.f32 %v15173_v6, %v3465_v58 }
 0x282   :  { %v3420_v34 = vpop.f32.mrf.mxu1 }
 0x283   :  { %v15317_v38 = vpop.f32.mrf.mxu0  ;;  %v3466_v32 = vadd.f32 %v3420_v34, %v2941_v53 }
 0x284   :  { %v12341_v1 = vpop.f32.mrf.mxu1 }
 0x285   :  { %v12445_v27 = vpop.f32.mrf.mxu0  ;;  %v15320_v14 = vadd.f32 %v15188_v12, %v3466_v32 }
 0x286   :  { %v3425_v20 = vpop.f32.mrf.mxu1 }
 0x287   :  { %v15322_v7 = vpop.f32.mrf.mxu0  ;;  %v3467_v11 = vadd.f32 %v3425_v20, %v15186_v40 }
 0x288   :  { %v12344_v56 = vpop.f32.mrf.mxu1 }
 0x289   :  { %v12448_v54 = vpop.f32.mrf.mxu0  ;;  %v15326_v24 = vadd.f32 %v15206_v48, %v3467_v11 }
 0x28a   :  { %v3428_v33 = vpop.f32.mrf.mxu1 }
 0x28b   :  { %v15328_v6 = vpop.f32.mrf.mxu0  ;;  %v3468_v43 = vadd.f32 %v3428_v33, %v15198_v28 }
 0x28c   :  { %v12345_v41 = vpop.f32.mrf.mxu1 }
 0x28d   :  { %v12449_v0 = vpop.f32.mrf.mxu0  ;;  %v15332_v12 = vadd.f32 %v15218_v9, %v3468_v43 }
 0x28e   :  { %v3433_v8 = vpop.f32.mrf.mxu1 }
 0x28f   :  { %v15334_v29 = vpop.f32.mrf.mxu0  ;;  %v3469_v40 = vadd.f32 %v3433_v8, %v15213_v10 }
 0x290   :  { %v12348_v19 = vpop.f32.mrf.mxu1 }
 0x291   :  { %v12452_v61 = vpop.f32.mrf.mxu0  ;;  %v15338_v48 = vadd.f32 %v15242_v37, %v3469_v40 }
 0x292   :  { %v3436_v39 = vpop.f32.mrf.mxu1 }
 0x293   :  { %v15340_v59 = vpop.f32.mrf.mxu0  ;;  %v3470_v28 = vadd.f32 %v3436_v39, %v15234_v49 }
 0x294   :  { %v12349_v3 = vpop.f32.mrf.mxu1 }
 0x295   :  { %v12453_v50 = vpop.f32.mrf.mxu0  ;;  %v15344_v9 = vadd.f32 %v15260_v4, %v3470_v28 }
 0x296   :  { %v3441_v25 = vpop.f32.mrf.mxu1 }
 0x297   :  { %v15346_v62 = vpop.f32.mrf.mxu0  ;;  %v3471_v10 = vadd.f32 %v3441_v25, %v15249_v31 }
 0x298   :  { %v12352_v46 = vpop.f32.mrf.mxu1 }
 0x299   :  { %v12456_v15 = vpop.f32.mrf.mxu0  ;;  %v15350_v37 = vadd.f32 %v15268_v52, %v3471_v10 }
 0x29a   :  { %v3444_v51 = vpop.f32.mrf.mxu1 }
 0x29b   :  { %v15352_v42 = vpop.f32.mrf.mxu0  ;;  %v3472_v49 = vadd.f32 %v3444_v51, %v15266_v35 }
 0x29c   :  { %v12353_v57 = vpop.f32.mrf.mxu1 }
 0x29d   :  { %v12457_v26 = vpop.f32.mrf.mxu0  ;;  %v15356_v4 = vadd.f32 %v15274_v55, %v3472_v49 }
 0x29e   :  { %v3449_v23 = vpop.f32.mrf.mxu1 }
 0x29f   :  { %v15358_v58 = vpop.f32.mrf.mxu0  ;;  %v3473_v31 = vadd.f32 %v3449_v23, %v15272_v63 }
 0x2a0   :  { %v12356_v44 = vpop.f32.mrf.mxu1 }
 0x2a1   :  { %v12460_v21 = vpop.f32.mrf.mxu0  ;;  %v15362_v52 = vadd.f32 %v15280_v45, %v3473_v31 }
 0x2a2   :  { %v3452_v53 = vpop.f32.mrf.mxu1 }
 0x2a3   :  { %v15364_v34 = vpop.f32.mrf.mxu0  ;;  %v3474_v35 = vadd.f32 %v3452_v53, %v15278_v2 }
 0x2a4   :  { %v12357_v32 = vpop.f32.mrf.mxu1 }
 0x2a5   :  { %v12461_v1 = vpop.f32.mrf.mxu0  ;;  %v15368_v55 = vadd.f32 %v15288_v5, %v3474_v35 }
 0x2a6   :  { %v3457_v27 = vpop.f32.mrf.mxu1 }
 0x2a7   :  { %v15370_v20 = vpop.f32.mrf.mxu0  ;;  %v3475_v63 = vadd.f32 %v3457_v27, %v15286_v60  ;;  %v15385_v60 = vld [vmem:[%s17789_s4] ss:$0 sm:$0xff] }
 0x2a8   :  { %v12360_v11 = vpop.f32.mrf.mxu1 }
 0x2a9   :  { %v12464_v56 = vpop.f32.mrf.mxu0  ;;  %v15374_v45 = vadd.f32 %v15296_v16, %v3475_v63 }
 0x2aa   :  { %v3460_v54 = vpop.f32.mrf.mxu1 }
 0x2ab   :  { %v15376_v33 = vpop.f32.mrf.mxu0 }
 0x2ac   :  { %v12361_v43 = vpop.f32.mrf.mxu1 }
 0x2ad   :  { %v12465_v2 = vpop.f32.mrf.mxu0 }
 0x2ae   :  { %v4379_v41 = vpop.f32.mrf.mxu1 }
 0x2af   :  { %v15378_v0 = vpop.f32.mrf.mxu0  ;;  %v4433_v5 = vadd.f32 %v4379_v41, %v15300_v30 }
 0x2b0   :  { %v12408_v8 = vpop.f32.mrf.mxu1 }
 0x2b1   :  { %v12468_v40 = vpop.f32.mrf.mxu0  ;;  %v4918_v19 = vadd.f32 %v15310_v36, %v4433_v5 }
 0x2b2   :  { %v4382_v16 = vpop.f32.mrf.mxu1 }
 0x2b3   :  { %v4915_v61 = vpop.f32.mrf.mxu0  ;;  %v4434_v39 = vadd.f32 %v4382_v16, %v15305_v47  ;;  %v4938_v50 = vadd.f32 %v15385_v60, %v4918_v19 }
 0x2b4   :  { %v12409_v28 = vpop.f32.mrf.mxu1 }
 0x2b5   :  { %v12469_v3 = vpop.f32.mrf.mxu0  ;;  %v4919_v25 = vadd.f32 %v15317_v38, %v4434_v39  ;;  %v4951_v15 = vmax.f32 %v4938_v50, 0.0  ;;  %v12592_v39 = vld [vmem:[%s17788_s5 + $0x154] ss:$8 sps:$4 sm:$0xff]  }
 0x2b6   :  { %v4387_v30 = vpop.f32.mrf.mxu1 }
 0x2b7   :  { %v4939_v10 = vadd.f32 %v15385_v60, %v4919_v25  ;;  %v4435_v36 = vadd.f32 %v4387_v30, %v15315_v17 }
 0x2b8   :  { %v12412_v46 = vpop.f32.mrf.mxu1 }
 0x2b9   :  { %v4952_v51 = vmax.f32 %v4939_v10, 0.0  ;;  %v4920_v49 = vadd.f32 %v15322_v7, %v4435_v36 }
 0x2ba   :  { %v4390_v57 = vpop.f32.mrf.mxu1 }
 0x2bb   :  { %v4964_v26 = vpack.c.bf16 %v4952_v51, %v4951_v15  ;;  %v11369_v23 = vpack.c.bf16 %v4952_v51, %v4952_v51  ;;  %v4436_v47 = vadd.f32 %v4390_v57, %v15320_v14  ;;  %v4940_v53 = vadd.f32 %v15385_v60, %v4920_v49 }
 0x2bc   :  { %v12413_v31 = vpop.f32.mrf.mxu1 }
 0x2bd   :  { %v4985_v44 = vrot.slane %v4964_v26, %v13160_v13  ;;  %v4992_v38 = vrot.slane %v11369_v23, %v13160_v13  ;;  %v4921_v21 = vadd.f32 %v15328_v6, %v4436_v47  ;;  %v4953_v2 = vmax.f32 %v4940_v53, 0.0 }
 0x2be   :  { %v4395_v17 = vpop.f32.mrf.mxu1 }
 0x2bf   :  { %v4993_v35 = vcombine.high %v4985_v44, %v4985_v44  ;;  %v4994_v32 = vcombine.high %v4992_v38, %v4992_v38  ;;  %v5001_v1 = vrot.slane %v4985_v44, %v13160_v13  ;;  %v15400_v7 = vrot.slane %v4992_v38, %v13160_v13 }
 0x2c0   :  { %v4941_v27 = vadd.f32 %v15385_v60, %v4921_v21  ;;  %v4437_v14 = vadd.f32 %v4395_v17, %v15326_v24  ;;  %v12416_v63 = vpop.f32.mrf.mxu1 }
 0x2c1   :  { %v15405_v11 = vrot.slane %v4993_v35, %v13160_v13  ;;  %v15408_v6 = vrot.slane %v4994_v32, %v13160_v13  ;;  %v15410_v56 = vcombine.high %v5001_v1, %v5001_v1  ;;  %v5297_v54 = vunpack.i.h.s16 %v5001_v1 }
 0x2c2   :  { %v5305_v43 = vunpack.i.h.s16 %v15400_v7  ;;  %v4954_v41 = vmax.f32 %v4941_v27, 0.0  ;;  %v4922_v5 = vadd.f32 %v15334_v29, %v4437_v14  ;;  %v4398_v8 = vpop.f32.mrf.mxu1  ;;  %v15422_v16 = vcombine.high %v15400_v7, %v15400_v7 }
 0x2c3   :  { %v15416_v24 = vcombine.high %v15405_v11, %v15405_v11  ;;  %v5299_v40 = vunpack.i.h.s16 %v15405_v11  ;;  %v5301_v19 = vunpack.i.h.s16 %v15410_v56  ;;  %v15428_v29 = vpack.i.b16 %v15405_v11, %v5297_v54 }
 0x2c4   :  { %18371 = vst [vmem:[#allocation13_spill] sm:$0xff] %v15422_v16  ;;  %v12417_v28 = vpop.f32.mrf.mxu1  ;;  %v5891_v50 = vcombine.low %v5001_v1, %v15405_v11  ;;  %v4965_v25 = vpack.c.bf16 %v4954_v41, %v4953_v2  ;;  %v11447_v10 = vcombine.high %v5001_v1, %v15405_v11  ;;  %v11370_v36 = vpack.c.bf16 %v4954_v41, %v4954_v41 }
 0x2c5   :  { %v15431_v3 = vpack.i.b16 %v15410_v56, %v5299_v40  ;;  %v15435_v30 = vpack.i.b16 %v15416_v24, %v5301_v19  ;;  %v4438_v46 = vadd.f32 %v4398_v8, %v15332_v12  ;;  %v15442_v51 = vpack.i.b16 %v15408_v6, %v5305_v43 }
 0x2c6   :  { %v4403_v15 = vpop.f32.mrf.mxu1  ;;  %v5034_v49 = vrot.slane %v4965_v25, %v13160_v13  ;;  %v5309_v26 = vunpack.i.h.s16 %v15422_v16  ;;  %v5041_v23 = vrot.slane %v11370_v36, %v13160_v13  ;;  %v4942_v47 = vadd.f32 %v15385_v60, %v4922_v5 }
 0x2c7   :  { %v4439_v57 = vadd.f32 %v4403_v15, %v15338_v48  ;;  %v4923_v31 = vadd.f32 %v15340_v59, %v4438_v46  ;;  %v15452_v12 = vcombine.high %v15408_v6, %v15408_v6  ;;  %v5469_v38 = vcombine.low %v15428_v29, %v15431_v3 }
 0x2c8   :  { %v12420_v44 = vpop.f32.mrf.mxu1  ;;  %v5042_v21 = vcombine.high %v5034_v49, %v5034_v49  ;;  %v11443_v48 = vpack.i.b16 %v5309_v26, %v15400_v7  ;;  %v5043_v17 = vcombine.high %v5041_v23, %v5041_v23  ;;  %v15459_v35 = vrot.slane %v5034_v49, %v13160_v13 }
 0x2c9   :  { %v4924_v53 = vadd.f32 %v15346_v62, %v4439_v57  ;;  %v4943_v32 = vadd.f32 %v15385_v60, %v4923_v31  ;;  %v5901_v1 = vrot.slane %v5891_v50, %v13160_v13  ;;  %v4955_v2 = vmax.f32 %v4942_v47, 0.0 }
 0x2ca   :  { %v4406_v59 = vpop.f32.mrf.mxu1  ;;  %v15464_v27 = vrot.slane %v5042_v21, %v13160_v13  ;;  %v5893_v62 = vcombine.low %v11443_v48, %v15452_v12  ;;  %v15470_v54 = vrot.slane %v5043_v17, %v13160_v13  ;;  %v15473_v8 = vrot.slane %v11447_v10, %v13160_v13 }
 0x2cb   :  { %v4944_v14 = vadd.f32 %v15385_v60, %v4924_v53  ;;  %v4440_v63 = vadd.f32 %v4406_v59, %v15344_v9  ;;  %v4956_v41 = vmax.f32 %v4943_v32, 0.0  ;;  %v15476_v40 = vrot.slane %v5041_v23, %v13160_v13 }
 0x2cc   :  { %v12421_v5 = vpop.f32.mrf.mxu1  ;;  %18372 = vst [vmem:[#allocation16_spill] sm:$0xff] %v15473_v8  ;;  %v17991_v28 = vunpack.i.h.s16 %v15452_v12  ;;  %v5894_v9 = vcombine.low %v15459_v35, %v15464_v27  ;;  %v5923_v15 = vcombine.low %v5901_v1, %v15473_v8  ;;  %v5915_v57 = vrot.slane %v5893_v62, %v13160_v13 }
 0x2cd   :  { %v4925_v19 = vadd.f32 %v15352_v42, %v4440_v63  ;;  %v4966_v50 = vpack.c.bf16 %v4956_v41, %v4955_v2  ;;  %v11371_v25 = vpack.c.bf16 %v4956_v41, %v4956_v41  ;;  %v4957_v36 = vmax.f32 %v4944_v14, 0.0 }
 0x2ce   :  { %v4411_v46 = vpop.f32.mrf.mxu1  ;;  %v5922_v26 = vrot.slane %v5894_v9, %v13160_v13  ;;  %v15489_v42 = vcombine.high %v15470_v54, %v15470_v54  ;;  %v5931_v44 = vrot.slane %v5923_v15, %v13160_v13  ;;  %v11448_v8 = vcombine.high %v15476_v40, %v15470_v54 }
 0x2cf   :  { %v4945_v49 = vadd.f32 %v15385_v60, %v4925_v19  ;;  %v4441_v10 = vadd.f32 %v4411_v46, %v15350_v37  ;;  %v5083_v23 = vrot.slane %v4966_v50, %v13160_v13  ;;  %v5090_v47 = vrot.slane %v11371_v25, %v13160_v13 }
 0x2d0   :  { %18373 = vst [vmem:[#allocation11_spill] sm:$0xff] %v15489_v42  ;;  %v12424_v31 = vpop.f32.mrf.mxu1  ;;  %v5924_v48 = vcombine.low %v5915_v57, %v5922_v26  ;;  %v15497_v37 = vcombine.high %v15459_v35, %v15459_v35  ;;  %v5303_v50 = vunpack.i.h.s16 %v15416_v24  ;;  %v5315_v57 = vunpack.i.h.s16 %v15464_v27 }
 0x2d1   :  { %v4958_v21 = vmax.f32 %v4945_v49, 0.0  ;;  %v4926_v53 = vadd.f32 %v15358_v58, %v4441_v10  ;;  %v5091_v17 = vcombine.high %v5083_v23, %v5083_v23  ;;  %v5092_v32 = vcombine.high %v5090_v47, %v5090_v47 }
 0x2d2   :  { %v15500_v59 = vrot.slane %v5083_v23, %v13160_v13  ;;  %v15503_v1 = vrot.slane %v5090_v47, %v13160_v13  ;;  %v4414_v14 = vpop.f32.mrf.mxu1  ;;  %v5938_v9 = vrot.slane %v5924_v48, %v13160_v13  ;;  %v17990_v10 = vunpack.i.h.s16 %v15459_v35  ;;  %v12587_v23 = vld [vmem:[%s17788_s5 + $0x1f0] ss:$8 sps:$4 sm:$0xff]  }
 0x2d3   :  { %v4967_v63 = vpack.c.bf16 %v4958_v21, %v4957_v36  ;;  %v11372_v62 = vpack.c.bf16 %v4958_v21, %v4958_v21  ;;  %v4946_v2 = vadd.f32 %v15385_v60, %v4926_v53  ;;  %v4442_v58 = vadd.f32 %v4414_v14, %v15356_v4 }
 0x2d4   :  { %18374 = vst [vmem:[#allocation12_spill] sm:$0xff] %v15503_v1  ;;  %v15508_v41 = vrot.slane %v5091_v17, %v13160_v13  ;;  %v15511_v5 = vrot.slane %v5092_v32, %v13160_v13  ;;  %v12425_v19 = vpop.f32.mrf.mxu1  ;;  %v5939_v49 = vcombine.low %v5931_v44, %v5938_v9  ;;  %v15521_v26 = vpack.i.b16 %v15400_v7, %v5303_v50  ;;  %v12595_v44 = vld [vmem:[%s17788_s5 + $0x1e4] ss:$8 sps:$4 sm:$0xff]  }
 0x2d5   :  { %v5132_v25 = vrot.slane %v4967_v63, %v13160_v13  ;;  %v5139_v36 = vrot.slane %v11372_v62, %v13160_v13  ;;  %v4959_v46 = vmax.f32 %v4946_v2, 0.0  ;;  %v4927_v15 = vadd.f32 %v15364_v34, %v4442_v58 }
 0x2d6   :  { %v4419_v4 = vpop.f32.mrf.mxu1  ;;  %6229 = vmatmul.mubr.bf16.vlgmr.msra.gmra.mxu0 %v5939_v49  ;;  %v11395_v32 = vpack.i.b16 %v15452_v12, %v5305_v43  ;;  %v11396_v14 = vpack.i.b16 %v15459_v35, %v17991_v28  ;;  %v15552_v2 = vpack.i.b16 %v15464_v27, %v17990_v10  ;;  %v5470_v19 = vcombine.low %v15435_v30, %v15521_v26 }
 0x2d7   :  { %v5140_v47 = vcombine.high %v5132_v25, %v5132_v25  ;;  %v5141_v31 = vcombine.high %v5139_v36, %v5139_v36  ;;  %v15527_v21 = vrot.slane %v5132_v25, %v13160_v13  ;;  %v15530_v34 = vrot.slane %v5139_v36, %v13160_v13  ;;  %6238 = vmatprep.mubr.bf16.mxu0 %v17992_v22  ;;  %v12593_v25 = vld [vmem:[%s17788_s5 + $0x1e0] ss:$8 sps:$4 sm:$0xff]  }
 0x2d8   :  { %v4947_v53 = vadd.f32 %v15385_v60, %v4927_v15  ;;  %v4443_v48 = vadd.f32 %v4419_v4, %v15362_v52  ;;  %v12428_v17 = vpop.f32.mrf.mxu1  ;;  %v15555_v52 = vpack.i.b16 %v15497_v37, %v5315_v57  ;;  %v5471_v9 = vcombine.low %v11395_v32, %v11396_v14  ;;  %7045 = vmatpush1.bf16.msra.mxu0 %v12587_v23  ;;  %v12601_v4 = vld [vmem:[%s17788_s5 + $0x1d4] ss:$8 sps:$4 sm:$0xff]  }
 0x2d9   :  { %18375 = vst [vmem:[#allocation35_spill] sm:$0xff] %v15530_v34  ;;  %v15544_v63 = vrot.slane %v5140_v47, %v13160_v13  ;;  %v15547_v62 = vrot.slane %v5141_v31, %v13160_v13  ;;  %7046 = vmatprep.subr.bf16.mxu0 %v12595_v44  ;;  %v5486_v31 = vrot.slane %v5470_v19, %v13160_v13 }
 0x2da   :  { %v4960_v43 = vmax.f32 %v4947_v53, 0.0  ;;  %v4928_v58 = vadd.f32 %v15370_v20, %v4443_v48  ;;  %v4422_v50 = vpop.f32.mrf.mxu1  ;;  %v5472_v15 = vcombine.low %v15552_v2, %v15555_v52  ;;  %v5479_v20 = vrot.slane %v5469_v38, %v13160_v13 }
 0x2db   :  { %18376 = vst [vmem:[#allocation26_spill] sm:$0xff] %v15544_v63  ;;  %v15566_v36 = vcombine.high %v15544_v63, %v15544_v63  ;;  %v4444_v49 = vadd.f32 %v4422_v50, %v15368_v55  ;;  %v5493_v48 = vrot.slane %v5471_v9, %v13160_v13  ;;  %v15585_v55 = vcombine.high %v15476_v40, %v15476_v40  ;;  %v12604_v50 = vld [vmem:[%s17788_s5 + $0x1c4] ss:$8 sps:$4 sm:$0xff]  }
 0x2dc   :  { %v4968_v57 = vpack.c.bf16 %v4960_v43, %v4959_v46  ;;  %v11373_v23 = vpack.c.bf16 %v4960_v43, %v4960_v43  ;;  %v4948_v47 = vadd.f32 %v15385_v60, %v4928_v58  ;;  %v12429_v53 = vpop.f32.mrf.mxu1  ;;  %v5500_v17 = vrot.slane %v5472_v15, %v13160_v13  ;;  %7047 = vmatpush1.bf16.msra.mxu0 %v12593_v25  ;;  %v12599_v43 = vld [vmem:[%s17788_s5 + $0x1d0] ss:$8 sps:$4 sm:$0xff]  }
 0x2dd   :  { %18377 = vst [vmem:[#allocation25_spill] sm:$0xff] %v15566_v36  ;;  %v4929_v29 = vadd.f32 %v15376_v33, %v4444_v49  ;;  %v5501_v32 = vcombine.low %v5479_v20, %v5486_v31  ;;  %v15596_v9 = vcombine.high %v15464_v27, %v15464_v27  ;;  %7048 = vmatprep.subr.bf16.mxu0 %v12601_v4 }
 0x2de   :  { %v5181_v38 = vrot.slane %v4968_v57, %v13160_v13  ;;  %v5188_v46 = vrot.slane %v11373_v23, %v13160_v13  ;;  %v4961_v44 = vmax.f32 %v4948_v47, 0.0  ;;  %v4427_v14 = vpop.f32.mrf.mxu1  ;;  %v5502_v58 = vcombine.low %v5493_v48, %v5500_v17 }
 0x2df   :  { %v4949_v19 = vadd.f32 %v15385_v60, %v4929_v29  ;;  %v4445_v33 = vadd.f32 %v4427_v14, %v15374_v45  ;;  %v5509_v45 = vrot.slane %v5501_v32, %v13160_v13  ;;  %v15750_v16 = vcombine.high %v15530_v34, %v15530_v34 }
 0x2e0   :  { %v5189_v15 = vcombine.high %v5181_v38, %v5181_v38  ;;  %v5190_v25 = vcombine.high %v5188_v46, %v5188_v46  ;;  %v15602_v20 = vrot.slane %v5181_v38, %v13160_v13  ;;  %v15605_v49 = vrot.slane %v5188_v46, %v13160_v13  ;;  %v12432_v57 = vpop.f32.mrf.mxu1  ;;  %v12581_v38 = vld [vmem:[%s17788_s5 + $0x170] ss:$8 sps:$4 sm:$0xff]   ;;  %7049 = vmatpush1.bf16.msra.mxu0 %v12599_v43 }
 0x2e1   :  { %v5516_v23 = vrot.slane %v5502_v58, %v13160_v13  ;;  %v4962_v47 = vmax.f32 %v4949_v19, 0.0  ;;  %v4930_v4 = vadd.f32 %v15378_v0, %v4445_v33  ;;  %v12586_v58 = vld [vmem:[%s17788_s5 + $0x164] ss:$8 sps:$4 sm:$0xff]   ;;  %7050 = vmatprep.subr.bf16.mxu0 %v12604_v50  ;;  %v15630_v19 = vcombine.high %v15503_v1, %v15503_v1  ;;  %18386 = vst [vmem:[#allocation50_spill] sm:$0xff] %v15750_v16 }
 0x2e2   :  { %18378 = vst [vmem:[#allocation37_spill] sm:$0xff] %v15602_v20  ;;  %v15611_v31 = vrot.slane %v5189_v15, %v13160_v13  ;;  %v15614_v53 = vrot.slane %v5190_v25, %v13160_v13  ;;  %v15618_v48 = vcombine.high %v15602_v20, %v15602_v20  ;;  %v4430_v29 = vpop.f32.mrf.mxu1  ;;  %v5317_v33 = vunpack.i.h.s16 %v15497_v37 }
 0x2e3   :  { %v5517_v46 = vcombine.low %v5509_v45, %v5516_v23  ;;  %v4969_v0 = vpack.c.bf16 %v4962_v47, %v4961_v44  ;;  %v11374_v32 = vpack.c.bf16 %v4962_v47, %v4962_v47  ;;  %v4950_v14 = vadd.f32 %v15385_v60, %v4930_v4  ;;  %v12602_v60 = vld [vmem:[%s17788_s5 + $0x1c0] ss:$8 sps:$4 sm:$0xff]   ;;  %v12610_v23 = vld [vmem:[%s17788_s5 + $0x1b4] ss:$8 sps:$4 sm:$0xff]  }
 0x2e4   :  { %18379 = vst [vmem:[#allocation31_spill] sm:$0xff] %v15611_v31  ;;  %v5323_v15 = vunpack.i.h.s16 %v15470_v54  ;;  %v5325_v43 = vunpack.i.h.s16 %v15585_v55  ;;  %v12433_v25 = vpop.f32.mrf.mxu1  ;;  %v5327_v45 = vunpack.i.h.s16 %v15489_v42  ;;  %v5329_v47 = vunpack.i.h.s16 %v15500_v59  ;;  %7051 = vmatpush1.bf16.msra.mxu0 %v12602_v60 }
 0x2e5   :  { %5807 = vmatmul.mubr.bf16.vlgmr.msra.gmra.mxu1 %v5517_v46  ;;  %v5230_v44 = vrot.slane %v4969_v0, %v13160_v13  ;;  %v5237_v50 = vrot.slane %v11374_v32, %v13160_v13  ;;  %v4963_v57 = vmax.f32 %v4950_v14, 0.0  ;;  %v17996_v4 = vunpack.i.h.s16 %v15508_v41  ;;  %v12584_v0 = vld [vmem:[%s17788_s5 + $0x160] ss:$8 sps:$4 sm:$0xff]   ;;  %7052 = vmatprep.subr.bf16.mxu0 %v12610_v23  ;;  %v12590_v23 = vld [vmem:[%s17788_s5 + $0x150] ss:$8 sps:$4 sm:$0xff]  }
 0x2e6   :  { %5816 = vmatprep.mubr.bf16.mxu1 %v17992_v22  ;;  %v17995_v29 = vunpack.i.h.s16 %v15503_v1  ;;  %v17994_v46 = vunpack.i.h.s16 %v15511_v5  ;;  %6612 = vmatpush1.bf16.msra.mxu1 %v12581_v38  ;;  %v11399_v38 = vpack.i.b16 %v15596_v9, %v5317_v33  ;;  %v11400_v61 = vpack.i.b16 %v15585_v55, %v5323_v15  ;;  %v12616_v55 = vld [vmem:[%s17788_s5 + $0x1a4] ss:$8 sps:$4 sm:$0xff]  }
 0x2e7   :  { %v5238_v32 = vcombine.high %v5230_v44, %v5230_v44  ;;  %v5239_v14 = vcombine.high %v5237_v50, %v5237_v50  ;;  %v15653_v25 = vrot.slane %v5230_v44, %v13160_v13  ;;  %v15656_v10 = vrot.slane %v5237_v50, %v13160_v13  ;;  %6613 = vmatprep.subr.bf16.mxu1 %v12586_v58  ;;  %v12608_v44 = vld [vmem:[%s17788_s5 + $0x1b0] ss:$8 sps:$4 sm:$0xff]  }
 0x2e8   :  { %v4970_v28 = vpack.c.bf16 %v4963_v57, %v4963_v57  ;;  %v15664_v22 = vpack.i.b16 %v15489_v42, %v5325_v43  ;;  %v15676_v57 = vpack.i.b16 %v15500_v59, %v5327_v45  ;;  %v15679_v33 = vpack.i.b16 %v15508_v41, %v5329_v47  ;;  %7053 = vmatpush1.bf16.msra.mxu0 %v12608_v44  ;;  %v12622_v44 = vld [vmem:[%s17788_s5 + $0x194] ss:$8 sps:$4 sm:$0xff]  }
 0x2e9   :  { %v15670_v50 = vrot.slane %v5238_v32, %v13160_v13  ;;  %v15673_v58 = vrot.slane %v5239_v14, %v13160_v13  ;;  %v11404_v43 = vpack.i.b16 %v15503_v1, %v17996_v4  ;;  %v11405_v60 = vpack.i.b16 %v15511_v5, %v17995_v29  ;;  %7054 = vmatprep.subr.bf16.mxu0 %v12616_v55 }
 0x2ea   :  { %18380 = vst [vmem:[#allocation80_spill] sm:$0xff] %v15664_v22  ;;  %18383 = vst [vmem:[#allocation27_spill] sm:$0xff] %v15676_v57  ;;  %v5278_v15 = vrot.slane %v4970_v28, %v13160_v13  ;;  %v15694_v45 = vpack.i.b16 %v15630_v19, %v17994_v46  ;;  %6614 = vmatpush1.bf16.msra.mxu1 %v12584_v0  ;;  %v5518_v47 = vcombine.low %v11399_v38, %v11400_v61  ;;  %v12598_v46 = vld [vmem:[%s17788_s5 + $0x144] ss:$8 sps:$4 sm:$0xff]   ;;  %v12614_v61 = vld [vmem:[%s17788_s5 + $0x1a0] ss:$8 sps:$4 sm:$0xff]  }
 0x2eb   :  { %18381 = vst [vmem:[#allocation81_spill] sm:$0xff] %v15670_v50  ;;  %18382 = vst [vmem:[#allocation43_spill] sm:$0xff] %v15673_v58  ;;  %v15701_v28 = vcombine.high %v15673_v58, %v15673_v58  ;;  %v5519_v32 = vcombine.low %v15664_v22, %v15676_v57  ;;  %v6742_v14 = vcombine.low %v15555_v52, %v11399_v38  ;;  %6615 = vmatprep.subr.bf16.mxu1 %v12592_v39 }
 0x2ec   :  { %18384 = vst [vmem:[#allocation38_spill] sm:$0xff] %v15694_v45  ;;  %v5279_v0 = vcombine.high %v5278_v15, %v5278_v15  ;;  %v15710_v29 = vrot.slane %v5278_v15, %v13160_v13  ;;  %v5520_v4 = vcombine.low %v15679_v33, %v11404_v43  ;;  %v5521_v17 = vcombine.low %v11405_v60, %v15694_v45 }
 0x2ed   :  { %v5528_v52 = vrot.slane %v5518_v47, %v13160_v13  ;;  %v5535_v39 = vrot.slane %v5519_v32, %v13160_v13  ;;  %v15720_v38 = vrot.slane %v6742_v14, %v13160_v13  ;;  %v15724_v15 = vcombine.high %v15508_v41, %v15508_v41  ;;  %v12596_v14 = vld [vmem:[%s17788_s5 + $0x140] ss:$8 sps:$4 sm:$0xff]   ;;  %7055 = vmatpush1.bf16.msra.mxu0 %v12614_v61 }
 0x2ee   :  { %v15730_v43 = vrot.slane %v5279_v0, %v13160_v13  ;;  %v5542_v60 = vrot.slane %v5520_v4, %v13160_v13  ;;  %v5549_v47 = vrot.slane %v5521_v17, %v13160_v13  ;;  %v5940_v32 = vcombine.low %v15497_v37, %v15470_v54  ;;  %6616 = vmatpush1.bf16.msra.mxu1 %v12590_v23  ;;  %v12607_v17 = vld [vmem:[%s17788_s5 + $0x134] ss:$8 sps:$4 sm:$0xff]   ;;  %v12620_v54 = vld [vmem:[%s17788_s5 + $0x190] ss:$8 sps:$4 sm:$0xff]  }
 0x2ef   :  { %18385 = vst [vmem:[#allocation45_spill] sm:$0xff] %v15724_v15  ;;  %v5550_v55 = vcombine.low %v5528_v52, %v5535_v39  ;;  %v5335_v18 = vunpack.i.h.s16 %v15724_v15  ;;  %v5943_v0 = vcombine.low %v15503_v1, %v15511_v5  ;;  %6617 = vmatprep.subr.bf16.mxu1 %v12598_v46  ;;  %v11449_v52 = vcombine.high %v15503_v1, %v15511_v5 }
 0x2f0   :  { %v5551_v4 = vcombine.low %v5542_v60, %v5549_v47  ;;  %v5950_v23 = vrot.slane %v5940_v32, %v13160_v13  ;;  %v5957_v60 = vrot.slane %v11448_v8, %v13160_v13  ;;  %7056 = vmatprep.subr.bf16.mxu0 %v12622_v44  ;;  %v12628_v32 = vld [vmem:[%s17788_s5 + $0x184] ss:$8 sps:$4 sm:$0xff]   ;;  %v18387_v61 = vunpack.i.h.s16 %v15602_v20 }
 0x2f1   :  { %v5558_v46 = vrot.slane %v5550_v55, %v13160_v13  ;;  %v11444_v39 = vpack.i.b16 %v5335_v18, %v15508_v41  ;;  %v5971_v47 = vrot.slane %v5943_v0, %v13160_v13  ;;  %v11450_v55 = vcombine.high %v15527_v21, %v15544_v63  ;;  %7057 = vmatpush1.bf16.msra.mxu0 %v12620_v54 }
 0x2f2   :  { %v5565_v15 = vrot.slane %v5551_v4, %v13160_v13  ;;  %v11445_v42 = vpack.i.b16 %v18387_v61, %v15750_v16  ;;  %v5991_v18 = vcombine.low %v15530_v34, %v15547_v62  ;;  %6618 = vmatpush1.bf16.msra.mxu1 %v12596_v14  ;;  %v5972_v44 = vcombine.low %v5950_v23, %v5957_v60  ;;  %v12605_v61 = vld [vmem:[%s17788_s5 + $0x130] ss:$8 sps:$4 sm:$0xff]   ;;  %v12613_v23 = vld [vmem:[%s17788_s5 + $0x124] ss:$8 sps:$4 sm:$0xff]  }
 0x2f3   :  { %v5942_v8 = vcombine.low %v15500_v59, %v11444_v39  ;;  %v15774_v0 = vrot.slane %v11449_v52, %v13160_v13  ;;  %v15778_v4 = vcombine.high %v15511_v5, %v15511_v5  ;;  %6619 = vmatprep.subr.bf16.mxu1 %v12607_v17  ;;  %v6006_v14 = vrot.slane %v11450_v55, %v13160_v13  ;;  %v12626_v52 = vld [vmem:[%s17788_s5 + $0x180] ss:$8 sps:$4 sm:$0xff]  }
 0x2f4   :  { %v5566_v63 = vcombine.low %v5558_v46, %v5565_v15  ;;  %v5992_v22 = vcombine.low %v11445_v42, %v15611_v31  ;;  %v15786_v39 = vrot.slane %v5991_v18, %v13160_v13  ;;  %v5980_v15 = vrot.slane %v5972_v44, %v13160_v13  ;;  %7058 = vmatprep.subr.bf16.mxu0 %v12628_v32 }
 0x2f5   :  { %18388 = vst [vmem:[#allocation101_spill] sm:$0xff] %v15774_v0  ;;  %18389 = vst [vmem:[#allocation88_spill] sm:$0xff] %v15778_v4  ;;  %v5964_v60 = vrot.slane %v5942_v8, %v13160_v13  ;;  %v5170_v42 = vcombine.high %v15527_v21, %v15527_v21  ;;  %v5341_v17 = vunpack.i.h.s16 %v15630_v19  ;;  %v6021_v55 = vcombine.low %v15774_v0, %v6006_v14 }
 0x2f6   :  { %18390 = vst [vmem:[#allocation86_spill] sm:$0xff] %v15786_v39  ;;  %5817 = vmatmul.mubr.bf16.gmra.mxu1 %v5566_v63  ;;  %v6020_v46 = vrot.slane %v5992_v22, %v13160_v13  ;;  %v5343_v54 = vunpack.i.h.s16 %v15778_v4  ;;  %v5351_v18 = vunpack.i.h.s16 %v15566_v36  ;;  %v18391_v45 = vmov 0   ;;  %v12611_v63 = vld [vmem:[%s17788_s5 + $0x120] ss:$8 sps:$4 sm:$0xff]   ;;  %7059 = vmatpush1.bf16.msra.mxu0 %v12626_v52 }
 0x2f7   :  { %v5973_v1 = vcombine.low %v5964_v60, %v5971_v47  ;;  %5826 = vmatprep.mubr.bf16.mxu1 %v18391_v45  ;;  %v5349_v8 = vunpack.i.h.s16 %v5170_v42  ;;  %v5353_v44 = vunpack.i.h.s16 %v15530_v34  ;;  %v5355_v57 = vunpack.i.h.s16 %v15547_v62  ;;  %6620 = vmatpush1.bf16.msra.mxu1 %v12605_v61  ;;  %v12619_v60 = vld [vmem:[%s17788_s5 + $0x114] ss:$8 sps:$4 sm:$0xff]  }
 0x2f8   :  { %v6022_v22 = vcombine.low %v15786_v39, %v6020_v46  ;;  %v15811_v32 = vrot.slane %v6021_v55, %v13160_v13  ;;  %6621 = vmatprep.subr.bf16.mxu1 %v12613_v23  ;;  %v15820_v42 = vpack.i.b16 %v15778_v4, %v5341_v17  ;;  %v15823_v46 = vpack.i.b16 %v15527_v21, %v5343_v54  ;;  %v12631_v4 = vld [vmem:[%s17788_s5 + $0x274] ss:$8 sps:$4 sm:$0xff]  }
 0x2f9   :  { %v5987_v61 = vrot.slane %v5973_v1, %v13160_v13  ;;  %v11409_v55 = vpack.i.b16 %v15566_v36, %v5349_v8  ;;  %v15828_v47 = vpack.i.b16 %v15530_v34, %v5351_v18  ;;  %v15831_v23 = vpack.i.b16 %v15547_v62, %v5353_v44  ;;  %v12617_v18 = vld [vmem:[%s17788_s5 + $0x110] ss:$8 sps:$4 sm:$0xff]  }
 0x2fa   :  { %18392 = vst [vmem:[#allocation55_spill] sm:$0xff] %v15823_v46  ;;  %v6036_v14 = vrot.slane %v6022_v22, %v13160_v13  ;;  %v15834_v52 = vpack.i.b16 %v15750_v16, %v5355_v57  ;;  %v18395_v17 = vunpack.i.h.s16 %v15750_v16  ;;  %v18396_v54 = vunpack.i.h.s16 %v15611_v31 }
 0x2fb   :  { %18393 = vst [vmem:[#allocation51_spill] sm:$0xff] %v15828_v47  ;;  %v5988_v1 = vcombine.low %v5980_v15, %v5987_v61  ;;  %v5567_v22 = vcombine.low %v15820_v42, %v15823_v46  ;;  %6622 = vmatpush1.bf16.msra.mxu1 %v12611_v63  ;;  %v5568_v15 = vcombine.low %v11409_v55, %v15828_v47  ;;  %v5387_v0 = vunpack.i.h.s16 %v15673_v58 }
 0x2fc   :  { %18394 = vst [vmem:[#allocation48_spill] sm:$0xff] %v15834_v52  ;;  %v11413_v39 = vpack.i.b16 %v15611_v31, %v18395_v17  ;;  %v11414_v8 = vpack.i.b16 %v15618_v48, %v18396_v54  ;;  %v6037_v57 = vcombine.low %v15811_v32, %v6036_v14  ;;  %v5569_v44 = vcombine.low %v15831_v23, %v15834_v52  ;;  %v12625_v17 = vld [vmem:[%s17788_s5 + $0x104] ss:$8 sps:$4 sm:$0xff]  }
 0x2fd   :  { %v5222_v61 = vcombine.high %v15614_v53, %v15614_v53  ;;  %6623 = vmatprep.subr.bf16.mxu1 %v12619_v60  ;;  %6239 = vmatmul.mubr.bf16.gmra.mxu0 %v5988_v1  ;;  %v5577_v54 = vrot.slane %v5567_v22, %v13160_v13  ;;  %v15859_v32 = vcombine.high %v15653_v25, %v15653_v25  ;;  %v5369_v46 = vunpack.i.h.s16 %v15605_v49 }
 0x2fe   :  { %v5570_v63 = vcombine.low %v11413_v39, %v11414_v8  ;;  %v15863_v14 = vcombine.high %v15670_v50, %v15670_v50  ;;  %6248 = vmatprep.mubr.bf16.mxu0 %v18391_v45  ;;  %v5584_v60 = vrot.slane %v5568_v15, %v13160_v13  ;;  %v5591_v55 = vrot.slane %v5569_v44, %v13160_v13  ;;  %v12623_v15 = vld [vmem:[%s17788_s5 + $0x100] ss:$8 sps:$4 sm:$0xff]  }
 0x2ff   :  { %18397 = vst [vmem:[#allocation59_spill] sm:$0xff] %v15859_v32  ;;  %v11451_v39 = vcombine.high %v15602_v20, %v15611_v31  ;;  %v6039_v8 = vcombine.low %v15605_v49, %v5222_v61  ;;  %v6040_v22 = vcombine.low %v15653_v25, %v15670_v50  ;;  %v15877_v36 = vcombine.high %v15611_v31, %v15611_v31 }
 0x300   :  { %v5598_v1 = vrot.slane %v5570_v63, %v13160_v13  ;;  %6624 = vmatpush1.bf16.msra.mxu1 %v12617_v18  ;;  %v5599_v44 = vcombine.low %v5577_v54, %v5584_v60  ;;  %v11446_v34 = vpack.i.b16 %v5387_v0, %v15863_v14  ;;  %v15886_v63 = vcombine.high %v15656_v10, %v15656_v10 }
 0x301   :  { %v6048_v20 = vrot.slane %v11451_v39, %v13160_v13  ;;  %6625 = vmatprep.subr.bf16.mxu1 %v12625_v17  ;;  %v6055_v18 = vrot.slane %v6039_v8, %v13160_v13  ;;  %v6062_v52 = vrot.slane %v6040_v22, %v13160_v13  ;;  %v5367_v39 = vunpack.i.h.s16 %v15877_v36 }
 0x302   :  { %v5600_v31 = vcombine.low %v5591_v55, %v5598_v1  ;;  %v5607_v0 = vrot.slane %v5599_v44, %v13160_v13  ;;  %v6041_v60 = vcombine.low %v15859_v32, %v11446_v34  ;;  %v5375_v47 = vunpack.i.h.s16 %v5222_v61 }
 0x303   :  { %v6070_v16 = vcombine.low %v6048_v20, %v6055_v18  ;;  %v5377_v55 = vunpack.i.h.s16 %v15653_v25  ;;  %v5379_v8 = vunpack.i.h.s16 %v15670_v50  ;;  %v5381_v22 = vunpack.i.h.s16 %v15859_v32 }
 0x304   :  { %v5614_v17 = vrot.slane %v5600_v31, %v13160_v13  ;;  %6626 = vmatpush1.bf16.msra.mxu1 %v12623_v15  ;;  %v6069_v1 = vrot.slane %v6041_v60, %v13160_v13  ;;  %v18022_v44 = vunpack.i.h.s16 %v15863_v14  ;;  %v18398_v31 = vunpack.i.h.s16 %v15618_v48 }
 0x305   :  { %7445 = vmatprep.subr.bf16.mxu1 %v12631_v4  ;;  %6249 = vmatmul.mubr.bf16.gmra.mxu0 %v6037_v57  ;;  %v6078_v54 = vrot.slane %v6070_v16, %v13160_v13  ;;  %v15911_v61 = vpack.i.b16 %v15605_v49, %v5367_v39  ;;  %v15915_v18 = vpack.i.b16 %v15614_v53, %v5369_v46 }
 0x306   :  { %v5615_v34 = vcombine.low %v5607_v0, %v5614_v17  ;;  %v15908_v20 = vpack.i.b16 %v15877_v36, %v18398_v31  ;;  %6258 = vmatprep.mubr.bf16.mxu0 %v18391_v45  ;;  %v6071_v15 = vcombine.low %v6062_v52, %v6069_v1  ;;  %v11418_v4 = vpack.i.b16 %v15653_v25, %v5375_v47 }
 0x307   :  { %v15919_v57 = vpack.i.b16 %v15670_v50, %v5377_v55  ;;  %v15922_v16 = vpack.i.b16 %v15859_v32, %v5379_v8  ;;  %v15925_v0 = vpack.i.b16 %v15863_v14, %v5381_v22  ;;  %v11422_v60 = vpack.i.b16 %v15886_v63, %v18022_v44 }
 0x308   :  { %5827 = vmatmul.mubr.bf16.gmra.mxu1 %v5615_v34  ;;  %v5616_v46 = vcombine.low %v15908_v20, %v15911_v61  ;;  %v6085_v52 = vrot.slane %v6071_v15, %v13160_v13  ;;  %v5617_v47 = vcombine.low %v15915_v18, %v11418_v4  ;;  %v11452_v39 = vcombine.high %v15656_v10, %v15673_v58 }
 0x309   :  { %5836 = vmatprep.mubr.bf16.mxu1 %v18391_v45  ;;  %v6088_v17 = vcombine.low %v15710_v29, %v15730_v43  ;;  %v5618_v55 = vcombine.low %v15919_v57, %v15922_v16  ;;  %v5619_v1 = vcombine.low %v15925_v0, %v11422_v60  ;;  %v15945_v22 = vcombine.high %v15710_v29, %v15710_v29 }
 0x30a   :  { %v5626_v8 = vrot.slane %v5616_v46, %v13160_v13  ;;  %v6086_v34 = vcombine.low %v6078_v54, %v6085_v52  ;;  %v5633_v31 = vrot.slane %v5617_v47, %v13160_v13  ;;  %v6095_v15 = vrot.slane %v11452_v39, %v13160_v13 }
 0x30b   :  { %v15950_v4 = vrot.slane %v6088_v17, %v13160_v13  ;;  %v5640_v44 = vrot.slane %v5618_v55, %v13160_v13  ;;  %v5647_v58 = vrot.slane %v5619_v1, %v13160_v13  ;;  %v18028_v60 = vunpack.i.h.s16 %v15886_v63 }
 0x30c   :  { %v18027_v46 = vunpack.i.h.s16 %v15701_v28  ;;  %v5648_v50 = vcombine.low %v5626_v8, %v5633_v31  ;;  %v5393_v54 = vunpack.i.h.s16 %v15710_v29  ;;  %v5395_v52 = vunpack.i.h.s16 %v15730_v43 }
 0x30d   :  { %v6103_v32 = vcombine.low %v6095_v15, %v15950_v4  ;;  %6259 = vmatmul.mubr.bf16.gmra.mxu0 %v6086_v34  ;;  %v5649_v47 = vcombine.low %v5640_v44, %v5647_v58  ;;  %v11423_v39 = vpack.i.b16 %v15701_v28, %v18028_v60  ;;  %v18399_v55 = vunpack.i.h.s16 %v15408_v6 }
 0x30e   :  { %v15965_v17 = vpack.i.b16 %v15710_v29, %v18027_v46  ;;  %v5656_v8 = vrot.slane %v5648_v50, %v13160_v13  ;;  %6268 = vmatprep.mubr.bf16.mxu0 %v18391_v45  ;;  %v15974_v58 = vpack.i.b16 %v15730_v43, %v5393_v54  ;;  %v15977_v44 = vpack.i.b16 %v15945_v22, %v5395_v52 }
 0x30f   :  { %v11523_v1 = vpack.i.b16 %v15459_v35, %v18399_v55  ;;  %v6110_v34 = vrot.slane %v6103_v32, %v13160_v13  ;;  %v5663_v31 = vrot.slane %v5649_v47, %v13160_v13  ;;  %v6739_v46 = vcombine.low %v15431_v3, %v15435_v30 }
 0x310   :  { %v5665_v15 = vcombine.low %v11423_v39, %v15965_v17  ;;  %v6740_v50 = vcombine.low %v15521_v26, %v15442_v51  ;;  %v5666_v55 = vcombine.low %v15974_v58, %v15977_v44  ;;  %v18400_v54 = vunpack.i.h.s16 %v15452_v12 }
 0x311   :  { %v6741_v32 = vcombine.low %v11523_v1, %v15552_v2  ;;  %v6307_v47 = vcombine.low %v15416_v24, %v15400_v7  ;;  %v5664_v60 = vcombine.low %v5656_v8, %v5663_v31  ;;  %v6749_v3 = vrot.slane %v6739_v46, %v13160_v13 }
 0x312   :  { %v11485_v52 = vpack.i.b16 %v18400_v54, %v15408_v6  ;;  %v5673_v39 = vrot.slane %v5665_v15, %v13160_v13  ;;  %v6756_v30 = vrot.slane %v6740_v50, %v13160_v13  ;;  %v5680_v51 = vrot.slane %v5666_v55, %v13160_v13 }
 0x313   :  { %v6763_v26 = vrot.slane %v6741_v32, %v13160_v13  ;;  %v6309_v12 = vcombine.low %v15464_v27, %v15497_v37  ;;  %5837 = vmatmul.mubr.bf16.gmra.mxu1 %v5664_v60  ;;  %v18401_v24 = vcombine.low %v15405_v11, %v15410_v56  ;;  %v6323_v46 = vrot.slane %v6307_v47, %v13160_v13 }
 0x314   :  { %v6308_v2 = vcombine.low %v11485_v52, %v15459_v35  ;;  %v6771_v1 = vcombine.low %v6749_v3, %v6756_v30  ;;  %v16008_v31 = vcombine.high %v15500_v59, %v15500_v59  ;;  %5846 = vmatprep.mubr.bf16.mxu1 %v18391_v45  ;;  %v5681_v15 = vcombine.low %v5673_v39, %v5680_v51 }
 0x315   :  { %v6316_v8 = vrot.slane %v18401_v24, %v13160_v13  ;;  %v6772_v50 = vcombine.low %v6763_v26, %v15720_v38  ;;  %v6337_v60 = vrot.slane %v6309_v12, %v13160_v13  ;;  %6269 = vmatmul.mubr.bf16.gmra.mxu0 %v6110_v34  ;;  %v5319_v56 = vunpack.i.h.s16 %v15596_v9  ;;  %v18403_v9 = vld [vmem:[#allocation27_spill] sm:$0xff]  ;;  %v18404_v12 = vld [vmem:[#allocation38_spill] sm:$0xff]  ;;  %v18405_v24 = vld [vmem:[#allocation12_spill] sm:$0xff] }
 0x316   :  { %v6330_v37 = vrot.slane %v6308_v2, %v13160_v13  ;;  %v6779_v55 = vrot.slane %v6771_v1, %v13160_v13  ;;  %v5333_v32 = vunpack.i.h.s16 %v16008_v31  ;;  %v5688_v54 = vrot.slane %v5681_v15, %v13160_v13  ;;  %7076 = vmatprep.mubr.bf16.mxu0 %v18391_v45  ;;  %v18407_v15 = vld [vmem:[#allocation80_spill] sm:$0xff] }
 0x317   :  { %v6338_v11 = vcombine.low %v6316_v8, %v6323_v46  ;;  %v6786_v52 = vrot.slane %v6772_v50, %v13160_v13  ;;  %v18402_v38 = vunpack.i.h.s16 %v15508_v41  ;;  %v11524_v3 = vpack.i.b16 %v15476_v40, %v5319_v56 }
 0x318   :  { %v6339_v47 = vcombine.low %v6330_v37, %v6337_v60  ;;  %v11526_v30 = vpack.i.b16 %v15511_v5, %v5333_v32  ;;  %v6789_v51 = vcombine.low %v18403_v9, %v15679_v33  ;;  %v6791_v1 = vcombine.low %v18404_v12, %v15820_v42 }
 0x319   :  { %v11525_v39 = vpack.i.b16 %v16008_v31, %v18402_v38  ;;  %v6346_v34 = vrot.slane %v6338_v11, %v13160_v13  ;;  %v6787_v26 = vcombine.low %v6779_v55, %v6786_v52  ;;  %v18406_v8 = vunpack.i.h.s16 %v18405_v24  ;;  %v18408_v55 = vld [vmem:[#allocation11_spill] sm:$0xff] }
 0x31a   :  { %v6353_v2 = vrot.slane %v6339_v47, %v13160_v13  ;;  %v6788_v50 = vcombine.low %v11524_v3, %v18407_v15  ;;  %v6805_v60 = vrot.slane %v6789_v51, %v13160_v13  ;;  %v11489_v11 = vcombine.high %v15464_v27, %v15476_v40  ;;  %v18411_v15 = vld [vmem:[#allocation50_spill] sm:$0xff] }
 0x31b   :  { %v11486_v46 = vpack.i.b16 %v18406_v8, %v16008_v31  ;;  %v6790_v37 = vcombine.low %v11525_v39, %v11526_v30  ;;  %v6819_v33 = vrot.slane %v6791_v1, %v13160_v13  ;;  %v6356_v32 = vcombine.low %v18408_v55, %v15500_v59  ;;  %5847 = vmatmul.mubr.bf16.gmra.mxu1 %v5688_v54  ;;  %v18410_v8 = vld [vmem:[#allocation26_spill] sm:$0xff] }
 0x31c   :  { %v6354_v56 = vcombine.low %v6346_v34, %v6353_v2  ;;  %v6798_v52 = vrot.slane %v6788_v50, %v13160_v13  ;;  %v6358_v38 = vcombine.low %v15511_v5, %v15630_v19  ;;  %v6365_v39 = vrot.slane %v11489_v11, %v13160_v13  ;;  %6643 = vmatprep.mubr.bf16.mxu1 %v18391_v45  ;;  %v18409_v19 = vld [vmem:[#allocation51_spill] sm:$0xff] }
 0x31d   :  { %v6357_v42 = vcombine.low %v15508_v41, %v11486_v46  ;;  %v6812_v47 = vrot.slane %v6790_v37, %v13160_v13  ;;  %v6372_v34 = vrot.slane %v6356_v32, %v13160_v13  ;;  %v5173_v30 = vcombine.high %v15547_v62, %v15547_v62  ;;  %7077 = vmatmul.mubr.bf16.vlgmr.msra.gmra.mxu0 %v6787_v26 }
 0x31e   :  { %v5345_v54 = vunpack.i.h.s16 %v15527_v21  ;;  %v6820_v9 = vcombine.low %v6798_v52, %v6805_v60  ;;  %v6386_v2 = vrot.slane %v6358_v38, %v13160_v13  ;;  %v6838_v12 = vcombine.low %v18409_v19, %v15831_v23  ;;  %7086 = vmatprep.mubr.bf16.mxu0 %v18391_v45  ;;  %v12629_v23 = vld [vmem:[%s17788_s5 + $0x270] ss:$8 sps:$4 sm:$0xff]   ;;  %v18413_v52 = vld [vmem:[#allocation55_spill] sm:$0xff] }
 0x31f   :  { %v6379_v3 = vrot.slane %v6357_v42, %v13160_v13  ;;  %v6821_v51 = vcombine.low %v6812_v47, %v6819_v33  ;;  %v6387_v1 = vcombine.low %v6365_v39, %v6372_v34  ;;  %v5359_v24 = vunpack.i.h.s16 %v5173_v30  ;;  %v18414_v38 = vld [vmem:[#allocation48_spill] sm:$0xff]  ;;  %v12634_v34 = vld [vmem:[%s17788_s5 + $0x264] ss:$8 sps:$4 sm:$0xff]  }
 0x320   :  { %v11527_v46 = vpack.i.b16 %v18410_v8, %v5345_v54  ;;  %v18412_v50 = vunpack.i.h.s16 %v18411_v15  ;;  %v6828_v11 = vrot.slane %v6820_v9, %v13160_v13  ;;  %v6854_v33 = vrot.slane %v6838_v12, %v13160_v13  ;;  %v18415_v9 = vld [vmem:[#allocation31_spill] sm:$0xff]  ;;  %v18417_v19 = vld [vmem:[#allocation88_spill] sm:$0xff] }
 0x321   :  { %v6835_v26 = vrot.slane %v6821_v51, %v13160_v13  ;;  %v6388_v60 = vcombine.low %v6379_v3, %v6386_v2  ;;  %v6395_v32 = vrot.slane %v6387_v1, %v13160_v13  ;;  %v11529_v42 = vpack.i.b16 %v15618_v48, %v5359_v24 }
 0x322   :  { %v11528_v37 = vpack.i.b16 %v5173_v30, %v18412_v50  ;;  %v6837_v47 = vcombine.low %v18413_v52, %v11527_v46  ;;  %v18416_v51 = vunpack.i.h.s16 %v18415_v9  ;;  %v6404_v12 = vcombine.low %v18417_v19, %v15527_v21  ;;  %v18418_v50 = vld [vmem:[#allocation35_spill] sm:$0xff] }
 0x323   :  { %v6836_v54 = vcombine.low %v6828_v11, %v6835_v26  ;;  %v6402_v3 = vrot.slane %v6388_v60, %v13160_v13  ;;  %v6840_v1 = vcombine.low %v11529_v42, %v15908_v20  ;;  %6644 = vmatmul.mubr.bf16.vlgmr.msra.gmra.mxu1 %v6354_v56  ;;  %v6406_v11 = vcombine.low %v15547_v62, %v18411_v15  ;;  %v12632_v20 = vld [vmem:[%s17788_s5 + $0x260] ss:$8 sps:$4 sm:$0xff]   ;;  %v12637_v15 = vld [vmem:[%s17788_s5 + $0x254] ss:$8 sps:$4 sm:$0xff]  }
 0x324   :  { %v6839_v39 = vcombine.low %v18414_v38, %v11528_v37  ;;  %v11487_v2 = vpack.i.b16 %v18416_v51, %v5173_v30  ;;  %v6847_v24 = vrot.slane %v6837_v47, %v13160_v13  ;;  %v18419_v37 = vld [vmem:[#allocation25_spill] sm:$0xff]  ;;  %v6414_v30 = vrot.slane %v6404_v12, %v13160_v13  ;;  %7446 = vmatpush1.bf16.msra.mxu1 %v12629_v23 }
 0x325   :  { %v6405_v52 = vcombine.low %v18419_v37, %v18418_v50  ;;  %v6403_v38 = vcombine.low %v6395_v32, %v6402_v3  ;;  %6653 = vmatprep.mubr.bf16.mxu1 %v18391_v45  ;;  %v6868_v60 = vrot.slane %v6840_v1, %v13160_v13  ;;  %v5371_v32 = vunpack.i.h.s16 %v15614_v53  ;;  %7447 = vmatprep.subr.bf16.mxu1 %v12634_v34 }
 0x326   :  { %v6861_v46 = vrot.slane %v6839_v39, %v13160_v13  ;;  %v6407_v26 = vcombine.low %v11487_v2, %v15618_v48  ;;  %v6869_v42 = vcombine.low %v6847_v24, %v6854_v33  ;;  %7087 = vmatmul.mubr.bf16.gmra.mxu0 %v6836_v54  ;;  %v6428_v23 = vrot.slane %v6406_v11, %v13160_v13  ;;  %v12635_v24 = vld [vmem:[%s17788_s5 + $0x250] ss:$8 sps:$4 sm:$0xff]  }
 0x327   :  { %v6421_v56 = vrot.slane %v6405_v52, %v13160_v13  ;;  %v16101_v39 = vcombine.high %v15605_v49, %v15605_v49  ;;  %v5385_v33 = vunpack.i.h.s16 %v15656_v10  ;;  %7096 = vmatprep.mubr.bf16.mxu0 %v18391_v45  ;;  %v18420_v9 = vunpack.i.h.s16 %v15863_v14 }
 0x328   :  { %v6435_v47 = vrot.slane %v6407_v26, %v13160_v13  ;;  %v6870_v3 = vcombine.low %v6861_v46, %v6868_v60  ;;  %v6877_v34 = vrot.slane %v6869_v42, %v13160_v13  ;;  %v6886_v1 = vcombine.low %v15911_v61, %v15915_v18  ;;  %7448 = vmatpush1.bf16.msra.mxu1 %v12632_v20  ;;  %v12640_v61 = vld [vmem:[%s17788_s5 + $0x244] ss:$8 sps:$4 sm:$0xff]  }
 0x329   :  { %v6436_v54 = vcombine.low %v6414_v30, %v6421_v56  ;;  %v11531_v51 = vpack.i.b16 %v15656_v10, %v18420_v9  ;;  %v11530_v19 = vpack.i.b16 %v16101_v39, %v5371_v32  ;;  %v11532_v12 = vpack.i.b16 %v15701_v28, %v5385_v33  ;;  %7449 = vmatprep.subr.bf16.mxu1 %v12637_v15  ;;  %v12638_v33 = vld [vmem:[%s17788_s5 + $0x240] ss:$8 sps:$4 sm:$0xff]   ;;  %v12643_v9 = vld [vmem:[%s17788_s5 + $0x234] ss:$8 sps:$4 sm:$0xff]  }
 0x32a   :  { %v6437_v2 = vcombine.low %v6428_v23, %v6435_v47  ;;  %v6884_v46 = vrot.slane %v6870_v3, %v13160_v13  ;;  %v6888_v52 = vcombine.low %v15922_v16, %v15925_v0  ;;  %v18421_v11 = vunpack.i.h.s16 %v15886_v63  ;;  %v18422_v23 = vld [vmem:[#allocation59_spill] sm:$0xff] }
 0x32b   :  { %v6444_v37 = vrot.slane %v6436_v54, %v13160_v13  ;;  %v6887_v30 = vcombine.low %v11530_v19, %v15919_v57  ;;  %v6889_v20 = vcombine.low %v11531_v51, %v11532_v12  ;;  %v6896_v60 = vrot.slane %v6886_v1, %v13160_v13  ;;  %6654 = vmatmul.mubr.bf16.gmra.mxu1 %v6403_v38  ;;  %v18423_v57 = vld [vmem:[#allocation81_spill] sm:$0xff] }
 0x32c   :  { %v11488_v26 = vpack.i.b16 %v18421_v11, %v15656_v10  ;;  %v6451_v18 = vrot.slane %v6437_v2, %v13160_v13  ;;  %v6885_v42 = vcombine.low %v6877_v34, %v6884_v46  ;;  %v6910_v56 = vrot.slane %v6888_v52, %v13160_v13  ;;  %7450 = vmatpush1.bf16.msra.mxu1 %v12635_v24 }
 0x32d   :  { %v6453_v16 = vcombine.low %v15877_v36, %v15605_v49  ;;  %v6454_v63 = vcombine.low %v15614_v53, %v15653_v25  ;;  %v6903_v32 = vrot.slane %v6887_v30, %v13160_v13  ;;  %v6917_v15 = vrot.slane %v6889_v20, %v13160_v13  ;;  %6663 = vmatprep.mubr.bf16.mxu1 %v18391_v45 }
 0x32e   :  { %v6452_v0 = vcombine.low %v6444_v37, %v6451_v18  ;;  %v6455_v47 = vcombine.low %v18423_v57, %v18422_v23  ;;  %v6456_v3 = vcombine.low %v15863_v14, %v11488_v26  ;;  %v5397_v54 = vunpack.i.h.s16 %v15945_v22  ;;  %7097 = vmatmul.mubr.bf16.gmra.mxu0 %v6885_v42  ;;  %7451 = vmatprep.subr.bf16.mxu1 %v12640_v61  ;;  %v12641_v37 = vld [vmem:[%s17788_s5 + $0x230] ss:$8 sps:$4 sm:$0xff]   ;;  %v12646_v61 = vld [vmem:[%s17788_s5 + $0x224] ss:$8 sps:$4 sm:$0xff]  }
 0x32f   :  { %v6463_v34 = vrot.slane %v6453_v16, %v13160_v13  ;;  %v6470_v38 = vrot.slane %v6454_v63, %v13160_v13  ;;  %v6918_v51 = vcombine.low %v6896_v60, %v6903_v32  ;;  %v6919_v2 = vcombine.low %v6910_v56, %v6917_v15  ;;  %7106 = vmatprep.mubr.bf16.mxu0 %v18391_v45  ;;  %v12644_v56 = vld [vmem:[%s17788_s5 + $0x220] ss:$8 sps:$4 sm:$0xff]   ;;  %v18424_v63 = vld [vmem:[#allocation13_spill] sm:$0xff] }
 0x330   :  { %v6477_v19 = vrot.slane %v6455_v47, %v13160_v13  ;;  %v6484_v14 = vrot.slane %v6456_v3, %v13160_v13  ;;  %v5295_v1 = vcombine.high %v15730_v43, %v15730_v43  ;;  %7452 = vmatpush1.bf16.msra.mxu1 %v12638_v33  ;;  %v6935_v18 = vcombine.low %v15965_v17, %v15974_v58  ;;  %v12649_v58 = vld [vmem:[%s17788_s5 + $0x214] ss:$8 sps:$4 sm:$0xff]   ;;  %v12647_v3 = vld [vmem:[%s17788_s5 + $0x210] ss:$8 sps:$4 sm:$0xff]  }
 0x331   :  { %v6485_v12 = vcombine.low %v6463_v34, %v6470_v38  ;;  %v6926_v24 = vrot.slane %v6918_v51, %v13160_v13  ;;  %v6933_v46 = vrot.slane %v6919_v2, %v13160_v13  ;;  %7453 = vmatprep.subr.bf16.mxu1 %v12643_v9  ;;  %v6503_v17 = vcombine.low %v15730_v43, %v15945_v22  ;;  %v18426_v23 = vld [vmem:[#allocation37_spill] sm:$0xff] }
 0x332   :  { %v6486_v52 = vcombine.low %v6477_v19, %v6484_v14  ;;  %v11533_v11 = vpack.i.b16 %v5295_v1, %v5397_v54  ;;  %v6502_v15 = vcombine.low %v15701_v28, %v15710_v29  ;;  %v18427_v22 = vunpack.i.h.s16 %v15618_v48  ;;  %v18428_v54 = vld [vmem:[#allocation43_spill] sm:$0xff] }
 0x333   :  { %v6934_v26 = vcombine.low %v6926_v24, %v6933_v46  ;;  %v6493_v30 = vrot.slane %v6485_v12, %v13160_v13  ;;  %6664 = vmatmul.mubr.bf16.gmra.mxu1 %v6452_v0  ;;  %v18425_v0 = vunpack.i.h.s16 %v15459_v35  ;;  %v6517_v34 = vrot.slane %v6503_v17, %v13160_v13  ;;  %v12652_v48 = vld [vmem:[%s17788_s5 + $0x204] ss:$8 sps:$4 sm:$0xff]  }
 0x334   :  { %v6500_v20 = vrot.slane %v6486_v52, %v13160_v13  ;;  %v6936_v60 = vcombine.low %v15977_v44, %v11533_v11  ;;  %7454 = vmatpush1.bf16.msra.mxu1 %v12641_v37  ;;  %6673 = vmatprep.mubr.bf16.mxu1 %v18391_v45  ;;  %v6943_v44 = vrot.slane %v6935_v18, %v13160_v13  ;;  %v18429_v9 = vunpack.i.h.s16 %v15701_v28 }
 0x335   :  { %7455 = vmatprep.subr.bf16.mxu1 %v12646_v61  ;;  %v11566_v32 = vpack.i.b16 %v18425_v0, %v18424_v63  ;;  %v16187_v47 = vpack.i.b16 %v18427_v22, %v18426_v23  ;;  %v6510_v19 = vrot.slane %v6502_v15, %v13160_v13  ;;  %v7295_v14 = vcombine.low %v15605_v49, %v15614_v53  ;;  %v12650_v49 = vld [vmem:[%s17788_s5 + $0x200] ss:$8 sps:$4 sm:$0xff]   ;;  %v18430_v53 = vld [vmem:[#allocation45_spill] sm:$0xff] }
 0x336   :  { %v6501_v42 = vcombine.low %v6493_v30, %v6500_v20  ;;  %v6950_v16 = vrot.slane %v6936_v60, %v13160_v13  ;;  %7107 = vmatmul.mubr.bf16.gmra.mxu0 %v6934_v26  ;;  %v11569_v51 = vpack.i.b16 %v18429_v9, %v18428_v54  ;;  %v7296_v12 = vcombine.low %v16101_v39, %v18423_v57  ;;  %v18434_v9 = vld [vmem:[#allocation86_spill] sm:$0xff] }
 0x337   :  { %7116 = vmatprep.mubr.bf16.mxu0 %v18391_v45  ;;  %v7256_v38 = vcombine.low %v16187_v47, %v15877_v36  ;;  %v7173_v2 = vcombine.low %v11566_v32, %v15464_v27  ;;  %v7172_v36 = vcombine.low %v15400_v7, %v15408_v6  ;;  %v11570_v1 = vcombine.high %v15459_v35, %v15464_v27 }
 0x338   :  { %v6951_v33 = vcombine.low %v6943_v44, %v6950_v16  ;;  %7456 = vmatpush1.bf16.msra.mxu1 %v12644_v56  ;;  %v11572_v24 = vcombine.high %v15653_v25, %v18423_v57  ;;  %v6518_v46 = vcombine.low %v6510_v19, %v6517_v34  ;;  %v18431_v7 = vunpack.i.h.s16 %v15511_v5  ;;  %v18432_v56 = vld [vmem:[#allocation16_spill] sm:$0xff] }
 0x339   :  { %7457 = vmatprep.subr.bf16.mxu1 %v12649_v58  ;;  %v7298_v39 = vcombine.low %v15656_v10, %v11569_v51  ;;  %v7188_v35 = vrot.slane %v7173_v2, %v13160_v13  ;;  %v7305_v27 = vrot.slane %v7295_v14, %v13160_v13  ;;  %v7312_v25 = vrot.slane %v7296_v12, %v13160_v13  ;;  %v12653_v51 = vld [vmem:[%s17790_s7 + $0x70] ss:$8 sps:$4 sm:$0xff]   ;;  %v12658_v19 = vld [vmem:[%s17790_s7 + $0x174] ss:$8 sps:$4 sm:$0xff]   ;;  %v12661_v14 = vld [vmem:[%s17790_s7 + $0x64] ss:$8 sps:$4 sm:$0xff]  }
 0x33a   :  { %v6958_v28 = vrot.slane %v6951_v33, %v13160_v13  ;;  %v11567_v6 = vpack.i.b16 %v18431_v7, %v18430_v53  ;;  %v7319_v57 = vrot.slane %v11572_v24, %v13160_v13  ;;  %v7181_v52 = vrot.slane %v7172_v36, %v13160_v13  ;;  %v12656_v2 = vld [vmem:[%s17790_s7 + $0x170] ss:$8 sps:$4 sm:$0xff]   ;;  %8400 = vmatprep.subr.bf16.mxu0 %v12658_v19  ;;  %v12662_v12 = vld [vmem:[%s17790_s7 + $0x160] ss:$8 sps:$4 sm:$0xff]   ;;  %v12664_v36 = vld [vmem:[%s17790_s7 + $0x164] ss:$8 sps:$4 sm:$0xff]  }
 0x33b   :  { %6674 = vmatmul.mubr.bf16.gmra.mxu1 %v6501_v42  ;;  %v7326_v37 = vrot.slane %v7298_v39, %v13160_v13  ;;  %v7195_v11 = vrot.slane %v11570_v1, %v13160_v13  ;;  %v7327_v5 = vcombine.low %v7305_v27, %v7312_v25  ;;  %v11573_v10 = vcombine.high %v15710_v29, %v15730_v43  ;;  %v12667_v1 = vld [vmem:[%s17790_s7 + $0x54] ss:$8 sps:$4 sm:$0xff]   ;;  %v12668_v24 = vld [vmem:[%s17790_s7 + $0x150] ss:$8 sps:$4 sm:$0xff]   ;;  %v12673_v53 = vld [vmem:[%s17790_s7 + $0x44] ss:$8 sps:$4 sm:$0xff]  }
 0x33c   :  { %7458 = vmatpush1.bf16.msra.mxu1 %v12647_v3  ;;  %6683 = vmatprep.mubr.bf16.mxu1 %v18391_v45  ;;  %v6525_v61 = vrot.slane %v6518_v46, %v13160_v13  ;;  %v7215_v30 = vcombine.low %v16008_v31, %v11567_v6  ;;  %v7196_v16 = vcombine.low %v18432_v56, %v7181_v52  ;;  %v12670_v46 = vld [vmem:[%s17790_s7 + $0x154] ss:$8 sps:$4 sm:$0xff]   ;;  %v12674_v7 = vld [vmem:[%s17790_s7 + $0x140] ss:$8 sps:$4 sm:$0xff]   ;;  %v12676_v6 = vld [vmem:[%s17790_s7 + $0x144] ss:$8 sps:$4 sm:$0xff]  }
 0x33d   :  { %7459 = vmatprep.subr.bf16.mxu1 %v12652_v48  ;;  %v7328_v26 = vcombine.low %v7319_v57, %v7326_v37  ;;  %v7197_v18 = vcombine.low %v7188_v35, %v7195_v11  ;;  %v7351_v20 = vrot.slane %v11573_v10, %v13160_v13  ;;  %v7335_v60 = vrot.slane %v7327_v5, %v13160_v13  ;;  %v12655_v48 = vld [vmem:[%s17790_s7 + $0x74] ss:$8 sps:$4 sm:$0xff]   ;;  %v12677_v39 = vld [vmem:[%s17790_s7 + $0x30] ss:$8 sps:$4 sm:$0xff]   ;;  %v12683_v57 = vld [vmem:[%s17790_s7 + $0x20] ss:$8 sps:$4 sm:$0xff]  }
 0x33e   :  { %7117 = vmatmul.mubr.bf16.gmra.mxu0 %v6958_v28  ;;  %v7214_v17 = vcombine.low %v15500_v59, %v15508_v41  ;;  %v7213_v31 = vcombine.low %v15476_v40, %v18408_v55  ;;  %v7236_v44 = vrot.slane %v7215_v30, %v13160_v13  ;;  %v7204_v63 = vrot.slane %v7196_v16, %v13160_v13  ;;  %v18433_v59 = vld [vmem:[#allocation101_spill] sm:$0xff]  ;;  %v12685_v37 = vld [vmem:[%s17790_s7 + $0x24] ss:$8 sps:$4 sm:$0xff]   ;;  %v12686_v52 = vld [vmem:[%s17790_s7 + $0x120] ss:$8 sps:$4 sm:$0xff]  }
 0x33f   :  { %v7342_v42 = vrot.slane %v7328_v26, %v13160_v13  ;;  %v7352_v29 = vcombine.low %v15950_v4, %v7351_v20  ;;  %v7211_v58 = vrot.slane %v7197_v18, %v13160_v13  ;;  %v7254_v23 = vcombine.low %v15527_v21, %v18410_v8  ;;  %8401 = vmatpush1.bf16.msra.mxu0 %v12656_v2  ;;  %v12665_v28 = vld [vmem:[%s17790_s7 + $0x50] ss:$8 sps:$4 sm:$0xff]   ;;  %v12679_v35 = vld [vmem:[%s17790_s7 + $0x34] ss:$8 sps:$4 sm:$0xff]   ;;  %v12688_v11 = vld [vmem:[%s17790_s7 + $0x124] ss:$8 sps:$4 sm:$0xff]  }
 0x340   :  { %7460 = vmatpush1.bf16.msra.mxu1 %v12650_v49  ;;  %v7229_v0 = vrot.slane %v7214_v17, %v13160_v13  ;;  %v7222_v15 = vrot.slane %v7213_v31, %v13160_v13  ;;  %v7238_v41 = vcombine.low %v7236_v44, %v18433_v59  ;;  %v11571_v22 = vcombine.high %v18418_v50, %v15547_v62  ;;  %v12671_v49 = vld [vmem:[%s17790_s7 + $0x40] ss:$8 sps:$4 sm:$0xff]   ;;  %v12680_v27 = vld [vmem:[%s17790_s7 + $0x130] ss:$8 sps:$4 sm:$0xff]   ;;  %v12682_v25 = vld [vmem:[%s17790_s7 + $0x134] ss:$8 sps:$4 sm:$0xff]  }
 0x341   :  { %v7343_v43 = vcombine.low %v7335_v60, %v7342_v42  ;;  %v7212_v32 = vcombine.low %v7204_v63, %v7211_v58  ;;  %v7277_v55 = vrot.slane %v7256_v38, %v13160_v13  ;;  %v7263_v33 = vrot.slane %v7254_v23, %v13160_v13  ;;  %8897 = vmatprep.subr.bf16.mxu1 %v12655_v48  ;;  %v12689_v5 = vld [vmem:[%s17790_s7 + $0x10] ss:$8 sps:$4 sm:$0xff]   ;;  %v12691_v10 = vld [vmem:[%s17790_s7 + $0x14] ss:$8 sps:$4 sm:$0xff]   ;;  %v12695_v18 = vld [vmem:[%s17790_s7] ss:$8 sps:$4 sm:$0xff]  }
 0x342   :  { %v7237_v4 = vcombine.low %v7222_v15, %v7229_v0  ;;  %v7252_v40 = vrot.slane %v7238_v41, %v13160_v13  ;;  %v7270_v3 = vrot.slane %v11571_v22, %v13160_v13  ;;  %v7359_v38 = vrot.slane %v7352_v29, %v13160_v13  ;;  %8402 = vmatprep.subr.bf16.mxu0 %v12664_v36  ;;  %v12692_v26 = vld [vmem:[%s17790_s7 + $0x110] ss:$8 sps:$4 sm:$0xff]   ;;  %v12697_v30 = vld [vmem:[%s17790_s7 + $0x4] ss:$8 sps:$4 sm:$0xff]   ;;  %v12698_v20 = vld [vmem:[%s17790_s7 + $0x100] ss:$8 sps:$4 sm:$0xff]  }
 0x343   :  { %6684 = vmatmul.mubr.bf16.gmra.mxu1 %v6525_v61  ;;  %v7278_v21 = vcombine.low %v7263_v33, %v18434_v9  ;;  %8403 = vmatpush1.bf16.msra.mxu0 %v12662_v12  ;;  %v12694_v61 = vld [vmem:[%s17790_s7 + $0x114] ss:$8 sps:$4 sm:$0xff]   ;;  %v12700_v60 = vld [vmem:[%s17790_s7 + $0x104] ss:$8 sps:$4 sm:$0xff]   ;;  %v12701_v42 = vld [vmem:[%s17790_s7 + $0xf0] ss:$8 sps:$4 sm:$0xff]  }
 0x344   :  { %7477 = vmatprep.mubr.bf16.mxu1 %v18391_v45  ;;  %v7245_v47 = vrot.slane %v7237_v4, %v13160_v13  ;;  %v7279_v54 = vcombine.low %v7270_v3, %v7277_v55  ;;  %8404 = vmatprep.subr.bf16.mxu0 %v12670_v46  ;;  %v12703_v56 = vld [vmem:[%s17790_s7 + $0xf4] ss:$8 sps:$4 sm:$0xff]   ;;  %v12704_v16 = vld [vmem:[%s17790_s7 + $0x1f0] ss:$8 sps:$4 sm:$0xff]   ;;  %v12707_v29 = vld [vmem:[%s17790_s7 + $0xe0] ss:$8 sps:$4 sm:$0xff]  }
 0x345   :  { %v7286_v8 = vrot.slane %v7278_v21, %v13160_v13  ;;  %v12706_v17 = vld [vmem:[%s17790_s7 + $0x1f4] ss:$8 sps:$4 sm:$0xff]   ;;  %v12709_v58 = vld [vmem:[%s17790_s7 + $0xe4] ss:$8 sps:$4 sm:$0xff]   ;;  %v12710_v44 = vld [vmem:[%s17790_s7 + $0x1e0] ss:$8 sps:$4 sm:$0xff]  }
 0x346   :  { %v7253_v34 = vcombine.low %v7245_v47, %v7252_v40  ;;  %v7293_v62 = vrot.slane %v7279_v54, %v13160_v13  ;;  %v12712_v63 = vld [vmem:[%s17790_s7 + $0x1e4] ss:$8 sps:$4 sm:$0xff]   ;;  %v12713_v0 = vld [vmem:[%s17790_s7 + $0xd0] ss:$8 sps:$4 sm:$0xff]   ;;  %v12718_v55 = vld [vmem:[%s17790_s7 + $0x1d4] ss:$8 sps:$4 sm:$0xff]  }
 0x347   :  { %8405 = vmatpush1.bf16.msra.mxu0 %v12668_v24  ;;  %v12716_v40 = vld [vmem:[%s17790_s7 + $0x1d0] ss:$8 sps:$4 sm:$0xff]   ;;  %v12719_v47 = vld [vmem:[%s17790_s7 + $0xc0] ss:$8 sps:$4 sm:$0xff]   ;;  %v12721_v3 = vld [vmem:[%s17790_s7 + $0xc4] ss:$8 sps:$4 sm:$0xff]  }
 0x348   :  { %v7294_v50 = vcombine.low %v7286_v8, %v7293_v62  ;;  %8406 = vmatprep.subr.bf16.mxu0 %v12676_v6  ;;  %v12727_v21 = vld [vmem:[%s17790_s7 + $0xb4] ss:$8 sps:$4 sm:$0xff]   ;;  %v12722_v8 = vld [vmem:[%s17790_s7 + $0x1c0] ss:$8 sps:$4 sm:$0xff]   ;;  %v12728_v48 = vld [vmem:[%s17790_s7 + $0x1b0] ss:$8 sps:$4 sm:$0xff]  }
 0x349   :  { %v12731_v2 = vld [vmem:[%s17790_s7 + $0xa0] ss:$8 sps:$4 sm:$0xff]   ;;  %v12736_v19 = vld [vmem:[%s17790_s7 + $0x1a4] ss:$8 sps:$4 sm:$0xff]   ;;  %v12737_v12 = vld [vmem:[%s17790_s7 + $0x90] ss:$8 sps:$4 sm:$0xff]  }
 0x34a   :  { %v12742_v36 = vld [vmem:[%s17790_s7 + $0x194] ss:$8 sps:$4 sm:$0xff]   ;;  %v12740_v24 = vld [vmem:[%s17790_s7 + $0x190] ss:$8 sps:$4 sm:$0xff]   ;;  %v12743_v46 = vld [vmem:[%s17790_s7 + $0x80] ss:$8 sps:$4 sm:$0xff]  }
 0x34b   :  { %7478 = vmatmul.mubr.bf16.vlgmr.msra.gmra.mxu1 %v7212_v32  ;;  %8407 = vmatpush1.bf16.msra.mxu0 %v12674_v7  ;;  %v12715_v32 = vld [vmem:[%s17790_s7 + $0xd4] ss:$8 sps:$4 sm:$0xff]   ;;  %v12746_v7 = vld [vmem:[%s17790_s7 + $0x180] ss:$8 sps:$4 sm:$0xff]  }
 0x34c   :  { %7487 = vmatprep.mubr.bf16.mxu1 %v18391_v45  ;;  %8898 = vmatpush1.bf16.msra.mxu1 %v12653_v51  ;;  %v12733_v51 = vld [vmem:[%s17790_s7 + $0xa4] ss:$8 sps:$4 sm:$0xff]  }
 0x34d   :  { %8899 = vmatprep.subr.bf16.mxu1 %v12661_v14  ;;  %8408 = vmatprep.subr.bf16.mxu0 %v12682_v25  ;;  %v12739_v14 = vld [vmem:[%s17790_s7 + $0x94] ss:$8 sps:$4 sm:$0xff]  }
 0x34f   :  { %8409 = vmatpush1.bf16.msra.mxu0 %v12680_v27 }
 0x350   :  { %8410 = vmatprep.subr.bf16.mxu0 %v12688_v11 }
 0x353   :  { %7488 = vmatmul.mubr.bf16.gmra.mxu1 %v7253_v34  ;;  %8411 = vmatpush1.bf16.msra.mxu0 %v12686_v52  ;;  %v12724_v34 = vld [vmem:[%s17790_s7 + $0x1c4] ss:$8 sps:$4 sm:$0xff]  }
 0x354   :  { %7497 = vmatprep.mubr.bf16.mxu1 %v18391_v45  ;;  %8412 = vmatprep.subr.bf16.mxu0 %v12694_v61 }
 0x357   :  { %8413 = vmatpush1.bf16.msra.mxu0 %v12692_v26 }
 0x358   :  { %8414 = vmatprep.subr.bf16.mxu0 %v12700_v60 }
 0x35b   :  { %7498 = vmatmul.mubr.bf16.gmra.mxu1 %v7294_v50  ;;  %8415 = vmatpush1.bf16.msra.mxu0 %v12698_v20  ;;  %v12725_v50 = vld [vmem:[%s17790_s7 + $0xb0] ss:$8 sps:$4 sm:$0xff]  }
 0x35c   :  { %7507 = vmatprep.mubr.bf16.mxu1 %v18391_v45  ;;  %8416 = vmatprep.subr.bf16.mxu0 %v12706_v17 }
 0x35f   :  { %8417 = vmatpush2.bf16.msra.mxu0 %v12704_v16 }
 0x360   :  { %8418 = vmatprep.subr.bf16.mxu0 %v12712_v63 }
 0x363   :  { %7508 = vmatmul.mubr.bf16.gmra.mxu1 %v7343_v43  ;;  %8419 = vmatpush2.bf16.msra.mxu0 %v12710_v44 }
 0x364   :  { %7517 = vmatprep.mubr.bf16.mxu1 %v18391_v45  ;;  %v12659_v45 = vld [vmem:[%s17790_s7 + $0x60] ss:$8 sps:$4 sm:$0xff]   ;;  %8420 = vmatprep.subr.bf16.mxu0 %v12718_v55 }
 0x365   :  { %8900 = vmatpush1.bf16.msra.mxu1 %v12659_v45  ;;  %v12734_v45 = vld [vmem:[%s17790_s7 + $0x1a0] ss:$8 sps:$4 sm:$0xff]  }
 0x366   :  { %8901 = vmatprep.subr.bf16.mxu1 %v12667_v1  ;;  %v12745_v1 = vld [vmem:[%s17790_s7 + $0x84] ss:$8 sps:$4 sm:$0xff]  }
 0x367   :  { %8421 = vmatpush2.bf16.msra.mxu0 %v12716_v40 }
 0x368   :  { %8422 = vmatprep.subr.bf16.mxu0 %v12724_v34 }
 0x369   :  { %8902 = vmatpush1.bf16.msra.mxu1 %v12665_v28 }
 0x36a   :  { %8903 = vmatprep.subr.bf16.mxu1 %v12673_v53 }
 0x36b   :  { %7518 = vmatmul.mubr.bf16.gmra.mxu1 %v7359_v38  ;;  %v12730_v38 = vld [vmem:[%s17790_s7 + $0x1b4] ss:$8 sps:$4 sm:$0xff]   ;;  %8423 = vmatpush2.bf16.msra.mxu0 %v12722_v8 }
 0x36c   :  { %8424 = vmatprep.subr.bf16.mxu0 %v12730_v38 }
 0x36d   :  { %8904 = vmatpush1.bf16.msra.mxu1 %v12671_v49  ;;  %v12748_v49 = vld [vmem:[%s17790_s7 + $0x184] ss:$8 sps:$4 sm:$0xff]  }
 0x36e   :  { %8905 = vmatprep.subr.bf16.mxu1 %v12679_v35 }
 0x36f   :  { %8425 = vmatpush2.bf16.msra.mxu0 %v12728_v48 }
 0x370   :  { %8426 = vmatprep.subr.bf16.mxu0 %v12736_v19 }
 0x371   :  { %8906 = vmatpush1.bf16.msra.mxu1 %v12677_v39 }
 0x372   :  { %8907 = vmatprep.subr.bf16.mxu1 %v12685_v37 }
 0x373   :  { %8427 = vmatpush2.bf16.msra.mxu0 %v12734_v45 }
 0x374   :  { %8428 = vmatprep.subr.bf16.mxu0 %v12742_v36 }
 0x375   :  { %8908 = vmatpush1.bf16.msra.mxu1 %v12683_v57 }
 0x376   :  { %8909 = vmatprep.subr.bf16.mxu1 %v12691_v10 }
 0x377   :  { %8429 = vmatpush2.bf16.msra.mxu0 %v12740_v24 }
 0x378   :  { %8430 = vmatprep.subr.bf16.mxu0 %v12748_v49 }
 0x379   :  { %8910 = vmatpush1.bf16.msra.mxu1 %v12689_v5  ;;  %v12751_v5 = vld [vmem:[%s17790_s7 + $0x274] ss:$8 sps:$4 sm:$0xff]  }
 0x37a   :  { %8911 = vmatprep.subr.bf16.mxu1 %v12697_v30 }
 0x37b   :  { %8431 = vmatpush2.bf16.msra.mxu0 %v12746_v7 }
 0x37c   :  { %9411 = vmatprep.subr.bf16.mxu0 %v12751_v5 }
 0x37d   :  { %8912 = vmatpush1.bf16.msra.mxu1 %v12695_v18 }
 0x37e   :  { %8913 = vmatprep.subr.bf16.mxu1 %v12703_v56 }
 0x381   :  { %8914 = vmatpush2.bf16.msra.mxu1 %v12701_v42 }
 0x382   :  { %8915 = vmatprep.subr.bf16.mxu1 %v12709_v58 }
 0x385   :  { %8916 = vmatpush2.bf16.msra.mxu1 %v12707_v29 }
 0x386   :  { %8917 = vmatprep.subr.bf16.mxu1 %v12715_v32 }
 0x389   :  { %8918 = vmatpush2.bf16.msra.mxu1 %v12713_v0 }
 0x38a   :  { %8919 = vmatprep.subr.bf16.mxu1 %v12721_v3 }
 0x38d   :  { %8920 = vmatpush2.bf16.msra.mxu1 %v12719_v47 }
 0x38e   :  { %8921 = vmatprep.subr.bf16.mxu1 %v12727_v21 }
 0x391   :  { %8922 = vmatpush2.bf16.msra.mxu1 %v12725_v50 }
 0x392   :  { %8923 = vmatprep.subr.bf16.mxu1 %v12733_v51 }
 0x395   :  { %8924 = vmatpush2.bf16.msra.mxu1 %v12731_v2 }
 0x396   :  { %v6230_v43 = vpop.f32.mrf.mxu0  ;;  %8925 = vmatprep.subr.bf16.mxu1 %v12739_v14 }
 0x398   :  { %v6232_v31 = vpop.f32.mrf.mxu0 }
 0x399   :  { %8926 = vmatpush2.bf16.msra.mxu1 %v12737_v12 }
 0x39a   :  { %v6234_v41 = vpop.f32.mrf.mxu0  ;;  %8927 = vmatprep.subr.bf16.mxu1 %v12745_v1 }
 0x39c   :  { %v6236_v54 = vpop.f32.mrf.mxu0 }
 0x39d   :  { %8928 = vmatpush2.bf16.msra.mxu1 %v12743_v46 }
 0x3a5   :  { %v5808_v15 = vpop.f32.mrf.mxu1 }
 0x3a6   :  { %v16392_v59 = vadd.f32 %v6230_v43, %v5808_v15 }
 0x3a7   :  { %v5810_v4 = vpop.f32.mrf.mxu1 }
 0x3a8   :  { %v16394_v23 = vadd.f32 %v6232_v31, %v5810_v4 }
 0x3a9   :  { %v5812_v22 = vpop.f32.mrf.mxu1 }
 0x3aa   :  { %v16405_v33 = vadd.f32 %v6234_v41, %v5812_v22 }
 0x3ab   :  { %v5814_v9 = vpop.f32.mrf.mxu1 }
 0x3ac   :  { %v16416_v62 = vadd.f32 %v6236_v54, %v5814_v9 }
 0x3b6   :  { %v5818_v28 = vpop.f32.mrf.mxu1 }
 0x3b8   :  { %v5820_v53 = vpop.f32.mrf.mxu1 }
 0x3ba   :  { %v5822_v35 = vpop.f32.mrf.mxu1 }
 0x3bc   :  { %v5824_v52 = vpop.f32.mrf.mxu1 }
 0x3bd   :  { %v6240_v6 = vpop.f32.mrf.mxu0 }
 0x3be   :  { %v16466_v39 = vadd.f32 %v6240_v6, %v5818_v28 }
 0x3bf   :  { %v6242_v27 = vpop.f32.mrf.mxu0 }
 0x3c0   :  { %v16468_v25 = vadd.f32 %v6242_v27, %v5820_v53 }
 0x3c1   :  { %v6244_v57 = vpop.f32.mrf.mxu0 }
 0x3c2   :  { %v16470_v37 = vadd.f32 %v6244_v57, %v5822_v35 }
 0x3c3   :  { %v6246_v11 = vpop.f32.mrf.mxu0 }
 0x3c4   :  { %v16475_v10 = vadd.f32 %v6246_v11, %v5824_v52 }
 0x3c5   :  { %v6250_v26 = vpop.f32.mrf.mxu0 }
 0x3c7   :  { %v6252_v18 = vpop.f32.mrf.mxu0 }
 0x3c8   :  { %v5828_v61 = vpop.f32.mrf.mxu1 }
 0x3c9   :  { %v16477_v30 = vadd.f32 %v6250_v26, %v5828_v61  ;;  %v6254_v60 = vpop.f32.mrf.mxu0 }
 0x3ca   :  { %v5830_v20 = vpop.f32.mrf.mxu1 }
 0x3cb   :  { %v16479_v42 = vadd.f32 %v6252_v18, %v5830_v20  ;;  %v6256_v16 = vpop.f32.mrf.mxu0 }
 0x3cc   :  { %v5832_v56 = vpop.f32.mrf.mxu1 }
 0x3cd   :  { %v6255_v17 = vadd.f32 %v6254_v60, %v5832_v56  ;;  %v6260_v43 = vpop.f32.mrf.mxu0 }
 0x3ce   :  { %v5834_v29 = vpop.f32.mrf.mxu1 }
 0x3cf   :  { %v6257_v58 = vadd.f32 %v6256_v16, %v5834_v29  ;;  %v6262_v31 = vpop.f32.mrf.mxu0 }
 0x3d1   :  { %v6264_v44 = vpop.f32.mrf.mxu0 }
 0x3d3   :  { %v5838_v63 = vpop.f32.mrf.mxu1  ;;  %v6266_v0 = vpop.f32.mrf.mxu0 }
 0x3d4   :  { %v6261_v32 = vadd.f32 %v6260_v43, %v5838_v63 }
 0x3d5   :  { %v5840_v15 = vpop.f32.mrf.mxu1  ;;  %v6270_v41 = vpop.f32.mrf.mxu0 }
 0x3d6   :  { %v6263_v4 = vadd.f32 %v6262_v31, %v5840_v15 }
 0x3d7   :  { %v5842_v22 = vpop.f32.mrf.mxu1  ;;  %v6272_v40 = vpop.f32.mrf.mxu0 }
 0x3d8   :  { %v6265_v55 = vadd.f32 %v6264_v44, %v5842_v22 }
 0x3d9   :  { %v5844_v47 = vpop.f32.mrf.mxu1  ;;  %v6274_v3 = vpop.f32.mrf.mxu0 }
 0x3da   :  { %v6267_v34 = vadd.f32 %v6266_v0, %v5844_v47 }
 0x3db   :  { %v5848_v54 = vpop.f32.mrf.mxu1  ;;  %v6275_v9 = vpop.f32.mrf.mxu0 }
 0x3dc   :  { %v6271_v21 = vadd.f32 %v6270_v41, %v5848_v54 }
 0x3dd   :  { %v5850_v8 = vpop.f32.mrf.mxu1  ;;  %v16481_v50 = vpop.f32.mrf.mxu0 }
 0x3de   :  { %v6273_v38 = vadd.f32 %v6272_v40, %v5850_v8 }
 0x3df   :  { %v5852_v51 = vpop.f32.mrf.mxu1  ;;  %v16483_v48 = vpop.f32.mrf.mxu0 }
 0x3e1   :  { %v5853_v2 = vpop.f32.mrf.mxu1  ;;  %v16485_v19 = vpop.f32.mrf.mxu0 }
 0x3e3   :  { %v6645_v45 = vpop.f32.mrf.mxu1  ;;  %v16487_v14 = vpop.f32.mrf.mxu0 }
 0x3e5   :  { %v6647_v12 = vpop.f32.mrf.mxu1 }
 0x3e6   :  { %v16489_v36 = vpop.f32.mrf.mxu0 }
 0x3e7   :  { %v6649_v28 = vpop.f32.mrf.mxu1 }
 0x3e8   :  { %v16491_v1 = vpop.f32.mrf.mxu0 }
 0x3e9   :  { %v6651_v24 = vpop.f32.mrf.mxu1 }
 0x3ea   :  { %v16493_v46 = vpop.f32.mrf.mxu0 }
 0x3eb   :  { %v6655_v49 = vpop.f32.mrf.mxu1 }
 0x3ec   :  { %v16495_v53 = vpop.f32.mrf.mxu0 }
 0x3ed   :  { %v6657_v7 = vpop.f32.mrf.mxu1 }
 0x3ee   :  { %v16497_v6 = vpop.f32.mrf.mxu0 }
 0x3ef   :  { %v16499_v35 = vpop.f32.mrf.mxu1 }
 0x3f0   :  { %v16501_v27 = vpop.f32.mrf.mxu0 }
 0x3f1   :  { %v16503_v57 = vpop.f32.mrf.mxu1 }
 0x3f2   :  { %v7102_v52 = vpop.f32.mrf.mxu0 }
 0x3f3   :  { %v16505_v11 = vpop.f32.mrf.mxu1 }
 0x3f4   :  { %v7104_v5 = vpop.f32.mrf.mxu0 }
 0x3f5   :  { %v16507_v26 = vpop.f32.mrf.mxu1 }
 0x3f6   :  { %v7108_v61 = vpop.f32.mrf.mxu0 }
 0x3f7   :  { %v6669_v18 = vpop.f32.mrf.mxu1 }
 0x3f8   :  { %v7110_v20 = vpop.f32.mrf.mxu0  ;;  %v6702_v60 = vadd.f32 %v6669_v18, %v6255_v17 }
 0x3f9   :  { %v6671_v56 = vpop.f32.mrf.mxu1 }
 0x3fa   :  { %v7112_v16 = vpop.f32.mrf.mxu0  ;;  %v6703_v29 = vadd.f32 %v6671_v56, %v6257_v58  ;;  %v16509_v43 = vadd.f32 %v7102_v52, %v6702_v60  ;;  %v18435_v60 = vld [vmem:[#allocation2_spill] sm:$0xff] }
 0x3fb   :  { %v6675_v31 = vpop.f32.mrf.mxu1  ;;  %v7548_v56 = vsub.s32 0, %v18435_v60 }
 0x3fc   :  { %v7114_v44 = vpop.f32.mrf.mxu0  ;;  %v6704_v63 = vadd.f32 %v6675_v31, %v6261_v32  ;;  %v16511_v0 = vadd.f32 %v7104_v5, %v6703_v29 }
 0x3fd   :  { %v6677_v15 = vpop.f32.mrf.mxu1 }
 0x3fe   :  { %v7118_v41 = vpop.f32.mrf.mxu0  ;;  %v6705_v22 = vadd.f32 %v6677_v15, %v6263_v4  ;;  %v16513_v40 = vadd.f32 %v7108_v61, %v6704_v63  ;;  %v6692_v4 = vadd.f32 %v6645_v45, %v16392_v59  ;;  %v6695_v63 = vadd.f32 %v6651_v24, %v16416_v62 }
 0x3ff   :  { %v6679_v47 = vpop.f32.mrf.mxu1 }
 0x400   :  { %v7120_v3 = vpop.f32.mrf.mxu0  ;;  %v6706_v54 = vadd.f32 %v6679_v47, %v6265_v55  ;;  %v16515_v9 = vadd.f32 %v7110_v20, %v6705_v22  ;;  %v6693_v20 = vadd.f32 %v6647_v12, %v16394_v23  ;;  %v7125_v59 = vadd.f32 %v16481_v50, %v6692_v4 }
 0x401   :  { %v6681_v17 = vpop.f32.mrf.mxu1  ;;  %v6696_v12 = vadd.f32 %v6655_v49, %v16466_v39  ;;  %v6697_v47 = vadd.f32 %v6657_v7, %v16468_v25  ;;  %v6699_v7 = vadd.f32 %v16503_v57, %v16475_v10 }
 0x402   :  { %v7122_v8 = vpop.f32.mrf.mxu0  ;;  %v6707_v58 = vadd.f32 %v6681_v17, %v6267_v34  ;;  %v16517_v51 = vadd.f32 %v7112_v16, %v6706_v54  ;;  %v7544_v34 = vld [vmem:[%s17791_s6] sm:$0x3]  ;;  %v7552_v16 = vsub.s32 1, %v18435_v60 }
 0x403   :  { %v6685_v2 = vpop.f32.mrf.mxu1  ;;  %v7129_v17 = vadd.f32 %v16489_v36, %v6696_v12  ;;  %v7130_v25 = vadd.f32 %v16491_v1, %v6697_v47  ;;  %v6700_v36 = vadd.f32 %v16505_v11, %v16477_v30  ;;  %v7132_v30 = vadd.f32 %v16495_v53, %v6699_v7 }
 0x404   :  { %v7123_v52 = vpop.f32.mrf.mxu0  ;;  %v6708_v32 = vadd.f32 %v6685_v2, %v6271_v21  ;;  %v16519_v5 = vadd.f32 %v7114_v44, %v6707_v58  ;;  %v6694_v44 = vadd.f32 %v6649_v28, %v16405_v33  ;;  %v16542_v23 = vrot.slane %v7544_v34, %v7552_v16 }
 0x405   :  { %v6687_v18 = vpop.f32.mrf.mxu1  ;;  %v6698_v2 = vadd.f32 %v16499_v35, %v16470_v37 }
 0x406   :  { %v6709_v61 = vadd.f32 %v6687_v18, %v6273_v38  ;;  %v16523_v29 = vadd.f32 %v7118_v41, %v6708_v32  ;;  %v16536_v38 = vrot.slane %v7544_v34, %v7548_v56  ;;  %v7126_v41 = vadd.f32 %v16483_v48, %v6693_v20 }
 0x407   :  { %v6689_v55 = vpop.f32.mrf.mxu1  ;;  %v7127_v28 = vadd.f32 %v16485_v19, %v6694_v44  ;;  %v7128_v48 = vadd.f32 %v16487_v14, %v6695_v63  ;;  %v6701_v18 = vadd.f32 %v16507_v26, %v16479_v42  ;;  %v7131_v10 = vadd.f32 %v16493_v46, %v6698_v2 }
 0x408   :  { %v16530_v21 = vadd.f32 %v7120_v3, %v6709_v61  ;;  %v7133_v44 = vadd.f32 %v16497_v6, %v6700_v36 }
 0x409   :  { %v6690_v31 = vpop.f32.mrf.mxu1 }
 0x40b   :  { %v7479_v45 = vpop.f32.mrf.mxu1 }
 0x40c   :  { %v7526_v15 = vadd.f32 %v7479_v45, %v7125_v59  ;;  %v7134_v59 = vadd.f32 %v16501_v27, %v6701_v18 }
 0x40d   :  { %v7481_v22 = vpop.f32.mrf.mxu1 }
 0x40e   :  { %v7556_v33 = vadd.f32 %v16536_v38, %v7526_v15  ;;  %v7527_v50 = vadd.f32 %v7481_v22, %v7126_v41 }
 0x40f   :  { %v7483_v3 = vpop.f32.mrf.mxu1 }
 0x410   :  { %v7557_v62 = vadd.f32 %v16542_v23, %v7527_v50  ;;  %v7528_v24 = vadd.f32 %v7483_v3, %v7127_v28  ;;  %v7574_v8 = vmax.f32 %v7556_v33, 0.0 }
 0x411   :  { %v7485_v54 = vpop.f32.mrf.mxu1 }
 0x412   :  { %v7575_v58 = vmax.f32 %v7557_v62, 0.0  ;;  %v7558_v39 = vadd.f32 %v16536_v38, %v7528_v24  ;;  %v7529_v49 = vadd.f32 %v7485_v54, %v7128_v48 }
 0x413   :  { %v7489_v19 = vpop.f32.mrf.mxu1 }
 0x414   :  { %v11590_v52 = vpack.c.bf16 %v7575_v58, %v7574_v8  ;;  %v7559_v14 = vadd.f32 %v16542_v23, %v7529_v49  ;;  %v7530_v32 = vadd.f32 %v7489_v19, %v7129_v17  ;;  %v7576_v4 = vmax.f32 %v7558_v39, 0.0 }
 0x415   :  { %v7491_v61 = vpop.f32.mrf.mxu1 }
 0x416   :  { %v7620_v37 = vrot.slane %v11590_v52, %v13160_v13  ;;  %v7577_v35 = vmax.f32 %v7559_v14, 0.0  ;;  %v7560_v1 = vadd.f32 %v16536_v38, %v7530_v32  ;;  %v7531_v55 = vadd.f32 %v7491_v61, %v7130_v25 }
 0x417   :  { %v7493_v57 = vpop.f32.mrf.mxu1 }
 0x418   :  { %v7628_v34 = vcombine.high %v7620_v37, %v7620_v37  ;;  %v16566_v20 = vrot.slane %v7620_v37, %v13160_v13  ;;  %v11591_v31 = vpack.c.bf16 %v7577_v35, %v7576_v4  ;;  %v7561_v42 = vadd.f32 %v16542_v23, %v7531_v55 }
 0x419   :  { %v7532_v11 = vadd.f32 %v7493_v57, %v7131_v10  ;;  %v7495_v26 = vpop.f32.mrf.mxu1  ;;  %v7578_v15 = vmax.f32 %v7560_v1, 0.0 }
 0x41a   :  { %v16573_v45 = vrot.slane %v7628_v34, %v13160_v13  ;;  %v16577_v46 = vcombine.high %v16566_v20, %v16566_v20  ;;  %v7627_v63 = vrot.slane %v11591_v31, %v13160_v13  ;;  %v7838_v53 = vunpack.i.h.s16 %v16566_v20 }
 0x41b   :  { %v7579_v41 = vmax.f32 %v7561_v42, 0.0  ;;  %v7562_v12 = vadd.f32 %v16536_v38, %v7532_v11  ;;  %v7533_v22 = vadd.f32 %v7495_v26, %v7132_v30  ;;  %v7499_v33 = vpop.f32.mrf.mxu1 }
 0x41c   :  { %v7629_v6 = vcombine.high %v7627_v63, %v7627_v63  ;;  %v16583_v27 = vrot.slane %v7627_v63, %v13160_v13  ;;  %v7534_v50 = vadd.f32 %v7499_v33, %v7133_v44  ;;  %v16587_v28 = vcombine.high %v16573_v45, %v16573_v45 }
 0x41d   :  { %v11592_v47 = vpack.c.bf16 %v7579_v41, %v7578_v15  ;;  %v7580_v3 = vmax.f32 %v7562_v12, 0.0  ;;  %v7563_v62 = vadd.f32 %v16542_v23, %v7533_v22  ;;  %v7501_v24 = vpop.f32.mrf.mxu1  ;;  %v8499_v48 = vcombine.low %v16566_v20, %v16573_v45 }
 0x41e   :  { %v16593_v54 = vrot.slane %v7629_v6, %v13160_v13  ;;  %v7564_v17 = vadd.f32 %v16536_v38, %v7534_v50  ;;  %v7535_v8 = vadd.f32 %v7501_v24, %v7134_v59  ;;  %v16598_v58 = vcombine.high %v16583_v27, %v16583_v27 }
 0x41f   :  { %v7670_v39 = vrot.slane %v11592_v47, %v13160_v13  ;;  %v7581_v49 = vmax.f32 %v7563_v62, 0.0  ;;  %v7503_v2 = vpop.f32.mrf.mxu1  ;;  %v7846_v19 = vunpack.i.h.s16 %v16583_v27  ;;  %v16603_v25 = vrot.slane %v8499_v48, %v13160_v13 }
 0x420   :  { %v7582_v7 = vmax.f32 %v7564_v17, 0.0  ;;  %v7565_v52 = vadd.f32 %v16542_v23, %v7535_v8  ;;  %v7536_v14 = vadd.f32 %v7503_v2, %v16509_v43  ;;  %v16609_v32 = vcombine.high %v16593_v54, %v16593_v54 }
 0x421   :  { %v7678_v36 = vcombine.high %v7670_v39, %v7670_v39  ;;  %v16612_v18 = vrot.slane %v7670_v39, %v13160_v13  ;;  %v11593_v4 = vpack.c.bf16 %v7581_v49, %v7580_v3  ;;  %v7505_v61 = vpop.f32.mrf.mxu1  ;;  %v11691_v37 = vpack.i.b16 %v7846_v19, %v16587_v28 }
 0x422   :  { %v7583_v35 = vmax.f32 %v7565_v52, 0.0  ;;  %v7566_v1 = vadd.f32 %v16536_v38, %v7536_v14  ;;  %v7537_v55 = vadd.f32 %v7505_v61, %v16511_v0  ;;  %v8501_v43 = vcombine.low %v16593_v54, %v16598_v58 }
 0x423   :  { %v16620_v10 = vrot.slane %v7678_v36, %v13160_v13  ;;  %v16624_v57 = vcombine.high %v16612_v18, %v16612_v18  ;;  %v7677_v34 = vrot.slane %v11593_v4, %v13160_v13  ;;  %v7509_v31 = vpop.f32.mrf.mxu1  ;;  %v8500_v30 = vcombine.low %v16577_v46, %v11691_v37 }
 0x424   :  { %v11594_v42 = vpack.c.bf16 %v7583_v35, %v7582_v7  ;;  %v7584_v11 = vmax.f32 %v7566_v1, 0.0  ;;  %v7567_v26 = vadd.f32 %v16542_v23, %v7537_v55  ;;  %v7538_v0 = vadd.f32 %v7509_v31, %v16513_v40 }
 0x425   :  { %v7679_v44 = vcombine.high %v7677_v34, %v7677_v34  ;;  %v16631_v59 = vrot.slane %v7677_v34, %v13160_v13  ;;  %v7511_v63 = vpop.f32.mrf.mxu1  ;;  %v8502_v15 = vcombine.low %v16609_v32, %v16620_v10  ;;  %v8516_v41 = vrot.slane %v8500_v30, %v13160_v13 }
 0x426   :  { %v7720_v12 = vrot.slane %v11594_v42, %v13160_v13  ;;  %v7585_v22 = vmax.f32 %v7567_v26, 0.0  ;;  %v7568_v33 = vadd.f32 %v16536_v38, %v7538_v0  ;;  %v7539_v6 = vadd.f32 %v7511_v63, %v16515_v9 }
 0x427   :  { %v16640_v50 = vrot.slane %v7679_v44, %v13160_v13  ;;  %v7513_v40 = vpop.f32.mrf.mxu1  ;;  %v8523_v47 = vrot.slane %v8501_v43, %v13160_v13  ;;  %v8530_v3 = vrot.slane %v8502_v15, %v13160_v13  ;;  %v8531_v62 = vcombine.low %v16603_v25, %v8516_v41 }
 0x428   :  { %v7728_v24 = vcombine.high %v7720_v12, %v7720_v12  ;;  %v16646_v48 = vrot.slane %v7720_v12, %v13160_v13  ;;  %v11595_v17 = vpack.c.bf16 %v7585_v22, %v7584_v11  ;;  %v7586_v8 = vmax.f32 %v7568_v33, 0.0 }
 0x429   :  { %v16650_v39 = vcombine.high %v16640_v50, %v16640_v50  ;;  %v7864_v9 = vunpack.i.h.s16 %v16640_v50  ;;  %v7569_v49 = vadd.f32 %v16542_v23, %v7539_v6  ;;  %v7540_v2 = vadd.f32 %v7513_v40, %v16517_v51  ;;  %v7515_v19 = vpop.f32.mrf.mxu1 }
 0x42a   :  { %v16656_v7 = vrot.slane %v7728_v24, %v13160_v13  ;;  %v7727_v52 = vrot.slane %v11595_v17, %v13160_v13  ;;  %v7541_v14 = vadd.f32 %v7515_v19, %v16519_v5  ;;  %v8532_v36 = vcombine.high %v16603_v25, %v8516_v41 }
 0x42b   :  { %v7587_v4 = vmax.f32 %v7569_v49, 0.0  ;;  %v7570_v61 = vadd.f32 %v16536_v38, %v7540_v2  ;;  %v7519_v37 = vpop.f32.mrf.mxu1  ;;  %v8533_v35 = vcombine.low %v8523_v47, %v8530_v3  ;;  %v8534_v1 = vcombine.high %v8523_v47, %v8530_v3 }
 0x42c   :  { %v7729_v55 = vcombine.high %v7727_v52, %v7727_v52  ;;  %v16663_v43 = vrot.slane %v7727_v52, %v13160_v13  ;;  %v7571_v51 = vadd.f32 %v16542_v23, %v7541_v14  ;;  %v7542_v34 = vadd.f32 %v7519_v37, %v16523_v29 }
 0x42d   :  { %v11596_v31 = vpack.c.bf16 %v7587_v4, %v7586_v8  ;;  %v7588_v30 = vmax.f32 %v7570_v61, 0.0  ;;  %v7521_v42 = vpop.f32.mrf.mxu1  ;;  %v8541_v5 = vrot.slane %v8531_v62, %v13160_v13  ;;  %v8548_v25 = vrot.slane %v8532_v36, %v13160_v13 }
 0x42e   :  { %v16670_v11 = vrot.slane %v7729_v55, %v13160_v13  ;;  %v7589_v26 = vmax.f32 %v7571_v51, 0.0  ;;  %v7572_v0 = vadd.f32 %v16536_v38, %v7542_v34  ;;  %v7543_v44 = vadd.f32 %v7521_v42, %v16530_v21 }
 0x42f   :  { %v7770_v63 = vrot.slane %v11596_v31, %v13160_v13  ;;  %v8555_v15 = vrot.slane %v8533_v35, %v13160_v13  ;;  %v8562_v29 = vrot.slane %v8534_v1, %v13160_v13  ;;  %v7523_v41 = vpop.f32.mrf.mxu1  ;;  %v7840_v12 = vunpack.i.h.s16 %v16573_v45 }
 0x430   :  { %v11597_v22 = vpack.c.bf16 %v7589_v26, %v7588_v30  ;;  %v7590_v33 = vmax.f32 %v7572_v0, 0.0  ;;  %v7573_v6 = vadd.f32 %v16542_v23, %v7543_v44  ;;  %v7842_v40 = vunpack.i.h.s16 %v16577_v46 }
 0x431   :  { %v7778_v47 = vcombine.high %v7770_v63, %v7770_v63  ;;  %v16681_v38 = vrot.slane %v7770_v63, %v13160_v13  ;;  %v8563_v21 = vcombine.low %v8541_v5, %v8555_v15  ;;  %v8564_v3 = vcombine.low %v8548_v25, %v8562_v29  ;;  %v7524_v62 = vpop.f32.mrf.mxu1 }
 0x432   :  { %v7777_v24 = vrot.slane %v11597_v22, %v13160_v13  ;;  %v7591_v17 = vmax.f32 %v7573_v6, 0.0  ;;  %v7844_v8 = vunpack.i.h.s16 %v16587_v28  ;;  %v7848_v49 = vunpack.i.h.s16 %v16593_v54 }
 0x433   :  { %v16687_v2 = vrot.slane %v7778_v47, %v13160_v13  ;;  %8929 = vmatprep.mubr.bf16.mxu1 %v8564_v3  ;;  %v7850_v23 = vunpack.i.h.s16 %v16598_v58  ;;  %v7852_v19 = vunpack.i.h.s16 %v16609_v32  ;;  %v7856_v52 = vunpack.i.h.s16 %v16620_v10 }
 0x434   :  { %v7779_v14 = vcombine.high %v7777_v24, %v7777_v24  ;;  %v16693_v36 = vrot.slane %v7777_v24, %v13160_v13  ;;  %v11598_v4 = vpack.c.bf16 %v7591_v17, %v7590_v33  ;;  %8930 = vmatmul.mubr.bf16.vlgmr.msra.gmra.mxu1 %v8563_v21  ;;  %v11631_v61 = vpack.i.b16 %v16573_v45, %v7838_v53 }
 0x435   :  { %v11632_v37 = vpack.i.b16 %v16577_v46, %v7840_v12  ;;  %v11633_v35 = vpack.i.b16 %v16587_v28, %v7842_v40  ;;  %v11634_v1 = vpack.i.b16 %v16593_v54, %v7844_v8  ;;  %v11635_v55 = vpack.i.b16 %v16598_v58, %v7848_v49 }
 0x436   :  { %v16705_v51 = vrot.slane %v7779_v14, %v13160_v13  ;;  %v16709_v34 = vcombine.high %v16693_v36, %v16693_v36  ;;  %v7819_v20 = vrot.slane %v11598_v4, %v13160_v13  ;;  %v11636_v53 = vpack.i.b16 %v16609_v32, %v7850_v23 }
 0x437   :  { %v11637_v31 = vpack.i.b16 %v16612_v18, %v7852_v19  ;;  %v11638_v30 = vpack.i.b16 %v16624_v57, %v7856_v52  ;;  %v8002_v42 = vcombine.low %v11631_v61, %v11632_v37  ;;  %v8003_v5 = vcombine.low %v11633_v35, %v11634_v1 }
 0x438   :  { %v7820_v25 = vcombine.high %v7819_v20, %v7819_v20  ;;  %v16716_v58 = vrot.slane %v7819_v20, %v13160_v13  ;;  %v8004_v26 = vcombine.low %v11635_v55, %v11636_v53  ;;  %v16720_v0 = vcombine.high %v16631_v59, %v16631_v59 }
 0x439   :  { %v8005_v44 = vcombine.low %v11637_v31, %v11638_v30  ;;  %v8012_v63 = vrot.slane %v8002_v42, %v13160_v13  ;;  %v8019_v32 = vrot.slane %v8003_v5, %v13160_v13  ;;  %v11692_v15 = vpack.i.b16 %v7864_v9, %v16631_v59  ;;  %v12749_v42 = vld [vmem:[%s17790_s7 + $0x270] ss:$8 sps:$4 sm:$0xff]  }
 0x43a   :  { %v16728_v29 = vrot.slane %v7820_v25, %v13160_v13  ;;  %v8026_v41 = vrot.slane %v8004_v26, %v13160_v13  ;;  %v11695_v12 = vcombine.high %v16612_v18, %v16620_v10  ;;  %v8567_v22 = vcombine.low %v16650_v39, %v16646_v48 }
 0x43b   :  { %v8033_v33 = vrot.slane %v8005_v44, %v13160_v13  ;;  %v8034_v6 = vcombine.low %v8012_v63, %v8019_v32  ;;  %v8035_v40 = vcombine.high %v8012_v63, %v8019_v32  ;;  %v8566_v47 = vcombine.low %v11692_v15, %v16720_v0  ;;  %v12754_v63 = vld [vmem:[%s17790_s7 + $0x264] ss:$8 sps:$4 sm:$0xff]  }
 0x43c   :  { %v11696_v9 = vcombine.high %v16646_v48, %v16656_v7  ;;  %v8575_v21 = vrot.slane %v11695_v12, %v13160_v13  ;;  %v8589_v3 = vrot.slane %v8567_v22, %v13160_v13  ;;  %v16743_v62 = vcombine.high %v16620_v10, %v16620_v10 }
 0x43d   :  { %v8036_v24 = vcombine.low %v8026_v41, %v8033_v33  ;;  %v8037_v17 = vcombine.high %v8026_v41, %v8033_v33  ;;  %v8044_v8 = vrot.slane %v8034_v6, %v13160_v13  ;;  %v8051_v23 = vrot.slane %v8035_v40, %v13160_v13 }
 0x43e   :  { %v8582_v19 = vrot.slane %v8566_v47, %v13160_v13  ;;  %v8596_v52 = vrot.slane %v11696_v9, %v13160_v13  ;;  %v7758_v14 = vcombine.high %v16646_v48, %v16646_v48  ;;  %v16753_v4 = vcombine.high %v16656_v7, %v16656_v7 }
 0x43f   :  { %v8058_v10 = vrot.slane %v8036_v24, %v13160_v13  ;;  %v8065_v61 = vrot.slane %v8037_v17, %v13160_v13  ;;  %v7858_v37 = vunpack.i.h.s16 %v16624_v57  ;;  %v7860_v35 = vunpack.i.h.s16 %v16743_v62 }
 0x440   :  { %v8598_v1 = vcombine.high %v8575_v21, %v8582_v19  ;;  %v8600_v55 = vcombine.high %v8589_v3, %v8596_v52  ;;  %v8597_v20 = vcombine.low %v8575_v21, %v8582_v19  ;;  %v8599_v53 = vcombine.low %v8589_v3, %v8596_v52  ;;  %v12752_v21 = vld [vmem:[%s17790_s7 + $0x260] ss:$8 sps:$4 sm:$0xff]  }
 0x441   :  { %v8066_v31 = vcombine.low %v8044_v8, %v8058_v10  ;;  %v8067_v30 = vcombine.low %v8051_v23, %v8065_v61  ;;  %v7862_v5 = vunpack.i.h.s16 %v16631_v59  ;;  %v7866_v25 = vunpack.i.h.s16 %v16720_v0  ;;  %v12757_v23 = vld [vmem:[%s17790_s7 + $0x254] ss:$8 sps:$4 sm:$0xff]  }
 0x442   :  { %v8614_v26 = vrot.slane %v8598_v1, %v13160_v13  ;;  %v8628_v44 = vrot.slane %v8600_v55, %v13160_v13  ;;  %v8607_v32 = vrot.slane %v8597_v20, %v13160_v13  ;;  %v8621_v15 = vrot.slane %v8599_v53, %v13160_v13 }
 0x443   :  { %8432 = vmatprep.mubr.bf16.mxu0 %v8067_v30  ;;  %v7868_v41 = vunpack.i.h.s16 %v16650_v39  ;;  %v7870_v12 = vunpack.i.h.s16 %v16646_v48  ;;  %v7874_v22 = vunpack.i.h.s16 %v7758_v14  ;;  %v7876_v33 = vunpack.i.h.s16 %v16753_v4  ;;  %v12755_v30 = vld [vmem:[%s17790_s7 + $0x250] ss:$8 sps:$4 sm:$0xff]  }
 0x444   :  { %8433 = vmatmul.mubr.bf16.vlgmr.msra.gmra.mxu0 %v8066_v31  ;;  %v8630_v6 = vcombine.low %v8614_v26, %v8628_v44  ;;  %v8629_v40 = vcombine.low %v8607_v32, %v8621_v15  ;;  %v11639_v47 = vpack.i.b16 %v16743_v62, %v7858_v37  ;;  %v11640_v9 = vpack.i.b16 %v16631_v59, %v7860_v35  ;;  %v12760_v32 = vld [vmem:[%s17790_s7 + $0x244] ss:$8 sps:$4 sm:$0xff]  }
 0x445   :  { %9412 = vmatpush1.bf16.msra.mxu0 %v12749_v42  ;;  %v11641_v3 = vpack.i.b16 %v16720_v0, %v7862_v5  ;;  %v11642_v24 = vpack.i.b16 %v16650_v39, %v7866_v25  ;;  %v11643_v17 = vpack.i.b16 %v16646_v48, %v7868_v41  ;;  %v11644_v8 = vpack.i.b16 %v16656_v7, %v7870_v12 }
 0x446   :  { %8939 = vmatprep.mubr.bf16.mxu1 %v8630_v6  ;;  %9413 = vmatprep.subr.bf16.mxu0 %v12754_v63  ;;  %v11645_v19 = vpack.i.b16 %v16753_v4, %v7874_v22  ;;  %v11646_v52 = vpack.i.b16 %v16663_v43, %v7876_v33  ;;  %v8068_v14 = vcombine.low %v11639_v47, %v11640_v9  ;;  %v7878_v10 = vunpack.i.h.s16 %v16663_v43 }
 0x447   :  { %8940 = vmatmul.mubr.bf16.gmra.mxu1 %v8629_v40  ;;  %v8069_v61 = vcombine.low %v11641_v3, %v11642_v24  ;;  %v8070_v37 = vcombine.low %v11643_v17, %v11644_v8  ;;  %v16793_v35 = vcombine.high %v16663_v43, %v16663_v43  ;;  %v16797_v1 = vcombine.high %v16670_v11, %v16670_v11  ;;  %v12758_v8 = vld [vmem:[%s17790_s7 + $0x240] ss:$8 sps:$4 sm:$0xff]  }
 0x448   :  { %v8071_v55 = vcombine.low %v11645_v19, %v11646_v52  ;;  %v8078_v20 = vrot.slane %v8068_v14, %v13160_v13  ;;  %v7810_v53 = vcombine.high %v16687_v2, %v16687_v2  ;;  %v8634_v31 = vcombine.low %v16693_v36, %v16705_v51 }
 0x449   :  { %9414 = vmatpush1.bf16.msra.mxu0 %v12752_v21  ;;  %v8085_v42 = vrot.slane %v8069_v61, %v13160_v13  ;;  %v8092_v5 = vrot.slane %v8070_v37, %v13160_v13  ;;  %v7882_v26 = vunpack.i.h.s16 %v16793_v35  ;;  %v8632_v44 = vcombine.low %v16797_v1, %v16681_v38  ;;  %v12763_v37 = vld [vmem:[%s17790_s7 + $0x234] ss:$8 sps:$4 sm:$0xff]  }
 0x44a   :  { %9415 = vmatprep.subr.bf16.mxu0 %v12757_v23  ;;  %v8099_v63 = vrot.slane %v8071_v55, %v13160_v13  ;;  %v8633_v15 = vcombine.low %v16687_v2, %v7810_v53  ;;  %v8662_v41 = vrot.slane %v8634_v31, %v13160_v13  ;;  %v16820_v12 = vcombine.high %v16681_v38, %v16681_v38 }
 0x44b   :  { %v8101_v22 = vcombine.high %v8078_v20, %v8085_v42  ;;  %v8100_v33 = vcombine.low %v8078_v20, %v8085_v42  ;;  %v11693_v6 = vpack.i.b16 %v7882_v26, %v16670_v11  ;;  %v8648_v40 = vrot.slane %v8632_v44, %v13160_v13 }
 0x44c   :  { %v8103_v47 = vcombine.high %v8092_v5, %v8099_v63  ;;  %v8102_v9 = vcombine.low %v8092_v5, %v8099_v63  ;;  %v8655_v21 = vrot.slane %v8633_v15, %v13160_v13  ;;  %v7880_v3 = vunpack.i.h.s16 %v16670_v11  ;;  %v12761_v15 = vld [vmem:[%s17790_s7 + $0x230] ss:$8 sps:$4 sm:$0xff]  }
 0x44d   :  { %9416 = vmatpush1.bf16.msra.mxu0 %v12755_v30  ;;  %v8117_v24 = vrot.slane %v8101_v22, %v13160_v13  ;;  %v8110_v17 = vrot.slane %v8100_v33, %v13160_v13  ;;  %v8631_v23 = vcombine.low %v16663_v43, %v11693_v6  ;;  %v7884_v19 = vunpack.i.h.s16 %v16797_v1 }
 0x44e   :  { %v8131_v52 = vrot.slane %v8103_v47, %v13160_v13  ;;  %v8124_v14 = vrot.slane %v8102_v9, %v13160_v13  ;;  %9417 = vmatprep.subr.bf16.mxu0 %v12760_v32  ;;  %v8666_v61 = vcombine.high %v8655_v21, %v8662_v41  ;;  %v8665_v55 = vcombine.low %v8655_v21, %v8662_v41  ;;  %v12766_v9 = vld [vmem:[%s17790_s7 + $0x224] ss:$8 sps:$4 sm:$0xff]  }
 0x44f   :  { %v8641_v20 = vrot.slane %v8631_v23, %v13160_v13  ;;  %v7886_v31 = vunpack.i.h.s16 %v16681_v38  ;;  %v7888_v30 = vunpack.i.h.s16 %v16687_v2  ;;  %v7892_v42 = vunpack.i.h.s16 %v7810_v53 }
 0x450   :  { %v8133_v5 = vcombine.low %v8117_v24, %v8131_v52  ;;  %v8132_v26 = vcombine.low %v8110_v17, %v8124_v14  ;;  %v8694_v44 = vrot.slane %v8666_v61, %v13160_v13  ;;  %v8687_v63 = vrot.slane %v8665_v55, %v13160_v13 }
 0x451   :  { %9418 = vmatpush1.bf16.msra.mxu0 %v12758_v8  ;;  %v8664_v32 = vcombine.high %v8641_v20, %v8648_v40  ;;  %v8663_v41 = vcombine.low %v8641_v20, %v8648_v40  ;;  %v7894_v22 = vunpack.i.h.s16 %v16693_v36  ;;  %v7896_v33 = vunpack.i.h.s16 %v16705_v51  ;;  %v12764_v20 = vld [vmem:[%s17790_s7 + $0x220] ss:$8 sps:$4 sm:$0xff]  }
 0x452   :  { %8442 = vmatprep.mubr.bf16.mxu0 %v8133_v5  ;;  %9419 = vmatprep.subr.bf16.mxu0 %v12763_v37  ;;  %v11647_v53 = vpack.i.b16 %v16670_v11, %v7878_v10  ;;  %v11648_v6 = vpack.i.b16 %v16797_v1, %v7880_v3  ;;  %v11649_v47 = vpack.i.b16 %v16681_v38, %v7884_v19  ;;  %v7898_v40 = vunpack.i.h.s16 %v16709_v34 }
 0x453   :  { %8443 = vmatmul.mubr.bf16.gmra.mxu0 %v8132_v26  ;;  %v8680_v21 = vrot.slane %v8664_v32, %v13160_v13  ;;  %v8673_v24 = vrot.slane %v8663_v41, %v13160_v13  ;;  %v11650_v17 = vpack.i.b16 %v16687_v2, %v7886_v31  ;;  %v11651_v10 = vpack.i.b16 %v16820_v12, %v7888_v30  ;;  %v12769_v26 = vld [vmem:[%s17790_s7 + $0x214] ss:$8 sps:$4 sm:$0xff]  }
 0x454   :  { %v11652_v3 = vpack.i.b16 %v16693_v36, %v7892_v42  ;;  %v11653_v8 = vpack.i.b16 %v16705_v51, %v7894_v22  ;;  %v11654_v23 = vpack.i.b16 %v16709_v34, %v7896_v33  ;;  %v8134_v52 = vcombine.low %v11647_v53, %v11648_v6 }
 0x455   :  { %v8696_v14 = vcombine.low %v8680_v21, %v8694_v44  ;;  %v8695_v61 = vcombine.low %v8673_v24, %v8687_v63  ;;  %9420 = vmatpush1.bf16.msra.mxu0 %v12761_v15  ;;  %v8135_v37 = vcombine.low %v11649_v47, %v11650_v17  ;;  %v16866_v55 = vcombine.high %v16705_v51, %v16705_v51  ;;  %v12767_v24 = vld [vmem:[%s17790_s7 + $0x210] ss:$8 sps:$4 sm:$0xff]  }
 0x456   :  { %v8136_v31 = vcombine.low %v11651_v10, %v11652_v3  ;;  %v8137_v30 = vcombine.low %v11653_v8, %v11654_v23  ;;  %v8144_v42 = vrot.slane %v8134_v52, %v13160_v13  ;;  %v7835_v5 = vcombine.high %v16716_v58, %v16716_v58  ;;  %9421 = vmatprep.subr.bf16.mxu0 %v12766_v9  ;;  %v12772_v23 = vld [vmem:[%s17790_s7 + $0x204] ss:$8 sps:$4 sm:$0xff]  }
 0x457   :  { %8949 = vmatprep.mubr.bf16.mxu1 %v8696_v14  ;;  %v8151_v44 = vrot.slane %v8135_v37, %v13160_v13  ;;  %v7900_v63 = vunpack.i.h.s16 %v16866_v55  ;;  %v7836_v32 = vcombine.high %v16728_v29, %v16728_v29  ;;  %v7902_v15 = vunpack.i.h.s16 %v16716_v58 }
 0x458   :  { %8950 = vmatmul.mubr.bf16.gmra.mxu1 %v8695_v61  ;;  %v8158_v41 = vrot.slane %v8136_v31, %v13160_v13  ;;  %v8165_v22 = vrot.slane %v8137_v30, %v13160_v13  ;;  %v8698_v33 = vcombine.low %v16728_v29, %v7835_v5  ;;  %v7904_v53 = vunpack.i.h.s16 %v16728_v29 }
 0x459   :  { %v8167_v6 = vcombine.high %v8144_v42, %v8151_v44  ;;  %v11694_v47 = vpack.i.b16 %v7900_v63, %v16709_v34  ;;  %v8166_v9 = vcombine.low %v8144_v42, %v8151_v44  ;;  %9422 = vmatpush1.bf16.msra.mxu0 %v12764_v20  ;;  %v7906_v21 = vunpack.i.h.s16 %v7835_v5 }
 0x45a   :  { %v8169_v17 = vcombine.high %v8158_v41, %v8165_v22  ;;  %v8712_v10 = vrot.slane %v8698_v33, %v13160_v13  ;;  %v8168_v3 = vcombine.low %v8158_v41, %v8165_v22  ;;  %v11655_v8 = vpack.i.b16 %v16716_v58, %v7898_v40  ;;  %9423 = vmatprep.subr.bf16.mxu0 %v12769_v26 }
 0x45b   :  { %v8183_v52 = vrot.slane %v8167_v6, %v13160_v13  ;;  %v8697_v14 = vcombine.low %v11694_v47, %v16716_v58  ;;  %v8176_v61 = vrot.slane %v8166_v9, %v13160_v13  ;;  %v11656_v37 = vpack.i.b16 %v16728_v29, %v7902_v15  ;;  %v12770_v6 = vld [vmem:[%s17790_s7 + $0x200] ss:$8 sps:$4 sm:$0xff]  }
 0x45c   :  { %v8197_v20 = vrot.slane %v8169_v17, %v13160_v13  ;;  %v8190_v31 = vrot.slane %v8168_v3, %v13160_v13  ;;  %v11657_v40 = vpack.i.b16 %v7835_v5, %v7904_v53  ;;  %v11658_v30 = vpack.i.b16 %v7836_v32, %v7906_v21 }
 0x45d   :  { %v8705_v42 = vrot.slane %v8697_v14, %v13160_v13  ;;  %v8200_v26 = vcombine.low %v11655_v8, %v11656_v37  ;;  %9424 = vmatpush1.bf16.msra.mxu0 %v12767_v24  ;;  %v11761_v44 = vpack.i.b16 %v7848_v49, %v16583_v27  ;;  %v9013_v63 = vcombine.low %v16573_v45, %v16577_v46  ;;  %v12775_v45 = vld [vmem:[%s17790_s7 + $0x2f4] ss:$8 sps:$4 sm:$0xff]  }
 0x45e   :  { %v8199_v41 = vcombine.low %v8183_v52, %v8197_v20  ;;  %v8198_v22 = vcombine.low %v8176_v61, %v8190_v31  ;;  %v8201_v33 = vcombine.low %v11657_v40, %v11658_v30  ;;  %9425 = vmatprep.subr.bf16.mxu0 %v12772_v23  ;;  %v11765_v5 = vcombine.high %v16583_v27, %v16593_v54  ;;  %v12776_v30 = vld [vmem:[%s17790_s7 + $0x2e0] ss:$8 sps:$4 sm:$0xff]  }
 0x45f   :  { %v8714_v32 = vcombine.high %v8705_v42, %v8712_v10  ;;  %v8208_v53 = vrot.slane %v8200_v26, %v13160_v13  ;;  %v8713_v47 = vcombine.low %v8705_v42, %v8712_v10  ;;  %v9014_v49 = vcombine.low %v16587_v28, %v11761_v44 }
 0x460   :  { %8452 = vmatprep.mubr.bf16.mxu0 %v8199_v41  ;;  %v8215_v46 = vrot.slane %v8201_v33, %v13160_v13  ;;  %v9016_v9 = vcombine.low %v16612_v18, %v16624_v57  ;;  %v9023_v21 = vrot.slane %v9013_v63, %v13160_v13  ;;  %v9037_v27 = vrot.slane %v11765_v5, %v13160_v13  ;;  %v12773_v57 = vld [vmem:[%s17790_s7 + $0x2f0] ss:$8 sps:$4 sm:$0xff]  }
 0x461   :  { %v8728_v54 = vrot.slane %v8714_v32, %v13160_v13  ;;  %8453 = vmatmul.mubr.bf16.gmra.mxu0 %v8198_v22  ;;  %v8721_v24 = vrot.slane %v8713_v47, %v13160_v13  ;;  %v9030_v28 = vrot.slane %v9014_v49, %v13160_v13  ;;  %v11762_v17 = vpack.i.b16 %v7866_v25, %v16640_v50  ;;  %v12778_v50 = vld [vmem:[%s17790_s7 + $0x2e4] ss:$8 sps:$4 sm:$0xff]  }
 0x462   :  { %v8217_v10 = vcombine.high %v8208_v53, %v8215_v46  ;;  %v8216_v3 = vcombine.low %v8208_v53, %v8215_v46  ;;  %9426 = vmatpush1.bf16.msra.mxu0 %v12770_v6  ;;  %v9044_v18 = vrot.slane %v9016_v9, %v13160_v13  ;;  %v9079_v8 = vcombine.low %v16743_v62, %v16631_v59 }
 0x463   :  { %8959 = vmatprep.mubr.bf16.mxu1 %v8728_v54  ;;  %v9045_v23 = vcombine.low %v9023_v21, %v9030_v28  ;;  %v9046_v52 = vcombine.high %v9023_v21, %v9030_v28  ;;  %9427 = vmatprep.subr.bf16.mxu0 %v12775_v45  ;;  %v9080_v0 = vcombine.low %v11762_v17, %v16650_v39  ;;  %v12782_v21 = vld [vmem:[%s17790_s7 + $0x2c0] ss:$8 sps:$4 sm:$0xff]   ;;  %v12787_v17 = vld [vmem:[%s17790_s7 + $0x2b4] ss:$8 sps:$4 sm:$0xff]  }
 0x464   :  { %v8231_v25 = vrot.slane %v8217_v10, %v13160_v13  ;;  %8960 = vmatmul.mubr.bf16.gmra.mxu1 %v8721_v24  ;;  %v8224_v14 = vrot.slane %v8216_v3, %v13160_v13  ;;  %v9047_v61 = vcombine.low %v9037_v27, %v9044_v18  ;;  %v9048_v37 = vcombine.high %v9037_v27, %v9044_v18 }
 0x465   :  { %v16943_v20 = vrot.slane %v9045_v23, %v13160_v13  ;;  %v9062_v59 = vrot.slane %v9046_v52, %v13160_v13  ;;  %v9081_v62 = vcombine.low %v16646_v48, %v16656_v7  ;;  %v9082_v31 = vcombine.low %v16753_v4, %v16663_v43  ;;  %v12781_v48 = vld [vmem:[%s17790_s7 + $0x2d4] ss:$8 sps:$4 sm:$0xff]  }
 0x466   :  { %8462 = vmatprep.mubr.bf16.mxu0 %v8231_v25  ;;  %v16951_v39 = vrot.slane %v9047_v61, %v13160_v13  ;;  %v9076_v40 = vrot.slane %v9048_v37, %v13160_v13  ;;  %9428 = vmatpush2.bf16.msra.mxu0 %v12773_v57  ;;  %v9089_v42 = vrot.slane %v9079_v8, %v13160_v13  ;;  %v12785_v8 = vld [vmem:[%s17790_s7 + $0x2b0] ss:$8 sps:$4 sm:$0xff]   ;;  %v12788_v25 = vld [vmem:[%s17790_s7 + $0x2a0] ss:$8 sps:$4 sm:$0xff]   ;;  %v12796_v37 = vld [vmem:[%s17790_s7 + $0x284] ss:$8 sps:$4 sm:$0xff]  }
 0x467   :  { %9429 = vmatprep.subr.bf16.mxu0 %v12778_v50  ;;  %v9096_v7 = vrot.slane %v9080_v0, %v13160_v13  ;;  %v9103_v43 = vrot.slane %v9081_v62, %v13160_v13  ;;  %v9110_v4 = vrot.slane %v9082_v31, %v13160_v13  ;;  %v11763_v26 = vpack.i.b16 %v7884_v19, %v16793_v35  ;;  %v12779_v35 = vld [vmem:[%s17790_s7 + $0x2d0] ss:$8 sps:$4 sm:$0xff]  }
 0x468   :  { %v9077_v44 = vcombine.low %v16943_v20, %v16951_v39  ;;  %v9078_v63 = vcombine.low %v9062_v59, %v9076_v40  ;;  %v9146_v41 = vcombine.low %v16681_v38, %v16687_v2  ;;  %v9147_v22 = vcombine.low %v16820_v12, %v16693_v36  ;;  %v12784_v2 = vld [vmem:[%s17790_s7 + $0x2c4] ss:$8 sps:$4 sm:$0xff]   ;;  %v12791_v61 = vld [vmem:[%s17790_s7 + $0x290] ss:$8 sps:$4 sm:$0xff]   ;;  %v12794_v20 = vld [vmem:[%s17790_s7 + $0x280] ss:$8 sps:$4 sm:$0xff]  }
 0x469   :  { %8463 = vmatmul.mubr.bf16.gmra.mxu0 %v8224_v14  ;;  %v9112_v33 = vcombine.high %v9089_v42, %v9096_v7  ;;  %v9114_v6 = vcombine.high %v9103_v43, %v9110_v4  ;;  %v9111_v5 = vcombine.low %v9089_v42, %v9096_v7  ;;  %v9113_v32 = vcombine.low %v9103_v43, %v9110_v4  ;;  %v12793_v14 = vld [vmem:[%s17790_s7 + $0x294] ss:$8 sps:$4 sm:$0xff]   ;;  %v12805_v43 = vld [vmem:[%s17792_s9 + $0x68] sm:$0xff]  }
 0x46a   :  { %9443 = vmatprep.mubr.bf16.mxu0 %v9078_v63  ;;  %9430 = vmatpush2.bf16.msra.mxu0 %v12776_v30  ;;  %v9145_v1 = vcombine.low %v16670_v11, %v11763_v26  ;;  %v9148_v19 = vcombine.low %v16705_v51, %v16709_v34  ;;  %v9162_v38 = vrot.slane %v9146_v41, %v13160_v13  ;;  %v12797_v31 = vld [vmem:[%s17792_s9 + $0x78] sm:$0xff]   ;;  %v12802_v42 = vld [vmem:[%s17792_s9 + $0xf0] sm:$0xff]   ;;  %v12806_v4 = vld [vmem:[%s17792_s9 + $0xe8] sm:$0xff]  }
 0x46b   :  { %9431 = vmatprep.subr.bf16.mxu0 %v12781_v48  ;;  %v9128_v36 = vrot.slane %v9112_v33, %v13160_v13  ;;  %v9142_v12 = vrot.slane %v9114_v6, %v13160_v13  ;;  %v9121_v53 = vrot.slane %v9111_v5, %v13160_v13  ;;  %v9135_v47 = vrot.slane %v9113_v32, %v13160_v13  ;;  %v12798_v39 = vld [vmem:[%s17792_s9 + $0xf8] sm:$0xff]   ;;  %v12803_v48 = vld [vmem:[%s17792_s9 + $0x30] sm:$0xff]   ;;  %v12807_v26 = vld [vmem:[%s17792_s9 + $0x28] sm:$0xff]  }
 0x46c   :  { %v9155_v11 = vrot.slane %v9145_v1, %v13160_v13  ;;  %v9169_v49 = vrot.slane %v9147_v22, %v13160_v13  ;;  %v9176_v51 = vrot.slane %v9148_v19, %v13160_v13  ;;  %v11764_v34 = vpack.i.b16 %v7902_v15, %v16866_v55  ;;  %12017 = vmatprep.subr.bf16.mxu1 %v12797_v31  ;;  %v12799_v40 = vld [vmem:[%s17792_s9 + $0x38] sm:$0xff]   ;;  %v12804_v7 = vld [vmem:[%s17792_s9 + $0xb0] sm:$0xff]   ;;  %v12809_v63 = vld [vmem:[%s17792_s9 + $0x60] sm:$0xff]  }
 0x46d   :  { %v9144_v45 = vcombine.low %v9128_v36, %v9142_v12  ;;  %v9143_v46 = vcombine.low %v9121_v53, %v9135_v47  ;;  %v11766_v9 = vcombine.high %v16716_v58, %v16728_v29  ;;  %v12800_v30 = vld [vmem:[%s17792_s9 + $0xb8] sm:$0xff]   ;;  %12018 = vmatpush3.bf16.msra.mxu1 %v12799_v40  ;;  %v12810_v41 = vld [vmem:[%s17792_s9 + $0xe0] sm:$0xff]   ;;  %v12817_v1 = vld [vmem:[%s17792_s9 + $0x50] sm:$0xff]  }
 0x46e   :  { %9432 = vmatpush2.bf16.msra.mxu0 %v12779_v35  ;;  %v9178_v27 = vcombine.high %v9155_v11, %v9162_v38  ;;  %v9180_v54 = vcombine.high %v9169_v49, %v9176_v51  ;;  %v9177_v24 = vcombine.low %v9155_v11, %v9162_v38  ;;  %v9179_v28 = vcombine.low %v9169_v49, %v9176_v51  ;;  %v12811_v22 = vld [vmem:[%s17792_s9 + $0x20] sm:$0xff]   ;;  %v12813_v6 = vld [vmem:[%s17792_s9 + $0x58] sm:$0xff]   ;;  %v12818_v19 = vld [vmem:[%s17792_s9 + $0xd0] sm:$0xff]  }
 0x46f   :  { %9433 = vmatprep.subr.bf16.mxu0 %v12784_v2  ;;  %v9211_v55 = vcombine.low %v11764_v34, %v16728_v29  ;;  %v9226_v57 = vrot.slane %v11766_v9, %v13160_v13  ;;  %v12790_v29 = vld [vmem:[%s17790_s7 + $0x2a4] ss:$8 sps:$4 sm:$0xff]   ;;  %v12814_v5 = vld [vmem:[%s17792_s9 + $0xd8] sm:$0xff]   ;;  %v12819_v38 = vld [vmem:[%s17792_s9 + $0x10] sm:$0xff]  }
 0x470   :  { %v9194_v15 = vrot.slane %v9178_v27, %v13160_v13  ;;  %v9208_v58 = vrot.slane %v9180_v54, %v13160_v13  ;;  %v9187_v10 = vrot.slane %v9177_v24, %v13160_v13  ;;  %v9201_v3 = vrot.slane %v9179_v28, %v13160_v13  ;;  %v12812_v33 = vld [vmem:[%s17792_s9 + $0xa0] sm:$0xff]   ;;  %v12815_v32 = vld [vmem:[%s17792_s9 + $0x18] sm:$0xff]   ;;  %v12820_v2 = vld [vmem:[%s17792_s9 + $0x90] sm:$0xff]  }
 0x471   :  { %v9219_v18 = vrot.slane %v9211_v55, %v13160_v13  ;;  %v12816_v35 = vld [vmem:[%s17792_s9 + $0x98] sm:$0xff]   ;;  %v12821_v36 = vld [vmem:[%s17792_s9 + $0x48] sm:$0xff]   ;;  %v12825_v11 = vld [vmem:[%s17792_s9 + $0x40] sm:$0xff]  }
 0x472   :  { %9434 = vmatpush2.bf16.msra.mxu0 %v12782_v21  ;;  %v9210_v23 = vcombine.low %v9194_v15, %v9208_v58  ;;  %v9209_v52 = vcombine.low %v9187_v10, %v9201_v3  ;;  %v12822_v12 = vld [vmem:[%s17792_s9 + $0xc8] sm:$0xff]   ;;  %v12826_v49 = vld [vmem:[%s17792_s9 + $0xc0] sm:$0xff]  }
 0x473   :  { %9435 = vmatprep.subr.bf16.mxu0 %v12787_v17  ;;  %v9228_v50 = vcombine.high %v9219_v18, %v9226_v57  ;;  %v9227_v0 = vcombine.low %v9219_v18, %v9226_v57  ;;  %v12823_v53 = vld [vmem:[%s17792_s9 + $0x8] sm:$0xff]   ;;  %v12827_v51 = vld [vmem:[%s17792_s9] sm:$0xff]  }
 0x474   :  { %v12824_v47 = vld [vmem:[%s17792_s9 + $0x88] sm:$0xff]   ;;  %v12828_v34 = vld [vmem:[%s17792_s9 + $0x80] sm:$0xff]  }
 0x475   :  { %v9242_v59 = vrot.slane %v9228_v50, %v13160_v13  ;;  %v9235_v62 = vrot.slane %v9227_v0, %v13160_v13  ;;  %v12801_v13 = vld [vmem:[%s17792_s9 + $0x70] sm:$0xff]  }
 0x476   :  { %9436 = vmatpush2.bf16.msra.mxu0 %v12785_v8  ;;  %12019 = vmatprep.subr.bf16.mxu1 %v12801_v13 }
 0x477   :  { %9437 = vmatprep.subr.bf16.mxu0 %v12790_v29  ;;  %12020 = vmatpush3.bf16.msra.mxu1 %v12803_v48 }
 0x478   :  { %12021 = vmatprep.subr.bf16.mxu1 %v12805_v43 }
 0x47a   :  { %9438 = vmatpush2.bf16.msra.mxu0 %v12788_v25 }
 0x47b   :  { %9439 = vmatprep.subr.bf16.mxu0 %v12793_v14  ;;  %12022 = vmatpush3.bf16.msra.mxu1 %v12807_v26  ;;  %v9496_v26 = vld [vmem:[%s17793_s8] sm:$0x3] }
 0x47c   :  { %12023 = vmatprep.subr.bf16.mxu1 %v12809_v63 }
 0x47e   :  { %9440 = vmatpush2.bf16.msra.mxu0 %v12791_v61 }
 0x47f   :  { %9441 = vmatprep.subr.bf16.mxu0 %v12796_v37  ;;  %12024 = vmatpush3.bf16.msra.mxu1 %v12811_v22  ;;  %v17142_v22 = vrot.slane %v9496_v26, %v7552_v16 }
 0x480   :  { %12025 = vmatprep.subr.bf16.mxu1 %v12813_v6 }
 0x482   :  { %9442 = vmatpush2.bf16.msra.mxu0 %v12794_v20 }
 0x483   :  { %12039 = vmatprep.subr.bf16.mxu0 %v12798_v39  ;;  %12026 = vmatpush3.bf16.msra.mxu1 %v12815_v32 }
 0x484   :  { %12027 = vmatprep.subr.bf16.mxu1 %v12817_v1 }
 0x485   :  { %9444 = vmatmul.mubr.bf16.vlgmr.msra.gmra.mxu0 %v9077_v44  ;;  %v12808_v44 = vld [vmem:[%s17792_s9 + $0xa8] sm:$0xff]  }
 0x486   :  { %9453 = vmatprep.mubr.bf16.mxu0 %v9144_v45  ;;  %12040 = vmatpush3.bf16.msra.mxu0 %v12800_v30  ;;  %v12829_v45 = vld [vmem:[%s17792_s9 + $0x178] sm:$0xff]  }
 0x487   :  { %12041 = vmatprep.subr.bf16.mxu0 %v12802_v42  ;;  %12028 = vmatpush3.bf16.msra.mxu1 %v12819_v38 }
 0x488   :  { %12029 = vmatprep.subr.bf16.mxu1 %v12821_v36 }
 0x48a   :  { %12042 = vmatpush3.bf16.msra.mxu0 %v12804_v7 }
 0x48b   :  { %12043 = vmatprep.subr.bf16.mxu0 %v12806_v4  ;;  %12030 = vmatpush3.bf16.msra.mxu1 %v12823_v53 }
 0x48c   :  { %12031 = vmatprep.subr.bf16.mxu1 %v12825_v11 }
 0x48d   :  { %9454 = vmatmul.mubr.bf16.gmra.mxu0 %v9143_v46  ;;  %v12830_v46 = vld [vmem:[%s17792_s9 + $0x1f8] sm:$0xff]  }
 0x48e   :  { %9463 = vmatprep.mubr.bf16.mxu0 %v9210_v23  ;;  %12044 = vmatpush3.bf16.msra.mxu0 %v12808_v44  ;;  %v17138_v44 = vrot.slane %v9496_v26, %v7548_v56 }
 0x48f   :  { %12045 = vmatprep.subr.bf16.mxu0 %v12810_v41  ;;  %12032 = vmatpush3.bf16.msra.mxu1 %v12827_v51 }
 0x490   :  { %12061 = vmatprep.subr.bf16.mxu1 %v12829_v45 }
 0x492   :  { %12046 = vmatpush3.bf16.msra.mxu0 %v12812_v33 }
 0x493   :  { %12047 = vmatprep.subr.bf16.mxu0 %v12814_v5 }
 0x495   :  { %9464 = vmatmul.mubr.bf16.gmra.mxu0 %v9209_v52 }
 0x496   :  { %9473 = vmatprep.mubr.bf16.mxu0 %v9242_v59  ;;  %12048 = vmatpush3.bf16.msra.mxu0 %v12816_v35 }
 0x497   :  { %12049 = vmatprep.subr.bf16.mxu0 %v12818_v19 }
 0x49a   :  { %12050 = vmatpush3.bf16.msra.mxu0 %v12820_v2 }
 0x49b   :  { %12051 = vmatprep.subr.bf16.mxu0 %v12822_v12 }
 0x49d   :  { %9474 = vmatmul.mubr.bf16.gmra.mxu0 %v9235_v62 }
 0x49e   :  { %12052 = vmatpush3.bf16.msra.mxu0 %v12824_v47 }
 0x49f   :  { %12053 = vmatprep.subr.bf16.mxu0 %v12826_v49 }
 0x4a2   :  { %12054 = vmatpush3.bf16.msra.mxu0 %v12828_v34 }
 0x4a3   :  { %12083 = vmatprep.subr.bf16.mxu0 %v12830_v46 }
 0x4f4   :  { %v8931_v9 = vpop.f32.mrf.mxu1 }
 0x4f6   :  { %v8933_v21 = vpop.f32.mrf.mxu1 }
 0x4f8   :  { %v8935_v27 = vpop.f32.mrf.mxu1 }
 0x4fa   :  { %v8937_v17 = vpop.f32.mrf.mxu1 }
 0x504   :  { %v8434_v54 = vpop.f32.mrf.mxu0 }
 0x505   :  { %v8932_v24 = vadd.f32 %v8931_v9, %v8434_v54 }
 0x506   :  { %v8436_v28 = vpop.f32.mrf.mxu0 }
 0x507   :  { %v8934_v55 = vadd.f32 %v8933_v21, %v8436_v28  ;;  %v8941_v10 = vpop.f32.mrf.mxu1 }
 0x508   :  { %v8438_v15 = vpop.f32.mrf.mxu0 }
 0x509   :  { %v8936_v58 = vadd.f32 %v8935_v27, %v8438_v15  ;;  %v8943_v57 = vpop.f32.mrf.mxu1 }
 0x50a   :  { %v8440_v3 = vpop.f32.mrf.mxu0 }
 0x50b   :  { %v8938_v18 = vadd.f32 %v8937_v17, %v8440_v3  ;;  %v8945_v8 = vpop.f32.mrf.mxu1 }
 0x50d   :  { %v8947_v29 = vpop.f32.mrf.mxu1 }
 0x513   :  { %v8444_v23 = vpop.f32.mrf.mxu0 }
 0x514   :  { %v8942_v52 = vadd.f32 %v8941_v10, %v8444_v23 }
 0x515   :  { %v8446_v50 = vpop.f32.mrf.mxu0 }
 0x516   :  { %v8944_v56 = vadd.f32 %v8943_v57, %v8446_v50 }
 0x517   :  { %v8448_v14 = vpop.f32.mrf.mxu0 }
 0x518   :  { %v8951_v0 = vpop.f32.mrf.mxu1  ;;  %v8946_v38 = vadd.f32 %v8945_v8, %v8448_v14 }
 0x519   :  { %v8450_v37 = vpop.f32.mrf.mxu0 }
 0x51a   :  { %v8953_v25 = vpop.f32.mrf.mxu1  ;;  %v8948_v2 = vadd.f32 %v8947_v29, %v8450_v37 }
 0x51c   :  { %v8955_v61 = vpop.f32.mrf.mxu1 }
 0x51e   :  { %v8957_v20 = vpop.f32.mrf.mxu1 }
 0x521   :  { %v8454_v59 = vpop.f32.mrf.mxu0 }
 0x522   :  { %v8952_v36 = vadd.f32 %v8951_v0, %v8454_v59 }
 0x523   :  { %v8456_v62 = vpop.f32.mrf.mxu0 }
 0x524   :  { %v8961_v31 = vpop.f32.mrf.mxu1  ;;  %v8954_v16 = vadd.f32 %v8953_v25, %v8456_v62 }
 0x525   :  { %v8458_v39 = vpop.f32.mrf.mxu0 }
 0x526   :  { %v8963_v40 = vpop.f32.mrf.mxu1  ;;  %v17148_v12 = vadd.f32 %v8955_v61, %v8458_v39 }
 0x527   :  { %v8460_v30 = vpop.f32.mrf.mxu0 }
 0x528   :  { %v8965_v13 = vpop.f32.mrf.mxu1  ;;  %v17150_v53 = vadd.f32 %v8957_v20, %v8460_v30 }
 0x529   :  { %v8464_v42 = vpop.f32.mrf.mxu0 }
 0x52a   :  { %v8966_v48 = vpop.f32.mrf.mxu1  ;;  %v17152_v47 = vadd.f32 %v8961_v31, %v8464_v42 }
 0x52b   :  { %v8466_v7 = vpop.f32.mrf.mxu0 }
 0x52c   :  { %v17154_v11 = vadd.f32 %v8963_v40, %v8466_v7 }
 0x52d   :  { %v8468_v43 = vpop.f32.mrf.mxu0 }
 0x52f   :  { %v8469_v4 = vpop.f32.mrf.mxu0 }
 0x545   :  { %v9445_v63 = vpop.f32.mrf.mxu0 }
 0x546   :  { %v9482_v41 = vadd.f32 %v9445_v63, %v8932_v24 }
 0x547   :  { %v9447_v33 = vpop.f32.mrf.mxu0 }
 0x548   :  { %v9508_v6 = vadd.f32 %v17138_v44, %v9482_v41  ;;  %v9483_v5 = vadd.f32 %v9447_v33, %v8934_v55 }
 0x549   :  { %v9449_v32 = vpop.f32.mrf.mxu0 }
 0x54a   :  { %v17145_v35 = vmax.f32 %v9508_v6, 0.0  ;;  %v9509_v1 = vadd.f32 %v17142_v22, %v9483_v5  ;;  %v9484_v19 = vadd.f32 %v9449_v32, %v8936_v58 }
 0x54b   :  { %v9451_v60 = vpop.f32.mrf.mxu0 }
 0x54c   :  { %v9538_v49 = vrot.slane %v17145_v35, 6  ;;  %v9572_v51 = vrot.slane %v17145_v35, 1  ;;  %v17158_v34 = vmax.f32 %v9509_v1, 0.0  ;;  %v9537_v46 = vsel %vm9536_vm4, %v17145_v35, 0.0 }
 0x54d   :  { %v9455_v45 = vpop.f32.mrf.mxu0  ;;  %v9604_v9 = vrot.slane %v17145_v35, 2  ;;  %v9510_v21 = vadd.f32 %v17138_v44, %v9484_v19  ;;  %v9485_v27 = vadd.f32 %v9451_v60, %v8938_v18  ;;  %v9632_v15 = vrot.slane %v17145_v35, 3 }
 0x54e   :  { %v9486_v54 = vadd.f32 %v9455_v45, %v8942_v52  ;;  %v9558_v28 = vsel %vm9536_vm4, %v17158_v34, 0.0  ;;  %v9559_v17 = vrot.slane %v17158_v34, 6  ;;  %v9588_v55 = vrot.slane %v17158_v34, 1 }
 0x54f   :  { %v9457_v24 = vpop.f32.mrf.mxu0  ;;  %v17169_v58 = vmax.f32 %v9510_v21, 0.0  ;;  %v9511_v10 = vadd.f32 %v17142_v22, %v9485_v27  ;;  %v9540_v18 = vsel %vm9539_vm5, %v9538_v49, %v9537_v46  ;;  %v17176_v57 = vsel %vm9536_vm4, %v9572_v51, 0.0 }
 0x550   :  { %v9487_v3 = vadd.f32 %v9457_v24, %v8944_v56  ;;  %v9512_v8 = vadd.f32 %v17138_v44, %v9486_v54  ;;  %v9618_v52 = vrot.slane %v17158_v34, 2  ;;  %v9560_v50 = vsel %vm9539_vm5, %v9559_v17, %v9558_v28 }
 0x551   :  { %v9459_v23 = vpop.f32.mrf.mxu0  ;;  %v9541_v29 = vrot.slane %v17169_v58, 4  ;;  %v9589_v0 = vsel %vm9536_vm4, %v9588_v55, 0.0  ;;  %v9648_v25 = vrot.slane %v17158_v34, 3  ;;  %v9574_v14 = vrot.slane %v17169_v58, 7 }
 0x552   :  { %v9576_v61 = vrot.slane %v17169_v58, 5  ;;  %v17188_v37 = vmax.f32 %v9511_v10, 0.0  ;;  %v17190_v20 = vmax.f32 %v9512_v8, 0.0  ;;  %v9513_v62 = vadd.f32 %v17142_v22, %v9487_v3 }
 0x553   :  { %v9461_v59 = vpop.f32.mrf.mxu0  ;;  %v9488_v31 = vadd.f32 %v9459_v23, %v8946_v38  ;;  %v9543_v40 = vsel %vm9542_vm6, %v9541_v29, %v9540_v18  ;;  %v9634_v30 = vrot.slane %v17169_v58, 1 }
 0x554   :  { %v9489_v39 = vadd.f32 %v9461_v59, %v8948_v2  ;;  %v9544_v13 = vrot.slane %v17190_v20, 2  ;;  %v9578_v42 = vrot.slane %v17190_v20, 3  ;;  %v9607_v48 = vrot.slane %v17190_v20, 6 }
 0x555   :  { %v9465_v7 = vpop.f32.mrf.mxu0  ;;  %v9636_v43 = vrot.slane %v17190_v20, 7  ;;  %v17201_v4 = vmax.f32 %v9513_v62, 0.0  ;;  %v9514_v26 = vadd.f32 %v17138_v44, %v9488_v31  ;;  %v9561_v6 = vrot.slane %v17188_v37, 4 }
 0x556   :  { %v9515_v63 = vadd.f32 %v17142_v22, %v9489_v39  ;;  %v9490_v41 = vadd.f32 %v9465_v7, %v8952_v36  ;;  %v9590_v5 = vrot.slane %v17188_v37, 7  ;;  %v9592_v32 = vrot.slane %v17188_v37, 5 }
 0x557   :  { %v9467_v33 = vpop.f32.mrf.mxu0  ;;  %v17208_v1 = vmax.f32 %v9514_v26, 0.0  ;;  %v9563_v38 = vrot.slane %v17201_v4, 2  ;;  %v9562_v36 = vsel %vm9542_vm6, %v9561_v6, %v9560_v50  ;;  %v9594_v45 = vrot.slane %v17201_v4, 3 }
 0x558   :  { %v17210_v19 = vmax.f32 %v9515_v63, 0.0  ;;  %v9491_v56 = vadd.f32 %v9467_v33, %v8954_v16  ;;  %v9516_v2 = vadd.f32 %v17138_v44, %v9490_v41  ;;  %v9591_v51 = vsel %vm9539_vm5, %v9590_v5, %v9589_v0 }
 0x559   :  { %v9469_v60 = vpop.f32.mrf.mxu0  ;;  %v9564_v16 = vsel %vm9545_vm7, %v9563_v38, %v9562_v36  ;;  %v9593_v27 = vsel %vm9542_vm6, %v9592_v32, %v9591_v51  ;;  %v9546_v8 = vsel %vm9545_vm7, %v9544_v13, %v9543_v40  ;;  %v9575_v62 = vsel %vm9539_vm5, %v9574_v14, %v17176_v57 }
 0x55a   :  { %v9517_v46 = vadd.f32 %v17142_v22, %v9491_v56  ;;  %v9492_v21 = vadd.f32 %v9469_v60, %v17148_v12  ;;  %v17225_v54 = vmax.f32 %v9516_v2, 0.0  ;;  %v9565_v28 = vsel %vm9547_vm8, %v17210_v19, %v9564_v16 }
 0x55b   :  { %v9471_v24 = vpop.f32.mrf.mxu0  ;;  %v9595_v55 = vsel %vm9545_vm7, %v9594_v45, %v9593_v27  ;;  %v9596_v10 = vrot.slane %v17210_v19, 1  ;;  %v9548_v0 = vsel %vm9547_vm8, %v17208_v1, %v9546_v8  ;;  %v9577_v41 = vsel %vm9542_vm6, %v9576_v61, %v9575_v62 }
 0x55c   :  { %v17231_v3 = vmax.f32 %v9517_v46, 0.0  ;;  %v9518_v12 = vadd.f32 %v17138_v44, %v9492_v21  ;;  %v9493_v18 = vadd.f32 %v9471_v24, %v17150_v53  ;;  %v9549_v59 = vrot.slane %v17225_v54, 6 }
 0x55d   :  { %v9475_v23 = vpop.f32.mrf.mxu0  ;;  %v9597_v50 = vsel %vm9547_vm8, %v9596_v10, %v9595_v55  ;;  %v9580_v33 = vrot.slane %v17208_v1, 1  ;;  %v9579_v60 = vsel %vm9545_vm7, %v9578_v42, %v9577_v41  ;;  %v9582_v61 = vrot.slane %v17225_v54, 7 }
 0x55e   :  { %v17244_v31 = vmax.f32 %v9518_v12, 0.0  ;;  %v9519_v39 = vadd.f32 %v17142_v22, %v9493_v18  ;;  %v9494_v53 = vadd.f32 %v9475_v23, %v17152_v47  ;;  %v9566_v7 = vrot.slane %v17231_v3, 6 }
 0x55f   :  { %v9477_v40 = vpop.f32.mrf.mxu0  ;;  %v9598_v26 = vrot.slane %v17231_v3, 7  ;;  %v9551_v63 = vsel %vm9550_vm9, %v9549_v59, %v9548_v0  ;;  %v9581_v21 = vsel %vm9547_vm8, %v9580_v33, %v9579_v60  ;;  %v9619_v42 = vsel %vm9536_vm4, %v9618_v52, 0.0 }
 0x560   :  { %v17255_v57 = vmax.f32 %v9519_v39, 0.0  ;;  %v9520_v14 = vadd.f32 %v17138_v44, %v9494_v53  ;;  %v9495_v5 = vadd.f32 %v9477_v40, %v17154_v11  ;;  %v9567_v47 = vsel %vm9550_vm9, %v9566_v7, %v9565_v28 }
 0x561   :  { %v9479_v32 = vpop.f32.mrf.mxu0  ;;  %v9599_v56 = vsel %vm9550_vm9, %v9598_v26, %v9597_v50  ;;  %v9552_v2 = vrot.slane %v17244_v31, 4  ;;  %v9584_v16 = vrot.slane %v17244_v31, 5  ;;  %v9583_v55 = vsel %vm9550_vm9, %v9582_v61, %v9581_v21 }
 0x562   :  { %v17266_v36 = vmax.f32 %v9520_v14, 0.0  ;;  %v9521_v51 = vadd.f32 %v17142_v22, %v9495_v5  ;;  %v9568_v44 = vrot.slane %v17255_v57, 4  ;;  %v9600_v11 = vrot.slane %v17255_v57, 5  ;;  %v12831_v5 = vld [vmem:[%s17792_s9 + $0x138] sm:$0xff]  }
 0x563   :  { %v9480_v45 = vpop.f32.mrf.mxu0  ;;  %v9554_v46 = vsel %vm9553_vm10, %v9552_v2, %v9551_v63  ;;  %v9620_v12 = vsel %vm9539_vm5, %v17188_v37, %v9619_v42  ;;  %v9621_v18 = vrot.slane %v17201_v4, 6  ;;  %v9585_v50 = vsel %vm9553_vm10, %v9584_v16, %v9583_v55 }
 0x564   :  { %v17279_v27 = vmax.f32 %v9521_v51, 0.0  ;;  %v9569_v22 = vsel %vm9553_vm10, %v9568_v44, %v9567_v47  ;;  %v9601_v24 = vsel %vm9553_vm10, %v9600_v11, %v9599_v56  ;;  %v9555_v28 = vrot.slane %v17266_v36, 2  ;;  %v12832_v47 = vld [vmem:[%s17792_s9 + $0x1b8] sm:$0xff]   ;;  %v12833_v45 = vld [vmem:[%s17792_s9 + $0x170] sm:$0xff]  }
 0x565   :  { %v9586_v10 = vrot.slane %v17266_v36, 3  ;;  %v9622_v39 = vsel %vm9542_vm6, %v9621_v18, %v9620_v12  ;;  %v9623_v53 = vrot.slane %v17201_v4, 4  ;;  %v9625_v41 = vrot.slane %v17210_v19, 2 }
 0x566   :  { %v9570_v52 = vrot.slane %v17279_v27, 2  ;;  %v9602_v8 = vrot.slane %v17279_v27, 3  ;;  %v9557_v23 = vsel %vm9556_vm11, %v9555_v28, %v9554_v46  ;;  %v9628_v56 = vrot.slane %v17255_v57, 6  ;;  %v12834_v46 = vld [vmem:[%s17792_s9 + $0x1f0] sm:$0xff]  }
 0x567   :  { %v9740_v0 = vpack.c.bf16 %v9557_v23, %v9557_v23  ;;  %v9587_v62 = vsel %vm9556_vm11, %v9586_v10, %v9585_v50  ;;  %v9624_v32 = vsel %vm9545_vm7, %v9623_v53, %v9622_v39  ;;  %v9630_v61 = vrot.slane %v17279_v27, 4  ;;  %v12835_v23 = vld [vmem:[%s17792_s9 + $0x130] sm:$0xff]   ;;  %v12837_v53 = vld [vmem:[%s17792_s9 + $0x168] sm:$0xff]  }
 0x568   :  { %v9571_v40 = vsel %vm9556_vm11, %v9570_v52, %v9569_v22  ;;  %v9603_v26 = vsel %vm9556_vm11, %v9602_v8, %v9601_v24  ;;  %v9742_v63 = vpack.c.bf16 %v9587_v62, %v9587_v62  ;;  %v9626_v60 = vsel %vm9547_vm8, %v9625_v41, %v9624_v32  ;;  %v12836_v50 = vld [vmem:[%s17792_s9 + $0x1b0] sm:$0xff]  }
 0x569   :  { %v9741_v33 = vpack.c.bf16 %v9571_v40, %v9571_v40  ;;  %v9743_v14 = vpack.c.bf16 %v9603_v26, %v9603_v26  ;;  %v9649_v51 = vsel %vm9536_vm4, %v9648_v25, 0.0  ;;  %v9650_v11 = vrot.slane %v17188_v37, 1  ;;  %v12838_v40 = vld [vmem:[%s17792_s9 + $0x1e8] sm:$0xff]  }
 0x56a   :  { %v9627_v21 = vsel %vm9550_vm9, %v17231_v3, %v9626_v60  ;;  %v9652_v16 = vrot.slane %v17201_v4, 7  ;;  %v9654_v42 = vrot.slane %v17210_v19, 5  ;;  %v9656_v25 = vrot.slane %v17210_v19, 3 }
 0x56b   :  { %10689 = vmatprep.mubr.bf16.mxu1 %v9741_v33  ;;  %10729 = vmatprep.mubr.bf16.mxu0 %v9743_v14  ;;  %v9629_v22 = vsel %vm9553_vm10, %v9628_v56, %v9627_v21  ;;  %v9651_v24 = vsel %vm9539_vm5, %v9650_v11, %v9649_v51  ;;  %v9658_v55 = vrot.slane %v17231_v3, 1  ;;  %v9660_v10 = vrot.slane %v17255_v57, 7  ;;  %v12839_v56 = vld [vmem:[%s17792_s9 + $0x128] sm:$0xff]   ;;  %v12841_v11 = vld [vmem:[%s17792_s9 + $0x160] sm:$0xff]  }
 0x56c   :  { %10690 = vmatmul.mubr.bf16.vlgmr.msra.gmra.mxu1 %v9740_v0  ;;  %10730 = vmatmul.mubr.bf16.vlgmr.msra.gmra.mxu0 %v9742_v63  ;;  %v9631_v12 = vsel %vm9556_vm11, %v9630_v61, %v9629_v22  ;;  %v9653_v18 = vsel %vm9542_vm6, %v9652_v16, %v9651_v24  ;;  %v9662_v8 = vrot.slane %v17279_v27, 5  ;;  %v9605_v0 = vsel %vm9536_vm4, %v9604_v9, 0.0  ;;  %v12842_v16 = vld [vmem:[%s17792_s9 + $0x1e0] sm:$0xff]  }
 0x56d   :  { %12062 = vmatpush3.bf16.msra.mxu1 %v12831_v5  ;;  %12084 = vmatpush3.bf16.msra.mxu0 %v12832_v47  ;;  %v9745_v62 = vpack.c.bf16 %v9631_v12, %v9631_v12  ;;  %v9655_v39 = vsel %vm9545_vm7, %v9654_v42, %v9653_v18  ;;  %v9606_v26 = vsel %vm9539_vm5, %v17169_v58, %v9605_v0  ;;  %v9609_v63 = vrot.slane %v17190_v20, 4  ;;  %v12843_v24 = vld [vmem:[%s17792_s9 + $0x120] sm:$0xff]  }
 0x56e   :  { %12063 = vmatprep.subr.bf16.mxu1 %v12833_v45  ;;  %12085 = vmatprep.subr.bf16.mxu0 %v12834_v46  ;;  %v9657_v9 = vsel %vm9547_vm8, %v9656_v25, %v9655_v39  ;;  %v9608_v41 = vsel %vm9542_vm6, %v9607_v48, %v9606_v26  ;;  %v9611_v33 = vrot.slane %v17208_v1, 2  ;;  %v9633_v47 = vsel %vm9536_vm4, %v9632_v15, 0.0  ;;  %v12840_v15 = vld [vmem:[%s17792_s9 + $0x1a8] sm:$0xff]   ;;  %v12844_v18 = vld [vmem:[%s17792_s9 + $0x1a0] sm:$0xff]   ;;  %v12846_v39 = vld [vmem:[%s17792_s9 + $0x1d8] sm:$0xff]  }
 0x56f   :  { %10769 = vmatprep.mubr.bf16.mxu1 %v9745_v62  ;;  %v9659_v14 = vsel %vm9550_vm9, %v9658_v55, %v9657_v9  ;;  %v9610_v5 = vsel %vm9545_vm7, %v9609_v63, %v9608_v41  ;;  %v9635_v60 = vsel %vm9539_vm5, %v9634_v30, %v9633_v47  ;;  %v9638_v61 = vrot.slane %v17208_v1, 5 }
 0x570   :  { %v9661_v32 = vsel %vm9553_vm10, %v9660_v10, %v9659_v14  ;;  %v9612_v48 = vsel %vm9547_vm8, %v9611_v33, %v9610_v5  ;;  %v9637_v30 = vsel %vm9542_vm6, %v9636_v43, %v9635_v60  ;;  %v9640_v46 = vrot.slane %v17208_v1, 3  ;;  %v12847_v33 = vld [vmem:[%s17792_s9 + $0x118] sm:$0xff]   ;;  %v12849_v60 = vld [vmem:[%s17792_s9 + $0x150] sm:$0xff]  }
 0x571   :  { %12064 = vmatpush3.bf16.msra.mxu1 %v12835_v23  ;;  %12086 = vmatpush3.bf16.msra.mxu0 %v12836_v50  ;;  %v9663_v51 = vsel %vm9556_vm11, %v9662_v8, %v9661_v32  ;;  %v9613_v45 = vsel %vm9550_vm9, %v17225_v54, %v9612_v48  ;;  %v9639_v42 = vsel %vm9545_vm7, %v9638_v61, %v9637_v30  ;;  %v9642_v25 = vrot.slane %v17225_v54, 1  ;;  %v12845_v8 = vld [vmem:[%s17792_s9 + $0x158] sm:$0xff]  }
 0x572   :  { %12065 = vmatprep.subr.bf16.mxu1 %v12837_v53  ;;  %12087 = vmatprep.subr.bf16.mxu0 %v12838_v40  ;;  %v9747_v21 = vpack.c.bf16 %v9663_v51, %v9663_v51  ;;  %v9641_v22 = vsel %vm9547_vm8, %v9640_v46, %v9639_v42  ;;  %v9614_v43 = vrot.slane %v17244_v31, 6  ;;  %v9678_v10 = vrot.slane %v17158_v34, 4  ;;  %v12848_v48 = vld [vmem:[%s17792_s9 + $0x198] sm:$0xff]  }
 0x573   :  { %v17399_v55 = vsel %vm9550_vm9, %v9642_v25, %v9641_v22  ;;  %v9680_v12 = vrot.slane %v17188_v37, 2  ;;  %v9616_v23 = vrot.slane %v17266_v36, 4  ;;  %v9683_v50 = vrot.slane %v17210_v19, 6 }
 0x574   :  { %10809 = vmatprep.mubr.bf16.mxu0 %v9747_v21  ;;  %v9664_v0 = vrot.slane %v17145_v35, 4  ;;  %v9692_v62 = vrot.slane %v17145_v35, 5  ;;  %v9679_v53 = vsel %vm9536_vm4, %v9678_v10, 0.0  ;;  %v9708_v40 = vrot.slane %v17158_v34, 5  ;;  %v12860_v35 = vld [vmem:[%s17792_s9 + $0x180] sm:$0xff]  }
 0x575   :  { %12066 = vmatpush3.bf16.msra.mxu1 %v12839_v56  ;;  %12088 = vmatpush3.bf16.msra.mxu0 %v12840_v15  ;;  %v9666_v26 = vrot.slane %v17169_v58, 2  ;;  %v9681_v63 = vsel %vm9539_vm5, %v9680_v12, %v9679_v53  ;;  %v9710_v9 = vrot.slane %v17188_v37, 3  ;;  %v9712_v41 = vrot.slane %v17201_v4, 1 }
 0x576   :  { %12067 = vmatprep.subr.bf16.mxu1 %v12841_v11  ;;  %12089 = vmatprep.subr.bf16.mxu0 %v12842_v16  ;;  %v9615_v14 = vsel %vm9553_vm10, %v9614_v43, %v9613_v45  ;;  %v9682_v5 = vsel %vm9542_vm6, %v17201_v4, %v9681_v63  ;;  %v9709_v47 = vsel %vm9536_vm4, %v9708_v40, 0.0  ;;  %v9714_v32 = vrot.slane %v17210_v19, 7  ;;  %v12850_v45 = vld [vmem:[%s17792_s9 + $0x1d0] sm:$0xff]   ;;  %v12854_v40 = vld [vmem:[%s17792_s9 + $0x1c8] sm:$0xff]  }
 0x577   :  { %v9694_v56 = vrot.slane %v17169_v58, 3  ;;  %v17438_v61 = vsel %vm9556_vm11, %v9616_v23, %v9615_v14  ;;  %v9684_v51 = vsel %vm9545_vm7, %v9683_v50, %v9682_v5  ;;  %v9711_v15 = vsel %vm9539_vm5, %v9710_v9, %v9709_v47  ;;  %v12853_v23 = vld [vmem:[%s17792_s9 + $0x148] sm:$0xff]  }
 0x578   :  { %v9696_v11 = vrot.slane %v17190_v20, 1  ;;  %v9644_v30 = vrot.slane %v17244_v31, 7  ;;  %v9713_v46 = vsel %vm9542_vm6, %v9712_v41, %v9711_v15  ;;  %v9665_v21 = vsel %vm9536_vm4, %v9664_v0, 0.0 }
 0x579   :  { %12068 = vmatpush3.bf16.msra.mxu1 %v12843_v24  ;;  %12090 = vmatpush3.bf16.msra.mxu0 %v12844_v18  ;;  %v9685_v16 = vrot.slane %v17231_v3, 4  ;;  %v9715_v42 = vsel %vm9545_vm7, %v9714_v32, %v9713_v46  ;;  %v9667_v25 = vsel %vm9539_vm5, %v9666_v26, %v9665_v21  ;;  %v9669_v22 = vrot.slane %v17208_v1, 6  ;;  %v12851_v24 = vld [vmem:[%s17792_s9 + $0x110] sm:$0xff]   ;;  %v12855_v32 = vld [vmem:[%s17792_s9 + $0x108] sm:$0xff]  }
 0x57a   :  { %12069 = vmatprep.subr.bf16.mxu1 %v12845_v8  ;;  %12091 = vmatprep.subr.bf16.mxu0 %v12846_v39  ;;  %v9744_v43 = vpack.c.bf16 %v17438_v61, %v17438_v61  ;;  %v9646_v10 = vrot.slane %v17266_v36, 5  ;;  %v9668_v12 = vsel %vm9542_vm6, %v17190_v20, %v9667_v25  ;;  %v9671_v18 = vrot.slane %v17225_v54, 4  ;;  %v12852_v8 = vld [vmem:[%s17792_s9 + $0x190] sm:$0xff]   ;;  %v12858_v25 = vld [vmem:[%s17792_s9 + $0x1c0] sm:$0xff]   ;;  %v12869_v61 = vld [vmem:[%s17792_s9 + $0x268] sm:$0xff]  }
 0x57b   :  { %v9687_v50 = vrot.slane %v17231_v3, 2  ;;  %v9690_v0 = vrot.slane %v17279_v27, 6  ;;  %v9670_v39 = vsel %vm9545_vm7, %v9669_v22, %v9668_v12  ;;  %v9673_v53 = vrot.slane %v17225_v54, 2 }
 0x57c   :  { %v9716_v26 = vrot.slane %v17231_v3, 5  ;;  %v9718_v63 = vrot.slane %v17255_v57, 3  ;;  %v9672_v9 = vsel %vm9547_vm8, %v9671_v18, %v9670_v39  ;;  %v9676_v41 = vrot.slane %v17266_v36, 6  ;;  %v12859_v39 = vld [vmem:[%s17792_s9 + $0x100] sm:$0xff]  }
 0x57d   :  { %12070 = vmatpush3.bf16.msra.mxu1 %v12847_v33  ;;  %12092 = vmatpush3.bf16.msra.mxu0 %v12848_v48  ;;  %v9686_v33 = vsel %vm9547_vm8, %v9685_v16, %v9684_v51  ;;  %v9674_v14 = vsel %vm9550_vm9, %v9673_v53, %v9672_v9  ;;  %v9693_v5 = vsel %vm9536_vm4, %v9692_v62, 0.0  ;;  %v9698_v47 = vrot.slane %v17208_v1, 7  ;;  %v12856_v62 = vld [vmem:[%s17792_s9 + $0x188] sm:$0xff]   ;;  %v12862_v53 = vld [vmem:[%s17792_s9 + $0x2f8] sm:$0xff]   ;;  %v12867_v9 = vld [vmem:[%s17792_s9 + $0x230] sm:$0xff]  }
 0x57e   :  { %12071 = vmatprep.subr.bf16.mxu1 %v12849_v60  ;;  %12093 = vmatprep.subr.bf16.mxu0 %v12850_v45  ;;  %v9720_v48 = vrot.slane %v17255_v57, 1  ;;  %v9675_v60 = vsel %vm9553_vm10, %v17244_v31, %v9674_v14  ;;  %v9695_v15 = vsel %vm9539_vm5, %v9694_v56, %v9693_v5  ;;  %v9700_v51 = vrot.slane %v17225_v54, 5  ;;  %v12857_v45 = vld [vmem:[%s17792_s9 + $0x140] sm:$0xff]  }
 0x57f   :  { %v17498_v46 = vsel %vm9556_vm11, %v9676_v41, %v9675_v60  ;;  %v9697_v21 = vsel %vm9542_vm6, %v9696_v11, %v9695_v15  ;;  %v9702_v16 = vrot.slane %v17244_v31, 3  ;;  %v9704_v56 = vrot.slane %v17244_v31, 1  ;;  %v12865_v31 = vld [vmem:[%s17792_s9 + $0x270] sm:$0xff]   ;;  %v12871_v41 = vld [vmem:[%s17792_s9 + $0x228] sm:$0xff]   ;;  %v12873_v14 = vld [vmem:[%s17792_s9 + $0x260] sm:$0xff]  }
 0x580   :  { %v9688_v22 = vsel %vm9550_vm9, %v9687_v50, %v9686_v33  ;;  %v9706_v12 = vrot.slane %v17266_v36, 7  ;;  %v9732_v18 = vsel %vm9536_vm4, %v9559_v17, 0.0  ;;  %v9717_v11 = vsel %vm9547_vm8, %v9716_v26, %v9715_v42  ;;  %v12872_v33 = vld [vmem:[%s17792_s9 + $0x2a8] sm:$0xff]   ;;  %v12874_v5 = vld [vmem:[%s17792_s9 + $0x2e0] sm:$0xff]   ;;  %v12878_v60 = vld [vmem:[%s17792_s9 + $0x2d8] sm:$0xff]  }
 0x581   :  { %12072 = vmatpush3.bf16.msra.mxu1 %v12851_v24  ;;  %12094 = vmatpush3.bf16.msra.mxu0 %v12852_v8  ;;  %v9699_v24 = vsel %vm9545_vm7, %v9698_v47, %v9697_v21  ;;  %v9724_v50 = vsel %vm9536_vm4, %v9538_v49, 0.0  ;;  %v9719_v34 = vsel %vm9550_vm9, %v9718_v63, %v9717_v11  ;;  %v12861_v49 = vld [vmem:[%s17792_s9 + $0x278] sm:$0xff]   ;;  %v12866_v63 = vld [vmem:[%s17792_s9 + $0x2f0] sm:$0xff]   ;;  %v12875_v47 = vld [vmem:[%s17792_s9 + $0x220] sm:$0xff]  }
 0x582   :  { %12073 = vmatprep.subr.bf16.mxu1 %v12853_v23  ;;  %12095 = vmatprep.subr.bf16.mxu0 %v12854_v40  ;;  %v9701_v8 = vsel %vm9547_vm8, %v9700_v51, %v9699_v24  ;;  %v9733_v23 = vsel %vm9539_vm5, %v9561_v6, %v9732_v18  ;;  %v9725_v37 = vsel %vm9539_vm5, %v9541_v29, %v9724_v50  ;;  %v9722_v6 = vrot.slane %v17279_v27, 7  ;;  %v12879_v15 = vld [vmem:[%s17792_s9 + $0x218] sm:$0xff]   ;;  %v12883_v21 = vld [vmem:[%s17792_s9 + $0x210] sm:$0xff]   ;;  %v12888_v24 = vld [vmem:[%s17792_s9 + $0x288] sm:$0xff]  }
 0x583   :  { %v9703_v17 = vsel %vm9550_vm9, %v9702_v16, %v9701_v8  ;;  %v9734_v42 = vsel %vm9542_vm6, %v9563_v38, %v9733_v23  ;;  %v9726_v58 = vsel %vm9542_vm6, %v9544_v13, %v9725_v37  ;;  %v9645_v29 = vsel %vm9553_vm10, %v9644_v30, %v17399_v55  ;;  %v12880_v51 = vld [vmem:[%s17792_s9 + $0x298] sm:$0xff]   ;;  %v12884_v16 = vld [vmem:[%s17792_s9 + $0x290] sm:$0xff]   ;;  %v12890_v18 = vld [vmem:[%s17792_s9 + $0x2c0] sm:$0xff]  }
 0x584   :  { %v9705_v4 = vsel %vm9553_vm10, %v9704_v56, %v9703_v17  ;;  %v9735_v38 = vsel %vm9545_vm7, %v17210_v19, %v9734_v42  ;;  %v9727_v20 = vsel %vm9545_vm7, %v17208_v1, %v9726_v58  ;;  %v9647_v13 = vsel %vm9556_vm11, %v9646_v10, %v9645_v29  ;;  %v12863_v1 = vld [vmem:[%s17792_s9 + $0x238] sm:$0xff]   ;;  %v12885_v56 = vld [vmem:[%s17792_s9 + $0x248] sm:$0xff]   ;;  %v12891_v11 = vld [vmem:[%s17792_s9 + $0x200] sm:$0xff]  }
 0x585   :  { %12074 = vmatpush3.bf16.msra.mxu1 %v12855_v32  ;;  %12096 = vmatpush3.bf16.msra.mxu0 %v12856_v62  ;;  %v17552_v40 = vsel %vm9556_vm11, %v9706_v12, %v9705_v4  ;;  %v9736_v19 = vsel %vm9547_vm8, %v9566_v7, %v9735_v38  ;;  %v9689_v55 = vsel %vm9553_vm10, %v17255_v57, %v9688_v22  ;;  %v12876_v32 = vld [vmem:[%s17792_s9 + $0x2a0] sm:$0xff]   ;;  %v12881_v62 = vld [vmem:[%s17792_s9 + $0x250] sm:$0xff]   ;;  %v12887_v22 = vld [vmem:[%s17792_s9 + $0x208] sm:$0xff]   ;;  %v18436_v42 = vmov 0.0  }
 0x586   :  { %12075 = vmatprep.subr.bf16.mxu1 %v12857_v45  ;;  %12097 = vmatprep.subr.bf16.mxu0 %v12858_v25  ;;  %v9737_v30 = vsel %vm9550_vm9, %v9568_v44, %v9736_v19  ;;  %v9728_v3 = vsel %vm9547_vm8, %v9549_v59, %v9727_v20  ;;  %v9691_v7 = vsel %vm9556_vm11, %v9690_v0, %v9689_v55  ;;  %v12864_v59 = vld [vmem:[%s17792_s9 + $0x2b8] sm:$0xff]   ;;  %v12882_v45 = vld [vmem:[%s17792_s9 + $0x2d0] sm:$0xff]   ;;  %v12886_v25 = vld [vmem:[%s17792_s9 + $0x2c8] sm:$0xff]  }
 0x587   :  { %v9721_v10 = vsel %vm9553_vm10, %v9720_v48, %v9719_v34  ;;  %v9738_v57 = vsel %vm9553_vm10, %v9570_v52, %v9737_v30  ;;  %v9729_v54 = vsel %vm9550_vm9, %v9552_v2, %v9728_v3  ;;  %v9746_v26 = vpack.c.bf16 %v9647_v13, %v9647_v13  ;;  %v12877_v48 = vld [vmem:[%s17792_s9 + $0x258] sm:$0xff]   ;;  %v12889_v12 = vld [vmem:[%s17792_s9 + $0x240] sm:$0xff]   ;;  %v12895_v34 = vld [vmem:[%s17792_s9 + $0x370] sm:$0xff]  }
 0x588   :  { %v9723_v44 = vsel %vm9556_vm11, %v9722_v6, %v9721_v10  ;;  %v17589_v0 = vsel %vm9556_vm11, %v17279_v27, %v9738_v57  ;;  %v9730_v52 = vsel %vm9553_vm10, %v9555_v28, %v9729_v54  ;;  %v9749_v27 = vpack.c.bf16 %v9691_v7, %v9691_v7  ;;  %v12892_v8 = vld [vmem:[%s17792_s9 + $0x280] sm:$0xff]   ;;  %v12893_v23 = vld [vmem:[%s17792_s9 + $0x378] sm:$0xff]   ;;  %v12903_v29 = vld [vmem:[%s17792_s9 + $0x350] sm:$0xff]  }
 0x589   :  { %12076 = vmatpush3.bf16.msra.mxu1 %v12859_v39  ;;  %12098 = vmatpush3.bf16.msra.mxu0 %v12860_v35  ;;  %v17599_v2 = vsel %vm9556_vm11, %v17266_v36, %v9730_v52  ;;  %v9751_v28 = vpack.c.bf16 %v9723_v44, %v9723_v44  ;;  %v12868_v36 = vld [vmem:[%s17792_s9 + $0x2b0] sm:$0xff]   ;;  %v12894_v50 = vld [vmem:[%s17792_s9 + $0x338] sm:$0xff]   ;;  %v9748_v39 = vpack.c.bf16 %v17498_v46, %v17498_v46  ;;  %v12897_v35 = vld [vmem:[%s17792_s9 + $0x368] sm:$0xff]  }
 0x58a   :  { %12105 = vmatprep.subr.bf16.mxu1 %v12861_v49  ;;  %12127 = vmatprep.subr.bf16.mxu0 %v12862_v53  ;;  %v9750_v17 = vpack.c.bf16 %v17552_v40, %v17552_v40  ;;  %v9753_v37 = vpack.c.bf16 %v17589_v0, %v17589_v0  ;;  %v12896_v46 = vld [vmem:[%s17792_s9 + $0x330] sm:$0xff]   ;;  %v12898_v49 = vld [vmem:[%s17792_s9 + $0x328] sm:$0xff]   ;;  %v12899_v6 = vld [vmem:[%s17792_s9 + $0x360] sm:$0xff]   ;;  %v9752_v55 = vpack.c.bf16 %v17599_v2, %v17599_v2 }
 0x58b   :  { %v12900_v4 = vld [vmem:[%s17792_s9 + $0x320] sm:$0xff]   ;;  %v12901_v38 = vld [vmem:[%s17792_s9 + $0x358] sm:$0xff]   ;;  %v12904_v53 = vld [vmem:[%s17792_s9 + $0x310] sm:$0xff]  }
 0x58c   :  { %10770 = vmatmul.mubr.bf16.vlgmr.msra.gmra.mxu1 %v9744_v43  ;;  %10810 = vmatmul.mubr.bf16.vlgmr.msra.gmra.mxu0 %v9746_v26  ;;  %v12870_v43 = vld [vmem:[%s17792_s9 + $0x2e8] sm:$0xff]   ;;  %v12902_v58 = vld [vmem:[%s17792_s9 + $0x318] sm:$0xff]   ;;  %v12907_v20 = vld [vmem:[%s17792_s9 + $0x340] sm:$0xff]  }
 0x58d   :  { %12106 = vmatpush3.bf16.msra.mxu1 %v12863_v1  ;;  %10849 = vmatprep.mubr.bf16.mxu1 %v9749_v27  ;;  %v12905_v40 = vld [vmem:[%s17792_s9 + $0x348] sm:$0xff]   ;;  %v12908_v13 = vld [vmem:[%s17792_s9 + $0x300] sm:$0xff]   ;;  %v12909_v30 = vld [vmem:[%s17794_s11 + $0x38] sm:$0xff]  }
 0x58e   :  { %12128 = vmatpush3.bf16.msra.mxu0 %v12864_v59  ;;  %10889 = vmatprep.mubr.bf16.mxu0 %v9751_v28  ;;  %v12906_v19 = vld [vmem:[%s17792_s9 + $0x308] sm:$0xff]   ;;  %v12910_v3 = vld [vmem:[%s17794_s11 + $0x30] sm:$0xff]   ;;  %v12912_v7 = vld [vmem:[%s17794_s11 + $0x20] sm:$0xff]  }
 0x58f   :  { %12107 = vmatprep.subr.bf16.mxu1 %v12865_v31  ;;  %12129 = vmatprep.subr.bf16.mxu0 %v12866_v63  ;;  %v12911_v1 = vld [vmem:[%s17794_s11 + $0x28] sm:$0xff]   ;;  %v12913_v10 = vld [vmem:[%s17794_s11 + $0x18] sm:$0xff]   ;;  %v12914_v57 = vld [vmem:[%s17794_s11 + $0x10] sm:$0xff]  }
 0x590   :  { %v12915_v54 = vld [vmem:[%s17794_s11 + $0x8] sm:$0xff]   ;;  %v12916_v59 = vld [vmem:[%s17794_s11] sm:$0xff]  }
 0x591   :  { %12108 = vmatpush3.bf16.msra.mxu1 %v12867_v9  ;;  %v11799_v52 = vld [vmem:[%s17795_s10] ss:$0 sm:$0xff] }
 0x592   :  { %12130 = vmatpush3.bf16.msra.mxu0 %v12868_v36  ;;  %12109 = vmatprep.subr.bf16.mxu1 %v12869_v61 }
 0x593   :  { %12131 = vmatprep.subr.bf16.mxu0 %v12870_v43 }
 0x595   :  { %12110 = vmatpush3.bf16.msra.mxu1 %v12871_v41 }
 0x596   :  { %12132 = vmatpush3.bf16.msra.mxu0 %v12872_v33  ;;  %12111 = vmatprep.subr.bf16.mxu1 %v12873_v14 }
 0x597   :  { %12133 = vmatprep.subr.bf16.mxu0 %v12874_v5 }
 0x599   :  { %12112 = vmatpush3.bf16.msra.mxu1 %v12875_v47 }
 0x59a   :  { %12134 = vmatpush3.bf16.msra.mxu0 %v12876_v32  ;;  %12113 = vmatprep.subr.bf16.mxu1 %v12877_v48 }
 0x59b   :  { %12135 = vmatprep.subr.bf16.mxu0 %v12878_v60 }
 0x59d   :  { %12114 = vmatpush3.bf16.msra.mxu1 %v12879_v15 }
 0x59e   :  { %12136 = vmatpush3.bf16.msra.mxu0 %v12880_v51  ;;  %12115 = vmatprep.subr.bf16.mxu1 %v12881_v62 }
 0x59f   :  { %12137 = vmatprep.subr.bf16.mxu0 %v12882_v45 }
 0x5a1   :  { %12116 = vmatpush3.bf16.msra.mxu1 %v12883_v21 }
 0x5a2   :  { %12138 = vmatpush3.bf16.msra.mxu0 %v12884_v16  ;;  %12117 = vmatprep.subr.bf16.mxu1 %v12885_v56 }
 0x5a3   :  { %12139 = vmatprep.subr.bf16.mxu0 %v12886_v25 }
 0x5a5   :  { %12118 = vmatpush3.bf16.msra.mxu1 %v12887_v22 }
 0x5a6   :  { %12140 = vmatpush3.bf16.msra.mxu0 %v12888_v24  ;;  %12119 = vmatprep.subr.bf16.mxu1 %v12889_v12 }
 0x5a7   :  { %12141 = vmatprep.subr.bf16.mxu0 %v12890_v18 }
 0x5a9   :  { %12120 = vmatpush3.bf16.msra.mxu1 %v12891_v11 }
 0x5aa   :  { %12142 = vmatpush3.bf16.msra.mxu0 %v12892_v8  ;;  %12149 = vmatprep.subr.bf16.mxu1 %v12893_v23 }
 0x5ab   :  { %12470 = vmatprep.subr.bf16.mxu0 %v18436_v42 }
 0x5ac   :  { %10850 = vmatmul.mubr.bf16.vlgmr.msra.gmra.mxu1 %v9748_v39 }
 0x5ad   :  { %10890 = vmatmul.mubr.bf16.vlgmr.msra.gmra.mxu0 %v9750_v17  ;;  %12150 = vmatpush3.bf16.msra.mxu1 %v12894_v50 }
 0x5ae   :  { %10929 = vmatprep.mubr.bf16.mxu1 %v9753_v37  ;;  %12151 = vmatprep.subr.bf16.mxu1 %v12895_v34 }
 0x5af   :  { %12486 = vmatprep.mubr.msk.bf16.mxu0 %vm12918_vm2, %v18436_v42  ;;  %12471 = vmatpush3.bf16.msra.mxu0 %v12909_v30 }
 0x5b0   :  { %12472 = vmatprep.subr.bf16.mxu0 %v18436_v42 }
 0x5b1   :  { %12152 = vmatpush3.bf16.msra.mxu1 %v12896_v46 }
 0x5b2   :  { %12153 = vmatprep.subr.bf16.mxu1 %v12897_v35 }
 0x5b3   :  { %12473 = vmatpush3.bf16.msra.mxu0 %v12910_v3 }
 0x5b4   :  { %12474 = vmatprep.subr.bf16.mxu0 %v18436_v42 }
 0x5b5   :  { %12154 = vmatpush3.bf16.msra.mxu1 %v12898_v49 }
 0x5b6   :  { %12155 = vmatprep.subr.bf16.mxu1 %v12899_v6  ;;  %v11912_v6 = vld [vmem:[%s17796_s12] ss:$0 sm:$0xff] }
 0x5b7   :  { %12475 = vmatpush3.bf16.msra.mxu0 %v12911_v1 }
 0x5b8   :  { %12476 = vmatprep.subr.bf16.mxu0 %v18436_v42 }
 0x5b9   :  { %12156 = vmatpush3.bf16.msra.mxu1 %v12900_v4 }
 0x5ba   :  { %12157 = vmatprep.subr.bf16.mxu1 %v12901_v38 }
 0x5bb   :  { %12477 = vmatpush3.bf16.msra.mxu0 %v12912_v7 }
 0x5bc   :  { %12478 = vmatprep.subr.bf16.mxu0 %v18436_v42 }
 0x5bd   :  { %12158 = vmatpush3.bf16.msra.mxu1 %v12902_v58 }
 0x5be   :  { %12159 = vmatprep.subr.bf16.mxu1 %v12903_v29 }
 0x5bf   :  { %12479 = vmatpush3.bf16.msra.mxu0 %v12913_v10 }
 0x5c0   :  { %12480 = vmatprep.subr.bf16.mxu0 %v18436_v42 }
 0x5c1   :  { %12160 = vmatpush3.bf16.msra.mxu1 %v12904_v53 }
 0x5c2   :  { %12161 = vmatprep.subr.bf16.mxu1 %v12905_v40 }
 0x5c3   :  { %12481 = vmatpush3.bf16.msra.mxu0 %v12914_v57 }
 0x5c4   :  { %12482 = vmatprep.subr.bf16.mxu0 %v18436_v42 }
 0x5c5   :  { %12162 = vmatpush3.bf16.msra.mxu1 %v12906_v19 }
 0x5c6   :  { %12163 = vmatprep.subr.bf16.mxu1 %v12907_v20 }
 0x5c7   :  { %12483 = vmatpush3.bf16.msra.mxu0 %v12915_v54 }
 0x5c8   :  { %12484 = vmatprep.subr.bf16.mxu0 %v18436_v42 }
 0x5c9   :  { %12164 = vmatpush3.bf16.msra.mxu1 %v12908_v13 }
 0x5cb   :  { %12485 = vmatpush3.bf16.msra.mxu0 %v12916_v59 }
 0x5cc   :  { %10930 = vmatmul.mubr.bf16.vlgmr.msra.gmra.mxu1 %v9752_v55 }
 0x62c   :  { %v12033_v44 = vpop.f32.mrf.mxu1  ;;  %v12055_v0 = vpop.f32.mrf.mxu0 }
 0x62e   :  { %v12034_v26 = vpop.f32.mrf.mxu1  ;;  %v12056_v31 = vpop.f32.mrf.mxu0 }
 0x62f   :  { %v12035_v2 = vadd.f32 %v12034_v26, %v12033_v44  ;;  %v12057_v27 = vadd.f32 %v12056_v31, %v12055_v0 }
 0x630   :  { %v12036_v63 = vpop.f32.mrf.mxu1  ;;  %v12058_v28 = vpop.f32.mrf.mxu0 }
 0x631   :  { %v10692_v9 = vadd.f32 %v12035_v2, %v11799_v52 }
 0x632   :  { %v12037_v36 = vpop.f32.mrf.mxu1  ;;  %v12059_v61 = vpop.f32.mrf.mxu0 }
 0x633   :  { %v10732_v43 = vadd.f32 %v12057_v27, %v10692_v9 }
 0x64c   :  { %v12077_v41 = vpop.f32.mrf.mxu1  ;;  %v12099_v33 = vpop.f32.mrf.mxu0 }
 0x64e   :  { %v12078_v14 = vpop.f32.mrf.mxu1  ;;  %v12100_v5 = vpop.f32.mrf.mxu0 }
 0x64f   :  { %v12079_v22 = vadd.f32 %v12078_v14, %v12077_v41  ;;  %v12101_v12 = vadd.f32 %v12100_v5, %v12099_v33 }
 0x650   :  { %v12080_v47 = vpop.f32.mrf.mxu1  ;;  %v12102_v32 = vpop.f32.mrf.mxu0 }
 0x651   :  { %v10772_v24 = vadd.f32 %v12079_v22, %v10732_v43 }
 0x652   :  { %v12081_v48 = vpop.f32.mrf.mxu1  ;;  %v12103_v60 = vpop.f32.mrf.mxu0 }
 0x653   :  { %v10812_v11 = vadd.f32 %v12101_v12, %v10772_v24 }
 0x66c   :  { %v12121_v15 = vpop.f32.mrf.mxu1 }
 0x66d   :  { %v12143_v51 = vpop.f32.mrf.mxu0 }
 0x66e   :  { %v12122_v62 = vpop.f32.mrf.mxu1 }
 0x66f   :  { %v12144_v45 = vpop.f32.mrf.mxu0  ;;  %v12123_v18 = vadd.f32 %v12122_v62, %v12121_v15 }
 0x670   :  { %v12124_v21 = vpop.f32.mrf.mxu1  ;;  %v12145_v50 = vadd.f32 %v12144_v45, %v12143_v51 }
 0x671   :  { %v12146_v16 = vpop.f32.mrf.mxu0  ;;  %v10852_v8 = vadd.f32 %v12123_v18, %v10812_v11 }
 0x672   :  { %v12125_v56 = vpop.f32.mrf.mxu1 }
 0x673   :  { %v12147_v25 = vpop.f32.mrf.mxu0  ;;  %v10892_v34 = vadd.f32 %v12145_v50, %v10852_v8 }
 0x68c   :  { %v12165_v23 = vpop.f32.mrf.mxu1 }
 0x68e   :  { %v12166_v39 = vpop.f32.mrf.mxu1 }
 0x68f   :  { %v12167_v17 = vadd.f32 %v12166_v39, %v12165_v23 }
 0x690   :  { %v12168_v42 = vpop.f32.mrf.mxu1 }
 0x691   :  { %v10932_v37 = vadd.f32 %v12167_v17, %v10892_v34 }
 0x692   :  { %v12169_v46 = vpop.f32.mrf.mxu1 }
 0x693   :  { %v10937_v35 = vmax.f32 %v10932_v37, 0.0 }
 0x695   :  { %v10938_v49 = vpack.c.bf16 %v10937_v35, %v10937_v35 }
 0x697   :  { %12487 = vmatmul.mubr.bf16.vlgmr.msra.gmra.mxu0 %v10938_v49 }
 0x757   :  { %v11044_v4 = vpop.f32.mrf.mxu0 }
 0x758   :  { %v11045_v38 = vadd.f32 %v11912_v6, %v11044_v4 }
 0x759   :  { %v12488_v58 = vpop.f32.mrf.mxu0 }
 0x75a   :  { %11051 = vst.msk [vmem:[%s17797_s13] sm:$0xff] %vm11050_vm12, %v11045_v38 }
 0x75b   :  { %v11047_v29 = vpop.f32.mrf.mxu0 }
 0x75d   :  { %v12489_v53 = vpop.f32.mrf.mxu0 }

</bundles_post_ra>
